<compile_context>
chip_gen: v6e
topology: v6e:2x2x1
jax: 0.10.0
libtpu: 0.0.40
codegen_flags: <defaults>
</compile_context>

<pallas_src>
import functools

import numpy as np
import jax
import jax.numpy as jnp
from jax.experimental import pallas as pl
from jax.experimental.pallas import tpu as pltpu

PAD_ID = 1  # padding token id (HAN.get_sequence_lens treats token==1 as padding)

# Per-level kernel operands, in a fixed order shared by wrapper and kernel.
_LEVEL_KEYS = ("mask", "wi_f", "wi_b", "bi", "wh", "bh", "wp", "bp",
               "gamma", "beta", "ctxT", "Gm", "GT", "Psum", "Pbr")
_L1_KEYS = _LEVEL_KEYS + ("Ppool", "PpoolR")
_L2_KEYS = _LEVEL_KEYS + ("Ppool",)


# ----------------------------------------------------------------------------
# In-kernel building block: fused BiGRU + mask + Linear + BatchNorm1d(T) + ReLU
# + context attention + softmax-over-time + weighted pooling for one level.
# ----------------------------------------------------------------------------
def _bigru_attn_pool(x, x_rev, p, gsel_ref, stf_ref, stb_ref, *, T, Np, H,
                     pool_ref, pool_rev_ref):
    """x, x_rev: (T*Np, I) values, rows ordered t*Np + n (time-major; x_rev has
    time-reversed row blocks).  Returns (pooled, pooled_rev_or_None)."""
    f32 = jnp.float32
    D = 2 * H

    # Hoisted input-gate projections for BOTH directions and ALL timesteps.
    # Column layout (each block H lanes): [r_f | r_b | z_f | z_b | n_f | n_b].
    # wi_f has zeros in the bwd columns and vice versa, so row block s of gsel
    # already holds fwd gates of time s and bwd gates of time T-1-s: the serial
    # recurrence below does zero gate selection.
    gsel_ref[...] = (jnp.dot(x, p["wi_f"][...], preferred_element_type=f32)
                     + jnp.dot(x_rev, p["wi_b"][...], preferred_element_type=f32)
                     + p["bi"][...])

    wh = p["wh"][...]          # (2H, 6H) block-diagonal over directions
    bh = p["bh"][...]

    # Unrolled bidirectional recurrence: one MXU push per step; states streamed
    # to VMEM slabs (stf indexed by forward time, stb by backward time).
    h = jnp.zeros((Np, D), f32)                      # [h_fwd | h_bwd]
    for s in range(T):
        g = gsel_ref[s * Np:(s + 1) * Np, :]                          # (Np, 6H)
        hg = jnp.dot(h, wh, preferred_element_type=f32) + bh          # (Np, 6H)
        r = jax.nn.sigmoid(g[:, 0:D] + hg[:, 0:D])
        z = jax.nn.sigmoid(g[:, D:2 * D] + hg[:, D:2 * D])
        n = jnp.tanh(g[:, 2 * D:3 * D] + r * hg[:, 2 * D:3 * D])
        h = (1.0 - z) * n + z * h
        stf_ref[s * Np:(s + 1) * Np, :] = h
        stb_ref[(T - 1 - s) * Np:(T - s) * Np, :] = h

    # Per-timestep bidirectional outputs + zero padded steps: ONE slab select.
    # Reuse stf as the masked output slab.
    fwd_lane = jax.lax.broadcasted_iota(jnp.int32, (1, D), 1) < H
    out = jnp.where(fwd_lane, stf_ref[...], stb_ref[...]) * p["mask"][...]
    stf_ref[...] = out

    # Linear projection (single flattened matmul).
    proj = jnp.dot(out, p["wp"][...], preferred_element_type=f32) + p["bp"][...]
    C = proj.shape[1]

    # BatchNorm1d(num_features=T), training-mode batch statistics per timestep
    # over (N, C): row sums on the MXU (ones vector), per-time aggregation /
    # broadcast via the Gm/GT selection matrices (also MXU).
    ones_c = jnp.ones((C, 1), f32)
    Gm = p["Gm"][...]      # (T, T*Np), scaled by 1/(N_real*C), 0 at pad columns
    GT = p["GT"][...]      # (T*Np, T) one-hot time id per row
    mu_rows = jnp.dot(
        GT, jnp.dot(Gm, jnp.dot(proj, ones_c, preferred_element_type=f32),
                    preferred_element_type=f32),
        preferred_element_type=f32)                                   # (T*Np, 1)
    diff = proj - mu_rows
    var_t = jnp.dot(Gm, jnp.dot(diff * diff, ones_c, preferred_element_type=f32),
                    preferred_element_type=f32)                       # (T, 1)
    scale_rows = jnp.dot(GT, p["gamma"][...] * jax.lax.rsqrt(var_t + 1e-5),
                         preferred_element_type=f32)
    shift_rows = jnp.dot(GT, p["beta"][...], preferred_element_type=f32)
    act = jnp.maximum(diff * scale_rows + shift_rows, 0.0)            # (T*Np, C)

    # Context attention: all logits via one matmul; softmax over time per
    # sequence (padded steps keep their bias-only logits, matching the module).
    logits = jnp.dot(act, p["ctxT"][...], preferred_element_type=f32)  # (T*Np,1)
    e = jnp.exp(logits - jnp.max(logits, axis=0, keepdims=True))
    denom = jnp.dot(p["Psum"][...], e, preferred_element_type=f32)     # (Np, 1)
    inv = pl.reciprocal(denom, approx=True)
    att = e * jnp.dot(p["Pbr"][...], inv, preferred_element_type=f32)  # (T*Np,1)

    # Attention-weighted pooling (and the time-reversed copy for the next
    # level's hoisted backward gates) as selection-matrix matmuls.
    weighted = stf_ref[...] * att                                      # (T*Np,D)
    pooled = jnp.dot(pool_ref[...], weighted, preferred_element_type=f32)
    if pool_rev_ref is None:
        return pooled, None
    return pooled, jnp.dot(pool_rev_ref[...], weighted, preferred_element_type=f32)


# ----------------------------------------------------------------------------
# Single fused kernel for the whole HAN forward.
# ----------------------------------------------------------------------------
def _han_kernel(*refs, L, S, Hw, Hs, N1p, N2p):
    it = iter(refs)
    x1_ref = next(it)
    x1r_ref = next(it)
    l1 = {k: next(it) for k in _L1_KEYS}
    l2 = {k: next(it) for k in _L2_KEYS}
    wfc_ref = next(it)
    bfc_ref = next(it)
    out_ref = next(it)
    g1, sf1, sb1, g2, sf2, sb2 = (next(it) for _ in range(6))

    # Level 1: words -> sentence vectors.  The pooling matrices already place the
    # results (and their sentence-reversed copy) in the sentence level's padded
    # time-major row layout, so there is no transpose / HBM round trip between
    # the two levels.
    x2, x2r = _bigru_attn_pool(x1_ref[...], x1r_ref[...], l1, g1, sf1, sb1,
                               T=L, Np=N1p, H=Hw,
                               pool_ref=l1["Ppool"], pool_rev_ref=l1["PpoolR"])

    # Level 2: sentences -> document vector.
    doc, _ = _bigru_attn_pool(x2, x2r, l2, g2, sf2, sb2,
                              T=S, Np=N2p, H=Hs,
                              pool_ref=l2["Ppool"], pool_rev_ref=None)

    # Final classifier (fused epilogue).
    out_ref[...] = (jnp.dot(doc, wfc_ref[...], preferred_element_type=jnp.float32)
                    + bfc_ref[...]).astype(out_ref.dtype)


# ----------------------------------------------------------------------------
# Host-side glue: parameter packing, masks, selection matrices.
# ----------------------------------------------------------------------------
def _pad8(n):
    return ((n + 7) // 8) * 8


def _trailing_valid_len(valid):
    """Length up to (and including) the last valid element; 0 if none are valid.
    Matches HAN.get_sequence_lens / get_num_sentences_lens."""
    n = valid.shape[-1]
    idx = jnp.arange(1, n + 1, dtype=jnp.int32)
    return jnp.max(jnp.where(valid, idx, 0), axis=-1).astype(jnp.int32)


def _pack_bigru(pf, pb):
    """Pack per-gate GRU weights into the kernel's column layout.
    wi_f/wi_b are column-masked so the two hoisted matmuls (natural + reversed
    input) produce the per-step gate slab directly."""
    H = pf["whr"].shape[0]
    I = pf["wir"].shape[0]
    zi = jnp.zeros((I, H), jnp.float32)
    zh = jnp.zeros((H, H), jnp.float32)
    wi_f = jnp.concatenate([pf["wir"], zi, pf["wiz"], zi, pf["win"], zi], axis=1)
    wi_b = jnp.concatenate([zi, pb["wir"], zi, pb["wiz"], zi, pb["win"]], axis=1)
    bi = jnp.concatenate([pf["bir"], pb["bir"], pf["biz"], pb["biz"],
                          pf["bin"], pb["bin"]], axis=1)
    wh_f = jnp.concatenate([pf["whr"], zh, pf["whz"], zh, pf["whn"], zh], axis=1)
    wh_b = jnp.concatenate([zh, pb["whr"], zh, pb["whz"], zh, pb["whn"]], axis=1)
    wh = jnp.concatenate([wh_f, wh_b], axis=0)
    bh = jnp.concatenate([pf["bhr"], pb["bhr"], pf["bhz"], pb["bhz"],
                          pf["bhn"], pb["bhn"]], axis=1)
    return wi_f, wi_b, bi, wh, bh


def _time_sample_mats(T, n_real, Np, C):
    """0/1 selection matrices: per-time BN stats (Gm/GT, dummy pad rows excluded
    and scaled by 1/(N_real*C)) and per-sample softmax sum/broadcast (Psum/Pbr)."""
    tn = T * Np
    gm = np.zeros((T, tn), np.float32)
    gt = np.zeros((tn, T), np.float32)
    ps = np.zeros((Np, tn), np.float32)
    for t in range(T):
        for j in range(Np):
            r = t * Np + j
            gt[r, t] = 1.0
            ps[j, r] = 1.0
            if j < n_real:
                gm[t, r] = 1.0 / float(n_real * C)
    return (jnp.asarray(gm), jnp.asarray(gt), jnp.asarray(ps),
            jnp.asarray(np.ascontiguousarray(ps.T)))


def _word_pool_mats(L, S, B, N1p, N2p):
    """Pooling matrices mapping word-level weighted rows directly into the
    sentence level's padded layout (natural and sentence-reversed order)."""
    p = np.zeros((S * N2p, L * N1p), np.float32)
    pr = np.zeros((S * N2p, L * N1p), np.float32)
    for s in range(S):
        for b in range(B):
            for t in range(L):
                p[s * N2p + b, t * N1p + s * B + b] = 1.0
                pr[s * N2p + b, t * N1p + (S - 1 - s) * B + b] = 1.0
    return jnp.asarray(p), jnp.asarray(pr)


def _sent_pool_mat(S, B, N2p):
    p = np.zeros((B, S * N2p), np.float32)
    for b in range(B):
        for s in range(S):
            p[b, s * N2p + b] = 1.0
    return jnp.asarray(p)


def _level_arrays(lp, mask, T, n_real, Np):
    wi_f, wi_b, bi, wh, bh = _pack_bigru(lp["fwd"], lp["bwd"])
    C = lp["wp"].shape[1]
    gm, gt, psum, pbr = _time_sample_mats(T, n_real, Np, C)
    return {
        "mask": mask,
        "wi_f": wi_f, "wi_b": wi_b, "bi": bi, "wh": wh, "bh": bh,
        "wp": lp["wp"], "bp": lp["bp"],
        "gamma": lp["gamma"].reshape(-1, 1), "beta": lp["beta"].reshape(-1, 1),
        "ctxT": lp["ctx"].reshape(-1, 1),
        "Gm": gm, "GT": gt, "Psum": psum, "Pbr": pbr,
    }


@jax.jit
def han_forward(tokens, params):
    """tokens: [batch, num_sentences, sequence_length] int32 -> [batch, num_class]."""
    B, S, L = tokens.shape
    Hw = params["word"]["fwd"]["whr"].shape[0]
    Hs = params["sent"]["fwd"]["whr"].shape[0]
    num_class = params["wfc"].shape[1]
    N1, N2 = S * B, B
    N1p, N2p = _pad8(N1), _pad8(N2)

    nonpad = tokens != PAD_ID
    wlens = _trailing_valid_len(nonpad)                              # (B, S)
    slens = _trailing_valid_len(jnp.any(nonpad, axis=-1))            # (B,)

    # Word-level input slab, time-major row = l*N1p + (s*B + b); the reversed
    # copy feeds the hoisted backward-direction gate matmul.
    tok_lj = jnp.transpose(tokens, (2, 1, 0)).reshape(L, N1)
    tok_lj = jnp.pad(tok_lj, ((0, 0), (0, N1p - N1)), constant_values=PAD_ID)
    x1 = jnp.take(params["embedding"], tok_lj, axis=0)               # (L, N1p, E)
    x1_flat = x1.reshape(L * N1p, -1)
    x1r_flat = x1[::-1].reshape(L * N1p, -1)

    # Precomputed length masks (hoisted out of the kernel).
    wlens_j = jnp.pad(wlens.T.reshape(N1), (0, N1p - N1))
    mask1 = (jnp.arange(L, dtype=jnp.int32)[:, None]
             < wlens_j[None, :]).astype(jnp.float32).reshape(L * N1p, 1)
    slens_p = jnp.pad(slens, (0, N2p - N2))
    mask2 = (jnp.arange(S, dtype=jnp.int32)[:, None]
             < slens_p[None, :]).astype(jnp.float32).reshape(S * N2p, 1)

    l1 = _level_arrays(params["word"], mask1, L, N1, N1p)
    l1["Ppool"], l1["PpoolR"] = _word_pool_mats(L, S, B, N1p, N2p)
    l2 = _level_arrays(params["sent"], mask2, S, N2, N2p)
    l2["Ppool"] = _sent_pool_mat(S, B, N2p)

    args = ([x1_flat, x1r_flat]
            + [l1[k] for k in _L1_KEYS]
            + [l2[k] for k in _L2_KEYS]
            + [params["wfc"], params["bfc"]])

    kernel = functools.partial(_han_kernel, L=L, S=S, Hw=Hw, Hs=Hs,
                               N1p=N1p, N2p=N2p)
    in_specs = [pl.BlockSpec(a.shape, lambda i, n=a.ndim: (0,) * n) for a in args]
    scratch = [
        pltpu.VMEM((L * N1p, 6 * Hw), jnp.float32),   # word gate slab
        pltpu.VMEM((L * N1p, 2 * Hw), jnp.float32),   # word fwd-time states / out
        pltpu.VMEM((L * N1p, 2 * Hw), jnp.float32),   # word bwd-time states
        pltpu.VMEM((S * N2p, 6 * Hs), jnp.float32),   # sentence gate slab
        pltpu.VMEM((S * N2p, 2 * Hs), jnp.float32),
        pltpu.VMEM((S * N2p, 2 * Hs), jnp.float32),
    ]

    return pl.pallas_call(
        kernel,
        out_shape=jax.ShapeDtypeStruct((B, num_class), jnp.float32),
        grid_spec=pltpu.PrefetchScalarGridSpec(
            num_scalar_prefetch=0,
            grid=(1,),   # single fused invocation; recurrences unrolled in-kernel
            in_specs=in_specs,
            out_specs=pl.BlockSpec((B, num_class), lambda i: (0, 0)),
            scratch_shapes=scratch,
        ),
        compiler_params=pltpu.CompilerParams(
            dimension_semantics=("arbitrary",)),
    )(*args)


# ----------------------------------------------------------------------------
# Pure-JAX reference (same math) for a correctness check.
# ----------------------------------------------------------------------------
def _gru_bidir_ref(x_btd, pf, pb):
    x_tbi = jnp.transpose(x_btd, (1, 0, 2))

    def run(p, xs):
        def step(h, x_t):
            r = jax.nn.sigmoid(x_t @ p["wir"] + p["bir"] + h @ p["whr"] + p["bhr"])
            z = jax.nn.sigmoid(x_t @ p["wiz"] + p["biz"] + h @ p["whz"] + p["bhz"])
            n = jnp.tanh(x_t @ p["win"] + p["bin"] + r * (h @ p["whn"] + p["bhn"]))
            h_new = (1.0 - z) * n + z * h
            return h_new, h_new

        h0 = jnp.zeros((xs.shape[1], p["whr"].shape[0]), jnp.float32)
        _, out = jax.lax.scan(step, h0, xs)
        return out

    out_f = run(pf, x_tbi)
    out_b = run(pb, x_tbi[::-1])[::-1]
    return jnp.transpose(jnp.concatenate([out_f, out_b], axis=-1), (1, 0, 2))


def _level_ref(x_btd, lens, lp):
    g = _gru_bidir_ref(x_btd, lp["fwd"], lp["bwd"])                   # (N, T, 2H)
    N, T, _ = g.shape
    mask = (jnp.arange(T, dtype=jnp.int32)[None, :, None]
            < lens[:, None, None]).astype(jnp.float32)
    out = g * mask
    proj = jnp.einsum("ntd,dc->ntc", out, lp["wp"]) + lp["bp"]
    mean = proj.mean(axis=(0, 2), keepdims=True)
    var = ((proj - mean) ** 2).mean(axis=(0, 2), keepdims=True)
    act = jnp.maximum((proj - mean) * jax.lax.rsqrt(var + 1e-5)
                      * lp["gamma"].reshape(1, T, 1) + lp["beta"].reshape(1, T, 1), 0.0)
    logits = jnp.sum(act * lp["ctx"].reshape(1, 1, -1), axis=-1, keepdims=True)
    att = jax.nn.softmax(logits, axis=1)
    return jnp.sum(out * att, axis=1)


@jax.jit
def han_forward_ref(tokens, params):
    B, S, L = tokens.shape
    nonpad = tokens != PAD_ID
    wlens = _trailing_valid_len(nonpad).reshape(B * S)
    slens = _trailing_valid_len(jnp.any(nonpad, axis=-1))
    emb = jnp.take(params["embedding"], tokens.reshape(B * S, L), axis=0)
    sent = _level_ref(emb, wlens, params["word"])                     # (B*S, 2Hw)
    x2 = sent.reshape(B, S, sent.shape[-1])
    doc = _level_ref(x2, slens, params["sent"])                       # (B, 2Hs)
    return doc @ params["wfc"] + params["bfc"]


# ----------------------------------------------------------------------------
# Deterministic parameter init (shapes from the module's __init__).
# ----------------------------------------------------------------------------
def _uniform(key, shape):
    return jax.random.uniform(key, shape, jnp.float32, -0.1, 0.1)


def _init_gru_dir(key, in_dim, hidden):
    ks = jax.random.split(key, 12)
    names = ["wir", "wiz", "win", "whr", "whz", "whn",
             "bir", "biz", "bin", "bhr", "bhz", "bhn"]
    shapes = ([(in_dim, hidden)] * 3 + [(hidden, hidden)] * 3 + [(1, hidden)] * 6)
    return {n: _uniform(k, s) for n, k, s in zip(names, ks, shapes)}


def _init_level(key, in_dim, hidden, ctx_size, num_steps):
    kf, kb, kw, kbp, kc = jax.random.split(key, 5)
    return {
        "fwd": _init_gru_dir(kf, in_dim, hidden),
        "bwd": _init_gru_dir(kb, in_dim, hidden),
        "wp": _uniform(kw, (2 * hidden, ctx_size)),        # Linear weight^T
        "bp": _uniform(kbp, (1, ctx_size)),                # Linear bias
        "gamma": jnp.ones((1, num_steps), jnp.float32),    # BatchNorm1d weight
        "beta": jnp.zeros((1, num_steps), jnp.float32),    # BatchNorm1d bias
        "ctx": _uniform(kc, (1, ctx_size)),                # context (C,1) -> (1,C)
    }


def init_params(key, *, vocab, emb, word_hidden, word_ctx, sent_hidden, sent_ctx,
                num_sentences, seq_len, num_class):
    ke, kw, ks, kf1, kf2 = jax.random.split(key, 5)
    return {
        "embedding": _uniform(ke, (vocab, emb)),
        "word": _init_level(kw, emb, word_hidden, word_ctx, seq_len),
        "sent": _init_level(ks, 2 * word_hidden, sent_hidden, sent_ctx, num_sentences),
        "wfc": _uniform(kf1, (2 * sent_hidden, num_class)),
        "bfc": _uniform(kf2, (1, num_class)),
    }


if __name__ == "__main__":
    # config: batch=2, num_sentences=8, sequence_length=16, vocab=50, embedding=32,
    #         word_hidden=16, word_context=32, sentence_hidden=16, sentence_context=32,
    #         num_class=4
    B, S, L = 2, 8, 16
    VOCAB, EMB = 50, 32
    HW, CW = 16, 32
    HS, CS = 16, 32
    NUM_CLASS = 4

    key = jax.random.PRNGKey(0)
    kp, kt, kc = jax.random.split(key, 3)
    params = init_params(kp, vocab=VOCAB, emb=EMB, word_hidden=HW, word_ctx=CW,
                         sent_hidden=HS, sent_ctx=CS, num_sentences=S, seq_len=L,
                         num_class=NUM_CLASS)

    # Token tensor with realistic trailing padding (token id 1): document 0 has 5
    # valid sentences, document 1 has 8; each valid sentence has 3..16 words.
    tokens = jax.random.randint(kt, (B, S, L), 2, VOCAB, dtype=jnp.int32)
    sent_counts = jnp.array([5, 8], dtype=jnp.int32)
    word_counts = jax.random.randint(kc, (B, S), 3, L + 1, dtype=jnp.int32)
    word_counts = jnp.where(jnp.arange(S)[None, :] < sent_counts[:, None],
                            word_counts, 0)
    word_mask = jnp.arange(L)[None, None, :] < word_counts[:, :, None]
    tokens = jnp.where(word_mask, tokens, PAD_ID)

    logits = jax.block_until_ready(han_forward(tokens, params))
    ref = jax.block_until_ready(han_forward_ref(tokens, params))

    assert logits.shape == (B, NUM_CLASS), logits.shape
    max_err = float(jnp.max(jnp.abs(logits - ref)))
    # Tolerance slightly relaxed vs. the exact-arithmetic version because the
    # softmax denominator now uses pl.reciprocal(approx=True).
    assert bool(jnp.allclose(logits, ref, atol=2e-3, rtol=2e-3)), (
        f"mismatch vs reference (max abs err {max_err})")
    print("KERNEL_OK")
</pallas_src>

<mosaic_0001>
module attributes {stable_mosaic.version = 11 : i64} {
  func.func @_han_kernel(%arg0: i32, %arg1: memref<256x32xf32, #tpu.memory_space<vmem>>, %arg2: memref<256x32xf32, #tpu.memory_space<vmem>>, %arg3: memref<256x1xf32, #tpu.memory_space<vmem>>, %arg4: memref<32x96xf32, #tpu.memory_space<vmem>>, %arg5: memref<32x96xf32, #tpu.memory_space<vmem>>, %arg6: memref<1x96xf32, #tpu.memory_space<vmem>>, %arg7: memref<32x96xf32, #tpu.memory_space<vmem>>, %arg8: memref<1x96xf32, #tpu.memory_space<vmem>>, %arg9: memref<32x32xf32, #tpu.memory_space<vmem>>, %arg10: memref<1x32xf32, #tpu.memory_space<vmem>>, %arg11: memref<16x1xf32, #tpu.memory_space<vmem>>, %arg12: memref<16x1xf32, #tpu.memory_space<vmem>>, %arg13: memref<32x1xf32, #tpu.memory_space<vmem>>, %arg14: memref<16x256xf32, #tpu.memory_space<vmem>>, %arg15: memref<256x16xf32, #tpu.memory_space<vmem>>, %arg16: memref<16x256xf32, #tpu.memory_space<vmem>>, %arg17: memref<256x16xf32, #tpu.memory_space<vmem>>, %arg18: memref<64x256xf32, #tpu.memory_space<vmem>>, %arg19: memref<64x256xf32, #tpu.memory_space<vmem>>, %arg20: memref<64x1xf32, #tpu.memory_space<vmem>>, %arg21: memref<32x96xf32, #tpu.memory_space<vmem>>, %arg22: memref<32x96xf32, #tpu.memory_space<vmem>>, %arg23: memref<1x96xf32, #tpu.memory_space<vmem>>, %arg24: memref<32x96xf32, #tpu.memory_space<vmem>>, %arg25: memref<1x96xf32, #tpu.memory_space<vmem>>, %arg26: memref<32x32xf32, #tpu.memory_space<vmem>>, %arg27: memref<1x32xf32, #tpu.memory_space<vmem>>, %arg28: memref<8x1xf32, #tpu.memory_space<vmem>>, %arg29: memref<8x1xf32, #tpu.memory_space<vmem>>, %arg30: memref<32x1xf32, #tpu.memory_space<vmem>>, %arg31: memref<8x64xf32, #tpu.memory_space<vmem>>, %arg32: memref<64x8xf32, #tpu.memory_space<vmem>>, %arg33: memref<8x64xf32, #tpu.memory_space<vmem>>, %arg34: memref<64x8xf32, #tpu.memory_space<vmem>>, %arg35: memref<2x64xf32, #tpu.memory_space<vmem>>, %arg36: memref<32x4xf32, #tpu.memory_space<vmem>>, %arg37: memref<1x4xf32, #tpu.memory_space<vmem>>, %arg38: memref<2x4xf32, #tpu.memory_space<vmem>>, %arg39: memref<256x96xf32, #tpu.memory_space<vmem>>, %arg40: memref<256x32xf32, #tpu.memory_space<vmem>>, %arg41: memref<256x32xf32, #tpu.memory_space<vmem>>, %arg42: memref<64x96xf32, #tpu.memory_space<vmem>>, %arg43: memref<64x32xf32, #tpu.memory_space<vmem>>, %arg44: memref<64x32xf32, #tpu.memory_space<vmem>>) attributes {dimension_semantics = [#tpu.dimension_semantics<arbitrary>], iteration_bounds = array<i64: 1>, scalar_prefetch = 0 : i64, scratch_operands = 6 : i64, tpu.core_type = #tpu.core_type<tc>, window_params = [{pipeline_mode = #tpu.pipeline_mode<synchronous>, transform_indices = @transform_0, window_bounds = array<i64: 256, 32>}, {pipeline_mode = #tpu.pipeline_mode<synchronous>, transform_indices = @transform_1, window_bounds = array<i64: 256, 32>}, {pipeline_mode = #tpu.pipeline_mode<synchronous>, transform_indices = @transform_2, window_bounds = array<i64: 256, 1>}, {pipeline_mode = #tpu.pipeline_mode<synchronous>, transform_indices = @transform_3, window_bounds = array<i64: 32, 96>}, {pipeline_mode = #tpu.pipeline_mode<synchronous>, transform_indices = @transform_4, window_bounds = array<i64: 32, 96>}, {pipeline_mode = #tpu.pipeline_mode<synchronous>, transform_indices = @transform_5, window_bounds = array<i64: 1, 96>}, {pipeline_mode = #tpu.pipeline_mode<synchronous>, transform_indices = @transform_6, window_bounds = array<i64: 32, 96>}, {pipeline_mode = #tpu.pipeline_mode<synchronous>, transform_indices = @transform_7, window_bounds = array<i64: 1, 96>}, {pipeline_mode = #tpu.pipeline_mode<synchronous>, transform_indices = @transform_8, window_bounds = array<i64: 32, 32>}, {pipeline_mode = #tpu.pipeline_mode<synchronous>, transform_indices = @transform_9, window_bounds = array<i64: 1, 32>}, {pipeline_mode = #tpu.pipeline_mode<synchronous>, transform_indices = @transform_10, window_bounds = array<i64: 16, 1>}, {pipeline_mode = #tpu.pipeline_mode<synchronous>, transform_indices = @transform_11, window_bounds = array<i64: 16, 1>}, {pipeline_mode = #tpu.pipeline_mode<synchronous>, transform_indices = @transform_12, window_bounds = array<i64: 32, 1>}, {pipeline_mode = #tpu.pipeline_mode<synchronous>, transform_indices = @transform_13, window_bounds = array<i64: 16, 256>}, {pipeline_mode = #tpu.pipeline_mode<synchronous>, transform_indices = @transform_14, window_bounds = array<i64: 256, 16>}, {pipeline_mode = #tpu.pipeline_mode<synchronous>, transform_indices = @transform_15, window_bounds = array<i64: 16, 256>}, {pipeline_mode = #tpu.pipeline_mode<synchronous>, transform_indices = @transform_16, window_bounds = array<i64: 256, 16>}, {pipeline_mode = #tpu.pipeline_mode<synchronous>, transform_indices = @transform_17, window_bounds = array<i64: 64, 256>}, {pipeline_mode = #tpu.pipeline_mode<synchronous>, transform_indices = @transform_18, window_bounds = array<i64: 64, 256>}, {pipeline_mode = #tpu.pipeline_mode<synchronous>, transform_indices = @transform_19, window_bounds = array<i64: 64, 1>}, {pipeline_mode = #tpu.pipeline_mode<synchronous>, transform_indices = @transform_20, window_bounds = array<i64: 32, 96>}, {pipeline_mode = #tpu.pipeline_mode<synchronous>, transform_indices = @transform_21, window_bounds = array<i64: 32, 96>}, {pipeline_mode = #tpu.pipeline_mode<synchronous>, transform_indices = @transform_22, window_bounds = array<i64: 1, 96>}, {pipeline_mode = #tpu.pipeline_mode<synchronous>, transform_indices = @transform_23, window_bounds = array<i64: 32, 96>}, {pipeline_mode = #tpu.pipeline_mode<synchronous>, transform_indices = @transform_24, window_bounds = array<i64: 1, 96>}, {pipeline_mode = #tpu.pipeline_mode<synchronous>, transform_indices = @transform_25, window_bounds = array<i64: 32, 32>}, {pipeline_mode = #tpu.pipeline_mode<synchronous>, transform_indices = @transform_26, window_bounds = array<i64: 1, 32>}, {pipeline_mode = #tpu.pipeline_mode<synchronous>, transform_indices = @transform_27, window_bounds = array<i64: 8, 1>}, {pipeline_mode = #tpu.pipeline_mode<synchronous>, transform_indices = @transform_28, window_bounds = array<i64: 8, 1>}, {pipeline_mode = #tpu.pipeline_mode<synchronous>, transform_indices = @transform_29, window_bounds = array<i64: 32, 1>}, {pipeline_mode = #tpu.pipeline_mode<synchronous>, transform_indices = @transform_30, window_bounds = array<i64: 8, 64>}, {pipeline_mode = #tpu.pipeline_mode<synchronous>, transform_indices = @transform_31, window_bounds = array<i64: 64, 8>}, {pipeline_mode = #tpu.pipeline_mode<synchronous>, transform_indices = @transform_32, window_bounds = array<i64: 8, 64>}, {pipeline_mode = #tpu.pipeline_mode<synchronous>, transform_indices = @transform_33, window_bounds = array<i64: 64, 8>}, {pipeline_mode = #tpu.pipeline_mode<synchronous>, transform_indices = @transform_34, window_bounds = array<i64: 2, 64>}, {pipeline_mode = #tpu.pipeline_mode<synchronous>, transform_indices = @transform_35, window_bounds = array<i64: 32, 4>}, {pipeline_mode = #tpu.pipeline_mode<synchronous>, transform_indices = @transform_36, window_bounds = array<i64: 1, 4>}, {pipeline_mode = #tpu.pipeline_mode<synchronous>, transform_indices = @transform_37, window_bounds = array<i64: 2, 4>}]} {
    %c0 = arith.constant 0 : index
    %c0_0 = arith.constant 0 : index
    %0 = vector.load %arg1[%c0, %c0_0] : memref<256x32xf32, #tpu.memory_space<vmem>>, vector<256x32xf32>
    %c0_1 = arith.constant 0 : index
    %c0_2 = arith.constant 0 : index
    %1 = vector.load %arg2[%c0_1, %c0_2] : memref<256x32xf32, #tpu.memory_space<vmem>>, vector<256x32xf32>
    %c0_3 = arith.constant 0 : index
    %c0_4 = arith.constant 0 : index
    %2 = vector.load %arg4[%c0_3, %c0_4] : memref<32x96xf32, #tpu.memory_space<vmem>>, vector<32x96xf32>
    %cst = arith.constant dense<0.000000e+00> : vector<256x96xf32>
    %3 = tpu.matmul %0, %2, %cst {dimension_numbers = #tpu.dot_dimension_numbers<[1], [0], [0], [1], [0, 0, 1, 1], [], []>} : vector<256x32xf32>, vector<32x96xf32>, vector<256x96xf32> -> vector<256x96xf32>
    %c0_5 = arith.constant 0 : index
    %c0_6 = arith.constant 0 : index
    %4 = vector.load %arg5[%c0_5, %c0_6] : memref<32x96xf32, #tpu.memory_space<vmem>>, vector<32x96xf32>
    %cst_7 = arith.constant dense<0.000000e+00> : vector<256x96xf32>
    %5 = tpu.matmul %1, %4, %cst_7 {dimension_numbers = #tpu.dot_dimension_numbers<[1], [0], [0], [1], [0, 0, 1, 1], [], []>} : vector<256x32xf32>, vector<32x96xf32>, vector<256x96xf32> -> vector<256x96xf32>
    %6 = arith.addf %3, %5 : vector<256x96xf32>
    %c0_8 = arith.constant 0 : index
    %c0_9 = arith.constant 0 : index
    %7 = vector.load %arg6[%c0_8, %c0_9] : memref<1x96xf32, #tpu.memory_space<vmem>>, vector<1x96xf32>
    %8 = vector.broadcast %7 : vector<1x96xf32> to vector<256x96xf32>
    %9 = arith.addf %6, %8 : vector<256x96xf32>
    %c0_10 = arith.constant 0 : index
    %c0_11 = arith.constant 0 : index
    %10 = vector.load %arg39[%c0_10, %c0_11] : memref<256x96xf32, #tpu.memory_space<vmem>>, vector<256x96xf32>
    tpu.vector_store %arg39[%c0_10, %c0_11], %9 {strides = array<i32>} : memref<256x96xf32, #tpu.memory_space<vmem>>, vector<256x96xf32>,
    %c0_12 = arith.constant 0 : index
    %c0_13 = arith.constant 0 : index
    %11 = vector.load %arg7[%c0_12, %c0_13] : memref<32x96xf32, #tpu.memory_space<vmem>>, vector<32x96xf32>
    %c0_14 = arith.constant 0 : index
    %c0_15 = arith.constant 0 : index
    %12 = vector.load %arg8[%c0_14, %c0_15] : memref<1x96xf32, #tpu.memory_space<vmem>>, vector<1x96xf32>
    %cst_16 = arith.constant 0.000000e+00 : f32
    %13 = vector.broadcast %cst_16 : f32 to vector<16x32xf32>
    %c0_17 = arith.constant 0 : index
    %c0_18 = arith.constant 0 : index
    %14 = vector.load %arg39[%c0_17, %c0_18] : memref<256x96xf32, #tpu.memory_space<vmem>>, vector<16x96xf32>
    %cst_19 = arith.constant dense<0.000000e+00> : vector<16x96xf32>
    %15 = tpu.matmul %13, %11, %cst_19 {dimension_numbers = #tpu.dot_dimension_numbers<[1], [0], [0], [1], [0, 0, 1, 1], [], []>} : vector<16x32xf32>, vector<32x96xf32>, vector<16x96xf32> -> vector<16x96xf32>
    %16 = vector.broadcast %12 : vector<1x96xf32> to vector<16x96xf32>
    %17 = arith.addf %15, %16 : vector<16x96xf32>
    %18 = vector.extract_strided_slice %14 {offsets = [0, 0], sizes = [16, 32], strides = [1, 1]} : vector<16x96xf32> to vector<16x32xf32>
    %19 = vector.extract_strided_slice %17 {offsets = [0, 0], sizes = [16, 32], strides = [1, 1]} : vector<16x96xf32> to vector<16x32xf32>
    %20 = arith.addf %18, %19 : vector<16x32xf32>
    %21 = arith.negf %20 : vector<16x32xf32>
    %22 = math.exp %21 : vector<16x32xf32>
    %cst_20 = arith.constant 1.000000e+00 : f32
    %23 = vector.broadcast %cst_20 : f32 to vector<16x32xf32>
    %24 = arith.addf %23, %22 : vector<16x32xf32>
    %25 = arith.divf %23, %24 : vector<16x32xf32>
    %26 = vector.extract_strided_slice %14 {offsets = [0, 32], sizes = [16, 32], strides = [1, 1]} : vector<16x96xf32> to vector<16x32xf32>
    %27 = vector.extract_strided_slice %17 {offsets = [0, 32], sizes = [16, 32], strides = [1, 1]} : vector<16x96xf32> to vector<16x32xf32>
    %28 = arith.addf %26, %27 : vector<16x32xf32>
    %29 = arith.negf %28 : vector<16x32xf32>
    %30 = math.exp %29 : vector<16x32xf32>
    %cst_21 = arith.constant 1.000000e+00 : f32
    %31 = vector.broadcast %cst_21 : f32 to vector<16x32xf32>
    %32 = arith.addf %31, %30 : vector<16x32xf32>
    %33 = arith.divf %31, %32 : vector<16x32xf32>
    %34 = vector.extract_strided_slice %14 {offsets = [0, 64], sizes = [16, 32], strides = [1, 1]} : vector<16x96xf32> to vector<16x32xf32>
    %35 = vector.extract_strided_slice %17 {offsets = [0, 64], sizes = [16, 32], strides = [1, 1]} : vector<16x96xf32> to vector<16x32xf32>
    %36 = arith.mulf %25, %35 : vector<16x32xf32>
    %37 = arith.addf %34, %36 : vector<16x32xf32>
    %38 = math.tanh %37 : vector<16x32xf32>
    %cst_22 = arith.constant 1.000000e+00 : f32
    %39 = vector.broadcast %cst_22 : f32 to vector<16x32xf32>
    %40 = arith.subf %39, %33 : vector<16x32xf32>
    %41 = arith.mulf %40, %38 : vector<16x32xf32>
    %42 = arith.mulf %33, %13 : vector<16x32xf32>
    %43 = arith.addf %41, %42 : vector<16x32xf32>
    %c0_23 = arith.constant 0 : index
    %c0_24 = arith.constant 0 : index
    %44 = vector.load %arg40[%c0_23, %c0_24] : memref<256x32xf32, #tpu.memory_space<vmem>>, vector<16x32xf32>
    tpu.vector_store %arg40[%c0_23, %c0_24], %43 {strides = array<i32>} : memref<256x32xf32, #tpu.memory_space<vmem>>, vector<16x32xf32>,
    %c240 = arith.constant 240 : index
    %c0_25 = arith.constant 0 : index
    %45 = vector.load %arg41[%c240, %c0_25] : memref<256x32xf32, #tpu.memory_space<vmem>>, vector<16x32xf32>
    tpu.vector_store %arg41[%c240, %c0_25], %43 {strides = array<i32>} : memref<256x32xf32, #tpu.memory_space<vmem>>, vector<16x32xf32>,
    %c16 = arith.constant 16 : index
    %c0_26 = arith.constant 0 : index
    %46 = vector.load %arg39[%c16, %c0_26] : memref<256x96xf32, #tpu.memory_space<vmem>>, vector<16x96xf32>
    %cst_27 = arith.constant dense<0.000000e+00> : vector<16x96xf32>
    %47 = tpu.matmul %43, %11, %cst_27 {dimension_numbers = #tpu.dot_dimension_numbers<[1], [0], [0], [1], [0, 0, 1, 1], [], []>} : vector<16x32xf32>, vector<32x96xf32>, vector<16x96xf32> -> vector<16x96xf32>
    %48 = vector.broadcast %12 : vector<1x96xf32> to vector<16x96xf32>
    %49 = arith.addf %47, %48 : vector<16x96xf32>
    %50 = vector.extract_strided_slice %46 {offsets = [0, 0], sizes = [16, 32], strides = [1, 1]} : vector<16x96xf32> to vector<16x32xf32>
    %51 = vector.extract_strided_slice %49 {offsets = [0, 0], sizes = [16, 32], strides = [1, 1]} : vector<16x96xf32> to vector<16x32xf32>
    %52 = arith.addf %50, %51 : vector<16x32xf32>
    %53 = arith.negf %52 : vector<16x32xf32>
    %54 = math.exp %53 : vector<16x32xf32>
    %cst_28 = arith.constant 1.000000e+00 : f32
    %55 = vector.broadcast %cst_28 : f32 to vector<16x32xf32>
    %56 = arith.addf %55, %54 : vector<16x32xf32>
    %57 = arith.divf %55, %56 : vector<16x32xf32>
    %58 = vector.extract_strided_slice %46 {offsets = [0, 32], sizes = [16, 32], strides = [1, 1]} : vector<16x96xf32> to vector<16x32xf32>
    %59 = vector.extract_strided_slice %49 {offsets = [0, 32], sizes = [16, 32], strides = [1, 1]} : vector<16x96xf32> to vector<16x32xf32>
    %60 = arith.addf %58, %59 : vector<16x32xf32>
    %61 = arith.negf %60 : vector<16x32xf32>
    %62 = math.exp %61 : vector<16x32xf32>
    %cst_29 = arith.constant 1.000000e+00 : f32
    %63 = vector.broadcast %cst_29 : f32 to vector<16x32xf32>
    %64 = arith.addf %63, %62 : vector<16x32xf32>
    %65 = arith.divf %63, %64 : vector<16x32xf32>
    %66 = vector.extract_strided_slice %46 {offsets = [0, 64], sizes = [16, 32], strides = [1, 1]} : vector<16x96xf32> to vector<16x32xf32>
    %67 = vector.extract_strided_slice %49 {offsets = [0, 64], sizes = [16, 32], strides = [1, 1]} : vector<16x96xf32> to vector<16x32xf32>
    %68 = arith.mulf %57, %67 : vector<16x32xf32>
    %69 = arith.addf %66, %68 : vector<16x32xf32>
    %70 = math.tanh %69 : vector<16x32xf32>
    %cst_30 = arith.constant 1.000000e+00 : f32
    %71 = vector.broadcast %cst_30 : f32 to vector<16x32xf32>
    %72 = arith.subf %71, %65 : vector<16x32xf32>
    %73 = arith.mulf %72, %70 : vector<16x32xf32>
    %74 = arith.mulf %65, %43 : vector<16x32xf32>
    %75 = arith.addf %73, %74 : vector<16x32xf32>
    %c16_31 = arith.constant 16 : index
    %c0_32 = arith.constant 0 : index
    %76 = vector.load %arg40[%c16_31, %c0_32] : memref<256x32xf32, #tpu.memory_space<vmem>>, vector<16x32xf32>
    tpu.vector_store %arg40[%c16_31, %c0_32], %75 {strides = array<i32>} : memref<256x32xf32, #tpu.memory_space<vmem>>, vector<16x32xf32>,
    %c224 = arith.constant 224 : index
    %c0_33 = arith.constant 0 : index
    %77 = vector.load %arg41[%c224, %c0_33] : memref<256x32xf32, #tpu.memory_space<vmem>>, vector<16x32xf32>
    tpu.vector_store %arg41[%c224, %c0_33], %75 {strides = array<i32>} : memref<256x32xf32, #tpu.memory_space<vmem>>, vector<16x32xf32>,
    %c32 = arith.constant 32 : index
    %c0_34 = arith.constant 0 : index
    %78 = vector.load %arg39[%c32, %c0_34] : memref<256x96xf32, #tpu.memory_space<vmem>>, vector<16x96xf32>
    %cst_35 = arith.constant dense<0.000000e+00> : vector<16x96xf32>
    %79 = tpu.matmul %75, %11, %cst_35 {dimension_numbers = #tpu.dot_dimension_numbers<[1], [0], [0], [1], [0, 0, 1, 1], [], []>} : vector<16x32xf32>, vector<32x96xf32>, vector<16x96xf32> -> vector<16x96xf32>
    %80 = vector.broadcast %12 : vector<1x96xf32> to vector<16x96xf32>
    %81 = arith.addf %79, %80 : vector<16x96xf32>
    %82 = vector.extract_strided_slice %78 {offsets = [0, 0], sizes = [16, 32], strides = [1, 1]} : vector<16x96xf32> to vector<16x32xf32>
    %83 = vector.extract_strided_slice %81 {offsets = [0, 0], sizes = [16, 32], strides = [1, 1]} : vector<16x96xf32> to vector<16x32xf32>
    %84 = arith.addf %82, %83 : vector<16x32xf32>
    %85 = arith.negf %84 : vector<16x32xf32>
    %86 = math.exp %85 : vector<16x32xf32>
    %cst_36 = arith.constant 1.000000e+00 : f32
    %87 = vector.broadcast %cst_36 : f32 to vector<16x32xf32>
    %88 = arith.addf %87, %86 : vector<16x32xf32>
    %89 = arith.divf %87, %88 : vector<16x32xf32>
    %90 = vector.extract_strided_slice %78 {offsets = [0, 32], sizes = [16, 32], strides = [1, 1]} : vector<16x96xf32> to vector<16x32xf32>
    %91 = vector.extract_strided_slice %81 {offsets = [0, 32], sizes = [16, 32], strides = [1, 1]} : vector<16x96xf32> to vector<16x32xf32>
    %92 = arith.addf %90, %91 : vector<16x32xf32>
    %93 = arith.negf %92 : vector<16x32xf32>
    %94 = math.exp %93 : vector<16x32xf32>
    %cst_37 = arith.constant 1.000000e+00 : f32
    %95 = vector.broadcast %cst_37 : f32 to vector<16x32xf32>
    %96 = arith.addf %95, %94 : vector<16x32xf32>
    %97 = arith.divf %95, %96 : vector<16x32xf32>
    %98 = vector.extract_strided_slice %78 {offsets = [0, 64], sizes = [16, 32], strides = [1, 1]} : vector<16x96xf32> to vector<16x32xf32>
    %99 = vector.extract_strided_slice %81 {offsets = [0, 64], sizes = [16, 32], strides = [1, 1]} : vector<16x96xf32> to vector<16x32xf32>
    %100 = arith.mulf %89, %99 : vector<16x32xf32>
    %101 = arith.addf %98, %100 : vector<16x32xf32>
    %102 = math.tanh %101 : vector<16x32xf32>
    %cst_38 = arith.constant 1.000000e+00 : f32
    %103 = vector.broadcast %cst_38 : f32 to vector<16x32xf32>
    %104 = arith.subf %103, %97 : vector<16x32xf32>
    %105 = arith.mulf %104, %102 : vector<16x32xf32>
    %106 = arith.mulf %97, %75 : vector<16x32xf32>
    %107 = arith.addf %105, %106 : vector<16x32xf32>
    %c32_39 = arith.constant 32 : index
    %c0_40 = arith.constant 0 : index
    %108 = vector.load %arg40[%c32_39, %c0_40] : memref<256x32xf32, #tpu.memory_space<vmem>>, vector<16x32xf32>
    tpu.vector_store %arg40[%c32_39, %c0_40], %107 {strides = array<i32>} : memref<256x32xf32, #tpu.memory_space<vmem>>, vector<16x32xf32>,
    %c208 = arith.constant 208 : index
    %c0_41 = arith.constant 0 : index
    %109 = vector.load %arg41[%c208, %c0_41] : memref<256x32xf32, #tpu.memory_space<vmem>>, vector<16x32xf32>
    tpu.vector_store %arg41[%c208, %c0_41], %107 {strides = array<i32>} : memref<256x32xf32, #tpu.memory_space<vmem>>, vector<16x32xf32>,
    %c48 = arith.constant 48 : index
    %c0_42 = arith.constant 0 : index
    %110 = vector.load %arg39[%c48, %c0_42] : memref<256x96xf32, #tpu.memory_space<vmem>>, vector<16x96xf32>
    %cst_43 = arith.constant dense<0.000000e+00> : vector<16x96xf32>
    %111 = tpu.matmul %107, %11, %cst_43 {dimension_numbers = #tpu.dot_dimension_numbers<[1], [0], [0], [1], [0, 0, 1, 1], [], []>} : vector<16x32xf32>, vector<32x96xf32>, vector<16x96xf32> -> vector<16x96xf32>
    %112 = vector.broadcast %12 : vector<1x96xf32> to vector<16x96xf32>
    %113 = arith.addf %111, %112 : vector<16x96xf32>
    %114 = vector.extract_strided_slice %110 {offsets = [0, 0], sizes = [16, 32], strides = [1, 1]} : vector<16x96xf32> to vector<16x32xf32>
    %115 = vector.extract_strided_slice %113 {offsets = [0, 0], sizes = [16, 32], strides = [1, 1]} : vector<16x96xf32> to vector<16x32xf32>
    %116 = arith.addf %114, %115 : vector<16x32xf32>
    %117 = arith.negf %116 : vector<16x32xf32>
    %118 = math.exp %117 : vector<16x32xf32>
    %cst_44 = arith.constant 1.000000e+00 : f32
    %119 = vector.broadcast %cst_44 : f32 to vector<16x32xf32>
    %120 = arith.addf %119, %118 : vector<16x32xf32>
    %121 = arith.divf %119, %120 : vector<16x32xf32>
    %122 = vector.extract_strided_slice %110 {offsets = [0, 32], sizes = [16, 32], strides = [1, 1]} : vector<16x96xf32> to vector<16x32xf32>
    %123 = vector.extract_strided_slice %113 {offsets = [0, 32], sizes = [16, 32], strides = [1, 1]} : vector<16x96xf32> to vector<16x32xf32>
    %124 = arith.addf %122, %123 : vector<16x32xf32>
    %125 = arith.negf %124 : vector<16x32xf32>
    %126 = math.exp %125 : vector<16x32xf32>
    %cst_45 = arith.constant 1.000000e+00 : f32
    %127 = vector.broadcast %cst_45 : f32 to vector<16x32xf32>
    %128 = arith.addf %127, %126 : vector<16x32xf32>
    %129 = arith.divf %127, %128 : vector<16x32xf32>
    %130 = vector.extract_strided_slice %110 {offsets = [0, 64], sizes = [16, 32], strides = [1, 1]} : vector<16x96xf32> to vector<16x32xf32>
    %131 = vector.extract_strided_slice %113 {offsets = [0, 64], sizes = [16, 32], strides = [1, 1]} : vector<16x96xf32> to vector<16x32xf32>
    %132 = arith.mulf %121, %131 : vector<16x32xf32>
    %133 = arith.addf %130, %132 : vector<16x32xf32>
    %134 = math.tanh %133 : vector<16x32xf32>
    %cst_46 = arith.constant 1.000000e+00 : f32
    %135 = vector.broadcast %cst_46 : f32 to vector<16x32xf32>
    %136 = arith.subf %135, %129 : vector<16x32xf32>
    %137 = arith.mulf %136, %134 : vector<16x32xf32>
    %138 = arith.mulf %129, %107 : vector<16x32xf32>
    %139 = arith.addf %137, %138 : vector<16x32xf32>
    %c48_47 = arith.constant 48 : index
    %c0_48 = arith.constant 0 : index
    %140 = vector.load %arg40[%c48_47, %c0_48] : memref<256x32xf32, #tpu.memory_space<vmem>>, vector<16x32xf32>
    tpu.vector_store %arg40[%c48_47, %c0_48], %139 {strides = array<i32>} : memref<256x32xf32, #tpu.memory_space<vmem>>, vector<16x32xf32>,
    %c192 = arith.constant 192 : index
    %c0_49 = arith.constant 0 : index
    %141 = vector.load %arg41[%c192, %c0_49] : memref<256x32xf32, #tpu.memory_space<vmem>>, vector<16x32xf32>
    tpu.vector_store %arg41[%c192, %c0_49], %139 {strides = array<i32>} : memref<256x32xf32, #tpu.memory_space<vmem>>, vector<16x32xf32>,
    %c64 = arith.constant 64 : index
    %c0_50 = arith.constant 0 : index
    %142 = vector.load %arg39[%c64, %c0_50] : memref<256x96xf32, #tpu.memory_space<vmem>>, vector<16x96xf32>
    %cst_51 = arith.constant dense<0.000000e+00> : vector<16x96xf32>
    %143 = tpu.matmul %139, %11, %cst_51 {dimension_numbers = #tpu.dot_dimension_numbers<[1], [0], [0], [1], [0, 0, 1, 1], [], []>} : vector<16x32xf32>, vector<32x96xf32>, vector<16x96xf32> -> vector<16x96xf32>
    %144 = vector.broadcast %12 : vector<1x96xf32> to vector<16x96xf32>
    %145 = arith.addf %143, %144 : vector<16x96xf32>
    %146 = vector.extract_strided_slice %142 {offsets = [0, 0], sizes = [16, 32], strides = [1, 1]} : vector<16x96xf32> to vector<16x32xf32>
    %147 = vector.extract_strided_slice %145 {offsets = [0, 0], sizes = [16, 32], strides = [1, 1]} : vector<16x96xf32> to vector<16x32xf32>
    %148 = arith.addf %146, %147 : vector<16x32xf32>
    %149 = arith.negf %148 : vector<16x32xf32>
    %150 = math.exp %149 : vector<16x32xf32>
    %cst_52 = arith.constant 1.000000e+00 : f32
    %151 = vector.broadcast %cst_52 : f32 to vector<16x32xf32>
    %152 = arith.addf %151, %150 : vector<16x32xf32>
    %153 = arith.divf %151, %152 : vector<16x32xf32>
    %154 = vector.extract_strided_slice %142 {offsets = [0, 32], sizes = [16, 32], strides = [1, 1]} : vector<16x96xf32> to vector<16x32xf32>
    %155 = vector.extract_strided_slice %145 {offsets = [0, 32], sizes = [16, 32], strides = [1, 1]} : vector<16x96xf32> to vector<16x32xf32>
    %156 = arith.addf %154, %155 : vector<16x32xf32>
    %157 = arith.negf %156 : vector<16x32xf32>
    %158 = math.exp %157 : vector<16x32xf32>
    %cst_53 = arith.constant 1.000000e+00 : f32
    %159 = vector.broadcast %cst_53 : f32 to vector<16x32xf32>
    %160 = arith.addf %159, %158 : vector<16x32xf32>
    %161 = arith.divf %159, %160 : vector<16x32xf32>
    %162 = vector.extract_strided_slice %142 {offsets = [0, 64], sizes = [16, 32], strides = [1, 1]} : vector<16x96xf32> to vector<16x32xf32>
    %163 = vector.extract_strided_slice %145 {offsets = [0, 64], sizes = [16, 32], strides = [1, 1]} : vector<16x96xf32> to vector<16x32xf32>
    %164 = arith.mulf %153, %163 : vector<16x32xf32>
    %165 = arith.addf %162, %164 : vector<16x32xf32>
    %166 = math.tanh %165 : vector<16x32xf32>
    %cst_54 = arith.constant 1.000000e+00 : f32
    %167 = vector.broadcast %cst_54 : f32 to vector<16x32xf32>
    %168 = arith.subf %167, %161 : vector<16x32xf32>
    %169 = arith.mulf %168, %166 : vector<16x32xf32>
    %170 = arith.mulf %161, %139 : vector<16x32xf32>
    %171 = arith.addf %169, %170 : vector<16x32xf32>
    %c64_55 = arith.constant 64 : index
    %c0_56 = arith.constant 0 : index
    %172 = vector.load %arg40[%c64_55, %c0_56] : memref<256x32xf32, #tpu.memory_space<vmem>>, vector<16x32xf32>
    tpu.vector_store %arg40[%c64_55, %c0_56], %171 {strides = array<i32>} : memref<256x32xf32, #tpu.memory_space<vmem>>, vector<16x32xf32>,
    %c176 = arith.constant 176 : index
    %c0_57 = arith.constant 0 : index
    %173 = vector.load %arg41[%c176, %c0_57] : memref<256x32xf32, #tpu.memory_space<vmem>>, vector<16x32xf32>
    tpu.vector_store %arg41[%c176, %c0_57], %171 {strides = array<i32>} : memref<256x32xf32, #tpu.memory_space<vmem>>, vector<16x32xf32>,
    %c80 = arith.constant 80 : index
    %c0_58 = arith.constant 0 : index
    %174 = vector.load %arg39[%c80, %c0_58] : memref<256x96xf32, #tpu.memory_space<vmem>>, vector<16x96xf32>
    %cst_59 = arith.constant dense<0.000000e+00> : vector<16x96xf32>
    %175 = tpu.matmul %171, %11, %cst_59 {dimension_numbers = #tpu.dot_dimension_numbers<[1], [0], [0], [1], [0, 0, 1, 1], [], []>} : vector<16x32xf32>, vector<32x96xf32>, vector<16x96xf32> -> vector<16x96xf32>
    %176 = vector.broadcast %12 : vector<1x96xf32> to vector<16x96xf32>
    %177 = arith.addf %175, %176 : vector<16x96xf32>
    %178 = vector.extract_strided_slice %174 {offsets = [0, 0], sizes = [16, 32], strides = [1, 1]} : vector<16x96xf32> to vector<16x32xf32>
    %179 = vector.extract_strided_slice %177 {offsets = [0, 0], sizes = [16, 32], strides = [1, 1]} : vector<16x96xf32> to vector<16x32xf32>
    %180 = arith.addf %178, %179 : vector<16x32xf32>
    %181 = arith.negf %180 : vector<16x32xf32>
    %182 = math.exp %181 : vector<16x32xf32>
    %cst_60 = arith.constant 1.000000e+00 : f32
    %183 = vector.broadcast %cst_60 : f32 to vector<16x32xf32>
    %184 = arith.addf %183, %182 : vector<16x32xf32>
    %185 = arith.divf %183, %184 : vector<16x32xf32>
    %186 = vector.extract_strided_slice %174 {offsets = [0, 32], sizes = [16, 32], strides = [1, 1]} : vector<16x96xf32> to vector<16x32xf32>
    %187 = vector.extract_strided_slice %177 {offsets = [0, 32], sizes = [16, 32], strides = [1, 1]} : vector<16x96xf32> to vector<16x32xf32>
    %188 = arith.addf %186, %187 : vector<16x32xf32>
    %189 = arith.negf %188 : vector<16x32xf32>
    %190 = math.exp %189 : vector<16x32xf32>
    %cst_61 = arith.constant 1.000000e+00 : f32
    %191 = vector.broadcast %cst_61 : f32 to vector<16x32xf32>
    %192 = arith.addf %191, %190 : vector<16x32xf32>
    %193 = arith.divf %191, %192 : vector<16x32xf32>
    %194 = vector.extract_strided_slice %174 {offsets = [0, 64], sizes = [16, 32], strides = [1, 1]} : vector<16x96xf32> to vector<16x32xf32>
    %195 = vector.extract_strided_slice %177 {offsets = [0, 64], sizes = [16, 32], strides = [1, 1]} : vector<16x96xf32> to vector<16x32xf32>
    %196 = arith.mulf %185, %195 : vector<16x32xf32>
    %197 = arith.addf %194, %196 : vector<16x32xf32>
    %198 = math.tanh %197 : vector<16x32xf32>
    %cst_62 = arith.constant 1.000000e+00 : f32
    %199 = vector.broadcast %cst_62 : f32 to vector<16x32xf32>
    %200 = arith.subf %199, %193 : vector<16x32xf32>
    %201 = arith.mulf %200, %198 : vector<16x32xf32>
    %202 = arith.mulf %193, %171 : vector<16x32xf32>
    %203 = arith.addf %201, %202 : vector<16x32xf32>
    %c80_63 = arith.constant 80 : index
    %c0_64 = arith.constant 0 : index
    %204 = vector.load %arg40[%c80_63, %c0_64] : memref<256x32xf32, #tpu.memory_space<vmem>>, vector<16x32xf32>
    tpu.vector_store %arg40[%c80_63, %c0_64], %203 {strides = array<i32>} : memref<256x32xf32, #tpu.memory_space<vmem>>, vector<16x32xf32>,
    %c160 = arith.constant 160 : index
    %c0_65 = arith.constant 0 : index
    %205 = vector.load %arg41[%c160, %c0_65] : memref<256x32xf32, #tpu.memory_space<vmem>>, vector<16x32xf32>
    tpu.vector_store %arg41[%c160, %c0_65], %203 {strides = array<i32>} : memref<256x32xf32, #tpu.memory_space<vmem>>, vector<16x32xf32>,
    %c96 = arith.constant 96 : index
    %c0_66 = arith.constant 0 : index
    %206 = vector.load %arg39[%c96, %c0_66] : memref<256x96xf32, #tpu.memory_space<vmem>>, vector<16x96xf32>
    %cst_67 = arith.constant dense<0.000000e+00> : vector<16x96xf32>
    %207 = tpu.matmul %203, %11, %cst_67 {dimension_numbers = #tpu.dot_dimension_numbers<[1], [0], [0], [1], [0, 0, 1, 1], [], []>} : vector<16x32xf32>, vector<32x96xf32>, vector<16x96xf32> -> vector<16x96xf32>
    %208 = vector.broadcast %12 : vector<1x96xf32> to vector<16x96xf32>
    %209 = arith.addf %207, %208 : vector<16x96xf32>
    %210 = vector.extract_strided_slice %206 {offsets = [0, 0], sizes = [16, 32], strides = [1, 1]} : vector<16x96xf32> to vector<16x32xf32>
    %211 = vector.extract_strided_slice %209 {offsets = [0, 0], sizes = [16, 32], strides = [1, 1]} : vector<16x96xf32> to vector<16x32xf32>
    %212 = arith.addf %210, %211 : vector<16x32xf32>
    %213 = arith.negf %212 : vector<16x32xf32>
    %214 = math.exp %213 : vector<16x32xf32>
    %cst_68 = arith.constant 1.000000e+00 : f32
    %215 = vector.broadcast %cst_68 : f32 to vector<16x32xf32>
    %216 = arith.addf %215, %214 : vector<16x32xf32>
    %217 = arith.divf %215, %216 : vector<16x32xf32>
    %218 = vector.extract_strided_slice %206 {offsets = [0, 32], sizes = [16, 32], strides = [1, 1]} : vector<16x96xf32> to vector<16x32xf32>
    %219 = vector.extract_strided_slice %209 {offsets = [0, 32], sizes = [16, 32], strides = [1, 1]} : vector<16x96xf32> to vector<16x32xf32>
    %220 = arith.addf %218, %219 : vector<16x32xf32>
    %221 = arith.negf %220 : vector<16x32xf32>
    %222 = math.exp %221 : vector<16x32xf32>
    %cst_69 = arith.constant 1.000000e+00 : f32
    %223 = vector.broadcast %cst_69 : f32 to vector<16x32xf32>
    %224 = arith.addf %223, %222 : vector<16x32xf32>
    %225 = arith.divf %223, %224 : vector<16x32xf32>
    %226 = vector.extract_strided_slice %206 {offsets = [0, 64], sizes = [16, 32], strides = [1, 1]} : vector<16x96xf32> to vector<16x32xf32>
    %227 = vector.extract_strided_slice %209 {offsets = [0, 64], sizes = [16, 32], strides = [1, 1]} : vector<16x96xf32> to vector<16x32xf32>
    %228 = arith.mulf %217, %227 : vector<16x32xf32>
    %229 = arith.addf %226, %228 : vector<16x32xf32>
    %230 = math.tanh %229 : vector<16x32xf32>
    %cst_70 = arith.constant 1.000000e+00 : f32
    %231 = vector.broadcast %cst_70 : f32 to vector<16x32xf32>
    %232 = arith.subf %231, %225 : vector<16x32xf32>
    %233 = arith.mulf %232, %230 : vector<16x32xf32>
    %234 = arith.mulf %225, %203 : vector<16x32xf32>
    %235 = arith.addf %233, %234 : vector<16x32xf32>
    %c96_71 = arith.constant 96 : index
    %c0_72 = arith.constant 0 : index
    %236 = vector.load %arg40[%c96_71, %c0_72] : memref<256x32xf32, #tpu.memory_space<vmem>>, vector<16x32xf32>
    tpu.vector_store %arg40[%c96_71, %c0_72], %235 {strides = array<i32>} : memref<256x32xf32, #tpu.memory_space<vmem>>, vector<16x32xf32>,
    %c144 = arith.constant 144 : index
    %c0_73 = arith.constant 0 : index
    %237 = vector.load %arg41[%c144, %c0_73] : memref<256x32xf32, #tpu.memory_space<vmem>>, vector<16x32xf32>
    tpu.vector_store %arg41[%c144, %c0_73], %235 {strides = array<i32>} : memref<256x32xf32, #tpu.memory_space<vmem>>, vector<16x32xf32>,
    %c112 = arith.constant 112 : index
    %c0_74 = arith.constant 0 : index
    %238 = vector.load %arg39[%c112, %c0_74] : memref<256x96xf32, #tpu.memory_space<vmem>>, vector<16x96xf32>
    %cst_75 = arith.constant dense<0.000000e+00> : vector<16x96xf32>
    %239 = tpu.matmul %235, %11, %cst_75 {dimension_numbers = #tpu.dot_dimension_numbers<[1], [0], [0], [1], [0, 0, 1, 1], [], []>} : vector<16x32xf32>, vector<32x96xf32>, vector<16x96xf32> -> vector<16x96xf32>
    %240 = vector.broadcast %12 : vector<1x96xf32> to vector<16x96xf32>
    %241 = arith.addf %239, %240 : vector<16x96xf32>
    %242 = vector.extract_strided_slice %238 {offsets = [0, 0], sizes = [16, 32], strides = [1, 1]} : vector<16x96xf32> to vector<16x32xf32>
    %243 = vector.extract_strided_slice %241 {offsets = [0, 0], sizes = [16, 32], strides = [1, 1]} : vector<16x96xf32> to vector<16x32xf32>
    %244 = arith.addf %242, %243 : vector<16x32xf32>
    %245 = arith.negf %244 : vector<16x32xf32>
    %246 = math.exp %245 : vector<16x32xf32>
    %cst_76 = arith.constant 1.000000e+00 : f32
    %247 = vector.broadcast %cst_76 : f32 to vector<16x32xf32>
    %248 = arith.addf %247, %246 : vector<16x32xf32>
    %249 = arith.divf %247, %248 : vector<16x32xf32>
    %250 = vector.extract_strided_slice %238 {offsets = [0, 32], sizes = [16, 32], strides = [1, 1]} : vector<16x96xf32> to vector<16x32xf32>
    %251 = vector.extract_strided_slice %241 {offsets = [0, 32], sizes = [16, 32], strides = [1, 1]} : vector<16x96xf32> to vector<16x32xf32>
    %252 = arith.addf %250, %251 : vector<16x32xf32>
    %253 = arith.negf %252 : vector<16x32xf32>
    %254 = math.exp %253 : vector<16x32xf32>
    %cst_77 = arith.constant 1.000000e+00 : f32
    %255 = vector.broadcast %cst_77 : f32 to vector<16x32xf32>
    %256 = arith.addf %255, %254 : vector<16x32xf32>
    %257 = arith.divf %255, %256 : vector<16x32xf32>
    %258 = vector.extract_strided_slice %238 {offsets = [0, 64], sizes = [16, 32], strides = [1, 1]} : vector<16x96xf32> to vector<16x32xf32>
    %259 = vector.extract_strided_slice %241 {offsets = [0, 64], sizes = [16, 32], strides = [1, 1]} : vector<16x96xf32> to vector<16x32xf32>
    %260 = arith.mulf %249, %259 : vector<16x32xf32>
    %261 = arith.addf %258, %260 : vector<16x32xf32>
    %262 = math.tanh %261 : vector<16x32xf32>
    %cst_78 = arith.constant 1.000000e+00 : f32
    %263 = vector.broadcast %cst_78 : f32 to vector<16x32xf32>
    %264 = arith.subf %263, %257 : vector<16x32xf32>
    %265 = arith.mulf %264, %262 : vector<16x32xf32>
    %266 = arith.mulf %257, %235 : vector<16x32xf32>
    %267 = arith.addf %265, %266 : vector<16x32xf32>
    %c112_79 = arith.constant 112 : index
    %c0_80 = arith.constant 0 : index
    %268 = vector.load %arg40[%c112_79, %c0_80] : memref<256x32xf32, #tpu.memory_space<vmem>>, vector<16x32xf32>
    tpu.vector_store %arg40[%c112_79, %c0_80], %267 {strides = array<i32>} : memref<256x32xf32, #tpu.memory_space<vmem>>, vector<16x32xf32>,
    %c128 = arith.constant 128 : index
    %c0_81 = arith.constant 0 : index
    %269 = vector.load %arg41[%c128, %c0_81] : memref<256x32xf32, #tpu.memory_space<vmem>>, vector<16x32xf32>
    tpu.vector_store %arg41[%c128, %c0_81], %267 {strides = array<i32>} : memref<256x32xf32, #tpu.memory_space<vmem>>, vector<16x32xf32>,
    %c128_82 = arith.constant 128 : index
    %c0_83 = arith.constant 0 : index
    %270 = vector.load %arg39[%c128_82, %c0_83] : memref<256x96xf32, #tpu.memory_space<vmem>>, vector<16x96xf32>
    %cst_84 = arith.constant dense<0.000000e+00> : vector<16x96xf32>
    %271 = tpu.matmul %267, %11, %cst_84 {dimension_numbers = #tpu.dot_dimension_numbers<[1], [0], [0], [1], [0, 0, 1, 1], [], []>} : vector<16x32xf32>, vector<32x96xf32>, vector<16x96xf32> -> vector<16x96xf32>
    %272 = vector.broadcast %12 : vector<1x96xf32> to vector<16x96xf32>
    %273 = arith.addf %271, %272 : vector<16x96xf32>
    %274 = vector.extract_strided_slice %270 {offsets = [0, 0], sizes = [16, 32], strides = [1, 1]} : vector<16x96xf32> to vector<16x32xf32>
    %275 = vector.extract_strided_slice %273 {offsets = [0, 0], sizes = [16, 32], strides = [1, 1]} : vector<16x96xf32> to vector<16x32xf32>
    %276 = arith.addf %274, %275 : vector<16x32xf32>
    %277 = arith.negf %276 : vector<16x32xf32>
    %278 = math.exp %277 : vector<16x32xf32>
    %cst_85 = arith.constant 1.000000e+00 : f32
    %279 = vector.broadcast %cst_85 : f32 to vector<16x32xf32>
    %280 = arith.addf %279, %278 : vector<16x32xf32>
    %281 = arith.divf %279, %280 : vector<16x32xf32>
    %282 = vector.extract_strided_slice %270 {offsets = [0, 32], sizes = [16, 32], strides = [1, 1]} : vector<16x96xf32> to vector<16x32xf32>
    %283 = vector.extract_strided_slice %273 {offsets = [0, 32], sizes = [16, 32], strides = [1, 1]} : vector<16x96xf32> to vector<16x32xf32>
    %284 = arith.addf %282, %283 : vector<16x32xf32>
    %285 = arith.negf %284 : vector<16x32xf32>
    %286 = math.exp %285 : vector<16x32xf32>
    %cst_86 = arith.constant 1.000000e+00 : f32
    %287 = vector.broadcast %cst_86 : f32 to vector<16x32xf32>
    %288 = arith.addf %287, %286 : vector<16x32xf32>
    %289 = arith.divf %287, %288 : vector<16x32xf32>
    %290 = vector.extract_strided_slice %270 {offsets = [0, 64], sizes = [16, 32], strides = [1, 1]} : vector<16x96xf32> to vector<16x32xf32>
    %291 = vector.extract_strided_slice %273 {offsets = [0, 64], sizes = [16, 32], strides = [1, 1]} : vector<16x96xf32> to vector<16x32xf32>
    %292 = arith.mulf %281, %291 : vector<16x32xf32>
    %293 = arith.addf %290, %292 : vector<16x32xf32>
    %294 = math.tanh %293 : vector<16x32xf32>
    %cst_87 = arith.constant 1.000000e+00 : f32
    %295 = vector.broadcast %cst_87 : f32 to vector<16x32xf32>
    %296 = arith.subf %295, %289 : vector<16x32xf32>
    %297 = arith.mulf %296, %294 : vector<16x32xf32>
    %298 = arith.mulf %289, %267 : vector<16x32xf32>
    %299 = arith.addf %297, %298 : vector<16x32xf32>
    %c128_88 = arith.constant 128 : index
    %c0_89 = arith.constant 0 : index
    %300 = vector.load %arg40[%c128_88, %c0_89] : memref<256x32xf32, #tpu.memory_space<vmem>>, vector<16x32xf32>
    tpu.vector_store %arg40[%c128_88, %c0_89], %299 {strides = array<i32>} : memref<256x32xf32, #tpu.memory_space<vmem>>, vector<16x32xf32>,
    %c112_90 = arith.constant 112 : index
    %c0_91 = arith.constant 0 : index
    %301 = vector.load %arg41[%c112_90, %c0_91] : memref<256x32xf32, #tpu.memory_space<vmem>>, vector<16x32xf32>
    tpu.vector_store %arg41[%c112_90, %c0_91], %299 {strides = array<i32>} : memref<256x32xf32, #tpu.memory_space<vmem>>, vector<16x32xf32>,
    %c144_92 = arith.constant 144 : index
    %c0_93 = arith.constant 0 : index
    %302 = vector.load %arg39[%c144_92, %c0_93] : memref<256x96xf32, #tpu.memory_space<vmem>>, vector<16x96xf32>
    %cst_94 = arith.constant dense<0.000000e+00> : vector<16x96xf32>
    %303 = tpu.matmul %299, %11, %cst_94 {dimension_numbers = #tpu.dot_dimension_numbers<[1], [0], [0], [1], [0, 0, 1, 1], [], []>} : vector<16x32xf32>, vector<32x96xf32>, vector<16x96xf32> -> vector<16x96xf32>
    %304 = vector.broadcast %12 : vector<1x96xf32> to vector<16x96xf32>
    %305 = arith.addf %303, %304 : vector<16x96xf32>
    %306 = vector.extract_strided_slice %302 {offsets = [0, 0], sizes = [16, 32], strides = [1, 1]} : vector<16x96xf32> to vector<16x32xf32>
    %307 = vector.extract_strided_slice %305 {offsets = [0, 0], sizes = [16, 32], strides = [1, 1]} : vector<16x96xf32> to vector<16x32xf32>
    %308 = arith.addf %306, %307 : vector<16x32xf32>
    %309 = arith.negf %308 : vector<16x32xf32>
    %310 = math.exp %309 : vector<16x32xf32>
    %cst_95 = arith.constant 1.000000e+00 : f32
    %311 = vector.broadcast %cst_95 : f32 to vector<16x32xf32>
    %312 = arith.addf %311, %310 : vector<16x32xf32>
    %313 = arith.divf %311, %312 : vector<16x32xf32>
    %314 = vector.extract_strided_slice %302 {offsets = [0, 32], sizes = [16, 32], strides = [1, 1]} : vector<16x96xf32> to vector<16x32xf32>
    %315 = vector.extract_strided_slice %305 {offsets = [0, 32], sizes = [16, 32], strides = [1, 1]} : vector<16x96xf32> to vector<16x32xf32>
    %316 = arith.addf %314, %315 : vector<16x32xf32>
    %317 = arith.negf %316 : vector<16x32xf32>
    %318 = math.exp %317 : vector<16x32xf32>
    %cst_96 = arith.constant 1.000000e+00 : f32
    %319 = vector.broadcast %cst_96 : f32 to vector<16x32xf32>
    %320 = arith.addf %319, %318 : vector<16x32xf32>
    %321 = arith.divf %319, %320 : vector<16x32xf32>
    %322 = vector.extract_strided_slice %302 {offsets = [0, 64], sizes = [16, 32], strides = [1, 1]} : vector<16x96xf32> to vector<16x32xf32>
    %323 = vector.extract_strided_slice %305 {offsets = [0, 64], sizes = [16, 32], strides = [1, 1]} : vector<16x96xf32> to vector<16x32xf32>
    %324 = arith.mulf %313, %323 : vector<16x32xf32>
    %325 = arith.addf %322, %324 : vector<16x32xf32>
    %326 = math.tanh %325 : vector<16x32xf32>
    %cst_97 = arith.constant 1.000000e+00 : f32
    %327 = vector.broadcast %cst_97 : f32 to vector<16x32xf32>
    %328 = arith.subf %327, %321 : vector<16x32xf32>
    %329 = arith.mulf %328, %326 : vector<16x32xf32>
    %330 = arith.mulf %321, %299 : vector<16x32xf32>
    %331 = arith.addf %329, %330 : vector<16x32xf32>
    %c144_98 = arith.constant 144 : index
    %c0_99 = arith.constant 0 : index
    %332 = vector.load %arg40[%c144_98, %c0_99] : memref<256x32xf32, #tpu.memory_space<vmem>>, vector<16x32xf32>
    tpu.vector_store %arg40[%c144_98, %c0_99], %331 {strides = array<i32>} : memref<256x32xf32, #tpu.memory_space<vmem>>, vector<16x32xf32>,
    %c96_100 = arith.constant 96 : index
    %c0_101 = arith.constant 0 : index
    %333 = vector.load %arg41[%c96_100, %c0_101] : memref<256x32xf32, #tpu.memory_space<vmem>>, vector<16x32xf32>
    tpu.vector_store %arg41[%c96_100, %c0_101], %331 {strides = array<i32>} : memref<256x32xf32, #tpu.memory_space<vmem>>, vector<16x32xf32>,
    %c160_102 = arith.constant 160 : index
    %c0_103 = arith.constant 0 : index
    %334 = vector.load %arg39[%c160_102, %c0_103] : memref<256x96xf32, #tpu.memory_space<vmem>>, vector<16x96xf32>
    %cst_104 = arith.constant dense<0.000000e+00> : vector<16x96xf32>
    %335 = tpu.matmul %331, %11, %cst_104 {dimension_numbers = #tpu.dot_dimension_numbers<[1], [0], [0], [1], [0, 0, 1, 1], [], []>} : vector<16x32xf32>, vector<32x96xf32>, vector<16x96xf32> -> vector<16x96xf32>
    %336 = vector.broadcast %12 : vector<1x96xf32> to vector<16x96xf32>
    %337 = arith.addf %335, %336 : vector<16x96xf32>
    %338 = vector.extract_strided_slice %334 {offsets = [0, 0], sizes = [16, 32], strides = [1, 1]} : vector<16x96xf32> to vector<16x32xf32>
    %339 = vector.extract_strided_slice %337 {offsets = [0, 0], sizes = [16, 32], strides = [1, 1]} : vector<16x96xf32> to vector<16x32xf32>
    %340 = arith.addf %338, %339 : vector<16x32xf32>
    %341 = arith.negf %340 : vector<16x32xf32>
    %342 = math.exp %341 : vector<16x32xf32>
    %cst_105 = arith.constant 1.000000e+00 : f32
    %343 = vector.broadcast %cst_105 : f32 to vector<16x32xf32>
    %344 = arith.addf %343, %342 : vector<16x32xf32>
    %345 = arith.divf %343, %344 : vector<16x32xf32>
    %346 = vector.extract_strided_slice %334 {offsets = [0, 32], sizes = [16, 32], strides = [1, 1]} : vector<16x96xf32> to vector<16x32xf32>
    %347 = vector.extract_strided_slice %337 {offsets = [0, 32], sizes = [16, 32], strides = [1, 1]} : vector<16x96xf32> to vector<16x32xf32>
    %348 = arith.addf %346, %347 : vector<16x32xf32>
    %349 = arith.negf %348 : vector<16x32xf32>
    %350 = math.exp %349 : vector<16x32xf32>
    %cst_106 = arith.constant 1.000000e+00 : f32
    %351 = vector.broadcast %cst_106 : f32 to vector<16x32xf32>
    %352 = arith.addf %351, %350 : vector<16x32xf32>
    %353 = arith.divf %351, %352 : vector<16x32xf32>
    %354 = vector.extract_strided_slice %334 {offsets = [0, 64], sizes = [16, 32], strides = [1, 1]} : vector<16x96xf32> to vector<16x32xf32>
    %355 = vector.extract_strided_slice %337 {offsets = [0, 64], sizes = [16, 32], strides = [1, 1]} : vector<16x96xf32> to vector<16x32xf32>
    %356 = arith.mulf %345, %355 : vector<16x32xf32>
    %357 = arith.addf %354, %356 : vector<16x32xf32>
    %358 = math.tanh %357 : vector<16x32xf32>
    %cst_107 = arith.constant 1.000000e+00 : f32
    %359 = vector.broadcast %cst_107 : f32 to vector<16x32xf32>
    %360 = arith.subf %359, %353 : vector<16x32xf32>
    %361 = arith.mulf %360, %358 : vector<16x32xf32>
    %362 = arith.mulf %353, %331 : vector<16x32xf32>
    %363 = arith.addf %361, %362 : vector<16x32xf32>
    %c160_108 = arith.constant 160 : index
    %c0_109 = arith.constant 0 : index
    %364 = vector.load %arg40[%c160_108, %c0_109] : memref<256x32xf32, #tpu.memory_space<vmem>>, vector<16x32xf32>
    tpu.vector_store %arg40[%c160_108, %c0_109], %363 {strides = array<i32>} : memref<256x32xf32, #tpu.memory_space<vmem>>, vector<16x32xf32>,
    %c80_110 = arith.constant 80 : index
    %c0_111 = arith.constant 0 : index
    %365 = vector.load %arg41[%c80_110, %c0_111] : memref<256x32xf32, #tpu.memory_space<vmem>>, vector<16x32xf32>
    tpu.vector_store %arg41[%c80_110, %c0_111], %363 {strides = array<i32>} : memref<256x32xf32, #tpu.memory_space<vmem>>, vector<16x32xf32>,
    %c176_112 = arith.constant 176 : index
    %c0_113 = arith.constant 0 : index
    %366 = vector.load %arg39[%c176_112, %c0_113] : memref<256x96xf32, #tpu.memory_space<vmem>>, vector<16x96xf32>
    %cst_114 = arith.constant dense<0.000000e+00> : vector<16x96xf32>
    %367 = tpu.matmul %363, %11, %cst_114 {dimension_numbers = #tpu.dot_dimension_numbers<[1], [0], [0], [1], [0, 0, 1, 1], [], []>} : vector<16x32xf32>, vector<32x96xf32>, vector<16x96xf32> -> vector<16x96xf32>
    %368 = vector.broadcast %12 : vector<1x96xf32> to vector<16x96xf32>
    %369 = arith.addf %367, %368 : vector<16x96xf32>
    %370 = vector.extract_strided_slice %366 {offsets = [0, 0], sizes = [16, 32], strides = [1, 1]} : vector<16x96xf32> to vector<16x32xf32>
    %371 = vector.extract_strided_slice %369 {offsets = [0, 0], sizes = [16, 32], strides = [1, 1]} : vector<16x96xf32> to vector<16x32xf32>
    %372 = arith.addf %370, %371 : vector<16x32xf32>
    %373 = arith.negf %372 : vector<16x32xf32>
    %374 = math.exp %373 : vector<16x32xf32>
    %cst_115 = arith.constant 1.000000e+00 : f32
    %375 = vector.broadcast %cst_115 : f32 to vector<16x32xf32>
    %376 = arith.addf %375, %374 : vector<16x32xf32>
    %377 = arith.divf %375, %376 : vector<16x32xf32>
    %378 = vector.extract_strided_slice %366 {offsets = [0, 32], sizes = [16, 32], strides = [1, 1]} : vector<16x96xf32> to vector<16x32xf32>
    %379 = vector.extract_strided_slice %369 {offsets = [0, 32], sizes = [16, 32], strides = [1, 1]} : vector<16x96xf32> to vector<16x32xf32>
    %380 = arith.addf %378, %379 : vector<16x32xf32>
    %381 = arith.negf %380 : vector<16x32xf32>
    %382 = math.exp %381 : vector<16x32xf32>
    %cst_116 = arith.constant 1.000000e+00 : f32
    %383 = vector.broadcast %cst_116 : f32 to vector<16x32xf32>
    %384 = arith.addf %383, %382 : vector<16x32xf32>
    %385 = arith.divf %383, %384 : vector<16x32xf32>
    %386 = vector.extract_strided_slice %366 {offsets = [0, 64], sizes = [16, 32], strides = [1, 1]} : vector<16x96xf32> to vector<16x32xf32>
    %387 = vector.extract_strided_slice %369 {offsets = [0, 64], sizes = [16, 32], strides = [1, 1]} : vector<16x96xf32> to vector<16x32xf32>
    %388 = arith.mulf %377, %387 : vector<16x32xf32>
    %389 = arith.addf %386, %388 : vector<16x32xf32>
    %390 = math.tanh %389 : vector<16x32xf32>
    %cst_117 = arith.constant 1.000000e+00 : f32
    %391 = vector.broadcast %cst_117 : f32 to vector<16x32xf32>
    %392 = arith.subf %391, %385 : vector<16x32xf32>
    %393 = arith.mulf %392, %390 : vector<16x32xf32>
    %394 = arith.mulf %385, %363 : vector<16x32xf32>
    %395 = arith.addf %393, %394 : vector<16x32xf32>
    %c176_118 = arith.constant 176 : index
    %c0_119 = arith.constant 0 : index
    %396 = vector.load %arg40[%c176_118, %c0_119] : memref<256x32xf32, #tpu.memory_space<vmem>>, vector<16x32xf32>
    tpu.vector_store %arg40[%c176_118, %c0_119], %395 {strides = array<i32>} : memref<256x32xf32, #tpu.memory_space<vmem>>, vector<16x32xf32>,
    %c64_120 = arith.constant 64 : index
    %c0_121 = arith.constant 0 : index
    %397 = vector.load %arg41[%c64_120, %c0_121] : memref<256x32xf32, #tpu.memory_space<vmem>>, vector<16x32xf32>
    tpu.vector_store %arg41[%c64_120, %c0_121], %395 {strides = array<i32>} : memref<256x32xf32, #tpu.memory_space<vmem>>, vector<16x32xf32>,
    %c192_122 = arith.constant 192 : index
    %c0_123 = arith.constant 0 : index
    %398 = vector.load %arg39[%c192_122, %c0_123] : memref<256x96xf32, #tpu.memory_space<vmem>>, vector<16x96xf32>
    %cst_124 = arith.constant dense<0.000000e+00> : vector<16x96xf32>
    %399 = tpu.matmul %395, %11, %cst_124 {dimension_numbers = #tpu.dot_dimension_numbers<[1], [0], [0], [1], [0, 0, 1, 1], [], []>} : vector<16x32xf32>, vector<32x96xf32>, vector<16x96xf32> -> vector<16x96xf32>
    %400 = vector.broadcast %12 : vector<1x96xf32> to vector<16x96xf32>
    %401 = arith.addf %399, %400 : vector<16x96xf32>
    %402 = vector.extract_strided_slice %398 {offsets = [0, 0], sizes = [16, 32], strides = [1, 1]} : vector<16x96xf32> to vector<16x32xf32>
    %403 = vector.extract_strided_slice %401 {offsets = [0, 0], sizes = [16, 32], strides = [1, 1]} : vector<16x96xf32> to vector<16x32xf32>
    %404 = arith.addf %402, %403 : vector<16x32xf32>
    %405 = arith.negf %404 : vector<16x32xf32>
    %406 = math.exp %405 : vector<16x32xf32>
    %cst_125 = arith.constant 1.000000e+00 : f32
    %407 = vector.broadcast %cst_125 : f32 to vector<16x32xf32>
    %408 = arith.addf %407, %406 : vector<16x32xf32>
    %409 = arith.divf %407, %408 : vector<16x32xf32>
    %410 = vector.extract_strided_slice %398 {offsets = [0, 32], sizes = [16, 32], strides = [1, 1]} : vector<16x96xf32> to vector<16x32xf32>
    %411 = vector.extract_strided_slice %401 {offsets = [0, 32], sizes = [16, 32], strides = [1, 1]} : vector<16x96xf32> to vector<16x32xf32>
    %412 = arith.addf %410, %411 : vector<16x32xf32>
    %413 = arith.negf %412 : vector<16x32xf32>
    %414 = math.exp %413 : vector<16x32xf32>
    %cst_126 = arith.constant 1.000000e+00 : f32
    %415 = vector.broadcast %cst_126 : f32 to vector<16x32xf32>
    %416 = arith.addf %415, %414 : vector<16x32xf32>
    %417 = arith.divf %415, %416 : vector<16x32xf32>
    %418 = vector.extract_strided_slice %398 {offsets = [0, 64], sizes = [16, 32], strides = [1, 1]} : vector<16x96xf32> to vector<16x32xf32>
    %419 = vector.extract_strided_slice %401 {offsets = [0, 64], sizes = [16, 32], strides = [1, 1]} : vector<16x96xf32> to vector<16x32xf32>
    %420 = arith.mulf %409, %419 : vector<16x32xf32>
    %421 = arith.addf %418, %420 : vector<16x32xf32>
    %422 = math.tanh %421 : vector<16x32xf32>
    %cst_127 = arith.constant 1.000000e+00 : f32
    %423 = vector.broadcast %cst_127 : f32 to vector<16x32xf32>
    %424 = arith.subf %423, %417 : vector<16x32xf32>
    %425 = arith.mulf %424, %422 : vector<16x32xf32>
    %426 = arith.mulf %417, %395 : vector<16x32xf32>
    %427 = arith.addf %425, %426 : vector<16x32xf32>
    %c192_128 = arith.constant 192 : index
    %c0_129 = arith.constant 0 : index
    %428 = vector.load %arg40[%c192_128, %c0_129] : memref<256x32xf32, #tpu.memory_space<vmem>>, vector<16x32xf32>
    tpu.vector_store %arg40[%c192_128, %c0_129], %427 {strides = array<i32>} : memref<256x32xf32, #tpu.memory_space<vmem>>, vector<16x32xf32>,
    %c48_130 = arith.constant 48 : index
    %c0_131 = arith.constant 0 : index
    %429 = vector.load %arg41[%c48_130, %c0_131] : memref<256x32xf32, #tpu.memory_space<vmem>>, vector<16x32xf32>
    tpu.vector_store %arg41[%c48_130, %c0_131], %427 {strides = array<i32>} : memref<256x32xf32, #tpu.memory_space<vmem>>, vector<16x32xf32>,
    %c208_132 = arith.constant 208 : index
    %c0_133 = arith.constant 0 : index
    %430 = vector.load %arg39[%c208_132, %c0_133] : memref<256x96xf32, #tpu.memory_space<vmem>>, vector<16x96xf32>
    %cst_134 = arith.constant dense<0.000000e+00> : vector<16x96xf32>
    %431 = tpu.matmul %427, %11, %cst_134 {dimension_numbers = #tpu.dot_dimension_numbers<[1], [0], [0], [1], [0, 0, 1, 1], [], []>} : vector<16x32xf32>, vector<32x96xf32>, vector<16x96xf32> -> vector<16x96xf32>
    %432 = vector.broadcast %12 : vector<1x96xf32> to vector<16x96xf32>
    %433 = arith.addf %431, %432 : vector<16x96xf32>
    %434 = vector.extract_strided_slice %430 {offsets = [0, 0], sizes = [16, 32], strides = [1, 1]} : vector<16x96xf32> to vector<16x32xf32>
    %435 = vector.extract_strided_slice %433 {offsets = [0, 0], sizes = [16, 32], strides = [1, 1]} : vector<16x96xf32> to vector<16x32xf32>
    %436 = arith.addf %434, %435 : vector<16x32xf32>
    %437 = arith.negf %436 : vector<16x32xf32>
    %438 = math.exp %437 : vector<16x32xf32>
    %cst_135 = arith.constant 1.000000e+00 : f32
    %439 = vector.broadcast %cst_135 : f32 to vector<16x32xf32>
    %440 = arith.addf %439, %438 : vector<16x32xf32>
    %441 = arith.divf %439, %440 : vector<16x32xf32>
    %442 = vector.extract_strided_slice %430 {offsets = [0, 32], sizes = [16, 32], strides = [1, 1]} : vector<16x96xf32> to vector<16x32xf32>
    %443 = vector.extract_strided_slice %433 {offsets = [0, 32], sizes = [16, 32], strides = [1, 1]} : vector<16x96xf32> to vector<16x32xf32>
    %444 = arith.addf %442, %443 : vector<16x32xf32>
    %445 = arith.negf %444 : vector<16x32xf32>
    %446 = math.exp %445 : vector<16x32xf32>
    %cst_136 = arith.constant 1.000000e+00 : f32
    %447 = vector.broadcast %cst_136 : f32 to vector<16x32xf32>
    %448 = arith.addf %447, %446 : vector<16x32xf32>
    %449 = arith.divf %447, %448 : vector<16x32xf32>
    %450 = vector.extract_strided_slice %430 {offsets = [0, 64], sizes = [16, 32], strides = [1, 1]} : vector<16x96xf32> to vector<16x32xf32>
    %451 = vector.extract_strided_slice %433 {offsets = [0, 64], sizes = [16, 32], strides = [1, 1]} : vector<16x96xf32> to vector<16x32xf32>
    %452 = arith.mulf %441, %451 : vector<16x32xf32>
    %453 = arith.addf %450, %452 : vector<16x32xf32>
    %454 = math.tanh %453 : vector<16x32xf32>
    %cst_137 = arith.constant 1.000000e+00 : f32
    %455 = vector.broadcast %cst_137 : f32 to vector<16x32xf32>
    %456 = arith.subf %455, %449 : vector<16x32xf32>
    %457 = arith.mulf %456, %454 : vector<16x32xf32>
    %458 = arith.mulf %449, %427 : vector<16x32xf32>
    %459 = arith.addf %457, %458 : vector<16x32xf32>
    %c208_138 = arith.constant 208 : index
    %c0_139 = arith.constant 0 : index
    %460 = vector.load %arg40[%c208_138, %c0_139] : memref<256x32xf32, #tpu.memory_space<vmem>>, vector<16x32xf32>
    tpu.vector_store %arg40[%c208_138, %c0_139], %459 {strides = array<i32>} : memref<256x32xf32, #tpu.memory_space<vmem>>, vector<16x32xf32>,
    %c32_140 = arith.constant 32 : index
    %c0_141 = arith.constant 0 : index
    %461 = vector.load %arg41[%c32_140, %c0_141] : memref<256x32xf32, #tpu.memory_space<vmem>>, vector<16x32xf32>
    tpu.vector_store %arg41[%c32_140, %c0_141], %459 {strides = array<i32>} : memref<256x32xf32, #tpu.memory_space<vmem>>, vector<16x32xf32>,
    %c224_142 = arith.constant 224 : index
    %c0_143 = arith.constant 0 : index
    %462 = vector.load %arg39[%c224_142, %c0_143] : memref<256x96xf32, #tpu.memory_space<vmem>>, vector<16x96xf32>
    %cst_144 = arith.constant dense<0.000000e+00> : vector<16x96xf32>
    %463 = tpu.matmul %459, %11, %cst_144 {dimension_numbers = #tpu.dot_dimension_numbers<[1], [0], [0], [1], [0, 0, 1, 1], [], []>} : vector<16x32xf32>, vector<32x96xf32>, vector<16x96xf32> -> vector<16x96xf32>
    %464 = vector.broadcast %12 : vector<1x96xf32> to vector<16x96xf32>
    %465 = arith.addf %463, %464 : vector<16x96xf32>
    %466 = vector.extract_strided_slice %462 {offsets = [0, 0], sizes = [16, 32], strides = [1, 1]} : vector<16x96xf32> to vector<16x32xf32>
    %467 = vector.extract_strided_slice %465 {offsets = [0, 0], sizes = [16, 32], strides = [1, 1]} : vector<16x96xf32> to vector<16x32xf32>
    %468 = arith.addf %466, %467 : vector<16x32xf32>
    %469 = arith.negf %468 : vector<16x32xf32>
    %470 = math.exp %469 : vector<16x32xf32>
    %cst_145 = arith.constant 1.000000e+00 : f32
    %471 = vector.broadcast %cst_145 : f32 to vector<16x32xf32>
    %472 = arith.addf %471, %470 : vector<16x32xf32>
    %473 = arith.divf %471, %472 : vector<16x32xf32>
    %474 = vector.extract_strided_slice %462 {offsets = [0, 32], sizes = [16, 32], strides = [1, 1]} : vector<16x96xf32> to vector<16x32xf32>
    %475 = vector.extract_strided_slice %465 {offsets = [0, 32], sizes = [16, 32], strides = [1, 1]} : vector<16x96xf32> to vector<16x32xf32>
    %476 = arith.addf %474, %475 : vector<16x32xf32>
    %477 = arith.negf %476 : vector<16x32xf32>
    %478 = math.exp %477 : vector<16x32xf32>
    %cst_146 = arith.constant 1.000000e+00 : f32
    %479 = vector.broadcast %cst_146 : f32 to vector<16x32xf32>
    %480 = arith.addf %479, %478 : vector<16x32xf32>
    %481 = arith.divf %479, %480 : vector<16x32xf32>
    %482 = vector.extract_strided_slice %462 {offsets = [0, 64], sizes = [16, 32], strides = [1, 1]} : vector<16x96xf32> to vector<16x32xf32>
    %483 = vector.extract_strided_slice %465 {offsets = [0, 64], sizes = [16, 32], strides = [1, 1]} : vector<16x96xf32> to vector<16x32xf32>
    %484 = arith.mulf %473, %483 : vector<16x32xf32>
    %485 = arith.addf %482, %484 : vector<16x32xf32>
    %486 = math.tanh %485 : vector<16x32xf32>
    %cst_147 = arith.constant 1.000000e+00 : f32
    %487 = vector.broadcast %cst_147 : f32 to vector<16x32xf32>
    %488 = arith.subf %487, %481 : vector<16x32xf32>
    %489 = arith.mulf %488, %486 : vector<16x32xf32>
    %490 = arith.mulf %481, %459 : vector<16x32xf32>
    %491 = arith.addf %489, %490 : vector<16x32xf32>
    %c224_148 = arith.constant 224 : index
    %c0_149 = arith.constant 0 : index
    %492 = vector.load %arg40[%c224_148, %c0_149] : memref<256x32xf32, #tpu.memory_space<vmem>>, vector<16x32xf32>
    tpu.vector_store %arg40[%c224_148, %c0_149], %491 {strides = array<i32>} : memref<256x32xf32, #tpu.memory_space<vmem>>, vector<16x32xf32>,
    %c16_150 = arith.constant 16 : index
    %c0_151 = arith.constant 0 : index
    %493 = vector.load %arg41[%c16_150, %c0_151] : memref<256x32xf32, #tpu.memory_space<vmem>>, vector<16x32xf32>
    tpu.vector_store %arg41[%c16_150, %c0_151], %491 {strides = array<i32>} : memref<256x32xf32, #tpu.memory_space<vmem>>, vector<16x32xf32>,
    %c240_152 = arith.constant 240 : index
    %c0_153 = arith.constant 0 : index
    %494 = vector.load %arg39[%c240_152, %c0_153] : memref<256x96xf32, #tpu.memory_space<vmem>>, vector<16x96xf32>
    %cst_154 = arith.constant dense<0.000000e+00> : vector<16x96xf32>
    %495 = tpu.matmul %491, %11, %cst_154 {dimension_numbers = #tpu.dot_dimension_numbers<[1], [0], [0], [1], [0, 0, 1, 1], [], []>} : vector<16x32xf32>, vector<32x96xf32>, vector<16x96xf32> -> vector<16x96xf32>
    %496 = vector.broadcast %12 : vector<1x96xf32> to vector<16x96xf32>
    %497 = arith.addf %495, %496 : vector<16x96xf32>
    %498 = vector.extract_strided_slice %494 {offsets = [0, 0], sizes = [16, 32], strides = [1, 1]} : vector<16x96xf32> to vector<16x32xf32>
    %499 = vector.extract_strided_slice %497 {offsets = [0, 0], sizes = [16, 32], strides = [1, 1]} : vector<16x96xf32> to vector<16x32xf32>
    %500 = arith.addf %498, %499 : vector<16x32xf32>
    %501 = arith.negf %500 : vector<16x32xf32>
    %502 = math.exp %501 : vector<16x32xf32>
    %cst_155 = arith.constant 1.000000e+00 : f32
    %503 = vector.broadcast %cst_155 : f32 to vector<16x32xf32>
    %504 = arith.addf %503, %502 : vector<16x32xf32>
    %505 = arith.divf %503, %504 : vector<16x32xf32>
    %506 = vector.extract_strided_slice %494 {offsets = [0, 32], sizes = [16, 32], strides = [1, 1]} : vector<16x96xf32> to vector<16x32xf32>
    %507 = vector.extract_strided_slice %497 {offsets = [0, 32], sizes = [16, 32], strides = [1, 1]} : vector<16x96xf32> to vector<16x32xf32>
    %508 = arith.addf %506, %507 : vector<16x32xf32>
    %509 = arith.negf %508 : vector<16x32xf32>
    %510 = math.exp %509 : vector<16x32xf32>
    %cst_156 = arith.constant 1.000000e+00 : f32
    %511 = vector.broadcast %cst_156 : f32 to vector<16x32xf32>
    %512 = arith.addf %511, %510 : vector<16x32xf32>
    %513 = arith.divf %511, %512 : vector<16x32xf32>
    %514 = vector.extract_strided_slice %494 {offsets = [0, 64], sizes = [16, 32], strides = [1, 1]} : vector<16x96xf32> to vector<16x32xf32>
    %515 = vector.extract_strided_slice %497 {offsets = [0, 64], sizes = [16, 32], strides = [1, 1]} : vector<16x96xf32> to vector<16x32xf32>
    %516 = arith.mulf %505, %515 : vector<16x32xf32>
    %517 = arith.addf %514, %516 : vector<16x32xf32>
    %518 = math.tanh %517 : vector<16x32xf32>
    %cst_157 = arith.constant 1.000000e+00 : f32
    %519 = vector.broadcast %cst_157 : f32 to vector<16x32xf32>
    %520 = arith.subf %519, %513 : vector<16x32xf32>
    %521 = arith.mulf %520, %518 : vector<16x32xf32>
    %522 = arith.mulf %513, %491 : vector<16x32xf32>
    %523 = arith.addf %521, %522 : vector<16x32xf32>
    %c240_158 = arith.constant 240 : index
    %c0_159 = arith.constant 0 : index
    %524 = vector.load %arg40[%c240_158, %c0_159] : memref<256x32xf32, #tpu.memory_space<vmem>>, vector<16x32xf32>
    tpu.vector_store %arg40[%c240_158, %c0_159], %523 {strides = array<i32>} : memref<256x32xf32, #tpu.memory_space<vmem>>, vector<16x32xf32>,
    %c0_160 = arith.constant 0 : index
    %c0_161 = arith.constant 0 : index
    %525 = vector.load %arg41[%c0_160, %c0_161] : memref<256x32xf32, #tpu.memory_space<vmem>>, vector<16x32xf32>
    tpu.vector_store %arg41[%c0_160, %c0_161], %523 {strides = array<i32>} : memref<256x32xf32, #tpu.memory_space<vmem>>, vector<16x32xf32>,
    %526 = tpu.iota {dimensions = array<i32: 1>} : vector<1x32xi32>
    %c16_i32 = arith.constant 16 : i32
    %527 = vector.broadcast %c16_i32 : i32 to vector<1x32xi32>
    %528 = arith.cmpi slt, %526, %527 : vector<1x32xi32>
    %c0_162 = arith.constant 0 : index
    %c0_163 = arith.constant 0 : index
    %529 = vector.load %arg40[%c0_162, %c0_163] : memref<256x32xf32, #tpu.memory_space<vmem>>, vector<256x32xf32>
    %c0_164 = arith.constant 0 : index
    %c0_165 = arith.constant 0 : index
    %530 = vector.load %arg41[%c0_164, %c0_165] : memref<256x32xf32, #tpu.memory_space<vmem>>, vector<256x32xf32>
    %531 = vector.shape_cast %528 : vector<1x32xi1> to vector<1x32xi1>
    %532 = vector.broadcast %531 : vector<1x32xi1> to vector<256x32xi1>
    %533 = arith.select %532, %529, %530 : vector<256x32xi1>, vector<256x32xf32>
    %c0_166 = arith.constant 0 : index
    %c0_167 = arith.constant 0 : index
    %534 = vector.load %arg3[%c0_166, %c0_167] : memref<256x1xf32, #tpu.memory_space<vmem>>, vector<256x1xf32>
    %535 = vector.broadcast %534 : vector<256x1xf32> to vector<256x32xf32>
    %536 = arith.mulf %533, %535 : vector<256x32xf32>
    %c0_168 = arith.constant 0 : index
    %c0_169 = arith.constant 0 : index
    %537 = vector.load %arg40[%c0_168, %c0_169] : memref<256x32xf32, #tpu.memory_space<vmem>>, vector<256x32xf32>
    tpu.vector_store %arg40[%c0_168, %c0_169], %536 {strides = array<i32>} : memref<256x32xf32, #tpu.memory_space<vmem>>, vector<256x32xf32>,
    %c0_170 = arith.constant 0 : index
    %c0_171 = arith.constant 0 : index
    %538 = vector.load %arg9[%c0_170, %c0_171] : memref<32x32xf32, #tpu.memory_space<vmem>>, vector<32x32xf32>
    %cst_172 = arith.constant dense<0.000000e+00> : vector<256x32xf32>
    %539 = tpu.matmul %536, %538, %cst_172 {dimension_numbers = #tpu.dot_dimension_numbers<[1], [0], [0], [1], [0, 0, 1, 1], [], []>} : vector<256x32xf32>, vector<32x32xf32>, vector<256x32xf32> -> vector<256x32xf32>
    %c0_173 = arith.constant 0 : index
    %c0_174 = arith.constant 0 : index
    %540 = vector.load %arg10[%c0_173, %c0_174] : memref<1x32xf32, #tpu.memory_space<vmem>>, vector<1x32xf32>
    %541 = vector.broadcast %540 : vector<1x32xf32> to vector<256x32xf32>
    %542 = arith.addf %539, %541 : vector<256x32xf32>
    %cst_175 = arith.constant 1.000000e+00 : f32
    %543 = vector.broadcast %cst_175 : f32 to vector<32x1xf32>
    %c0_176 = arith.constant 0 : index
    %c0_177 = arith.constant 0 : index
    %544 = vector.load %arg14[%c0_176, %c0_177] : memref<16x256xf32, #tpu.memory_space<vmem>>, vector<16x256xf32>
    %c0_178 = arith.constant 0 : index
    %c0_179 = arith.constant 0 : index
    %545 = vector.load %arg15[%c0_178, %c0_179] : memref<256x16xf32, #tpu.memory_space<vmem>>, vector<256x16xf32>
    %cst_180 = arith.constant dense<0.000000e+00> : vector<256x1xf32>
    %546 = tpu.matmul %542, %543, %cst_180 {dimension_numbers = #tpu.dot_dimension_numbers<[1], [0], [0], [1], [0, 0, 1, 1], [], []>} : vector<256x32xf32>, vector<32x1xf32>, vector<256x1xf32> -> vector<256x1xf32>
    %cst_181 = arith.constant dense<0.000000e+00> : vector<16x1xf32>
    %547 = tpu.matmul %544, %546, %cst_181 {dimension_numbers = #tpu.dot_dimension_numbers<[1], [0], [0], [1], [0, 0, 1, 1], [], []>} : vector<16x256xf32>, vector<256x1xf32>, vector<16x1xf32> -> vector<16x1xf32>
    %cst_182 = arith.constant dense<0.000000e+00> : vector<256x1xf32>
    %548 = tpu.matmul %545, %547, %cst_182 {dimension_numbers = #tpu.dot_dimension_numbers<[1], [0], [0], [1], [0, 0, 1, 1], [], []>} : vector<256x16xf32>, vector<16x1xf32>, vector<256x1xf32> -> vector<256x1xf32>
    %549 = vector.broadcast %548 : vector<256x1xf32> to vector<256x32xf32>
    %550 = arith.subf %542, %549 : vector<256x32xf32>
    %551 = arith.mulf %550, %550 : vector<256x32xf32>
    %cst_183 = arith.constant dense<0.000000e+00> : vector<256x1xf32>
    %552 = tpu.matmul %551, %543, %cst_183 {dimension_numbers = #tpu.dot_dimension_numbers<[1], [0], [0], [1], [0, 0, 1, 1], [], []>} : vector<256x32xf32>, vector<32x1xf32>, vector<256x1xf32> -> vector<256x1xf32>
    %cst_184 = arith.constant dense<0.000000e+00> : vector<16x1xf32>
    %553 = tpu.matmul %544, %552, %cst_184 {dimension_numbers = #tpu.dot_dimension_numbers<[1], [0], [0], [1], [0, 0, 1, 1], [], []>} : vector<16x256xf32>, vector<256x1xf32>, vector<16x1xf32> -> vector<16x1xf32>
    %c0_185 = arith.constant 0 : index
    %c0_186 = arith.constant 0 : index
    %554 = vector.load %arg11[%c0_185, %c0_186] : memref<16x1xf32, #tpu.memory_space<vmem>>, vector<16x1xf32>
    %cst_187 = arith.constant 9.99999974E-6 : f32
    %555 = vector.broadcast %cst_187 : f32 to vector<16x1xf32>
    %556 = arith.addf %553, %555 : vector<16x1xf32>
    %557 = math.rsqrt %556 : vector<16x1xf32>
    %558 = arith.mulf %554, %557 : vector<16x1xf32>
    %cst_188 = arith.constant dense<0.000000e+00> : vector<256x1xf32>
    %559 = tpu.matmul %545, %558, %cst_188 {dimension_numbers = #tpu.dot_dimension_numbers<[1], [0], [0], [1], [0, 0, 1, 1], [], []>} : vector<256x16xf32>, vector<16x1xf32>, vector<256x1xf32> -> vector<256x1xf32>
    %c0_189 = arith.constant 0 : index
    %c0_190 = arith.constant 0 : index
    %560 = vector.load %arg12[%c0_189, %c0_190] : memref<16x1xf32, #tpu.memory_space<vmem>>, vector<16x1xf32>
    %cst_191 = arith.constant dense<0.000000e+00> : vector<256x1xf32>
    %561 = tpu.matmul %545, %560, %cst_191 {dimension_numbers = #tpu.dot_dimension_numbers<[1], [0], [0], [1], [0, 0, 1, 1], [], []>} : vector<256x16xf32>, vector<16x1xf32>, vector<256x1xf32> -> vector<256x1xf32>
    %562 = vector.broadcast %559 : vector<256x1xf32> to vector<256x32xf32>
    %563 = arith.mulf %550, %562 : vector<256x32xf32>
    %564 = vector.broadcast %561 : vector<256x1xf32> to vector<256x32xf32>
    %565 = arith.addf %563, %564 : vector<256x32xf32>
    %cst_192 = arith.constant 0.000000e+00 : f32
    %566 = vector.broadcast %cst_192 : f32 to vector<256x32xf32>
    %567 = arith.maximumf %565, %566 : vector<256x32xf32>
    %c0_193 = arith.constant 0 : index
    %c0_194 = arith.constant 0 : index
    %568 = vector.load %arg13[%c0_193, %c0_194] : memref<32x1xf32, #tpu.memory_space<vmem>>, vector<32x1xf32>
    %cst_195 = arith.constant dense<0.000000e+00> : vector<256x1xf32>
    %569 = tpu.matmul %567, %568, %cst_195 {dimension_numbers = #tpu.dot_dimension_numbers<[1], [0], [0], [1], [0, 0, 1, 1], [], []>} : vector<256x32xf32>, vector<32x1xf32>, vector<256x1xf32> -> vector<256x1xf32>
    %cst_196 = arith.constant dense<0xFF800000> : vector<1xf32>
    %570 = vector.multi_reduction <maximumf>, %569, %cst_196 [0] : vector<256x1xf32> to vector<1xf32>
    %571 = vector.shape_cast %570 : vector<1xf32> to vector<1x1xf32>
    %572 = vector.broadcast %571 : vector<1x1xf32> to vector<256x1xf32>
    %573 = arith.subf %569, %572 : vector<256x1xf32>
    %574 = math.exp %573 : vector<256x1xf32>
    %c0_197 = arith.constant 0 : index
    %c0_198 = arith.constant 0 : index
    %575 = vector.load %arg16[%c0_197, %c0_198] : memref<16x256xf32, #tpu.memory_space<vmem>>, vector<16x256xf32>
    %cst_199 = arith.constant dense<0.000000e+00> : vector<16x1xf32>
    %576 = tpu.matmul %575, %574, %cst_199 {dimension_numbers = #tpu.dot_dimension_numbers<[1], [0], [0], [1], [0, 0, 1, 1], [], []>} : vector<16x256xf32>, vector<256x1xf32>, vector<16x1xf32> -> vector<16x1xf32>
    %577 = tpu.reciprocal %576 {approx = true} : vector<16x1xf32> -> vector<16x1xf32>
    %c0_200 = arith.constant 0 : index
    %c0_201 = arith.constant 0 : index
    %578 = vector.load %arg17[%c0_200, %c0_201] : memref<256x16xf32, #tpu.memory_space<vmem>>, vector<256x16xf32>
    %cst_202 = arith.constant dense<0.000000e+00> : vector<256x1xf32>
    %579 = tpu.matmul %578, %577, %cst_202 {dimension_numbers = #tpu.dot_dimension_numbers<[1], [0], [0], [1], [0, 0, 1, 1], [], []>} : vector<256x16xf32>, vector<16x1xf32>, vector<256x1xf32> -> vector<256x1xf32>
    %580 = arith.mulf %574, %579 : vector<256x1xf32>
    %c0_203 = arith.constant 0 : index
    %c0_204 = arith.constant 0 : index
    %581 = vector.load %arg40[%c0_203, %c0_204] : memref<256x32xf32, #tpu.memory_space<vmem>>, vector<256x32xf32>
    %582 = vector.broadcast %580 : vector<256x1xf32> to vector<256x32xf32>
    %583 = arith.mulf %581, %582 : vector<256x32xf32>
    %c0_205 = arith.constant 0 : index
    %c0_206 = arith.constant 0 : index
    %584 = vector.load %arg18[%c0_205, %c0_206] : memref<64x256xf32, #tpu.memory_space<vmem>>, vector<64x256xf32>
    %cst_207 = arith.constant dense<0.000000e+00> : vector<64x32xf32>
    %585 = tpu.matmul %584, %583, %cst_207 {dimension_numbers = #tpu.dot_dimension_numbers<[1], [0], [0], [1], [0, 0, 1, 1], [], []>} : vector<64x256xf32>, vector<256x32xf32>, vector<64x32xf32> -> vector<64x32xf32>
    %c0_208 = arith.constant 0 : index
    %c0_209 = arith.constant 0 : index
    %586 = vector.load %arg19[%c0_208, %c0_209] : memref<64x256xf32, #tpu.memory_space<vmem>>, vector<64x256xf32>
    %cst_210 = arith.constant dense<0.000000e+00> : vector<64x32xf32>
    %587 = tpu.matmul %586, %583, %cst_210 {dimension_numbers = #tpu.dot_dimension_numbers<[1], [0], [0], [1], [0, 0, 1, 1], [], []>} : vector<64x256xf32>, vector<256x32xf32>, vector<64x32xf32> -> vector<64x32xf32>
    %c0_211 = arith.constant 0 : index
    %c0_212 = arith.constant 0 : index
    %588 = vector.load %arg21[%c0_211, %c0_212] : memref<32x96xf32, #tpu.memory_space<vmem>>, vector<32x96xf32>
    %cst_213 = arith.constant dense<0.000000e+00> : vector<64x96xf32>
    %589 = tpu.matmul %585, %588, %cst_213 {dimension_numbers = #tpu.dot_dimension_numbers<[1], [0], [0], [1], [0, 0, 1, 1], [], []>} : vector<64x32xf32>, vector<32x96xf32>, vector<64x96xf32> -> vector<64x96xf32>
    %c0_214 = arith.constant 0 : index
    %c0_215 = arith.constant 0 : index
    %590 = vector.load %arg22[%c0_214, %c0_215] : memref<32x96xf32, #tpu.memory_space<vmem>>, vector<32x96xf32>
    %cst_216 = arith.constant dense<0.000000e+00> : vector<64x96xf32>
    %591 = tpu.matmul %587, %590, %cst_216 {dimension_numbers = #tpu.dot_dimension_numbers<[1], [0], [0], [1], [0, 0, 1, 1], [], []>} : vector<64x32xf32>, vector<32x96xf32>, vector<64x96xf32> -> vector<64x96xf32>
    %592 = arith.addf %589, %591 : vector<64x96xf32>
    %c0_217 = arith.constant 0 : index
    %c0_218 = arith.constant 0 : index
    %593 = vector.load %arg23[%c0_217, %c0_218] : memref<1x96xf32, #tpu.memory_space<vmem>>, vector<1x96xf32>
    %594 = vector.broadcast %593 : vector<1x96xf32> to vector<64x96xf32>
    %595 = arith.addf %592, %594 : vector<64x96xf32>
    %c0_219 = arith.constant 0 : index
    %c0_220 = arith.constant 0 : index
    %596 = vector.load %arg42[%c0_219, %c0_220] : memref<64x96xf32, #tpu.memory_space<vmem>>, vector<64x96xf32>
    tpu.vector_store %arg42[%c0_219, %c0_220], %595 {strides = array<i32>} : memref<64x96xf32, #tpu.memory_space<vmem>>, vector<64x96xf32>,
    %c0_221 = arith.constant 0 : index
    %c0_222 = arith.constant 0 : index
    %597 = vector.load %arg24[%c0_221, %c0_222] : memref<32x96xf32, #tpu.memory_space<vmem>>, vector<32x96xf32>
    %c0_223 = arith.constant 0 : index
    %c0_224 = arith.constant 0 : index
    %598 = vector.load %arg25[%c0_223, %c0_224] : memref<1x96xf32, #tpu.memory_space<vmem>>, vector<1x96xf32>
    %cst_225 = arith.constant 0.000000e+00 : f32
    %599 = vector.broadcast %cst_225 : f32 to vector<8x32xf32>
    %c0_226 = arith.constant 0 : index
    %c0_227 = arith.constant 0 : index
    %600 = vector.load %arg42[%c0_226, %c0_227] : memref<64x96xf32, #tpu.memory_space<vmem>>, vector<8x96xf32>
    %cst_228 = arith.constant dense<0.000000e+00> : vector<8x96xf32>
    %601 = tpu.matmul %599, %597, %cst_228 {dimension_numbers = #tpu.dot_dimension_numbers<[1], [0], [0], [1], [0, 0, 1, 1], [], []>} : vector<8x32xf32>, vector<32x96xf32>, vector<8x96xf32> -> vector<8x96xf32>
    %602 = vector.broadcast %598 : vector<1x96xf32> to vector<8x96xf32>
    %603 = arith.addf %601, %602 : vector<8x96xf32>
    %604 = vector.extract_strided_slice %600 {offsets = [0, 0], sizes = [8, 32], strides = [1, 1]} : vector<8x96xf32> to vector<8x32xf32>
    %605 = vector.extract_strided_slice %603 {offsets = [0, 0], sizes = [8, 32], strides = [1, 1]} : vector<8x96xf32> to vector<8x32xf32>
    %606 = arith.addf %604, %605 : vector<8x32xf32>
    %607 = arith.negf %606 : vector<8x32xf32>
    %608 = math.exp %607 : vector<8x32xf32>
    %cst_229 = arith.constant 1.000000e+00 : f32
    %609 = vector.broadcast %cst_229 : f32 to vector<8x32xf32>
    %610 = arith.addf %609, %608 : vector<8x32xf32>
    %611 = arith.divf %609, %610 : vector<8x32xf32>
    %612 = vector.extract_strided_slice %600 {offsets = [0, 32], sizes = [8, 32], strides = [1, 1]} : vector<8x96xf32> to vector<8x32xf32>
    %613 = vector.extract_strided_slice %603 {offsets = [0, 32], sizes = [8, 32], strides = [1, 1]} : vector<8x96xf32> to vector<8x32xf32>
    %614 = arith.addf %612, %613 : vector<8x32xf32>
    %615 = arith.negf %614 : vector<8x32xf32>
    %616 = math.exp %615 : vector<8x32xf32>
    %cst_230 = arith.constant 1.000000e+00 : f32
    %617 = vector.broadcast %cst_230 : f32 to vector<8x32xf32>
    %618 = arith.addf %617, %616 : vector<8x32xf32>
    %619 = arith.divf %617, %618 : vector<8x32xf32>
    %620 = vector.extract_strided_slice %600 {offsets = [0, 64], sizes = [8, 32], strides = [1, 1]} : vector<8x96xf32> to vector<8x32xf32>
    %621 = vector.extract_strided_slice %603 {offsets = [0, 64], sizes = [8, 32], strides = [1, 1]} : vector<8x96xf32> to vector<8x32xf32>
    %622 = arith.mulf %611, %621 : vector<8x32xf32>
    %623 = arith.addf %620, %622 : vector<8x32xf32>
    %624 = math.tanh %623 : vector<8x32xf32>
    %cst_231 = arith.constant 1.000000e+00 : f32
    %625 = vector.broadcast %cst_231 : f32 to vector<8x32xf32>
    %626 = arith.subf %625, %619 : vector<8x32xf32>
    %627 = arith.mulf %626, %624 : vector<8x32xf32>
    %628 = arith.mulf %619, %599 : vector<8x32xf32>
    %629 = arith.addf %627, %628 : vector<8x32xf32>
    %c0_232 = arith.constant 0 : index
    %c0_233 = arith.constant 0 : index
    %630 = vector.load %arg43[%c0_232, %c0_233] : memref<64x32xf32, #tpu.memory_space<vmem>>, vector<8x32xf32>
    tpu.vector_store %arg43[%c0_232, %c0_233], %629 {strides = array<i32>} : memref<64x32xf32, #tpu.memory_space<vmem>>, vector<8x32xf32>,
    %c56 = arith.constant 56 : index
    %c0_234 = arith.constant 0 : index
    %631 = vector.load %arg44[%c56, %c0_234] : memref<64x32xf32, #tpu.memory_space<vmem>>, vector<8x32xf32>
    tpu.vector_store %arg44[%c56, %c0_234], %629 {strides = array<i32>} : memref<64x32xf32, #tpu.memory_space<vmem>>, vector<8x32xf32>,
    %c8 = arith.constant 8 : index
    %c0_235 = arith.constant 0 : index
    %632 = vector.load %arg42[%c8, %c0_235] : memref<64x96xf32, #tpu.memory_space<vmem>>, vector<8x96xf32>
    %cst_236 = arith.constant dense<0.000000e+00> : vector<8x96xf32>
    %633 = tpu.matmul %629, %597, %cst_236 {dimension_numbers = #tpu.dot_dimension_numbers<[1], [0], [0], [1], [0, 0, 1, 1], [], []>} : vector<8x32xf32>, vector<32x96xf32>, vector<8x96xf32> -> vector<8x96xf32>
    %634 = vector.broadcast %598 : vector<1x96xf32> to vector<8x96xf32>
    %635 = arith.addf %633, %634 : vector<8x96xf32>
    %636 = vector.extract_strided_slice %632 {offsets = [0, 0], sizes = [8, 32], strides = [1, 1]} : vector<8x96xf32> to vector<8x32xf32>
    %637 = vector.extract_strided_slice %635 {offsets = [0, 0], sizes = [8, 32], strides = [1, 1]} : vector<8x96xf32> to vector<8x32xf32>
    %638 = arith.addf %636, %637 : vector<8x32xf32>
    %639 = arith.negf %638 : vector<8x32xf32>
    %640 = math.exp %639 : vector<8x32xf32>
    %cst_237 = arith.constant 1.000000e+00 : f32
    %641 = vector.broadcast %cst_237 : f32 to vector<8x32xf32>
    %642 = arith.addf %641, %640 : vector<8x32xf32>
    %643 = arith.divf %641, %642 : vector<8x32xf32>
    %644 = vector.extract_strided_slice %632 {offsets = [0, 32], sizes = [8, 32], strides = [1, 1]} : vector<8x96xf32> to vector<8x32xf32>
    %645 = vector.extract_strided_slice %635 {offsets = [0, 32], sizes = [8, 32], strides = [1, 1]} : vector<8x96xf32> to vector<8x32xf32>
    %646 = arith.addf %644, %645 : vector<8x32xf32>
    %647 = arith.negf %646 : vector<8x32xf32>
    %648 = math.exp %647 : vector<8x32xf32>
    %cst_238 = arith.constant 1.000000e+00 : f32
    %649 = vector.broadcast %cst_238 : f32 to vector<8x32xf32>
    %650 = arith.addf %649, %648 : vector<8x32xf32>
    %651 = arith.divf %649, %650 : vector<8x32xf32>
    %652 = vector.extract_strided_slice %632 {offsets = [0, 64], sizes = [8, 32], strides = [1, 1]} : vector<8x96xf32> to vector<8x32xf32>
    %653 = vector.extract_strided_slice %635 {offsets = [0, 64], sizes = [8, 32], strides = [1, 1]} : vector<8x96xf32> to vector<8x32xf32>
    %654 = arith.mulf %643, %653 : vector<8x32xf32>
    %655 = arith.addf %652, %654 : vector<8x32xf32>
    %656 = math.tanh %655 : vector<8x32xf32>
    %cst_239 = arith.constant 1.000000e+00 : f32
    %657 = vector.broadcast %cst_239 : f32 to vector<8x32xf32>
    %658 = arith.subf %657, %651 : vector<8x32xf32>
    %659 = arith.mulf %658, %656 : vector<8x32xf32>
    %660 = arith.mulf %651, %629 : vector<8x32xf32>
    %661 = arith.addf %659, %660 : vector<8x32xf32>
    %c8_240 = arith.constant 8 : index
    %c0_241 = arith.constant 0 : index
    %662 = vector.load %arg43[%c8_240, %c0_241] : memref<64x32xf32, #tpu.memory_space<vmem>>, vector<8x32xf32>
    tpu.vector_store %arg43[%c8_240, %c0_241], %661 {strides = array<i32>} : memref<64x32xf32, #tpu.memory_space<vmem>>, vector<8x32xf32>,
    %c48_242 = arith.constant 48 : index
    %c0_243 = arith.constant 0 : index
    %663 = vector.load %arg44[%c48_242, %c0_243] : memref<64x32xf32, #tpu.memory_space<vmem>>, vector<8x32xf32>
    tpu.vector_store %arg44[%c48_242, %c0_243], %661 {strides = array<i32>} : memref<64x32xf32, #tpu.memory_space<vmem>>, vector<8x32xf32>,
    %c16_244 = arith.constant 16 : index
    %c0_245 = arith.constant 0 : index
    %664 = vector.load %arg42[%c16_244, %c0_245] : memref<64x96xf32, #tpu.memory_space<vmem>>, vector<8x96xf32>
    %cst_246 = arith.constant dense<0.000000e+00> : vector<8x96xf32>
    %665 = tpu.matmul %661, %597, %cst_246 {dimension_numbers = #tpu.dot_dimension_numbers<[1], [0], [0], [1], [0, 0, 1, 1], [], []>} : vector<8x32xf32>, vector<32x96xf32>, vector<8x96xf32> -> vector<8x96xf32>
    %666 = vector.broadcast %598 : vector<1x96xf32> to vector<8x96xf32>
    %667 = arith.addf %665, %666 : vector<8x96xf32>
    %668 = vector.extract_strided_slice %664 {offsets = [0, 0], sizes = [8, 32], strides = [1, 1]} : vector<8x96xf32> to vector<8x32xf32>
    %669 = vector.extract_strided_slice %667 {offsets = [0, 0], sizes = [8, 32], strides = [1, 1]} : vector<8x96xf32> to vector<8x32xf32>
    %670 = arith.addf %668, %669 : vector<8x32xf32>
    %671 = arith.negf %670 : vector<8x32xf32>
    %672 = math.exp %671 : vector<8x32xf32>
    %cst_247 = arith.constant 1.000000e+00 : f32
    %673 = vector.broadcast %cst_247 : f32 to vector<8x32xf32>
    %674 = arith.addf %673, %672 : vector<8x32xf32>
    %675 = arith.divf %673, %674 : vector<8x32xf32>
    %676 = vector.extract_strided_slice %664 {offsets = [0, 32], sizes = [8, 32], strides = [1, 1]} : vector<8x96xf32> to vector<8x32xf32>
    %677 = vector.extract_strided_slice %667 {offsets = [0, 32], sizes = [8, 32], strides = [1, 1]} : vector<8x96xf32> to vector<8x32xf32>
    %678 = arith.addf %676, %677 : vector<8x32xf32>
    %679 = arith.negf %678 : vector<8x32xf32>
    %680 = math.exp %679 : vector<8x32xf32>
    %cst_248 = arith.constant 1.000000e+00 : f32
    %681 = vector.broadcast %cst_248 : f32 to vector<8x32xf32>
    %682 = arith.addf %681, %680 : vector<8x32xf32>
    %683 = arith.divf %681, %682 : vector<8x32xf32>
    %684 = vector.extract_strided_slice %664 {offsets = [0, 64], sizes = [8, 32], strides = [1, 1]} : vector<8x96xf32> to vector<8x32xf32>
    %685 = vector.extract_strided_slice %667 {offsets = [0, 64], sizes = [8, 32], strides = [1, 1]} : vector<8x96xf32> to vector<8x32xf32>
    %686 = arith.mulf %675, %685 : vector<8x32xf32>
    %687 = arith.addf %684, %686 : vector<8x32xf32>
    %688 = math.tanh %687 : vector<8x32xf32>
    %cst_249 = arith.constant 1.000000e+00 : f32
    %689 = vector.broadcast %cst_249 : f32 to vector<8x32xf32>
    %690 = arith.subf %689, %683 : vector<8x32xf32>
    %691 = arith.mulf %690, %688 : vector<8x32xf32>
    %692 = arith.mulf %683, %661 : vector<8x32xf32>
    %693 = arith.addf %691, %692 : vector<8x32xf32>
    %c16_250 = arith.constant 16 : index
    %c0_251 = arith.constant 0 : index
    %694 = vector.load %arg43[%c16_250, %c0_251] : memref<64x32xf32, #tpu.memory_space<vmem>>, vector<8x32xf32>
    tpu.vector_store %arg43[%c16_250, %c0_251], %693 {strides = array<i32>} : memref<64x32xf32, #tpu.memory_space<vmem>>, vector<8x32xf32>,
    %c40 = arith.constant 40 : index
    %c0_252 = arith.constant 0 : index
    %695 = vector.load %arg44[%c40, %c0_252] : memref<64x32xf32, #tpu.memory_space<vmem>>, vector<8x32xf32>
    tpu.vector_store %arg44[%c40, %c0_252], %693 {strides = array<i32>} : memref<64x32xf32, #tpu.memory_space<vmem>>, vector<8x32xf32>,
    %c24 = arith.constant 24 : index
    %c0_253 = arith.constant 0 : index
    %696 = vector.load %arg42[%c24, %c0_253] : memref<64x96xf32, #tpu.memory_space<vmem>>, vector<8x96xf32>
    %cst_254 = arith.constant dense<0.000000e+00> : vector<8x96xf32>
    %697 = tpu.matmul %693, %597, %cst_254 {dimension_numbers = #tpu.dot_dimension_numbers<[1], [0], [0], [1], [0, 0, 1, 1], [], []>} : vector<8x32xf32>, vector<32x96xf32>, vector<8x96xf32> -> vector<8x96xf32>
    %698 = vector.broadcast %598 : vector<1x96xf32> to vector<8x96xf32>
    %699 = arith.addf %697, %698 : vector<8x96xf32>
    %700 = vector.extract_strided_slice %696 {offsets = [0, 0], sizes = [8, 32], strides = [1, 1]} : vector<8x96xf32> to vector<8x32xf32>
    %701 = vector.extract_strided_slice %699 {offsets = [0, 0], sizes = [8, 32], strides = [1, 1]} : vector<8x96xf32> to vector<8x32xf32>
    %702 = arith.addf %700, %701 : vector<8x32xf32>
    %703 = arith.negf %702 : vector<8x32xf32>
    %704 = math.exp %703 : vector<8x32xf32>
    %cst_255 = arith.constant 1.000000e+00 : f32
    %705 = vector.broadcast %cst_255 : f32 to vector<8x32xf32>
    %706 = arith.addf %705, %704 : vector<8x32xf32>
    %707 = arith.divf %705, %706 : vector<8x32xf32>
    %708 = vector.extract_strided_slice %696 {offsets = [0, 32], sizes = [8, 32], strides = [1, 1]} : vector<8x96xf32> to vector<8x32xf32>
    %709 = vector.extract_strided_slice %699 {offsets = [0, 32], sizes = [8, 32], strides = [1, 1]} : vector<8x96xf32> to vector<8x32xf32>
    %710 = arith.addf %708, %709 : vector<8x32xf32>
    %711 = arith.negf %710 : vector<8x32xf32>
    %712 = math.exp %711 : vector<8x32xf32>
    %cst_256 = arith.constant 1.000000e+00 : f32
    %713 = vector.broadcast %cst_256 : f32 to vector<8x32xf32>
    %714 = arith.addf %713, %712 : vector<8x32xf32>
    %715 = arith.divf %713, %714 : vector<8x32xf32>
    %716 = vector.extract_strided_slice %696 {offsets = [0, 64], sizes = [8, 32], strides = [1, 1]} : vector<8x96xf32> to vector<8x32xf32>
    %717 = vector.extract_strided_slice %699 {offsets = [0, 64], sizes = [8, 32], strides = [1, 1]} : vector<8x96xf32> to vector<8x32xf32>
    %718 = arith.mulf %707, %717 : vector<8x32xf32>
    %719 = arith.addf %716, %718 : vector<8x32xf32>
    %720 = math.tanh %719 : vector<8x32xf32>
    %cst_257 = arith.constant 1.000000e+00 : f32
    %721 = vector.broadcast %cst_257 : f32 to vector<8x32xf32>
    %722 = arith.subf %721, %715 : vector<8x32xf32>
    %723 = arith.mulf %722, %720 : vector<8x32xf32>
    %724 = arith.mulf %715, %693 : vector<8x32xf32>
    %725 = arith.addf %723, %724 : vector<8x32xf32>
    %c24_258 = arith.constant 24 : index
    %c0_259 = arith.constant 0 : index
    %726 = vector.load %arg43[%c24_258, %c0_259] : memref<64x32xf32, #tpu.memory_space<vmem>>, vector<8x32xf32>
    tpu.vector_store %arg43[%c24_258, %c0_259], %725 {strides = array<i32>} : memref<64x32xf32, #tpu.memory_space<vmem>>, vector<8x32xf32>,
    %c32_260 = arith.constant 32 : index
    %c0_261 = arith.constant 0 : index
    %727 = vector.load %arg44[%c32_260, %c0_261] : memref<64x32xf32, #tpu.memory_space<vmem>>, vector<8x32xf32>
    tpu.vector_store %arg44[%c32_260, %c0_261], %725 {strides = array<i32>} : memref<64x32xf32, #tpu.memory_space<vmem>>, vector<8x32xf32>,
    %c32_262 = arith.constant 32 : index
    %c0_263 = arith.constant 0 : index
    %728 = vector.load %arg42[%c32_262, %c0_263] : memref<64x96xf32, #tpu.memory_space<vmem>>, vector<8x96xf32>
    %cst_264 = arith.constant dense<0.000000e+00> : vector<8x96xf32>
    %729 = tpu.matmul %725, %597, %cst_264 {dimension_numbers = #tpu.dot_dimension_numbers<[1], [0], [0], [1], [0, 0, 1, 1], [], []>} : vector<8x32xf32>, vector<32x96xf32>, vector<8x96xf32> -> vector<8x96xf32>
    %730 = vector.broadcast %598 : vector<1x96xf32> to vector<8x96xf32>
    %731 = arith.addf %729, %730 : vector<8x96xf32>
    %732 = vector.extract_strided_slice %728 {offsets = [0, 0], sizes = [8, 32], strides = [1, 1]} : vector<8x96xf32> to vector<8x32xf32>
    %733 = vector.extract_strided_slice %731 {offsets = [0, 0], sizes = [8, 32], strides = [1, 1]} : vector<8x96xf32> to vector<8x32xf32>
    %734 = arith.addf %732, %733 : vector<8x32xf32>
    %735 = arith.negf %734 : vector<8x32xf32>
    %736 = math.exp %735 : vector<8x32xf32>
    %cst_265 = arith.constant 1.000000e+00 : f32
    %737 = vector.broadcast %cst_265 : f32 to vector<8x32xf32>
    %738 = arith.addf %737, %736 : vector<8x32xf32>
    %739 = arith.divf %737, %738 : vector<8x32xf32>
    %740 = vector.extract_strided_slice %728 {offsets = [0, 32], sizes = [8, 32], strides = [1, 1]} : vector<8x96xf32> to vector<8x32xf32>
    %741 = vector.extract_strided_slice %731 {offsets = [0, 32], sizes = [8, 32], strides = [1, 1]} : vector<8x96xf32> to vector<8x32xf32>
    %742 = arith.addf %740, %741 : vector<8x32xf32>
    %743 = arith.negf %742 : vector<8x32xf32>
    %744 = math.exp %743 : vector<8x32xf32>
    %cst_266 = arith.constant 1.000000e+00 : f32
    %745 = vector.broadcast %cst_266 : f32 to vector<8x32xf32>
    %746 = arith.addf %745, %744 : vector<8x32xf32>
    %747 = arith.divf %745, %746 : vector<8x32xf32>
    %748 = vector.extract_strided_slice %728 {offsets = [0, 64], sizes = [8, 32], strides = [1, 1]} : vector<8x96xf32> to vector<8x32xf32>
    %749 = vector.extract_strided_slice %731 {offsets = [0, 64], sizes = [8, 32], strides = [1, 1]} : vector<8x96xf32> to vector<8x32xf32>
    %750 = arith.mulf %739, %749 : vector<8x32xf32>
    %751 = arith.addf %748, %750 : vector<8x32xf32>
    %752 = math.tanh %751 : vector<8x32xf32>
    %cst_267 = arith.constant 1.000000e+00 : f32
    %753 = vector.broadcast %cst_267 : f32 to vector<8x32xf32>
    %754 = arith.subf %753, %747 : vector<8x32xf32>
    %755 = arith.mulf %754, %752 : vector<8x32xf32>
    %756 = arith.mulf %747, %725 : vector<8x32xf32>
    %757 = arith.addf %755, %756 : vector<8x32xf32>
    %c32_268 = arith.constant 32 : index
    %c0_269 = arith.constant 0 : index
    %758 = vector.load %arg43[%c32_268, %c0_269] : memref<64x32xf32, #tpu.memory_space<vmem>>, vector<8x32xf32>
    tpu.vector_store %arg43[%c32_268, %c0_269], %757 {strides = array<i32>} : memref<64x32xf32, #tpu.memory_space<vmem>>, vector<8x32xf32>,
    %c24_270 = arith.constant 24 : index
    %c0_271 = arith.constant 0 : index
    %759 = vector.load %arg44[%c24_270, %c0_271] : memref<64x32xf32, #tpu.memory_space<vmem>>, vector<8x32xf32>
    tpu.vector_store %arg44[%c24_270, %c0_271], %757 {strides = array<i32>} : memref<64x32xf32, #tpu.memory_space<vmem>>, vector<8x32xf32>,
    %c40_272 = arith.constant 40 : index
    %c0_273 = arith.constant 0 : index
    %760 = vector.load %arg42[%c40_272, %c0_273] : memref<64x96xf32, #tpu.memory_space<vmem>>, vector<8x96xf32>
    %cst_274 = arith.constant dense<0.000000e+00> : vector<8x96xf32>
    %761 = tpu.matmul %757, %597, %cst_274 {dimension_numbers = #tpu.dot_dimension_numbers<[1], [0], [0], [1], [0, 0, 1, 1], [], []>} : vector<8x32xf32>, vector<32x96xf32>, vector<8x96xf32> -> vector<8x96xf32>
    %762 = vector.broadcast %598 : vector<1x96xf32> to vector<8x96xf32>
    %763 = arith.addf %761, %762 : vector<8x96xf32>
    %764 = vector.extract_strided_slice %760 {offsets = [0, 0], sizes = [8, 32], strides = [1, 1]} : vector<8x96xf32> to vector<8x32xf32>
    %765 = vector.extract_strided_slice %763 {offsets = [0, 0], sizes = [8, 32], strides = [1, 1]} : vector<8x96xf32> to vector<8x32xf32>
    %766 = arith.addf %764, %765 : vector<8x32xf32>
    %767 = arith.negf %766 : vector<8x32xf32>
    %768 = math.exp %767 : vector<8x32xf32>
    %cst_275 = arith.constant 1.000000e+00 : f32
    %769 = vector.broadcast %cst_275 : f32 to vector<8x32xf32>
    %770 = arith.addf %769, %768 : vector<8x32xf32>
    %771 = arith.divf %769, %770 : vector<8x32xf32>
    %772 = vector.extract_strided_slice %760 {offsets = [0, 32], sizes = [8, 32], strides = [1, 1]} : vector<8x96xf32> to vector<8x32xf32>
    %773 = vector.extract_strided_slice %763 {offsets = [0, 32], sizes = [8, 32], strides = [1, 1]} : vector<8x96xf32> to vector<8x32xf32>
    %774 = arith.addf %772, %773 : vector<8x32xf32>
    %775 = arith.negf %774 : vector<8x32xf32>
    %776 = math.exp %775 : vector<8x32xf32>
    %cst_276 = arith.constant 1.000000e+00 : f32
    %777 = vector.broadcast %cst_276 : f32 to vector<8x32xf32>
    %778 = arith.addf %777, %776 : vector<8x32xf32>
    %779 = arith.divf %777, %778 : vector<8x32xf32>
    %780 = vector.extract_strided_slice %760 {offsets = [0, 64], sizes = [8, 32], strides = [1, 1]} : vector<8x96xf32> to vector<8x32xf32>
    %781 = vector.extract_strided_slice %763 {offsets = [0, 64], sizes = [8, 32], strides = [1, 1]} : vector<8x96xf32> to vector<8x32xf32>
    %782 = arith.mulf %771, %781 : vector<8x32xf32>
    %783 = arith.addf %780, %782 : vector<8x32xf32>
    %784 = math.tanh %783 : vector<8x32xf32>
    %cst_277 = arith.constant 1.000000e+00 : f32
    %785 = vector.broadcast %cst_277 : f32 to vector<8x32xf32>
    %786 = arith.subf %785, %779 : vector<8x32xf32>
    %787 = arith.mulf %786, %784 : vector<8x32xf32>
    %788 = arith.mulf %779, %757 : vector<8x32xf32>
    %789 = arith.addf %787, %788 : vector<8x32xf32>
    %c40_278 = arith.constant 40 : index
    %c0_279 = arith.constant 0 : index
    %790 = vector.load %arg43[%c40_278, %c0_279] : memref<64x32xf32, #tpu.memory_space<vmem>>, vector<8x32xf32>
    tpu.vector_store %arg43[%c40_278, %c0_279], %789 {strides = array<i32>} : memref<64x32xf32, #tpu.memory_space<vmem>>, vector<8x32xf32>,
    %c16_280 = arith.constant 16 : index
    %c0_281 = arith.constant 0 : index
    %791 = vector.load %arg44[%c16_280, %c0_281] : memref<64x32xf32, #tpu.memory_space<vmem>>, vector<8x32xf32>
    tpu.vector_store %arg44[%c16_280, %c0_281], %789 {strides = array<i32>} : memref<64x32xf32, #tpu.memory_space<vmem>>, vector<8x32xf32>,
    %c48_282 = arith.constant 48 : index
    %c0_283 = arith.constant 0 : index
    %792 = vector.load %arg42[%c48_282, %c0_283] : memref<64x96xf32, #tpu.memory_space<vmem>>, vector<8x96xf32>
    %cst_284 = arith.constant dense<0.000000e+00> : vector<8x96xf32>
    %793 = tpu.matmul %789, %597, %cst_284 {dimension_numbers = #tpu.dot_dimension_numbers<[1], [0], [0], [1], [0, 0, 1, 1], [], []>} : vector<8x32xf32>, vector<32x96xf32>, vector<8x96xf32> -> vector<8x96xf32>
    %794 = vector.broadcast %598 : vector<1x96xf32> to vector<8x96xf32>
    %795 = arith.addf %793, %794 : vector<8x96xf32>
    %796 = vector.extract_strided_slice %792 {offsets = [0, 0], sizes = [8, 32], strides = [1, 1]} : vector<8x96xf32> to vector<8x32xf32>
    %797 = vector.extract_strided_slice %795 {offsets = [0, 0], sizes = [8, 32], strides = [1, 1]} : vector<8x96xf32> to vector<8x32xf32>
    %798 = arith.addf %796, %797 : vector<8x32xf32>
    %799 = arith.negf %798 : vector<8x32xf32>
    %800 = math.exp %799 : vector<8x32xf32>
    %cst_285 = arith.constant 1.000000e+00 : f32
    %801 = vector.broadcast %cst_285 : f32 to vector<8x32xf32>
    %802 = arith.addf %801, %800 : vector<8x32xf32>
    %803 = arith.divf %801, %802 : vector<8x32xf32>
    %804 = vector.extract_strided_slice %792 {offsets = [0, 32], sizes = [8, 32], strides = [1, 1]} : vector<8x96xf32> to vector<8x32xf32>
    %805 = vector.extract_strided_slice %795 {offsets = [0, 32], sizes = [8, 32], strides = [1, 1]} : vector<8x96xf32> to vector<8x32xf32>
    %806 = arith.addf %804, %805 : vector<8x32xf32>
    %807 = arith.negf %806 : vector<8x32xf32>
    %808 = math.exp %807 : vector<8x32xf32>
    %cst_286 = arith.constant 1.000000e+00 : f32
    %809 = vector.broadcast %cst_286 : f32 to vector<8x32xf32>
    %810 = arith.addf %809, %808 : vector<8x32xf32>
    %811 = arith.divf %809, %810 : vector<8x32xf32>
    %812 = vector.extract_strided_slice %792 {offsets = [0, 64], sizes = [8, 32], strides = [1, 1]} : vector<8x96xf32> to vector<8x32xf32>
    %813 = vector.extract_strided_slice %795 {offsets = [0, 64], sizes = [8, 32], strides = [1, 1]} : vector<8x96xf32> to vector<8x32xf32>
    %814 = arith.mulf %803, %813 : vector<8x32xf32>
    %815 = arith.addf %812, %814 : vector<8x32xf32>
    %816 = math.tanh %815 : vector<8x32xf32>
    %cst_287 = arith.constant 1.000000e+00 : f32
    %817 = vector.broadcast %cst_287 : f32 to vector<8x32xf32>
    %818 = arith.subf %817, %811 : vector<8x32xf32>
    %819 = arith.mulf %818, %816 : vector<8x32xf32>
    %820 = arith.mulf %811, %789 : vector<8x32xf32>
    %821 = arith.addf %819, %820 : vector<8x32xf32>
    %c48_288 = arith.constant 48 : index
    %c0_289 = arith.constant 0 : index
    %822 = vector.load %arg43[%c48_288, %c0_289] : memref<64x32xf32, #tpu.memory_space<vmem>>, vector<8x32xf32>
    tpu.vector_store %arg43[%c48_288, %c0_289], %821 {strides = array<i32>} : memref<64x32xf32, #tpu.memory_space<vmem>>, vector<8x32xf32>,
    %c8_290 = arith.constant 8 : index
    %c0_291 = arith.constant 0 : index
    %823 = vector.load %arg44[%c8_290, %c0_291] : memref<64x32xf32, #tpu.memory_space<vmem>>, vector<8x32xf32>
    tpu.vector_store %arg44[%c8_290, %c0_291], %821 {strides = array<i32>} : memref<64x32xf32, #tpu.memory_space<vmem>>, vector<8x32xf32>,
    %c56_292 = arith.constant 56 : index
    %c0_293 = arith.constant 0 : index
    %824 = vector.load %arg42[%c56_292, %c0_293] : memref<64x96xf32, #tpu.memory_space<vmem>>, vector<8x96xf32>
    %cst_294 = arith.constant dense<0.000000e+00> : vector<8x96xf32>
    %825 = tpu.matmul %821, %597, %cst_294 {dimension_numbers = #tpu.dot_dimension_numbers<[1], [0], [0], [1], [0, 0, 1, 1], [], []>} : vector<8x32xf32>, vector<32x96xf32>, vector<8x96xf32> -> vector<8x96xf32>
    %826 = vector.broadcast %598 : vector<1x96xf32> to vector<8x96xf32>
    %827 = arith.addf %825, %826 : vector<8x96xf32>
    %828 = vector.extract_strided_slice %824 {offsets = [0, 0], sizes = [8, 32], strides = [1, 1]} : vector<8x96xf32> to vector<8x32xf32>
    %829 = vector.extract_strided_slice %827 {offsets = [0, 0], sizes = [8, 32], strides = [1, 1]} : vector<8x96xf32> to vector<8x32xf32>
    %830 = arith.addf %828, %829 : vector<8x32xf32>
    %831 = arith.negf %830 : vector<8x32xf32>
    %832 = math.exp %831 : vector<8x32xf32>
    %cst_295 = arith.constant 1.000000e+00 : f32
    %833 = vector.broadcast %cst_295 : f32 to vector<8x32xf32>
    %834 = arith.addf %833, %832 : vector<8x32xf32>
    %835 = arith.divf %833, %834 : vector<8x32xf32>
    %836 = vector.extract_strided_slice %824 {offsets = [0, 32], sizes = [8, 32], strides = [1, 1]} : vector<8x96xf32> to vector<8x32xf32>
    %837 = vector.extract_strided_slice %827 {offsets = [0, 32], sizes = [8, 32], strides = [1, 1]} : vector<8x96xf32> to vector<8x32xf32>
    %838 = arith.addf %836, %837 : vector<8x32xf32>
    %839 = arith.negf %838 : vector<8x32xf32>
    %840 = math.exp %839 : vector<8x32xf32>
    %cst_296 = arith.constant 1.000000e+00 : f32
    %841 = vector.broadcast %cst_296 : f32 to vector<8x32xf32>
    %842 = arith.addf %841, %840 : vector<8x32xf32>
    %843 = arith.divf %841, %842 : vector<8x32xf32>
    %844 = vector.extract_strided_slice %824 {offsets = [0, 64], sizes = [8, 32], strides = [1, 1]} : vector<8x96xf32> to vector<8x32xf32>
    %845 = vector.extract_strided_slice %827 {offsets = [0, 64], sizes = [8, 32], strides = [1, 1]} : vector<8x96xf32> to vector<8x32xf32>
    %846 = arith.mulf %835, %845 : vector<8x32xf32>
    %847 = arith.addf %844, %846 : vector<8x32xf32>
    %848 = math.tanh %847 : vector<8x32xf32>
    %cst_297 = arith.constant 1.000000e+00 : f32
    %849 = vector.broadcast %cst_297 : f32 to vector<8x32xf32>
    %850 = arith.subf %849, %843 : vector<8x32xf32>
    %851 = arith.mulf %850, %848 : vector<8x32xf32>
    %852 = arith.mulf %843, %821 : vector<8x32xf32>
    %853 = arith.addf %851, %852 : vector<8x32xf32>
    %c56_298 = arith.constant 56 : index
    %c0_299 = arith.constant 0 : index
    %854 = vector.load %arg43[%c56_298, %c0_299] : memref<64x32xf32, #tpu.memory_space<vmem>>, vector<8x32xf32>
    tpu.vector_store %arg43[%c56_298, %c0_299], %853 {strides = array<i32>} : memref<64x32xf32, #tpu.memory_space<vmem>>, vector<8x32xf32>,
    %c0_300 = arith.constant 0 : index
    %c0_301 = arith.constant 0 : index
    %855 = vector.load %arg44[%c0_300, %c0_301] : memref<64x32xf32, #tpu.memory_space<vmem>>, vector<8x32xf32>
    tpu.vector_store %arg44[%c0_300, %c0_301], %853 {strides = array<i32>} : memref<64x32xf32, #tpu.memory_space<vmem>>, vector<8x32xf32>,
    %856 = tpu.iota {dimensions = array<i32: 1>} : vector<1x32xi32>
    %c16_i32_302 = arith.constant 16 : i32
    %857 = vector.broadcast %c16_i32_302 : i32 to vector<1x32xi32>
    %858 = arith.cmpi slt, %856, %857 : vector<1x32xi32>
    %c0_303 = arith.constant 0 : index
    %c0_304 = arith.constant 0 : index
    %859 = vector.load %arg43[%c0_303, %c0_304] : memref<64x32xf32, #tpu.memory_space<vmem>>, vector<64x32xf32>
    %c0_305 = arith.constant 0 : index
    %c0_306 = arith.constant 0 : index
    %860 = vector.load %arg44[%c0_305, %c0_306] : memref<64x32xf32, #tpu.memory_space<vmem>>, vector<64x32xf32>
    %861 = vector.shape_cast %858 : vector<1x32xi1> to vector<1x32xi1>
    %862 = vector.broadcast %861 : vector<1x32xi1> to vector<64x32xi1>
    %863 = arith.select %862, %859, %860 : vector<64x32xi1>, vector<64x32xf32>
    %c0_307 = arith.constant 0 : index
    %c0_308 = arith.constant 0 : index
    %864 = vector.load %arg20[%c0_307, %c0_308] : memref<64x1xf32, #tpu.memory_space<vmem>>, vector<64x1xf32>
    %865 = vector.broadcast %864 : vector<64x1xf32> to vector<64x32xf32>
    %866 = arith.mulf %863, %865 : vector<64x32xf32>
    %c0_309 = arith.constant 0 : index
    %c0_310 = arith.constant 0 : index
    %867 = vector.load %arg43[%c0_309, %c0_310] : memref<64x32xf32, #tpu.memory_space<vmem>>, vector<64x32xf32>
    tpu.vector_store %arg43[%c0_309, %c0_310], %866 {strides = array<i32>} : memref<64x32xf32, #tpu.memory_space<vmem>>, vector<64x32xf32>,
    %c0_311 = arith.constant 0 : index
    %c0_312 = arith.constant 0 : index
    %868 = vector.load %arg26[%c0_311, %c0_312] : memref<32x32xf32, #tpu.memory_space<vmem>>, vector<32x32xf32>
    %cst_313 = arith.constant dense<0.000000e+00> : vector<64x32xf32>
    %869 = tpu.matmul %866, %868, %cst_313 {dimension_numbers = #tpu.dot_dimension_numbers<[1], [0], [0], [1], [0, 0, 1, 1], [], []>} : vector<64x32xf32>, vector<32x32xf32>, vector<64x32xf32> -> vector<64x32xf32>
    %c0_314 = arith.constant 0 : index
    %c0_315 = arith.constant 0 : index
    %870 = vector.load %arg27[%c0_314, %c0_315] : memref<1x32xf32, #tpu.memory_space<vmem>>, vector<1x32xf32>
    %871 = vector.broadcast %870 : vector<1x32xf32> to vector<64x32xf32>
    %872 = arith.addf %869, %871 : vector<64x32xf32>
    %cst_316 = arith.constant 1.000000e+00 : f32
    %873 = vector.broadcast %cst_316 : f32 to vector<32x1xf32>
    %c0_317 = arith.constant 0 : index
    %c0_318 = arith.constant 0 : index
    %874 = vector.load %arg31[%c0_317, %c0_318] : memref<8x64xf32, #tpu.memory_space<vmem>>, vector<8x64xf32>
    %c0_319 = arith.constant 0 : index
    %c0_320 = arith.constant 0 : index
    %875 = vector.load %arg32[%c0_319, %c0_320] : memref<64x8xf32, #tpu.memory_space<vmem>>, vector<64x8xf32>
    %cst_321 = arith.constant dense<0.000000e+00> : vector<64x1xf32>
    %876 = tpu.matmul %872, %873, %cst_321 {dimension_numbers = #tpu.dot_dimension_numbers<[1], [0], [0], [1], [0, 0, 1, 1], [], []>} : vector<64x32xf32>, vector<32x1xf32>, vector<64x1xf32> -> vector<64x1xf32>
    %cst_322 = arith.constant dense<0.000000e+00> : vector<8x1xf32>
    %877 = tpu.matmul %874, %876, %cst_322 {dimension_numbers = #tpu.dot_dimension_numbers<[1], [0], [0], [1], [0, 0, 1, 1], [], []>} : vector<8x64xf32>, vector<64x1xf32>, vector<8x1xf32> -> vector<8x1xf32>
    %cst_323 = arith.constant dense<0.000000e+00> : vector<64x1xf32>
    %878 = tpu.matmul %875, %877, %cst_323 {dimension_numbers = #tpu.dot_dimension_numbers<[1], [0], [0], [1], [0, 0, 1, 1], [], []>} : vector<64x8xf32>, vector<8x1xf32>, vector<64x1xf32> -> vector<64x1xf32>
    %879 = vector.broadcast %878 : vector<64x1xf32> to vector<64x32xf32>
    %880 = arith.subf %872, %879 : vector<64x32xf32>
    %881 = arith.mulf %880, %880 : vector<64x32xf32>
    %cst_324 = arith.constant dense<0.000000e+00> : vector<64x1xf32>
    %882 = tpu.matmul %881, %873, %cst_324 {dimension_numbers = #tpu.dot_dimension_numbers<[1], [0], [0], [1], [0, 0, 1, 1], [], []>} : vector<64x32xf32>, vector<32x1xf32>, vector<64x1xf32> -> vector<64x1xf32>
    %cst_325 = arith.constant dense<0.000000e+00> : vector<8x1xf32>
    %883 = tpu.matmul %874, %882, %cst_325 {dimension_numbers = #tpu.dot_dimension_numbers<[1], [0], [0], [1], [0, 0, 1, 1], [], []>} : vector<8x64xf32>, vector<64x1xf32>, vector<8x1xf32> -> vector<8x1xf32>
    %c0_326 = arith.constant 0 : index
    %c0_327 = arith.constant 0 : index
    %884 = vector.load %arg28[%c0_326, %c0_327] : memref<8x1xf32, #tpu.memory_space<vmem>>, vector<8x1xf32>
    %cst_328 = arith.constant 9.99999974E-6 : f32
    %885 = vector.broadcast %cst_328 : f32 to vector<8x1xf32>
    %886 = arith.addf %883, %885 : vector<8x1xf32>
    %887 = math.rsqrt %886 : vector<8x1xf32>
    %888 = arith.mulf %884, %887 : vector<8x1xf32>
    %cst_329 = arith.constant dense<0.000000e+00> : vector<64x1xf32>
    %889 = tpu.matmul %875, %888, %cst_329 {dimension_numbers = #tpu.dot_dimension_numbers<[1], [0], [0], [1], [0, 0, 1, 1], [], []>} : vector<64x8xf32>, vector<8x1xf32>, vector<64x1xf32> -> vector<64x1xf32>
    %c0_330 = arith.constant 0 : index
    %c0_331 = arith.constant 0 : index
    %890 = vector.load %arg29[%c0_330, %c0_331] : memref<8x1xf32, #tpu.memory_space<vmem>>, vector<8x1xf32>
    %cst_332 = arith.constant dense<0.000000e+00> : vector<64x1xf32>
    %891 = tpu.matmul %875, %890, %cst_332 {dimension_numbers = #tpu.dot_dimension_numbers<[1], [0], [0], [1], [0, 0, 1, 1], [], []>} : vector<64x8xf32>, vector<8x1xf32>, vector<64x1xf32> -> vector<64x1xf32>
    %892 = vector.broadcast %889 : vector<64x1xf32> to vector<64x32xf32>
    %893 = arith.mulf %880, %892 : vector<64x32xf32>
    %894 = vector.broadcast %891 : vector<64x1xf32> to vector<64x32xf32>
    %895 = arith.addf %893, %894 : vector<64x32xf32>
    %cst_333 = arith.constant 0.000000e+00 : f32
    %896 = vector.broadcast %cst_333 : f32 to vector<64x32xf32>
    %897 = arith.maximumf %895, %896 : vector<64x32xf32>
    %c0_334 = arith.constant 0 : index
    %c0_335 = arith.constant 0 : index
    %898 = vector.load %arg30[%c0_334, %c0_335] : memref<32x1xf32, #tpu.memory_space<vmem>>, vector<32x1xf32>
    %cst_336 = arith.constant dense<0.000000e+00> : vector<64x1xf32>
    %899 = tpu.matmul %897, %898, %cst_336 {dimension_numbers = #tpu.dot_dimension_numbers<[1], [0], [0], [1], [0, 0, 1, 1], [], []>} : vector<64x32xf32>, vector<32x1xf32>, vector<64x1xf32> -> vector<64x1xf32>
    %cst_337 = arith.constant dense<0xFF800000> : vector<1xf32>
    %900 = vector.multi_reduction <maximumf>, %899, %cst_337 [0] : vector<64x1xf32> to vector<1xf32>
    %901 = vector.shape_cast %900 : vector<1xf32> to vector<1x1xf32>
    %902 = vector.broadcast %901 : vector<1x1xf32> to vector<64x1xf32>
    %903 = arith.subf %899, %902 : vector<64x1xf32>
    %904 = math.exp %903 : vector<64x1xf32>
    %c0_338 = arith.constant 0 : index
    %c0_339 = arith.constant 0 : index
    %905 = vector.load %arg33[%c0_338, %c0_339] : memref<8x64xf32, #tpu.memory_space<vmem>>, vector<8x64xf32>
    %cst_340 = arith.constant dense<0.000000e+00> : vector<8x1xf32>
    %906 = tpu.matmul %905, %904, %cst_340 {dimension_numbers = #tpu.dot_dimension_numbers<[1], [0], [0], [1], [0, 0, 1, 1], [], []>} : vector<8x64xf32>, vector<64x1xf32>, vector<8x1xf32> -> vector<8x1xf32>
    %907 = tpu.reciprocal %906 {approx = true} : vector<8x1xf32> -> vector<8x1xf32>
    %c0_341 = arith.constant 0 : index
    %c0_342 = arith.constant 0 : index
    %908 = vector.load %arg34[%c0_341, %c0_342] : memref<64x8xf32, #tpu.memory_space<vmem>>, vector<64x8xf32>
    %cst_343 = arith.constant dense<0.000000e+00> : vector<64x1xf32>
    %909 = tpu.matmul %908, %907, %cst_343 {dimension_numbers = #tpu.dot_dimension_numbers<[1], [0], [0], [1], [0, 0, 1, 1], [], []>} : vector<64x8xf32>, vector<8x1xf32>, vector<64x1xf32> -> vector<64x1xf32>
    %910 = arith.mulf %904, %909 : vector<64x1xf32>
    %c0_344 = arith.constant 0 : index
    %c0_345 = arith.constant 0 : index
    %911 = vector.load %arg43[%c0_344, %c0_345] : memref<64x32xf32, #tpu.memory_space<vmem>>, vector<64x32xf32>
    %912 = vector.broadcast %910 : vector<64x1xf32> to vector<64x32xf32>
    %913 = arith.mulf %911, %912 : vector<64x32xf32>
    %c0_346 = arith.constant 0 : index
    %c0_347 = arith.constant 0 : index
    %914 = vector.load %arg35[%c0_346, %c0_347] : memref<2x64xf32, #tpu.memory_space<vmem>>, vector<2x64xf32>
    %cst_348 = arith.constant dense<0.000000e+00> : vector<2x32xf32>
    %915 = tpu.matmul %914, %913, %cst_348 {dimension_numbers = #tpu.dot_dimension_numbers<[1], [0], [0], [1], [0, 0, 1, 1], [], []>} : vector<2x64xf32>, vector<64x32xf32>, vector<2x32xf32> -> vector<2x32xf32>
    %c0_349 = arith.constant 0 : index
    %c0_350 = arith.constant 0 : index
    %916 = vector.load %arg36[%c0_349, %c0_350] : memref<32x4xf32, #tpu.memory_space<vmem>>, vector<32x4xf32>
    %cst_351 = arith.constant dense<0.000000e+00> : vector<2x4xf32>
    %917 = tpu.matmul %915, %916, %cst_351 {dimension_numbers = #tpu.dot_dimension_numbers<[1], [0], [0], [1], [0, 0, 1, 1], [], []>} : vector<2x32xf32>, vector<32x4xf32>, vector<2x4xf32> -> vector<2x4xf32>
    %c0_352 = arith.constant 0 : index
    %c0_353 = arith.constant 0 : index
    %918 = vector.load %arg37[%c0_352, %c0_353] : memref<1x4xf32, #tpu.memory_space<vmem>>, vector<1x4xf32>
    %919 = vector.broadcast %918 : vector<1x4xf32> to vector<2x4xf32>
    %920 = arith.addf %917, %919 : vector<2x4xf32>
    %c0_354 = arith.constant 0 : index
    %c0_355 = arith.constant 0 : index
    %921 = vector.load %arg38[%c0_354, %c0_355] : memref<2x4xf32, #tpu.memory_space<vmem>>, vector<2x4xf32>
    tpu.vector_store %arg38[%c0_354, %c0_355], %920 {strides = array<i32>} : memref<2x4xf32, #tpu.memory_space<vmem>>, vector<2x4xf32>,
    return
  }
  func.func @transform_0(%arg0: i32) -> (i32, i32) {
    %c0_i32 = arith.constant 0 : i32
    %c0_i32_0 = arith.constant 0 : i32
    %c0_i32_1 = arith.constant 0 : i32
    return %c0_i32, %c0_i32_0 : i32, i32
  }
  func.func @transform_1(%arg0: i32) -> (i32, i32) {
    %c0_i32 = arith.constant 0 : i32
    %c0_i32_0 = arith.constant 0 : i32
    %c0_i32_1 = arith.constant 0 : i32
    return %c0_i32, %c0_i32_0 : i32, i32
  }
  func.func @transform_2(%arg0: i32) -> (i32, i32) {
    %c0_i32 = arith.constant 0 : i32
    %c0_i32_0 = arith.constant 0 : i32
    %c0_i32_1 = arith.constant 0 : i32
    return %c0_i32, %c0_i32_0 : i32, i32
  }
  func.func @transform_3(%arg0: i32) -> (i32, i32) {
    %c0_i32 = arith.constant 0 : i32
    %c0_i32_0 = arith.constant 0 : i32
    %c0_i32_1 = arith.constant 0 : i32
    return %c0_i32, %c0_i32_0 : i32, i32
  }
  func.func @transform_4(%arg0: i32) -> (i32, i32) {
    %c0_i32 = arith.constant 0 : i32
    %c0_i32_0 = arith.constant 0 : i32
    %c0_i32_1 = arith.constant 0 : i32
    return %c0_i32, %c0_i32_0 : i32, i32
  }
  func.func @transform_5(%arg0: i32) -> (i32, i32) {
    %c0_i32 = arith.constant 0 : i32
    %c0_i32_0 = arith.constant 0 : i32
    %c0_i32_1 = arith.constant 0 : i32
    return %c0_i32, %c0_i32_0 : i32, i32
  }
  func.func @transform_6(%arg0: i32) -> (i32, i32) {
    %c0_i32 = arith.constant 0 : i32
    %c0_i32_0 = arith.constant 0 : i32
    %c0_i32_1 = arith.constant 0 : i32
    return %c0_i32, %c0_i32_0 : i32, i32
  }
  func.func @transform_7(%arg0: i32) -> (i32, i32) {
    %c0_i32 = arith.constant 0 : i32
    %c0_i32_0 = arith.constant 0 : i32
    %c0_i32_1 = arith.constant 0 : i32
    return %c0_i32, %c0_i32_0 : i32, i32
  }
  func.func @transform_8(%arg0: i32) -> (i32, i32) {
    %c0_i32 = arith.constant 0 : i32
    %c0_i32_0 = arith.constant 0 : i32
    %c0_i32_1 = arith.constant 0 : i32
    return %c0_i32, %c0_i32_0 : i32, i32
  }
  func.func @transform_9(%arg0: i32) -> (i32, i32) {
    %c0_i32 = arith.constant 0 : i32
    %c0_i32_0 = arith.constant 0 : i32
    %c0_i32_1 = arith.constant 0 : i32
    return %c0_i32, %c0_i32_0 : i32, i32
  }
  func.func @transform_10(%arg0: i32) -> (i32, i32) {
    %c0_i32 = arith.constant 0 : i32
    %c0_i32_0 = arith.constant 0 : i32
    %c0_i32_1 = arith.constant 0 : i32
    return %c0_i32, %c0_i32_0 : i32, i32
  }
  func.func @transform_11(%arg0: i32) -> (i32, i32) {
    %c0_i32 = arith.constant 0 : i32
    %c0_i32_0 = arith.constant 0 : i32
    %c0_i32_1 = arith.constant 0 : i32
    return %c0_i32, %c0_i32_0 : i32, i32
  }
  func.func @transform_12(%arg0: i32) -> (i32, i32) {
    %c0_i32 = arith.constant 0 : i32
    %c0_i32_0 = arith.constant 0 : i32
    %c0_i32_1 = arith.constant 0 : i32
    return %c0_i32, %c0_i32_0 : i32, i32
  }
  func.func @transform_13(%arg0: i32) -> (i32, i32) {
    %c0_i32 = arith.constant 0 : i32
    %c0_i32_0 = arith.constant 0 : i32
    %c0_i32_1 = arith.constant 0 : i32
    return %c0_i32, %c0_i32_0 : i32, i32
  }
  func.func @transform_14(%arg0: i32) -> (i32, i32) {
    %c0_i32 = arith.constant 0 : i32
    %c0_i32_0 = arith.constant 0 : i32
    %c0_i32_1 = arith.constant 0 : i32
    return %c0_i32, %c0_i32_0 : i32, i32
  }
  func.func @transform_15(%arg0: i32) -> (i32, i32) {
    %c0_i32 = arith.constant 0 : i32
    %c0_i32_0 = arith.constant 0 : i32
    %c0_i32_1 = arith.constant 0 : i32
    return %c0_i32, %c0_i32_0 : i32, i32
  }
  func.func @transform_16(%arg0: i32) -> (i32, i32) {
    %c0_i32 = arith.constant 0 : i32
    %c0_i32_0 = arith.constant 0 : i32
    %c0_i32_1 = arith.constant 0 : i32
    return %c0_i32, %c0_i32_0 : i32, i32
  }
  func.func @transform_17(%arg0: i32) -> (i32, i32) {
    %c0_i32 = arith.constant 0 : i32
    %c0_i32_0 = arith.constant 0 : i32
    %c0_i32_1 = arith.constant 0 : i32
    return %c0_i32, %c0_i32_0 : i32, i32
  }
  func.func @transform_18(%arg0: i32) -> (i32, i32) {
    %c0_i32 = arith.constant 0 : i32
    %c0_i32_0 = arith.constant 0 : i32
    %c0_i32_1 = arith.constant 0 : i32
    return %c0_i32, %c0_i32_0 : i32, i32
  }
  func.func @transform_19(%arg0: i32) -> (i32, i32) {
    %c0_i32 = arith.constant 0 : i32
    %c0_i32_0 = arith.constant 0 : i32
    %c0_i32_1 = arith.constant 0 : i32
    return %c0_i32, %c0_i32_0 : i32, i32
  }
  func.func @transform_20(%arg0: i32) -> (i32, i32) {
    %c0_i32 = arith.constant 0 : i32
    %c0_i32_0 = arith.constant 0 : i32
    %c0_i32_1 = arith.constant 0 : i32
    return %c0_i32, %c0_i32_0 : i32, i32
  }
  func.func @transform_21(%arg0: i32) -> (i32, i32) {
    %c0_i32 = arith.constant 0 : i32
    %c0_i32_0 = arith.constant 0 : i32
    %c0_i32_1 = arith.constant 0 : i32
    return %c0_i32, %c0_i32_0 : i32, i32
  }
  func.func @transform_22(%arg0: i32) -> (i32, i32) {
    %c0_i32 = arith.constant 0 : i32
    %c0_i32_0 = arith.constant 0 : i32
    %c0_i32_1 = arith.constant 0 : i32
    return %c0_i32, %c0_i32_0 : i32, i32
  }
  func.func @transform_23(%arg0: i32) -> (i32, i32) {
    %c0_i32 = arith.constant 0 : i32
    %c0_i32_0 = arith.constant 0 : i32
    %c0_i32_1 = arith.constant 0 : i32
    return %c0_i32, %c0_i32_0 : i32, i32
  }
  func.func @transform_24(%arg0: i32) -> (i32, i32) {
    %c0_i32 = arith.constant 0 : i32
    %c0_i32_0 = arith.constant 0 : i32
    %c0_i32_1 = arith.constant 0 : i32
    return %c0_i32, %c0_i32_0 : i32, i32
  }
  func.func @transform_25(%arg0: i32) -> (i32, i32) {
    %c0_i32 = arith.constant 0 : i32
    %c0_i32_0 = arith.constant 0 : i32
    %c0_i32_1 = arith.constant 0 : i32
    return %c0_i32, %c0_i32_0 : i32, i32
  }
  func.func @transform_26(%arg0: i32) -> (i32, i32) {
    %c0_i32 = arith.constant 0 : i32
    %c0_i32_0 = arith.constant 0 : i32
    %c0_i32_1 = arith.constant 0 : i32
    return %c0_i32, %c0_i32_0 : i32, i32
  }
  func.func @transform_27(%arg0: i32) -> (i32, i32) {
    %c0_i32 = arith.constant 0 : i32
    %c0_i32_0 = arith.constant 0 : i32
    %c0_i32_1 = arith.constant 0 : i32
    return %c0_i32, %c0_i32_0 : i32, i32
  }
  func.func @transform_28(%arg0: i32) -> (i32, i32) {
    %c0_i32 = arith.constant 0 : i32
    %c0_i32_0 = arith.constant 0 : i32
    %c0_i32_1 = arith.constant 0 : i32
    return %c0_i32, %c0_i32_0 : i32, i32
  }
  func.func @transform_29(%arg0: i32) -> (i32, i32) {
    %c0_i32 = arith.constant 0 : i32
    %c0_i32_0 = arith.constant 0 : i32
    %c0_i32_1 = arith.constant 0 : i32
    return %c0_i32, %c0_i32_0 : i32, i32
  }
  func.func @transform_30(%arg0: i32) -> (i32, i32) {
    %c0_i32 = arith.constant 0 : i32
    %c0_i32_0 = arith.constant 0 : i32
    %c0_i32_1 = arith.constant 0 : i32
    return %c0_i32, %c0_i32_0 : i32, i32
  }
  func.func @transform_31(%arg0: i32) -> (i32, i32) {
    %c0_i32 = arith.constant 0 : i32
    %c0_i32_0 = arith.constant 0 : i32
    %c0_i32_1 = arith.constant 0 : i32
    return %c0_i32, %c0_i32_0 : i32, i32
  }
  func.func @transform_32(%arg0: i32) -> (i32, i32) {
    %c0_i32 = arith.constant 0 : i32
    %c0_i32_0 = arith.constant 0 : i32
    %c0_i32_1 = arith.constant 0 : i32
    return %c0_i32, %c0_i32_0 : i32, i32
  }
  func.func @transform_33(%arg0: i32) -> (i32, i32) {
    %c0_i32 = arith.constant 0 : i32
    %c0_i32_0 = arith.constant 0 : i32
    %c0_i32_1 = arith.constant 0 : i32
    return %c0_i32, %c0_i32_0 : i32, i32
  }
  func.func @transform_34(%arg0: i32) -> (i32, i32) {
    %c0_i32 = arith.constant 0 : i32
    %c0_i32_0 = arith.constant 0 : i32
    %c0_i32_1 = arith.constant 0 : i32
    return %c0_i32, %c0_i32_0 : i32, i32
  }
  func.func @transform_35(%arg0: i32) -> (i32, i32) {
    %c0_i32 = arith.constant 0 : i32
    %c0_i32_0 = arith.constant 0 : i32
    %c0_i32_1 = arith.constant 0 : i32
    return %c0_i32, %c0_i32_0 : i32, i32
  }
  func.func @transform_36(%arg0: i32) -> (i32, i32) {
    %c0_i32 = arith.constant 0 : i32
    %c0_i32_0 = arith.constant 0 : i32
    %c0_i32_1 = arith.constant 0 : i32
    return %c0_i32, %c0_i32_0 : i32, i32
  }
  func.func @transform_37(%arg0: i32) -> (i32, i32) {
    %c0_i32 = arith.constant 0 : i32
    %c0_i32_0 = arith.constant 0 : i32
    %c0_i32_1 = arith.constant 0 : i32
    return %c0_i32, %c0_i32_0 : i32, i32
  }
}

</mosaic_0001>

<bundles_post_ra>
// kernel: lt.22
= control target key start
LH: loop header
LB: loop body
LE: loop exit
PB: predicated region body
PF: predicated region fallthrough
CT: control target
= control target key end

     0   :  { %s69_s10 = smov 14   ;;  %s70_s11 = smov 10   ;;  %vm3_vm0 = vcmask 15360   ;;  %vm9_vm1 = vcmask 130160   ;;  %vm15_vm2 = vcmask 113760   ;;  %vm21_vm3 = vcmask 97360   ;;  %s113_s0 = inlined_call_operand.vmem [shape: s32[8,2], index: 0, kind: input, shape index: {}]   ;;  %s114_s1 = inlined_call_operand.vmem [shape: s32[16], index: 1, kind: output, shape index: {}]  }
   0x1   :  { %v55_v0 = vld [vmem:[%s113_s0 + $0x7] sm:$0x1]   ;;  %v57_v1 = vld [vmem:[%s113_s0 + $0x5] sm:$0x1]   ;;  %v56_v2 = vld [vmem:[%s113_s0 + $0x6] sm:$0x1]  }
   0x2   :  { %7 = vrot.lane.b32.xlu0 %v55_v0, %s69_s10  ;;  %19 = vrot.lane.b32.xlu1 %v57_v1, %s70_s11  ;;  %v58_v3 = vld [vmem:[%s113_s0 + $0x4] sm:$0x1]   ;;  %v2_v4 = vld [vmem:[%s113_s0] sm:$0x1]   ;;  %s71_s18 = smov 12   ;;  %s72_s19 = smov 8  }
   0x3   :  { %4 = vst.msk [vmem:[#allocation0] sm:$0x1] %vm3_vm0, %v2_v4   ;;  %v59_v5 = vld [vmem:[%s113_s0 + $0x3] sm:$0x1]   ;;  %v60_v6 = vld [vmem:[%s113_s0 + $0x2] sm:$0x1]  }
   0x4   :  { %s73_s24 = smov 6   ;;  %s74_s25 = smov 4   ;;  %v61_v7 = vld [vmem:[%s113_s0 + $0x1] sm:$0x1]   ;;  %vm27_vm4 = vcmask 80960   ;;  %vm33_vm5 = vcmask 64560  }
   0x5   :  { %s75_s0 = smov 2   ;;  %vm39_vm6 = vcmask 48160   ;;  %vm45_vm7 = vcmask 31760  }
   0x6   :  { %13 = vrot.lane.b32.xlu0 %v56_v2, %s71_s18  ;;  %25 = vrot.lane.b32.xlu1 %v58_v3, %s72_s19 }
   0xa   :  { %31 = vrot.lane.b32.xlu0 %v59_v5, %s73_s24  ;;  %37 = vrot.lane.b32.xlu1 %v60_v6, %s74_s25 }
   0xe   :  { %43 = vrot.lane.b32.xlu0 %v61_v7, %s75_s0 }
  0x74   :  { %v8_v8 = vpop.permute.xlu0 %7   ;;  %v20_v9 = vpop.permute.xlu1 %19  }
  0x75   :  { %10 = vst.msk [vmem:[#allocation0] sm:$0x1] %vm9_vm1, %v8_v8  }
  0x78   :  { %v14_v10 = vpop.permute.xlu0 %13   ;;  %v26_v11 = vpop.permute.xlu1 %25  }
  0x79   :  { %16 = vst.msk [vmem:[#allocation0] sm:$0x1] %vm15_vm2, %v14_v10  }
  0x7a   :  { %22 = vst.msk [vmem:[#allocation0] sm:$0x1] %vm21_vm3, %v20_v9  }
  0x7b   :  { %28 = vst.msk [vmem:[#allocation0] sm:$0x1] %vm27_vm4, %v26_v11  }
  0x7c   :  { %v32_v12 = vpop.permute.xlu0 %31   ;;  %v38_v13 = vpop.permute.xlu1 %37  }
  0x7d   :  { %34 = vst.msk [vmem:[#allocation0] sm:$0x1] %vm33_vm5, %v32_v12  }
  0x7e   :  { %40 = vst.msk [vmem:[#allocation0] sm:$0x1] %vm39_vm6, %v38_v13  }
  0x80   :  { %v44_v14 = vpop.permute.xlu0 %43  }
  0x81   :  { %46 = vst.msk [vmem:[#allocation0] sm:$0x1] %vm45_vm7, %v44_v14  }
  0x88   :  { %v51_v15 = vld [vmem:[#allocation0] sm:$0x1] }
  0x89   :  { %54 = vst [vmem:[%s114_s1] sm:$0x1] %v51_v15 }

// kernel: han_forward.1
= control target key start
LH: loop header
LB: loop body
LE: loop exit
PB: predicated region body
PF: predicated region fallthrough
CT: control target
= control target key end

     0   :  { %s13410_s6 = smov 1   ;;  %s13411_s10 = smov 2   ;;  %s16332_s0 = inlined_call_operand.smem [shape: u32[38], index: -1, kind: input, shape index: {}] }
   0x1   :  { %s13462_s5 = sld [smem:[%s16332_s0]]   ;;  %s13412_s14 = smov 3  }
   0x2   :  { %s13467_s9 = sld [smem:[%s16332_s0 + %s13410_s6]]   ;;  %s13413_s18 = smov 4  }
   0x3   :  { %s13472_s13 = sld [smem:[%s16332_s0 + %s13411_s10]]   ;;  %s13414_s22 = smov 5  }
   0x4   :  { %s13477_s17 = sld [smem:[%s16332_s0 + %s13412_s14]]   ;;  %s13415_s26 = smov 6  }
   0x5   :  { %s13482_s21 = sld [smem:[%s16332_s0 + %s13413_s18]]   ;;  %s13416_s30 = smov 7  }
   0x6   :  { %s13487_s25 = sld [smem:[%s16332_s0 + %s13414_s22]]   ;;  %s13417_s4 = smov 8  }
   0x7   :  { %s13492_s29 = sld [smem:[%s16332_s0 + %s13415_s26]]   ;;  %s13418_s10 = smov 9  }
   0x8   :  { %s13497_s3 = sld [smem:[%s16332_s0 + %s13416_s30]]   ;;  %s13419_s15 = smov 10  }
   0x9   :  { %s13502_s8 = sld [smem:[%s16332_s0 + %s13417_s4]]   ;;  %s13420_s20 = smov 11  }
   0xa   :  { %s13507_s14 = sld [smem:[%s16332_s0 + %s13418_s10]]   ;;  %s13421_s26 = smov 12  }
   0xb   :  { %s13512_s19 = sld [smem:[%s16332_s0 + %s13419_s15]]   ;;  %s13422_s1 = smov 13  }
   0xc   :  { %s13517_s24 = sld [smem:[%s16332_s0 + %s13420_s20]]   ;;  %s13423_s7 = smov 14  }
   0xd   :  { %s13522_s30 = sld [smem:[%s16332_s0 + %s13421_s26]]   ;;  %s13424_s15 = smov 15  }
   0xe   :  { %s13527_s6 = sld [smem:[%s16332_s0 + %s13422_s1]]   ;;  %s13425_s22 = smov 16  }
   0xf   :  { %s13532_s12 = sld [smem:[%s16332_s0 + %s13423_s7]]   ;;  %s13426_s28 = smov 17  }
  0x10   :  { %s13537_s20 = sld [smem:[%s16332_s0 + %s13424_s15]]   ;;  %s13427_s7 = smov 18  }
  0x11   :  { %s13542_s27 = sld [smem:[%s16332_s0 + %s13425_s22]]   ;;  %s13428_s15 = smov 19  }
  0x12   :  { %s13547_s4 = sld [smem:[%s16332_s0 + %s13426_s28]]   ;;  %s13429_s22 = smov 20  }
  0x13   :  { %16402 = sst [smem:[#allocation11_spill]] %s13522_s30  ;;  %s13430_s28 = smov 21  }
  0x14   :  { %s13552_s30 = sld [smem:[%s16332_s0 + %s13427_s7]]   ;;  %s13431_s7 = smov 22  }
  0x16   :  { %16403 = sst [smem:[#allocation12_spill]] %s13537_s20 }
  0x17   :  { %16404 = sst [smem:[#allocation13_spill]] %s13542_s27 }
  0x18   :  { %16405 = sst [smem:[#allocation14_spill]] %s13547_s4 }
  0x19   :  { %s13557_s20 = sld [smem:[%s16332_s0 + %s13428_s15]]   ;;  %s13432_s15 = smov 23  }
  0x1a   :  { %16406 = sst [smem:[#allocation15_spill]] %s13552_s30 }
  0x1b   :  { %s13562_s27 = sld [smem:[%s16332_s0 + %s13429_s22]]   ;;  %s13433_s22 = smov 24  }
  0x1c   :  { %s13567_s4 = sld [smem:[%s16332_s0 + %s13430_s28]]   ;;  %s13434_s28 = smov 25  }
  0x1d   :  { %s13572_s30 = sld [smem:[%s16332_s0 + %s13431_s7]]   ;;  %s13435_s7 = smov 26  }
  0x1f   :  { %16407 = sst [smem:[#allocation16_spill]] %s13557_s20 }
  0x20   :  { %s13577_s20 = sld [smem:[%s16332_s0 + %s13432_s15]]   ;;  %s13436_s15 = smov 27  }
  0x21   :  { %16408 = sst [smem:[#allocation17_spill]] %s13562_s27 }
  0x22   :  { %16409 = sst [smem:[#allocation18_spill]] %s13567_s4 }
  0x23   :  { %16410 = sst [smem:[#allocation19_spill]] %s13572_s30 }
  0x24   :  { %s13582_s27 = sld [smem:[%s16332_s0 + %s13433_s22]]   ;;  %s13437_s22 = smov 28  }
  0x25   :  { %s13587_s4 = sld [smem:[%s16332_s0 + %s13434_s28]]   ;;  %s13438_s28 = smov 29  }
  0x26   :  { %16411 = sst [smem:[#allocation20_spill]] %s13577_s20 }
  0x27   :  { %s13592_s30 = sld [smem:[%s16332_s0 + %s13435_s7]]   ;;  %s13439_s7 = smov 30  }
  0x28   :  { %s13597_s20 = sld [smem:[%s16332_s0 + %s13436_s15]]   ;;  %s13440_s15 = smov 31  }
  0x2a   :  { %16412 = sst [smem:[#allocation21_spill]] %s13582_s27 }
  0x2b   :  { %16413 = sst [smem:[#allocation22_spill]] %s13587_s4 }
  0x2c   :  { %s13602_s27 = sld [smem:[%s16332_s0 + %s13437_s22]]   ;;  %s13441_s22 = smov 32  }
  0x2d   :  { %16414 = sst [smem:[#allocation23_spill]] %s13592_s30 }
  0x2e   :  { %16415 = sst [smem:[#allocation24_spill]] %s13597_s20 }
  0x2f   :  { %s13607_s4 = sld [smem:[%s16332_s0 + %s13438_s28]]   ;;  %s13442_s28 = smov 33  }
  0x30   :  { %s13612_s30 = sld [smem:[%s16332_s0 + %s13439_s7]]   ;;  %s13443_s7 = smov 34  }
  0x31   :  { %s13617_s20 = sld [smem:[%s16332_s0 + %s13440_s15]]   ;;  %s13444_s15 = smov 35  }
  0x32   :  { %16416 = sst [smem:[#allocation25_spill]] %s13602_s27 }
  0x33   :  { %s13622_s27 = sld [smem:[%s16332_s0 + %s13441_s22]]   ;;  %s13445_s22 = smov 36  }
  0x35   :  { %16417 = sst [smem:[#allocation26_spill]] %s13607_s4 }
  0x36   :  { %16418 = sst [smem:[#allocation27_spill]] %s13612_s30 }
  0x37   :  { %16419 = sst [smem:[#allocation28_spill]] %s13617_s20 }
  0x38   :  { %s13627_s4 = sld [smem:[%s16332_s0 + %s13442_s28]]   ;;  %s13446_s28 = smov 37  }
  0x39   :  { %16420 = sst [smem:[#allocation29_spill]] %s13622_s27 }
  0x3a   :  { %s13632_s30 = sld [smem:[%s16332_s0 + %s13443_s7]]  }
  0x3b   :  { %s13637_s20 = sld [smem:[%s16332_s0 + %s13444_s15]]  }
  0x3c   :  { %s13642_s27 = sld [smem:[%s16332_s0 + %s13445_s22]]  }
  0x3e   :  { %16421 = sst [smem:[#allocation30_spill]] %s13627_s4 }
  0x3f   :  { %s13647_s4 = sld [smem:[%s16332_s0 + %s13446_s28]]  }
  0x40   :  { %v226_v0 = vld [vmem:[%s13482_s21 + $0x18] sm:$0xff]  ;;  %v225_v2 = vld [vmem:[%s13482_s21 + $0x10] sm:$0xff]  ;;  %v224_v4 = vld [vmem:[%s13482_s21 + $0x8] sm:$0xff]  ;;  %vm227_vm0 = vcmask 261120  }
  0x41   :  { %v222_v1 = vld [vmem:[%s13477_s17 + $0x18] sm:$0xff]  ;;  %11930 = vmatprep.subr.mxu0 %v226_v0  ;;  %v221_v3 = vld [vmem:[%s13477_s17 + $0x10] sm:$0xff]  ;;  %v220_v5 = vld [vmem:[%s13477_s17 + $0x8] sm:$0xff] }
  0x42   :  { %11986 = vmatprep.subr.mxu1 %v222_v1  ;;  %11931 = vmatpush3.msra.mxu0 %v226_v0  ;;  %v223_v6 = vld [vmem:[%s13482_s21] sm:$0xff]  ;;  %v188_v10 = vld [vmem:[%s13467_s9 + $0x8] sm:$0xff]  ;;  %v189_v12 = vld [vmem:[%s13467_s9 + $0x10] sm:$0xff] }
  0x43   :  { %11987 = vmatpush3.msra.mxu1 %v222_v1  ;;  %11932 = vmatprep.subr.mxu0 %v225_v2  ;;  %v219_v7 = vld [vmem:[%s13477_s17] sm:$0xff]  ;;  %v156_v11 = vld [vmem:[%s13462_s5 + $0x8] sm:$0xff]  ;;  %v157_v13 = vld [vmem:[%s13462_s5 + $0x10] sm:$0xff] }
  0x44   :  { %11988 = vmatprep.subr.mxu1 %v221_v3  ;;  %11933 = vmatpush3.msra.mxu0 %v225_v2  ;;  %v187_v8 = vld [vmem:[%s13467_s9] sm:$0xff]  ;;  %v190_v14 = vld [vmem:[%s13467_s9 + $0x18] sm:$0xff]  ;;  %v192_v18 = vld [vmem:[%s13467_s9 + $0x28] sm:$0xff] }
  0x45   :  { %11989 = vmatpush3.msra.mxu1 %v221_v3  ;;  %11934 = vmatprep.subr.mxu0 %v224_v4  ;;  %v155_v9 = vld [vmem:[%s13462_s5] sm:$0xff]  ;;  %v158_v15 = vld [vmem:[%s13462_s5 + $0x18] sm:$0xff]  ;;  %v160_v19 = vld [vmem:[%s13462_s5 + $0x28] sm:$0xff] }
  0x46   :  { %11990 = vmatprep.subr.mxu1 %v220_v5  ;;  %11935 = vmatpush3.msra.mxu0 %v224_v4  ;;  %v191_v16 = vld [vmem:[%s13467_s9 + $0x20] sm:$0xff]  ;;  %v193_v20 = vld [vmem:[%s13467_s9 + $0x30] sm:$0xff]  ;;  %v194_v22 = vld [vmem:[%s13467_s9 + $0x38] sm:$0xff] }
  0x47   :  { %11991 = vmatpush3.msra.mxu1 %v220_v5  ;;  %11936 = vmatprep.subr.mxu0 %v223_v6  ;;  %v159_v17 = vld [vmem:[%s13462_s5 + $0x20] sm:$0xff]  ;;  %v161_v21 = vld [vmem:[%s13462_s5 + $0x30] sm:$0xff]  ;;  %v162_v23 = vld [vmem:[%s13462_s5 + $0x38] sm:$0xff] }
  0x48   :  { %11992 = vmatprep.subr.mxu1 %v219_v7  ;;  %11937 = vmatpush3.msra.mxu0 %v223_v6  ;;  %v195_v24 = vld [vmem:[%s13467_s9 + $0x40] sm:$0xff]  ;;  %v13692_v26 = vld [vmem:[%s13492_s29 + $0x18] sm:$0xff]  ;;  %v196_v27 = vld [vmem:[%s13467_s9 + $0x48] sm:$0xff] }
  0x49   :  { %11938 = vmatprep.mubr.msk.f32.mxu0 %vm227_vm0, %v187_v8  ;;  %11993 = vmatpush3.msra.mxu1 %v219_v7  ;;  %v163_v25 = vld [vmem:[%s13462_s5 + $0x40] sm:$0xff]  ;;  %v164_v28 = vld [vmem:[%s13462_s5 + $0x48] sm:$0xff]  ;;  %v197_v29 = vld [vmem:[%s13467_s9 + $0x50] sm:$0xff] }
  0x4a   :  { %11994 = vmatprep.mubr.msk.f32.mxu1 %vm227_vm0, %v155_v9  ;;  %11939 = vmatmul.mubr.msk.f32.vlgmr.msra.gmra.mxu0 %vm227_vm0, %v188_v10  ;;  %v165_v30 = vld [vmem:[%s13462_s5 + $0x50] sm:$0xff] }
  0x4b   :  { %11995 = vmatmul.mubr.msk.f32.vlgmr.msra.gmra.mxu1 %vm227_vm0, %v156_v11  ;;  %11941 = vmatprep.mubr.msk.f32.mxu0 %vm227_vm0, %v189_v12  ;;  %v13704_v31 = vld [vmem:[%s13492_s29 + $0x10] sm:$0xff] }
  0x4c   :  { %11997 = vmatprep.mubr.msk.f32.mxu1 %vm227_vm0, %v157_v13  ;;  %12042 = vmatprep.subr.mxu0 %v13692_v26 }
  0x4d   :  { %12053 = vmatprep.subr.mxu1 %v13692_v26  ;;  %12043 = vmatpush3.msra.mxu0 %v13692_v26 }
  0x4e   :  { %11942 = vmatmul.mubr.msk.f32.gmra.mxu0 %vm227_vm0, %v190_v14  ;;  %12054 = vmatpush3.msra.mxu1 %v13692_v26 }
  0x4f   :  { %11998 = vmatmul.mubr.msk.f32.gmra.mxu1 %vm227_vm0, %v158_v15  ;;  %11944 = vmatprep.mubr.msk.f32.mxu0 %vm227_vm0, %v191_v16 }
  0x50   :  { %12000 = vmatprep.mubr.msk.f32.mxu1 %vm227_vm0, %v159_v17 }
  0x52   :  { %11945 = vmatmul.mubr.msk.f32.gmra.mxu0 %vm227_vm0, %v192_v18 }
  0x53   :  { %12001 = vmatmul.mubr.msk.f32.gmra.mxu1 %vm227_vm0, %v160_v19  ;;  %11947 = vmatprep.mubr.msk.f32.mxu0 %vm227_vm0, %v193_v20 }
  0x54   :  { %12003 = vmatprep.mubr.msk.f32.mxu1 %vm227_vm0, %v161_v21 }
  0x56   :  { %11948 = vmatmul.mubr.msk.f32.gmra.mxu0 %vm227_vm0, %v194_v22 }
  0x57   :  { %12004 = vmatmul.mubr.msk.f32.gmra.mxu1 %vm227_vm0, %v162_v23  ;;  %11950 = vmatprep.mubr.msk.f32.mxu0 %vm227_vm0, %v195_v24 }
  0x58   :  { %12006 = vmatprep.mubr.msk.f32.mxu1 %vm227_vm0, %v163_v25 }
  0x59   :  { %80 = vsyncpa [#allocation9], 0  ;;  %v198_v32 = vld [vmem:[%s13467_s9 + $0x58] sm:$0xff]  ;;  %v199_v34 = vld [vmem:[%s13467_s9 + $0x60] sm:$0xff]  ;;  %12044 = vmatprep.subr.mxu0 %v13704_v31  ;;  %12055 = vmatprep.subr.mxu1 %v13704_v31  ;;  %v16346_v12 = vmov 0.0   ;;  %vm909_vm1 = vcmask 785408  }
  0x5a   :  { %11951 = vmatmul.mubr.msk.f32.gmra.mxu0 %vm227_vm0, %v196_v27  ;;  %v166_v33 = vld [vmem:[%s13462_s5 + $0x58] sm:$0xff]  ;;  %v167_v35 = vld [vmem:[%s13462_s5 + $0x60] sm:$0xff]  ;;  %v13719_v36 = vld [vmem:[%s13492_s29 + $0x8] sm:$0xff]  ;;  %12056 = vmatpush3.msra.mxu1 %v13704_v31  ;;  %s13448_s0 = smov 64   ;;  %vm4393_vm3 = vcmask 130048   ;;  %vm6534_vm4 = vcmask 7168  }
  0x5b   :  { %12007 = vmatmul.mubr.msk.f32.gmra.mxu1 %vm227_vm0, %v164_v28  ;;  %11953 = vmatprep.mubr.msk.f32.mxu0 %vm227_vm0, %v197_v29  ;;  %v200_v37 = vld [vmem:[%s13467_s9 + $0x68] sm:$0xff]  ;;  %v201_v39 = vld [vmem:[%s13467_s9 + $0x70] sm:$0xff]  ;;  %v13734_v41 = vld [vmem:[%s13492_s29] sm:$0xff]  ;;  %s16498_s17 = sld [smem:[#allocation13_spill]]  ;;  %vm13452_vm5 = vmmov 0   ;;  %vm9136_vm6 = vcmask 523264  }
  0x5c   :  { %12009 = vmatprep.mubr.msk.f32.mxu1 %vm227_vm0, %v165_v30  ;;  %12045 = vmatpush3.msra.mxu0 %v13704_v31  ;;  %v168_v38 = vld [vmem:[%s13462_s5 + $0x68] sm:$0xff]  ;;  %v169_v40 = vld [vmem:[%s13462_s5 + $0x70] sm:$0xff]  ;;  %v202_v42 = vld [vmem:[%s13467_s9 + $0x78] sm:$0xff]  ;;  %s16499_s21 = sld [smem:[#allocation15_spill]]  ;;  %vm9210_vm7 = vcmask 64512   ;;  %vm10525_vm8 = vcmask 25600  }
  0x5d   :  { %12046 = vmatprep.subr.mxu0 %v13719_v36  ;;  %12057 = vmatprep.subr.mxu1 %v13719_v36  ;;  %v170_v43 = vld [vmem:[%s13462_s5 + $0x78] sm:$0xff]  ;;  %v203_v44 = vld [vmem:[%s13467_s9 + $0x80] sm:$0xff]  ;;  %v204_v46 = vld [vmem:[%s13467_s9 + $0x88] sm:$0xff]  ;;  %s16512_s7 = sld [smem:[#allocation27_spill]] }
  0x5e   :  { %11954 = vmatmul.mubr.msk.f32.gmra.mxu0 %vm227_vm0, %v198_v32  ;;  %12058 = vmatpush3.msra.mxu1 %v13719_v36  ;;  %v171_v45 = vld [vmem:[%s13462_s5 + $0x80] sm:$0xff]  ;;  %v172_v47 = vld [vmem:[%s13462_s5 + $0x88] sm:$0xff]  ;;  %v205_v48 = vld [vmem:[%s13467_s9 + $0x90] sm:$0xff]  ;;  %s16513_s10 = sld [smem:[#allocation28_spill]] }
  0x5f   :  { %12010 = vmatmul.mubr.msk.f32.gmra.mxu1 %vm227_vm0, %v166_v33  ;;  %11956 = vmatprep.mubr.msk.f32.mxu0 %vm227_vm0, %v199_v34  ;;  %v173_v49 = vld [vmem:[%s13462_s5 + $0x90] sm:$0xff]  ;;  %v206_v50 = vld [vmem:[%s13467_s9 + $0x98] sm:$0xff]  ;;  %v207_v52 = vld [vmem:[%s13467_s9 + $0xa0] sm:$0xff]  ;;  %s16514_s11 = sld [smem:[#allocation25_spill]] }
  0x60   :  { %12012 = vmatprep.mubr.msk.f32.mxu1 %vm227_vm0, %v167_v35  ;;  %12047 = vmatpush3.msra.mxu0 %v13719_v36  ;;  %v174_v51 = vld [vmem:[%s13462_s5 + $0x98] sm:$0xff]  ;;  %v175_v53 = vld [vmem:[%s13462_s5 + $0xa0] sm:$0xff]  ;;  %v208_v54 = vld [vmem:[%s13467_s9 + $0xa8] sm:$0xff]  ;;  %s16515_s15 = sld [smem:[#allocation24_spill]] }
  0x61   :  { %12048 = vmatprep.subr.mxu0 %v13734_v41  ;;  %12059 = vmatprep.subr.mxu1 %v13734_v41  ;;  %v176_v55 = vld [vmem:[%s13462_s5 + $0xa8] sm:$0xff]  ;;  %v209_v56 = vld [vmem:[%s13467_s9 + $0xb0] sm:$0xff]  ;;  %v210_v58 = vld [vmem:[%s13467_s9 + $0xb8] sm:$0xff]  ;;  %s16516_s16 = sld [smem:[#allocation26_spill]] }
  0x62   :  { %11957 = vmatmul.mubr.msk.f32.gmra.mxu0 %vm227_vm0, %v200_v37  ;;  %12060 = vmatpush3.msra.mxu1 %v13734_v41  ;;  %v177_v57 = vld [vmem:[%s13462_s5 + $0xb0] sm:$0xff]  ;;  %v178_v59 = vld [vmem:[%s13462_s5 + $0xb8] sm:$0xff]  ;;  %v211_v60 = vld [vmem:[%s13467_s9 + $0xc0] sm:$0xff]  ;;  %s16517_s18 = sld [smem:[#allocation29_spill]] }
  0x63   :  { %12013 = vmatmul.mubr.msk.f32.gmra.mxu1 %vm227_vm0, %v168_v38  ;;  %11959 = vmatprep.mubr.msk.f32.mxu0 %vm227_vm0, %v201_v39  ;;  %v179_v61 = vld [vmem:[%s13462_s5 + $0xc0] sm:$0xff]  ;;  %v212_v62 = vld [vmem:[%s13467_s9 + $0xc8] sm:$0xff]  ;;  %v213_v0 = vld [vmem:[%s13467_s9 + $0xd0] sm:$0xff]  ;;  %s16518_s22 = sld [smem:[#allocation30_spill]] }
  0x64   :  { %12015 = vmatprep.mubr.msk.f32.mxu1 %vm227_vm0, %v169_v40  ;;  %12049 = vmatpush3.msra.mxu0 %v13734_v41  ;;  %v180_v63 = vld [vmem:[%s13462_s5 + $0xc8] sm:$0xff]  ;;  %v181_v1 = vld [vmem:[%s13462_s5 + $0xd0] sm:$0xff]  ;;  %v214_v2 = vld [vmem:[%s13467_s9 + $0xd8] sm:$0xff] }
  0x65   :  { %12064 = vmatprep.subr.mxu0 %v13692_v26  ;;  %12075 = vmatprep.subr.mxu1 %v13692_v26  ;;  %v182_v3 = vld [vmem:[%s13462_s5 + $0xd8] sm:$0xff]  ;;  %v215_v4 = vld [vmem:[%s13467_s9 + $0xe0] sm:$0xff]  ;;  %v216_v6 = vld [vmem:[%s13467_s9 + $0xe8] sm:$0xff] }
  0x66   :  { %11960 = vmatmul.mubr.msk.f32.gmra.mxu0 %vm227_vm0, %v202_v42  ;;  %v183_v5 = vld [vmem:[%s13462_s5 + $0xe0] sm:$0xff]  ;;  %v184_v7 = vld [vmem:[%s13462_s5 + $0xe8] sm:$0xff]  ;;  %v217_v8 = vld [vmem:[%s13467_s9 + $0xf0] sm:$0xff] }
  0x67   :  { %12016 = vmatmul.mubr.msk.f32.gmra.mxu1 %vm227_vm0, %v170_v43  ;;  %11962 = vmatprep.mubr.msk.f32.mxu0 %vm227_vm0, %v203_v44  ;;  %v185_v9 = vld [vmem:[%s13462_s5 + $0xf0] sm:$0xff]  ;;  %v218_v10 = vld [vmem:[%s13467_s9 + $0xf8] sm:$0xff]  ;;  %v13826_v15 = vld [vmem:[%s13487_s25] ss:$0 sm:$0xff]  ;;  %s16474_s9 = sld [smem:[#allocation11_spill]] }
  0x68   :  { %12018 = vmatprep.mubr.msk.f32.mxu1 %vm227_vm0, %v171_v45  ;;  %v186_v11 = vld [vmem:[%s13462_s5 + $0xf8] sm:$0xff]  ;;  %s13449_s5 = smov 96   ;;  %s16500_s25 = sld [smem:[#allocation14_spill]] }
  0x6a   :  { %11963 = vmatmul.mubr.msk.f32.gmra.mxu0 %vm227_vm0, %v204_v46 }
  0x6b   :  { %12019 = vmatmul.mubr.msk.f32.gmra.mxu1 %vm227_vm0, %v172_v47  ;;  %11965 = vmatprep.mubr.msk.f32.mxu0 %vm227_vm0, %v205_v48 }
  0x6c   :  { %12021 = vmatprep.mubr.msk.f32.mxu1 %vm227_vm0, %v173_v49 }
  0x6e   :  { %11966 = vmatmul.mubr.msk.f32.gmra.mxu0 %vm227_vm0, %v206_v50 }
  0x6f   :  { %12022 = vmatmul.mubr.msk.f32.gmra.mxu1 %vm227_vm0, %v174_v51  ;;  %11968 = vmatprep.mubr.msk.f32.mxu0 %vm227_vm0, %v207_v52 }
  0x70   :  { %12024 = vmatprep.mubr.msk.f32.mxu1 %vm227_vm0, %v175_v53 }
  0x72   :  { %11969 = vmatmul.mubr.msk.f32.gmra.mxu0 %vm227_vm0, %v208_v54 }
  0x73   :  { %12025 = vmatmul.mubr.msk.f32.gmra.mxu1 %vm227_vm0, %v176_v55  ;;  %11971 = vmatprep.mubr.msk.f32.mxu0 %vm227_vm0, %v209_v56 }
  0x74   :  { %12027 = vmatprep.mubr.msk.f32.mxu1 %vm227_vm0, %v177_v57 }
  0x76   :  { %11972 = vmatmul.mubr.msk.f32.gmra.mxu0 %vm227_vm0, %v210_v58 }
  0x77   :  { %12028 = vmatmul.mubr.msk.f32.gmra.mxu1 %vm227_vm0, %v178_v59  ;;  %11974 = vmatprep.mubr.msk.f32.mxu0 %vm227_vm0, %v211_v60 }
  0x78   :  { %12030 = vmatprep.mubr.msk.f32.mxu1 %vm227_vm0, %v179_v61 }
  0x7a   :  { %11975 = vmatmul.mubr.msk.f32.gmra.mxu0 %vm227_vm0, %v212_v62 }
  0x7b   :  { %12031 = vmatmul.mubr.msk.f32.gmra.mxu1 %vm227_vm0, %v180_v63  ;;  %11977 = vmatprep.mubr.msk.f32.mxu0 %vm227_vm0, %v213_v0 }
  0x7c   :  { %12033 = vmatprep.mubr.msk.f32.mxu1 %vm227_vm0, %v181_v1 }
  0x7e   :  { %11978 = vmatmul.mubr.msk.f32.gmra.mxu0 %vm227_vm0, %v214_v2 }
  0x7f   :  { %12034 = vmatmul.mubr.msk.f32.gmra.mxu1 %vm227_vm0, %v182_v3  ;;  %11980 = vmatprep.mubr.msk.f32.mxu0 %vm227_vm0, %v215_v4 }
  0x80   :  { %12036 = vmatprep.mubr.msk.f32.mxu1 %vm227_vm0, %v183_v5 }
  0x82   :  { %11981 = vmatmul.mubr.msk.f32.gmra.mxu0 %vm227_vm0, %v216_v6 }
  0x83   :  { %12037 = vmatmul.mubr.msk.f32.gmra.mxu1 %vm227_vm0, %v184_v7  ;;  %11983 = vmatprep.mubr.msk.f32.mxu0 %vm227_vm0, %v217_v8 }
  0x84   :  { %12039 = vmatprep.mubr.msk.f32.mxu1 %vm227_vm0, %v185_v9 }
  0x86   :  { %11984 = vmatmul.mubr.msk.f32.gmra.mxu0 %vm227_vm0, %v218_v10 }
  0x87   :  { %12040 = vmatmul.mubr.msk.f32.gmra.mxu1 %vm227_vm0, %v186_v11  ;;  %12050 = vmatprep.mubr.f32.mxu0 %v16346_v12 }
  0x8a   :  { %12051 = vmatmul.mubr.f32.vlgmr.msra.gmra.mxu0 %v16346_v12 }
  0x8b   :  { %12065 = vmatpush3.msra.mxu0 %v13692_v26 }
  0x8c   :  { %12066 = vmatprep.subr.mxu0 %v13704_v31 }
  0x8d   :  { %12067 = vmatpush3.msra.mxu0 %v13704_v31 }
  0x8e   :  { %12068 = vmatprep.subr.mxu0 %v13719_v36 }
  0x8f   :  { %12069 = vmatpush3.msra.mxu0 %v13719_v36 }
  0x90   :  { %12070 = vmatprep.subr.mxu0 %v13734_v41 }
  0x91   :  { %12071 = vmatpush3.msra.mxu0 %v13734_v41 }
  0x92   :  { %12086 = vmatprep.subr.mxu0 %v13692_v26 }
 0x10a   :  { %v11940_v13 = vpop.f32.mrf.mxu0 }
 0x10b   :  { %v11996_v14 = vpop.f32.mrf.mxu1 }
 0x10c   :  { %v717_v16 = vadd.f32 %v11996_v14, %v11940_v13  ;;  %v390_v17 = vpop.f32.mrf.mxu0 }
 0x10d   :  { %v711_v18 = vpop.f32.mrf.mxu1 }
 0x10e   :  { %v878_v19 = vadd.f32 %v13826_v15, %v717_v16  ;;  %v712_v20 = vadd.f32 %v711_v18, %v390_v17  ;;  %v11943_v21 = vpop.f32.mrf.mxu0 }
 0x10f   :  { %v11999_v22 = vpop.f32.mrf.mxu1 }
 0x110   :  { %911 = vst.msk [vmem:[#allocation2 + $0x8] sm:$0xff] %vm909_vm1, %v878_v19  ;;  %v877_v23 = vadd.f32 %v13826_v15, %v712_v20  ;;  %v727_v24 = vadd.f32 %v11999_v22, %v11943_v21  ;;  %v400_v25 = vpop.f32.mrf.mxu0 }
 0x111   :  { %v721_v27 = vpop.f32.mrf.mxu1 }
 0x112   :  { %910 = vst.msk [vmem:[#allocation2] sm:$0xff] %vm909_vm1, %v877_v23  ;;  %v880_v28 = vadd.f32 %v13826_v15, %v727_v24  ;;  %v722_v29 = vadd.f32 %v721_v27, %v400_v25  ;;  %v11946_v30 = vpop.f32.mrf.mxu0 }
 0x113   :  { %v12002_v32 = vpop.f32.mrf.mxu1 }
 0x114   :  { %913 = vst.msk [vmem:[#allocation2 + $0x18] sm:$0xff] %vm909_vm1, %v880_v28  ;;  %v879_v33 = vadd.f32 %v13826_v15, %v722_v29  ;;  %v737_v34 = vadd.f32 %v12002_v32, %v11946_v30  ;;  %v410_v35 = vpop.f32.mrf.mxu0 }
 0x115   :  { %v731_v37 = vpop.f32.mrf.mxu1 }
 0x116   :  { %912 = vst.msk [vmem:[#allocation2 + $0x10] sm:$0xff] %vm909_vm1, %v879_v33  ;;  %v882_v38 = vadd.f32 %v13826_v15, %v737_v34  ;;  %v732_v39 = vadd.f32 %v731_v37, %v410_v35  ;;  %v11949_v40 = vpop.f32.mrf.mxu0 }
 0x117   :  { %v12005_v42 = vpop.f32.mrf.mxu1 }
 0x118   :  { %915 = vst.msk [vmem:[#allocation2 + $0x28] sm:$0xff] %vm909_vm1, %v882_v38  ;;  %v881_v43 = vadd.f32 %v13826_v15, %v732_v39  ;;  %v747_v44 = vadd.f32 %v12005_v42, %v11949_v40  ;;  %v420_v45 = vpop.f32.mrf.mxu0 }
 0x119   :  { %v741_v46 = vpop.f32.mrf.mxu1 }
 0x11a   :  { %914 = vst.msk [vmem:[#allocation2 + $0x20] sm:$0xff] %vm909_vm1, %v881_v43  ;;  %v884_v47 = vadd.f32 %v13826_v15, %v747_v44  ;;  %v742_v48 = vadd.f32 %v741_v46, %v420_v45  ;;  %v11952_v49 = vpop.f32.mrf.mxu0 }
 0x11b   :  { %v12008_v50 = vpop.f32.mrf.mxu1 }
 0x11c   :  { %917 = vst.msk [vmem:[#allocation2 + $0x38] sm:$0xff] %vm909_vm1, %v884_v47  ;;  %v883_v51 = vadd.f32 %v13826_v15, %v742_v48  ;;  %v757_v52 = vadd.f32 %v12008_v50, %v11952_v49  ;;  %v430_v53 = vpop.f32.mrf.mxu0 }
 0x11d   :  { %v751_v54 = vpop.f32.mrf.mxu1 }
 0x11e   :  { %916 = vst.msk [vmem:[#allocation2 + $0x30] sm:$0xff] %vm909_vm1, %v883_v51  ;;  %v886_v55 = vadd.f32 %v13826_v15, %v757_v52  ;;  %v752_v56 = vadd.f32 %v751_v54, %v430_v53  ;;  %v11955_v57 = vpop.f32.mrf.mxu0 }
 0x11f   :  { %v12011_v58 = vpop.f32.mrf.mxu1 }
 0x120   :  { %919 = vst.msk [vmem:[#allocation2 + $0x48] sm:$0xff] %vm909_vm1, %v886_v55  ;;  %v885_v59 = vadd.f32 %v13826_v15, %v752_v56  ;;  %v767_v60 = vadd.f32 %v12011_v58, %v11955_v57  ;;  %v440_v61 = vpop.f32.mrf.mxu0 }
 0x121   :  { %v761_v62 = vpop.f32.mrf.mxu1 }
 0x122   :  { %918 = vst.msk [vmem:[#allocation2 + $0x40] sm:$0xff] %vm909_vm1, %v885_v59  ;;  %v888_v63 = vadd.f32 %v13826_v15, %v767_v60  ;;  %v762_v0 = vadd.f32 %v761_v62, %v440_v61  ;;  %v11958_v1 = vpop.f32.mrf.mxu0 }
 0x123   :  { %v12014_v2 = vpop.f32.mrf.mxu1 }
 0x124   :  { %921 = vst.msk [vmem:[#allocation2 + $0x58] sm:$0xff] %vm909_vm1, %v888_v63  ;;  %v887_v3 = vadd.f32 %v13826_v15, %v762_v0  ;;  %v777_v4 = vadd.f32 %v12014_v2, %v11958_v1  ;;  %v450_v5 = vpop.f32.mrf.mxu0 }
 0x125   :  { %v771_v6 = vpop.f32.mrf.mxu1 }
 0x126   :  { %920 = vst.msk [vmem:[#allocation2 + $0x50] sm:$0xff] %vm909_vm1, %v887_v3  ;;  %v890_v7 = vadd.f32 %v13826_v15, %v777_v4  ;;  %v772_v8 = vadd.f32 %v771_v6, %v450_v5  ;;  %v11961_v9 = vpop.f32.mrf.mxu0 }
 0x127   :  { %v12017_v10 = vpop.f32.mrf.mxu1 }
 0x128   :  { %923 = vst.msk [vmem:[#allocation2 + $0x68] sm:$0xff] %vm909_vm1, %v890_v7  ;;  %v889_v11 = vadd.f32 %v13826_v15, %v772_v8  ;;  %v787_v13 = vadd.f32 %v12017_v10, %v11961_v9  ;;  %v460_v14 = vpop.f32.mrf.mxu0 }
 0x129   :  { %v781_v16 = vpop.f32.mrf.mxu1 }
 0x12a   :  { %922 = vst.msk [vmem:[#allocation2 + $0x60] sm:$0xff] %vm909_vm1, %v889_v11  ;;  %v892_v17 = vadd.f32 %v13826_v15, %v787_v13  ;;  %v782_v18 = vadd.f32 %v781_v16, %v460_v14  ;;  %v11964_v19 = vpop.f32.mrf.mxu0 }
 0x12b   :  { %v12020_v20 = vpop.f32.mrf.mxu1 }
 0x12c   :  { %925 = vst.msk [vmem:[#allocation2 + $0x78] sm:$0xff] %vm909_vm1, %v892_v17  ;;  %v891_v21 = vadd.f32 %v13826_v15, %v782_v18  ;;  %v797_v22 = vadd.f32 %v12020_v20, %v11964_v19  ;;  %v470_v23 = vpop.f32.mrf.mxu0 }
 0x12d   :  { %v791_v24 = vpop.f32.mrf.mxu1 }
 0x12e   :  { %924 = vst.msk [vmem:[#allocation2 + $0x70] sm:$0xff] %vm909_vm1, %v891_v21  ;;  %v894_v25 = vadd.f32 %v13826_v15, %v797_v22  ;;  %v792_v27 = vadd.f32 %v791_v24, %v470_v23  ;;  %v11967_v28 = vpop.f32.mrf.mxu0 }
 0x12f   :  { %v12023_v29 = vpop.f32.mrf.mxu1 }
 0x130   :  { %927 = vst.msk [vmem:[#allocation2 + $0x88] sm:$0xff] %vm909_vm1, %v894_v25  ;;  %v893_v30 = vadd.f32 %v13826_v15, %v792_v27  ;;  %v807_v32 = vadd.f32 %v12023_v29, %v11967_v28  ;;  %v480_v33 = vpop.f32.mrf.mxu0  ;;  %v13892_v28 = vld [vmem:[%s13497_s3] ss:$0 sm:$0xff] }
 0x131   :  { %v801_v34 = vpop.f32.mrf.mxu1 }
 0x132   :  { %926 = vst.msk [vmem:[#allocation2 + $0x80] sm:$0xff] %vm909_vm1, %v893_v30  ;;  %v896_v35 = vadd.f32 %v13826_v15, %v807_v32  ;;  %v802_v37 = vadd.f32 %v801_v34, %v480_v33  ;;  %v11970_v38 = vpop.f32.mrf.mxu0  ;;  %v947_v33 = vld [vmem:[#allocation2] sm:$0xff] }
 0x133   :  { %v12026_v39 = vpop.f32.mrf.mxu1 }
 0x134   :  { %929 = vst.msk [vmem:[#allocation2 + $0x98] sm:$0xff] %vm909_vm1, %v896_v35  ;;  %v895_v40 = vadd.f32 %v13826_v15, %v802_v37  ;;  %v817_v42 = vadd.f32 %v12026_v39, %v11970_v38  ;;  %v490_v43 = vpop.f32.mrf.mxu0  ;;  %v948_v35 = vld [vmem:[#allocation2 + $0x8] sm:$0xff] }
 0x135   :  { %v811_v44 = vpop.f32.mrf.mxu1 }
 0x136   :  { %928 = vst.msk [vmem:[#allocation2 + $0x90] sm:$0xff] %vm909_vm1, %v895_v40  ;;  %v898_v45 = vadd.f32 %v13826_v15, %v817_v42  ;;  %v812_v46 = vadd.f32 %v811_v44, %v490_v43  ;;  %v11973_v47 = vpop.f32.mrf.mxu0 }
 0x137   :  { %v12029_v48 = vpop.f32.mrf.mxu1 }
 0x138   :  { %931 = vst.msk [vmem:[#allocation2 + $0xa8] sm:$0xff] %vm909_vm1, %v898_v45  ;;  %v897_v49 = vadd.f32 %v13826_v15, %v812_v46  ;;  %v827_v50 = vadd.f32 %v12029_v48, %v11973_v47  ;;  %v500_v51 = vpop.f32.mrf.mxu0 }
 0x139   :  { %v821_v52 = vpop.f32.mrf.mxu1 }
 0x13a   :  { %930 = vst.msk [vmem:[#allocation2 + $0xa0] sm:$0xff] %vm909_vm1, %v897_v49  ;;  %v900_v53 = vadd.f32 %v13826_v15, %v827_v50  ;;  %v822_v54 = vadd.f32 %v821_v52, %v500_v51  ;;  %v11976_v55 = vpop.f32.mrf.mxu0 }
 0x13b   :  { %v12032_v56 = vpop.f32.mrf.mxu1 }
 0x13c   :  { %933 = vst.msk [vmem:[#allocation2 + $0xb8] sm:$0xff] %vm909_vm1, %v900_v53  ;;  %v899_v57 = vadd.f32 %v13826_v15, %v822_v54  ;;  %v837_v58 = vadd.f32 %v12032_v56, %v11976_v55  ;;  %v510_v59 = vpop.f32.mrf.mxu0 }
 0x13d   :  { %v831_v60 = vpop.f32.mrf.mxu1 }
 0x13e   :  { %932 = vst.msk [vmem:[#allocation2 + $0xb0] sm:$0xff] %vm909_vm1, %v899_v57  ;;  %v902_v61 = vadd.f32 %v13826_v15, %v837_v58  ;;  %v832_v62 = vadd.f32 %v831_v60, %v510_v59  ;;  %v11979_v63 = vpop.f32.mrf.mxu0 }
 0x13f   :  { %v12035_v0 = vpop.f32.mrf.mxu1 }
 0x140   :  { %935 = vst.msk [vmem:[#allocation2 + $0xc8] sm:$0xff] %vm909_vm1, %v902_v61  ;;  %v901_v1 = vadd.f32 %v13826_v15, %v832_v62  ;;  %v847_v2 = vadd.f32 %v12035_v0, %v11979_v63  ;;  %v520_v3 = vpop.f32.mrf.mxu0 }
 0x141   :  { %v841_v4 = vpop.f32.mrf.mxu1 }
 0x142   :  { %934 = vst.msk [vmem:[#allocation2 + $0xc0] sm:$0xff] %vm909_vm1, %v901_v1  ;;  %v904_v5 = vadd.f32 %v13826_v15, %v847_v2  ;;  %v842_v6 = vadd.f32 %v841_v4, %v520_v3  ;;  %v11982_v7 = vpop.f32.mrf.mxu0 }
 0x143   :  { %v12038_v8 = vpop.f32.mrf.mxu1 }
 0x144   :  { %937 = vst.msk [vmem:[#allocation2 + $0xd8] sm:$0xff] %vm909_vm1, %v904_v5  ;;  %v903_v9 = vadd.f32 %v13826_v15, %v842_v6  ;;  %v857_v10 = vadd.f32 %v12038_v8, %v11982_v7  ;;  %v530_v11 = vpop.f32.mrf.mxu0  ;;  %v1098_v8 = vld [vmem:[#allocation2 + $0x18] sm:$0xff] }
 0x145   :  { %v851_v13 = vpop.f32.mrf.mxu1 }
 0x146   :  { %936 = vst.msk [vmem:[#allocation2 + $0xd0] sm:$0xff] %vm909_vm1, %v903_v9  ;;  %v906_v14 = vadd.f32 %v13826_v15, %v857_v10  ;;  %v852_v16 = vadd.f32 %v851_v13, %v530_v11  ;;  %v11985_v17 = vpop.f32.mrf.mxu0  ;;  %v1097_v10 = vld [vmem:[#allocation2 + $0x10] sm:$0xff] }
 0x147   :  { %v12041_v18 = vpop.f32.mrf.mxu1 }
 0x148   :  { %939 = vst.msk [vmem:[#allocation2 + $0xe8] sm:$0xff] %vm909_vm1, %v906_v14  ;;  %v905_v19 = vadd.f32 %v13826_v15, %v852_v16  ;;  %v867_v20 = vadd.f32 %v12041_v18, %v11985_v17  ;;  %v540_v21 = vpop.f32.mrf.mxu0 }
 0x149   :  { %v861_v22 = vpop.f32.mrf.mxu1 }
 0x14a   :  { %938 = vst.msk [vmem:[#allocation2 + $0xe0] sm:$0xff] %vm909_vm1, %v905_v19  ;;  %v908_v23 = vadd.f32 %v13826_v15, %v867_v20  ;;  %v862_v24 = vadd.f32 %v861_v22, %v540_v21  ;;  %v12052_v25 = vpop.f32.mrf.mxu0 }
 0x14b   :  { %v1030_v32 = vadd.f32 %v12052_v25, %v13892_v28 }
 0x14c   :  { %941 = vst.msk [vmem:[#allocation2 + $0xf8] sm:$0xff] %vm909_vm1, %v908_v23  ;;  %v907_v27 = vadd.f32 %v13826_v15, %v862_v24  ;;  %v1024_v29 = vpop.f32.mrf.mxu0 }
 0x14d   :  { %v1025_v30 = vadd.f32 %v13892_v28, %v1024_v29  ;;  %v1034_v37 = vadd.f32 %v1030_v32, %v948_v35 }
 0x14e   :  { %940 = vst.msk [vmem:[#allocation2 + $0xf0] sm:$0xff] %vm909_vm1, %v907_v27 }
 0x14f   :  { %1049 = vrot.lane.b32.xlu0 %v1025_v30, %s13448_s0  ;;  %v1033_v34 = vadd.f32 %v1025_v30, %v947_v33  ;;  %v10645_v15 = vmul.f32 -1.442695, %v1034_v37 }
 0x151   :  { %v10644_v38 = vmul.f32 -1.442695, %v1033_v34 }
 0x153   :  { %1051 = vrot.lane.b32.xlu0 %v1030_v32, %s13448_s0  ;;  %13047 = vpow2.f32 %v10644_v38 }
 0x154   :  { %13049 = vpow2.f32 %v10645_v15 }
 0x160   :  { %v13048_v39 = vpop.eup %13047 }
 0x161   :  { %v1041_v40 = vadd.f32 1.0, %v13048_v39  ;;  %v13050_v42 = vpop.eup %13049 }
 0x162   :  { %v1042_v43 = vadd.f32 1.0, %v13050_v42 }
 0x163   :  { %13051 = vrcp.f32 %v1041_v40 }
 0x164   :  { %13053 = vrcp.f32 %v1042_v43 }
 0x170   :  { %v13052_v44 = vpop.eup %13051 }
 0x171   :  { %v13054_v47 = vpop.eup %13053  ;;  %v1069_v56 = vsub.f32 1.0, %v13052_v44  ;;  %v1081_v58 = vmul.f32 0.0, %v13052_v44 }
 0x172   :  { %v1070_v61 = vsub.f32 1.0, %v13054_v47  ;;  %v1082_v63 = vmul.f32 0.0, %v13054_v47 }
 0x1c1   :  { %v1050_v45 = vpop.permute.xlu0 %1049 }
 0x1c2   :  { %v1055_v46 = vmul.f32 %v13052_v44, %v1050_v45 }
 0x1c4   :  { %1059 = vrot.lane.b32.xlu1 %v1055_v46, %s13448_s0 }
 0x1c5   :  { %v1052_v48 = vpop.permute.xlu0 %1051 }
 0x1c6   :  { %v1056_v49 = vmul.f32 %v13054_v47, %v1052_v48 }
 0x1c8   :  { %1061 = vrot.lane.b32.xlu1 %v1056_v49, %s13448_s0 }
 0x236   :  { %v1060_v50 = vpop.permute.xlu1 %1059 }
 0x237   :  { %v1065_v51 = vadd.f32 %v1060_v50, %v947_v33 }
 0x239   :  { %13055 = vtanh.f32 %v1065_v51 }
 0x23a   :  { %v1062_v52 = vpop.permute.xlu1 %1061 }
 0x23b   :  { %v1066_v53 = vadd.f32 %v1062_v52, %v948_v35  ;;  %v1243_v52 = vld [vmem:[#allocation2 + $0x28] sm:$0xff] }
 0x23d   :  { %13057 = vtanh.f32 %v1066_v53 }
 0x246   :  { %v13056_v54 = vpop.eup %13055 }
 0x247   :  { %1073 = vrot.lane.b32.xlu0 %v13056_v54, %s13449_s5  ;;  %v1242_v54 = vld [vmem:[#allocation2 + $0x20] sm:$0xff] }
 0x24a   :  { %v13058_v55 = vpop.eup %13057 }
 0x24b   :  { %1075 = vrot.lane.b32.xlu1 %v13058_v55, %s13449_s5 }
 0x2b9   :  { %v1074_v57 = vpop.permute.xlu0 %1073 }
 0x2ba   :  { %v1079_v59 = vmul.f32 %v1074_v57, %v1069_v56 }
 0x2bc   :  { %v13903_v60 = vadd.f32 %v1081_v58, %v1079_v59 }
 0x2bd   :  { %v1076_v62 = vpop.permute.xlu1 %1075 }
 0x2be   :  { %v1080_v0 = vmul.f32 %v1076_v62, %v1070_v61  ;;  %1087 = vrot.lane.b32.xlu0 %v13903_v60, %s13449_s5 }
 0x2c0   :  { %v1084_v1 = vadd.f32 %v1082_v63, %v1080_v0 }
 0x2c2   :  { %1089 = vrot.lane.b32.xlu1 %v1084_v1, %s13449_s5 }
 0x330   :  { %v1088_v2 = vpop.permute.xlu0 %1087 }
 0x331   :  { %1093 = vst.msk [vmem:[#allocation3] sm:$0xff] %vm227_vm0, %v1088_v2  ;;  %1095 = vst.msk [vmem:[#allocation4 + $0xf0] sm:$0xff] %vm227_vm0, %v1088_v2  ;;  %12061 = vmatprep.mubr.msk.f32.mxu1 %vm227_vm0, %v1088_v2 }
 0x334   :  { %v1090_v3 = vpop.permute.xlu1 %1089 }
 0x335   :  { %1094 = vst.msk [vmem:[#allocation3 + $0x8] sm:$0xff] %vm227_vm0, %v1090_v3  ;;  %1096 = vst.msk [vmem:[#allocation4 + $0xf8] sm:$0xff] %vm227_vm0, %v1090_v3  ;;  %12062 = vmatmul.mubr.msk.f32.vlgmr.msra.gmra.mxu1 %vm227_vm0, %v1090_v3 }
 0x336   :  { %12076 = vmatpush3.msra.mxu1 %v13692_v26 }
 0x337   :  { %12077 = vmatprep.subr.mxu1 %v13704_v31 }
 0x338   :  { %12078 = vmatpush3.msra.mxu1 %v13704_v31 }
 0x339   :  { %12079 = vmatprep.subr.mxu1 %v13719_v36 }
 0x33a   :  { %12080 = vmatpush3.msra.mxu1 %v13719_v36 }
 0x33b   :  { %12081 = vmatprep.subr.mxu1 %v13734_v41 }
 0x33c   :  { %12082 = vmatpush3.msra.mxu1 %v13734_v41 }
 0x33d   :  { %12097 = vmatprep.subr.mxu1 %v13692_v26 }
 0x3f5   :  { %v12063_v4 = vpop.f32.mrf.mxu1 }
 0x3f6   :  { %v1175_v5 = vadd.f32 %v12063_v4, %v13892_v28 }
 0x3f7   :  { %v1169_v6 = vpop.f32.mrf.mxu1 }
 0x3f8   :  { %v1170_v7 = vadd.f32 %v13892_v28, %v1169_v6  ;;  %1196 = vrot.lane.b32.xlu1 %v1175_v5, %s13448_s0  ;;  %v1179_v9 = vadd.f32 %v1175_v5, %v1098_v8 }
 0x3fa   :  { %1194 = vrot.lane.b32.xlu0 %v1170_v7, %s13448_s0  ;;  %v1178_v11 = vadd.f32 %v1170_v7, %v1097_v10  ;;  %v10649_v13 = vmul.f32 -1.442695, %v1179_v9 }
 0x3fc   :  { %v10648_v14 = vmul.f32 -1.442695, %v1178_v11  ;;  %13059 = vpow2.f32 %v10649_v13 }
 0x3fe   :  { %13061 = vpow2.f32 %v10648_v14 }
 0x409   :  { %v13060_v16 = vpop.eup %13059 }
 0x40a   :  { %v1187_v18 = vadd.f32 1.0, %v13060_v16 }
 0x40b   :  { %v13062_v17 = vpop.eup %13061 }
 0x40c   :  { %v1186_v19 = vadd.f32 1.0, %v13062_v17  ;;  %13063 = vrcp.f32 %v1187_v18 }
 0x40e   :  { %13065 = vrcp.f32 %v1186_v19 }
 0x419   :  { %v13064_v20 = vpop.eup %13063 }
 0x41a   :  { %v1215_v35 = vsub.f32 1.0, %v13064_v20  ;;  %v1227_v38 = vmul.f32 %v13064_v20, %v1084_v1 }
 0x41b   :  { %v13066_v23 = vpop.eup %13065 }
 0x41c   :  { %v1214_v39 = vsub.f32 1.0, %v13066_v23  ;;  %v1226_v43 = vmul.f32 %v13066_v23, %v13903_v60 }
 0x46a   :  { %v1197_v21 = vpop.permute.xlu1 %1196 }
 0x46b   :  { %v1201_v22 = vmul.f32 %v13064_v20, %v1197_v21 }
 0x46c   :  { %v1195_v24 = vpop.permute.xlu0 %1194 }
 0x46d   :  { %v1200_v25 = vmul.f32 %v13066_v23, %v1195_v24  ;;  %1206 = vrot.lane.b32.xlu1 %v1201_v22, %s13448_s0 }
 0x46f   :  { %1204 = vrot.lane.b32.xlu0 %v1200_v25, %s13448_s0 }
 0x4df   :  { %v1207_v27 = vpop.permute.xlu1 %1206 }
 0x4e0   :  { %v1211_v29 = vadd.f32 %v1207_v27, %v1098_v8 }
 0x4e1   :  { %v1205_v30 = vpop.permute.xlu0 %1204 }
 0x4e2   :  { %13067 = vtanh.f32 %v1211_v29  ;;  %v1210_v32 = vadd.f32 %v1205_v30, %v1097_v10 }
 0x4e4   :  { %13069 = vtanh.f32 %v1210_v32  ;;  %v1387_v32 = vld [vmem:[#allocation2 + $0x30] sm:$0xff] }
 0x4ef   :  { %v13068_v33 = vpop.eup %13067 }
 0x4f0   :  { %1220 = vrot.lane.b32.xlu1 %v13068_v33, %s13449_s5 }
 0x4f1   :  { %v13070_v34 = vpop.eup %13069 }
 0x4f2   :  { %1218 = vrot.lane.b32.xlu0 %v13070_v34, %s13449_s5 }
 0x562   :  { %v1221_v37 = vpop.permute.xlu1 %1220 }
 0x563   :  { %v1225_v15 = vmul.f32 %v1221_v37, %v1215_v35 }
 0x564   :  { %v1219_v40 = vpop.permute.xlu0 %1218 }
 0x565   :  { %v1229_v42 = vadd.f32 %v1227_v38, %v1225_v15  ;;  %v1224_v44 = vmul.f32 %v1219_v40, %v1214_v39 }
 0x567   :  { %v13931_v45 = vadd.f32 %v1226_v43, %v1224_v44  ;;  %1234 = vrot.lane.b32.xlu1 %v1229_v42, %s13449_s5 }
 0x569   :  { %1232 = vrot.lane.b32.xlu0 %v13931_v45, %s13449_s5 }
 0x5d9   :  { %v1235_v46 = vpop.permute.xlu1 %1234 }
 0x5da   :  { %1239 = vst.msk [vmem:[#allocation3 + $0x18] sm:$0xff] %vm227_vm0, %v1235_v46  ;;  %1241 = vst.msk [vmem:[#allocation4 + $0xe8] sm:$0xff] %vm227_vm0, %v1235_v46 }
 0x5db   :  { %v1233_v47 = vpop.permute.xlu0 %1232 }
 0x5dc   :  { %1238 = vst.msk [vmem:[#allocation3 + $0x10] sm:$0xff] %vm227_vm0, %v1233_v47  ;;  %1240 = vst.msk [vmem:[#allocation4 + $0xe0] sm:$0xff] %vm227_vm0, %v1233_v47  ;;  %12072 = vmatprep.mubr.msk.f32.mxu0 %vm227_vm0, %v1233_v47 }
 0x5dd   :  { %12073 = vmatmul.mubr.msk.f32.vlgmr.msra.gmra.mxu0 %vm227_vm0, %v1235_v46 }
 0x5de   :  { %12087 = vmatpush3.msra.mxu0 %v13692_v26 }
 0x5df   :  { %12088 = vmatprep.subr.mxu0 %v13704_v31 }
 0x5e0   :  { %12089 = vmatpush3.msra.mxu0 %v13704_v31 }
 0x5e1   :  { %12090 = vmatprep.subr.mxu0 %v13719_v36 }
 0x5e2   :  { %12091 = vmatpush3.msra.mxu0 %v13719_v36 }
 0x5e3   :  { %12092 = vmatprep.subr.mxu0 %v13734_v41 }
 0x5e4   :  { %12093 = vmatpush3.msra.mxu0 %v13734_v41 }
 0x5e5   :  { %12108 = vmatprep.subr.mxu0 %v13692_v26 }
 0x69d   :  { %v12074_v48 = vpop.f32.mrf.mxu0 }
 0x69e   :  { %v1320_v49 = vadd.f32 %v12074_v48, %v13892_v28 }
 0x69f   :  { %v1314_v50 = vpop.f32.mrf.mxu0 }
 0x6a0   :  { %v1315_v51 = vadd.f32 %v13892_v28, %v1314_v50  ;;  %1341 = vrot.lane.b32.xlu1 %v1320_v49, %s13448_s0  ;;  %v1324_v53 = vadd.f32 %v1320_v49, %v1243_v52 }
 0x6a2   :  { %1339 = vrot.lane.b32.xlu0 %v1315_v51, %s13448_s0  ;;  %v1323_v55 = vadd.f32 %v1315_v51, %v1242_v54  ;;  %v10653_v56 = vmul.f32 -1.442695, %v1324_v53 }
 0x6a4   :  { %v10652_v57 = vmul.f32 -1.442695, %v1323_v55  ;;  %13071 = vpow2.f32 %v10653_v56 }
 0x6a6   :  { %13073 = vpow2.f32 %v10652_v57 }
 0x6b1   :  { %v13072_v58 = vpop.eup %13071 }
 0x6b2   :  { %v1332_v60 = vadd.f32 1.0, %v13072_v58 }
 0x6b3   :  { %v13074_v59 = vpop.eup %13073 }
 0x6b4   :  { %v1331_v61 = vadd.f32 1.0, %v13074_v59  ;;  %13075 = vrcp.f32 %v1332_v60 }
 0x6b6   :  { %13077 = vrcp.f32 %v1331_v61 }
 0x6c1   :  { %v13076_v62 = vpop.eup %13075 }
 0x6c2   :  { %v1360_v10 = vsub.f32 1.0, %v13076_v62  ;;  %v1372_v13 = vmul.f32 %v13076_v62, %v1229_v42 }
 0x6c3   :  { %v13078_v1 = vpop.eup %13077 }
 0x6c4   :  { %v1359_v16 = vsub.f32 1.0, %v13078_v1  ;;  %v1371_v19 = vmul.f32 %v13078_v1, %v13931_v45 }
 0x712   :  { %v1342_v63 = vpop.permute.xlu1 %1341 }
 0x713   :  { %v1346_v0 = vmul.f32 %v13076_v62, %v1342_v63  ;;  %v14002_v62 = vld [vmem:[%s13492_s29 + $0x18] sm:$0xff]  ;;  %v14006_v63 = vld [vmem:[%s13492_s29 + $0x10] sm:$0xff] }
 0x714   :  { %v1340_v2 = vpop.permute.xlu0 %1339 }
 0x715   :  { %v1345_v3 = vmul.f32 %v13078_v1, %v1340_v2  ;;  %1351 = vrot.lane.b32.xlu1 %v1346_v0, %s13448_s0  ;;  %v14011_v0 = vld [vmem:[%s13492_s29 + $0x8] sm:$0xff]  ;;  %v14016_v1 = vld [vmem:[%s13492_s29] sm:$0xff] }
 0x717   :  { %1349 = vrot.lane.b32.xlu0 %v1345_v3, %s13448_s0 }
 0x787   :  { %v1352_v4 = vpop.permute.xlu1 %1351 }
 0x788   :  { %v1356_v5 = vadd.f32 %v1352_v4, %v1243_v52 }
 0x789   :  { %v1350_v6 = vpop.permute.xlu0 %1349 }
 0x78a   :  { %13079 = vtanh.f32 %v1356_v5  ;;  %v1355_v7 = vadd.f32 %v1350_v6, %v1242_v54  ;;  %v1533_v6 = vld [vmem:[#allocation2 + $0x48] sm:$0xff] }
 0x78c   :  { %13081 = vtanh.f32 %v1355_v7 }
 0x797   :  { %v13080_v8 = vpop.eup %13079 }
 0x798   :  { %1365 = vrot.lane.b32.xlu1 %v13080_v8, %s13449_s5  ;;  %v1532_v8 = vld [vmem:[#allocation2 + $0x40] sm:$0xff] }
 0x799   :  { %v13082_v9 = vpop.eup %13081 }
 0x79a   :  { %1363 = vrot.lane.b32.xlu0 %v13082_v9, %s13449_s5 }
 0x80a   :  { %v1366_v11 = vpop.permute.xlu1 %1365 }
 0x80b   :  { %v1370_v14 = vmul.f32 %v1366_v11, %v1360_v10 }
 0x80c   :  { %v1364_v17 = vpop.permute.xlu0 %1363 }
 0x80d   :  { %v1374_v18 = vadd.f32 %v1372_v13, %v1370_v14  ;;  %v1369_v20 = vmul.f32 %v1364_v17, %v1359_v16 }
 0x80f   :  { %v13959_v21 = vadd.f32 %v1371_v19, %v1369_v20  ;;  %1379 = vrot.lane.b32.xlu1 %v1374_v18, %s13449_s5 }
 0x811   :  { %1377 = vrot.lane.b32.xlu0 %v13959_v21, %s13449_s5 }
 0x881   :  { %v1380_v22 = vpop.permute.xlu1 %1379 }
 0x882   :  { %1384 = vst.msk [vmem:[#allocation3 + $0x28] sm:$0xff] %vm227_vm0, %v1380_v22  ;;  %1386 = vst.msk [vmem:[#allocation4 + $0xd8] sm:$0xff] %vm227_vm0, %v1380_v22 }
 0x883   :  { %v1378_v23 = vpop.permute.xlu0 %1377 }
 0x884   :  { %1383 = vst.msk [vmem:[#allocation3 + $0x20] sm:$0xff] %vm227_vm0, %v1378_v23  ;;  %1385 = vst.msk [vmem:[#allocation4 + $0xd0] sm:$0xff] %vm227_vm0, %v1378_v23  ;;  %12083 = vmatprep.mubr.msk.f32.mxu1 %vm227_vm0, %v1378_v23 }
 0x885   :  { %12084 = vmatmul.mubr.msk.f32.vlgmr.msra.gmra.mxu1 %vm227_vm0, %v1380_v22 }
 0x886   :  { %12098 = vmatpush3.msra.mxu1 %v13692_v26 }
 0x887   :  { %12099 = vmatprep.subr.mxu1 %v13704_v31 }
 0x888   :  { %12100 = vmatpush3.msra.mxu1 %v13704_v31  ;;  %v1388_v31 = vld [vmem:[#allocation2 + $0x38] sm:$0xff] }
 0x889   :  { %12101 = vmatprep.subr.mxu1 %v13719_v36 }
 0x88a   :  { %12102 = vmatpush3.msra.mxu1 %v13719_v36 }
 0x88b   :  { %12103 = vmatprep.subr.mxu1 %v13734_v41 }
 0x88c   :  { %12104 = vmatpush3.msra.mxu1 %v13734_v41 }
 0x88d   :  { %12119 = vmatprep.subr.mxu1 %v13692_v26 }
 0x945   :  { %v12085_v24 = vpop.f32.mrf.mxu1 }
 0x946   :  { %v1465_v25 = vadd.f32 %v12085_v24, %v13892_v28 }
 0x947   :  { %v1459_v27 = vpop.f32.mrf.mxu1 }
 0x948   :  { %v1460_v29 = vadd.f32 %v13892_v28, %v1459_v27  ;;  %1486 = vrot.lane.b32.xlu1 %v1465_v25, %s13448_s0  ;;  %v1469_v30 = vadd.f32 %v1465_v25, %v1388_v31 }
 0x94a   :  { %1484 = vrot.lane.b32.xlu0 %v1460_v29, %s13448_s0  ;;  %v1468_v36 = vadd.f32 %v1460_v29, %v1387_v32  ;;  %v10657_v33 = vmul.f32 -1.442695, %v1469_v30 }
 0x94c   :  { %v10656_v34 = vmul.f32 -1.442695, %v1468_v36  ;;  %13083 = vpow2.f32 %v10657_v33 }
 0x94e   :  { %13085 = vpow2.f32 %v10656_v34 }
 0x959   :  { %v13084_v41 = vpop.eup %13083 }
 0x95a   :  { %v1477_v35 = vadd.f32 1.0, %v13084_v41 }
 0x95b   :  { %v13086_v26 = vpop.eup %13085 }
 0x95c   :  { %v1476_v37 = vadd.f32 1.0, %v13086_v26  ;;  %13087 = vrcp.f32 %v1477_v35 }
 0x95e   :  { %13089 = vrcp.f32 %v1476_v37 }
 0x969   :  { %v13088_v38 = vpop.eup %13087 }
 0x96a   :  { %v1505_v50 = vsub.f32 1.0, %v13088_v38  ;;  %v1517_v52 = vmul.f32 %v13088_v38, %v1374_v18 }
 0x96b   :  { %v13090_v40 = vpop.eup %13089 }
 0x96c   :  { %v1504_v54 = vsub.f32 1.0, %v13090_v40  ;;  %v1516_v57 = vmul.f32 %v13090_v40, %v13959_v21 }
 0x9ba   :  { %v1487_v15 = vpop.permute.xlu1 %1486 }
 0x9bb   :  { %v1491_v39 = vmul.f32 %v13088_v38, %v1487_v15 }
 0x9bc   :  { %v1485_v42 = vpop.permute.xlu0 %1484 }
 0x9bd   :  { %v1490_v43 = vmul.f32 %v13090_v40, %v1485_v42  ;;  %1496 = vrot.lane.b32.xlu1 %v1491_v39, %s13448_s0 }
 0x9bf   :  { %1494 = vrot.lane.b32.xlu0 %v1490_v43, %s13448_s0 }
 0xa2f   :  { %v1497_v44 = vpop.permute.xlu1 %1496 }
 0xa30   :  { %v1501_v45 = vadd.f32 %v1497_v44, %v1388_v31 }
 0xa31   :  { %v1495_v46 = vpop.permute.xlu0 %1494 }
 0xa32   :  { %13091 = vtanh.f32 %v1501_v45  ;;  %v1500_v47 = vadd.f32 %v1495_v46, %v1387_v32  ;;  %v1678_v46 = vld [vmem:[#allocation2 + $0x58] sm:$0xff] }
 0xa34   :  { %13093 = vtanh.f32 %v1500_v47 }
 0xa3f   :  { %v13092_v48 = vpop.eup %13091 }
 0xa40   :  { %1510 = vrot.lane.b32.xlu1 %v13092_v48, %s13449_s5  ;;  %v1677_v48 = vld [vmem:[#allocation2 + $0x50] sm:$0xff] }
 0xa41   :  { %v13094_v49 = vpop.eup %13093 }
 0xa42   :  { %1508 = vrot.lane.b32.xlu0 %v13094_v49, %s13449_s5 }
 0xab2   :  { %v1511_v51 = vpop.permute.xlu1 %1510 }
 0xab3   :  { %v1515_v53 = vmul.f32 %v1511_v51, %v1505_v50 }
 0xab4   :  { %v1509_v55 = vpop.permute.xlu0 %1508 }
 0xab5   :  { %v13986_v56 = vadd.f32 %v1517_v52, %v1515_v53  ;;  %v1514_v58 = vmul.f32 %v1509_v55, %v1504_v54 }
 0xab7   :  { %v13989_v59 = vadd.f32 %v1516_v57, %v1514_v58  ;;  %1524 = vrot.lane.b32.xlu1 %v13986_v56, %s13449_s5 }
 0xab9   :  { %1522 = vrot.lane.b32.xlu0 %v13989_v59, %s13449_s5 }
 0xb29   :  { %v1525_v60 = vpop.permute.xlu1 %1524 }
 0xb2a   :  { %1529 = vst.msk [vmem:[#allocation3 + $0x38] sm:$0xff] %vm227_vm0, %v1525_v60  ;;  %1531 = vst.msk [vmem:[#allocation4 + $0xc8] sm:$0xff] %vm227_vm0, %v1525_v60 }
 0xb2b   :  { %v1523_v61 = vpop.permute.xlu0 %1522 }
 0xb2c   :  { %1528 = vst.msk [vmem:[#allocation3 + $0x30] sm:$0xff] %vm227_vm0, %v1523_v61  ;;  %1530 = vst.msk [vmem:[#allocation4 + $0xc0] sm:$0xff] %vm227_vm0, %v1523_v61  ;;  %12094 = vmatprep.mubr.msk.f32.mxu0 %vm227_vm0, %v1523_v61 }
 0xb2d   :  { %12095 = vmatmul.mubr.msk.f32.vlgmr.msra.gmra.mxu0 %vm227_vm0, %v1525_v60 }
 0xb2e   :  { %12109 = vmatpush3.msra.mxu0 %v14002_v62 }
 0xb2f   :  { %12110 = vmatprep.subr.mxu0 %v14006_v63 }
 0xb30   :  { %12111 = vmatpush3.msra.mxu0 %v14006_v63 }
 0xb31   :  { %12112 = vmatprep.subr.mxu0 %v14011_v0 }
 0xb32   :  { %12113 = vmatpush3.msra.mxu0 %v14011_v0 }
 0xb33   :  { %12114 = vmatprep.subr.mxu0 %v14016_v1 }
 0xb34   :  { %12115 = vmatpush3.msra.mxu0 %v14016_v1 }
 0xb35   :  { %12130 = vmatprep.subr.mxu0 %v14002_v62 }
 0xbed   :  { %v12096_v2 = vpop.f32.mrf.mxu0 }
 0xbee   :  { %v1610_v3 = vadd.f32 %v12096_v2, %v13892_v28 }
 0xbef   :  { %v1604_v4 = vpop.f32.mrf.mxu0 }
 0xbf0   :  { %v1605_v5 = vadd.f32 %v13892_v28, %v1604_v4  ;;  %1631 = vrot.lane.b32.xlu1 %v1610_v3, %s13448_s0  ;;  %v1614_v7 = vadd.f32 %v1610_v3, %v1533_v6 }
 0xbf2   :  { %1629 = vrot.lane.b32.xlu0 %v1605_v5, %s13448_s0  ;;  %v1613_v9 = vadd.f32 %v1605_v5, %v1532_v8  ;;  %v10661_v10 = vmul.f32 -1.442695, %v1614_v7 }
 0xbf4   :  { %v10660_v11 = vmul.f32 -1.442695, %v1613_v9  ;;  %13095 = vpow2.f32 %v10661_v10 }
 0xbf6   :  { %13097 = vpow2.f32 %v10660_v11 }
 0xc01   :  { %v13096_v13 = vpop.eup %13095 }
 0xc02   :  { %v1622_v16 = vadd.f32 1.0, %v13096_v13 }
 0xc03   :  { %v13098_v14 = vpop.eup %13097 }
 0xc04   :  { %v1621_v17 = vadd.f32 1.0, %v13098_v14  ;;  %13099 = vrcp.f32 %v1622_v16 }
 0xc06   :  { %13101 = vrcp.f32 %v1621_v17 }
 0xc11   :  { %v13100_v18 = vpop.eup %13099 }
 0xc12   :  { %v1650_v32 = vsub.f32 1.0, %v13100_v18  ;;  %v1662_v33 = vmul.f32 %v13100_v18, %v13986_v56 }
 0xc13   :  { %v13102_v21 = vpop.eup %13101 }
 0xc14   :  { %v1649_v41 = vsub.f32 1.0, %v13102_v21  ;;  %v1661_v37 = vmul.f32 %v13102_v21, %v13989_v59 }
 0xc62   :  { %v1632_v19 = vpop.permute.xlu1 %1631 }
 0xc63   :  { %v1636_v20 = vmul.f32 %v13100_v18, %v1632_v19 }
 0xc64   :  { %v1630_v22 = vpop.permute.xlu0 %1629 }
 0xc65   :  { %v1635_v23 = vmul.f32 %v13102_v21, %v1630_v22  ;;  %1641 = vrot.lane.b32.xlu1 %v1636_v20, %s13448_s0 }
 0xc67   :  { %1639 = vrot.lane.b32.xlu0 %v1635_v23, %s13448_s0 }
 0xcd7   :  { %v1642_v24 = vpop.permute.xlu1 %1641 }
 0xcd8   :  { %v1646_v25 = vadd.f32 %v1642_v24, %v1533_v6 }
 0xcd9   :  { %v1640_v27 = vpop.permute.xlu0 %1639 }
 0xcda   :  { %13103 = vtanh.f32 %v1646_v25  ;;  %v1645_v29 = vadd.f32 %v1640_v27, %v1532_v8  ;;  %v1823_v27 = vld [vmem:[#allocation2 + $0x68] sm:$0xff] }
 0xcdc   :  { %13105 = vtanh.f32 %v1645_v29 }
 0xce7   :  { %v13104_v31 = vpop.eup %13103 }
 0xce8   :  { %1655 = vrot.lane.b32.xlu1 %v13104_v31, %s13449_s5  ;;  %v1822_v31 = vld [vmem:[#allocation2 + $0x60] sm:$0xff] }
 0xce9   :  { %v13106_v30 = vpop.eup %13105 }
 0xcea   :  { %1653 = vrot.lane.b32.xlu0 %v13106_v30, %s13449_s5 }
 0xd5a   :  { %v1656_v36 = vpop.permute.xlu1 %1655 }
 0xd5b   :  { %v1660_v34 = vmul.f32 %v1656_v36, %v1650_v32 }
 0xd5c   :  { %v1654_v26 = vpop.permute.xlu0 %1653 }
 0xd5d   :  { %v1664_v35 = vadd.f32 %v1662_v33, %v1660_v34  ;;  %v1659_v38 = vmul.f32 %v1654_v26, %v1649_v41 }
 0xd5f   :  { %v14031_v15 = vadd.f32 %v1661_v37, %v1659_v38  ;;  %1669 = vrot.lane.b32.xlu1 %v1664_v35, %s13449_s5 }
 0xd61   :  { %1667 = vrot.lane.b32.xlu0 %v14031_v15, %s13449_s5 }
 0xdd1   :  { %v1670_v39 = vpop.permute.xlu1 %1669 }
 0xdd2   :  { %1674 = vst.msk [vmem:[#allocation3 + $0x48] sm:$0xff] %vm227_vm0, %v1670_v39  ;;  %1676 = vst.msk [vmem:[#allocation4 + $0xb8] sm:$0xff] %vm227_vm0, %v1670_v39 }
 0xdd3   :  { %v1668_v40 = vpop.permute.xlu0 %1667 }
 0xdd4   :  { %1673 = vst.msk [vmem:[#allocation3 + $0x40] sm:$0xff] %vm227_vm0, %v1668_v40  ;;  %1675 = vst.msk [vmem:[#allocation4 + $0xb0] sm:$0xff] %vm227_vm0, %v1668_v40  ;;  %12105 = vmatprep.mubr.msk.f32.mxu1 %vm227_vm0, %v1668_v40 }
 0xdd5   :  { %12106 = vmatmul.mubr.msk.f32.vlgmr.msra.gmra.mxu1 %vm227_vm0, %v1670_v39 }
 0xdd6   :  { %12120 = vmatpush3.msra.mxu1 %v14002_v62 }
 0xdd7   :  { %12121 = vmatprep.subr.mxu1 %v14006_v63 }
 0xdd8   :  { %12122 = vmatpush3.msra.mxu1 %v14006_v63 }
 0xdd9   :  { %12123 = vmatprep.subr.mxu1 %v14011_v0 }
 0xdda   :  { %12124 = vmatpush3.msra.mxu1 %v14011_v0 }
 0xddb   :  { %12125 = vmatprep.subr.mxu1 %v14016_v1 }
 0xddc   :  { %12126 = vmatpush3.msra.mxu1 %v14016_v1 }
 0xddd   :  { %12141 = vmatprep.subr.mxu1 %v14002_v62 }
 0xe95   :  { %v12107_v42 = vpop.f32.mrf.mxu1 }
 0xe96   :  { %v1755_v43 = vadd.f32 %v12107_v42, %v13892_v28 }
 0xe97   :  { %v1749_v44 = vpop.f32.mrf.mxu1 }
 0xe98   :  { %v1750_v45 = vadd.f32 %v13892_v28, %v1749_v44  ;;  %1776 = vrot.lane.b32.xlu1 %v1755_v43, %s13448_s0  ;;  %v1759_v47 = vadd.f32 %v1755_v43, %v1678_v46 }
 0xe9a   :  { %1774 = vrot.lane.b32.xlu0 %v1750_v45, %s13448_s0  ;;  %v1758_v49 = vadd.f32 %v1750_v45, %v1677_v48  ;;  %v10665_v50 = vmul.f32 -1.442695, %v1759_v47 }
 0xe9c   :  { %v10664_v51 = vmul.f32 -1.442695, %v1758_v49  ;;  %13107 = vpow2.f32 %v10665_v50 }
 0xe9e   :  { %13109 = vpow2.f32 %v10664_v51 }
 0xea9   :  { %v13108_v52 = vpop.eup %13107 }
 0xeaa   :  { %v1767_v54 = vadd.f32 1.0, %v13108_v52 }
 0xeab   :  { %v13110_v53 = vpop.eup %13109 }
 0xeac   :  { %v1766_v55 = vadd.f32 1.0, %v13110_v53  ;;  %13111 = vrcp.f32 %v1767_v54 }
 0xeae   :  { %13113 = vrcp.f32 %v1766_v55 }
 0xeb9   :  { %v13112_v56 = vpop.eup %13111 }
 0xeba   :  { %v1795_v8 = vsub.f32 1.0, %v13112_v56  ;;  %v1807_v10 = vmul.f32 %v13112_v56, %v1664_v35 }
 0xebb   :  { %v13114_v59 = vpop.eup %13113 }
 0xebc   :  { %v1794_v13 = vsub.f32 1.0, %v13114_v59  ;;  %v1806_v17 = vmul.f32 %v13114_v59, %v14031_v15 }
 0xf0a   :  { %v1777_v57 = vpop.permute.xlu1 %1776 }
 0xf0b   :  { %v1781_v58 = vmul.f32 %v13112_v56, %v1777_v57 }
 0xf0c   :  { %v1775_v60 = vpop.permute.xlu0 %1774 }
 0xf0d   :  { %v1780_v61 = vmul.f32 %v13114_v59, %v1775_v60  ;;  %1786 = vrot.lane.b32.xlu1 %v1781_v58, %s13448_s0 }
 0xf0f   :  { %1784 = vrot.lane.b32.xlu0 %v1780_v61, %s13448_s0 }
 0xf7f   :  { %v1787_v2 = vpop.permute.xlu1 %1786 }
 0xf80   :  { %v1791_v3 = vadd.f32 %v1787_v2, %v1678_v46 }
 0xf81   :  { %v1785_v4 = vpop.permute.xlu0 %1784 }
 0xf82   :  { %13115 = vtanh.f32 %v1791_v3  ;;  %v1790_v5 = vadd.f32 %v1785_v4, %v1677_v48  ;;  %v1968_v4 = vld [vmem:[#allocation2 + $0x78] sm:$0xff] }
 0xf84   :  { %13117 = vtanh.f32 %v1790_v5 }
 0xf8f   :  { %v13116_v6 = vpop.eup %13115 }
 0xf90   :  { %1800 = vrot.lane.b32.xlu1 %v13116_v6, %s13449_s5  ;;  %v1967_v6 = vld [vmem:[#allocation2 + $0x70] sm:$0xff] }
 0xf91   :  { %v13118_v7 = vpop.eup %13117 }
 0xf92   :  { %1798 = vrot.lane.b32.xlu0 %v13118_v7, %s13449_s5 }
0x1002   :  { %v1801_v9 = vpop.permute.xlu1 %1800 }
0x1003   :  { %v1805_v11 = vmul.f32 %v1801_v9, %v1795_v8 }
0x1004   :  { %v1799_v14 = vpop.permute.xlu0 %1798 }
0x1005   :  { %v1809_v16 = vadd.f32 %v1807_v10, %v1805_v11  ;;  %v1804_v18 = vmul.f32 %v1799_v14, %v1794_v13 }
0x1007   :  { %v14059_v19 = vadd.f32 %v1806_v17, %v1804_v18  ;;  %1814 = vrot.lane.b32.xlu1 %v1809_v16, %s13449_s5 }
0x1009   :  { %1812 = vrot.lane.b32.xlu0 %v14059_v19, %s13449_s5 }
0x1079   :  { %v1815_v20 = vpop.permute.xlu1 %1814 }
0x107a   :  { %1819 = vst.msk [vmem:[#allocation3 + $0x58] sm:$0xff] %vm227_vm0, %v1815_v20  ;;  %1821 = vst.msk [vmem:[#allocation4 + $0xa8] sm:$0xff] %vm227_vm0, %v1815_v20 }
0x107b   :  { %v1813_v21 = vpop.permute.xlu0 %1812 }
0x107c   :  { %1818 = vst.msk [vmem:[#allocation3 + $0x50] sm:$0xff] %vm227_vm0, %v1813_v21  ;;  %1820 = vst.msk [vmem:[#allocation4 + $0xa0] sm:$0xff] %vm227_vm0, %v1813_v21  ;;  %12116 = vmatprep.mubr.msk.f32.mxu0 %vm227_vm0, %v1813_v21 }
0x107d   :  { %12117 = vmatmul.mubr.msk.f32.vlgmr.msra.gmra.mxu0 %vm227_vm0, %v1815_v20 }
0x107e   :  { %12131 = vmatpush3.msra.mxu0 %v14002_v62 }
0x107f   :  { %12132 = vmatprep.subr.mxu0 %v14006_v63 }
0x1080   :  { %12133 = vmatpush3.msra.mxu0 %v14006_v63 }
0x1081   :  { %12134 = vmatprep.subr.mxu0 %v14011_v0 }
0x1082   :  { %12135 = vmatpush3.msra.mxu0 %v14011_v0 }
0x1083   :  { %12136 = vmatprep.subr.mxu0 %v14016_v1 }
0x1084   :  { %12137 = vmatpush3.msra.mxu0 %v14016_v1 }
0x1085   :  { %12152 = vmatprep.subr.mxu0 %v14002_v62 }
0x113d   :  { %v12118_v22 = vpop.f32.mrf.mxu0 }
0x113e   :  { %v1900_v23 = vadd.f32 %v12118_v22, %v13892_v28 }
0x113f   :  { %v1894_v24 = vpop.f32.mrf.mxu0 }
0x1140   :  { %v1895_v25 = vadd.f32 %v13892_v28, %v1894_v24  ;;  %1921 = vrot.lane.b32.xlu1 %v1900_v23, %s13448_s0  ;;  %v1904_v29 = vadd.f32 %v1900_v23, %v1823_v27 }
0x1142   :  { %1919 = vrot.lane.b32.xlu0 %v1895_v25, %s13448_s0  ;;  %v1903_v30 = vadd.f32 %v1895_v25, %v1822_v31  ;;  %v10669_v32 = vmul.f32 -1.442695, %v1904_v29 }
0x1144   :  { %v10668_v36 = vmul.f32 -1.442695, %v1903_v30  ;;  %13119 = vpow2.f32 %v10669_v32 }
0x1146   :  { %13121 = vpow2.f32 %v10668_v36 }
0x1151   :  { %v13120_v33 = vpop.eup %13119 }
0x1152   :  { %v1912_v41 = vadd.f32 1.0, %v13120_v33 }
0x1153   :  { %v13122_v34 = vpop.eup %13121 }
0x1154   :  { %v1911_v26 = vadd.f32 1.0, %v13122_v34  ;;  %13123 = vrcp.f32 %v1912_v41 }
0x1156   :  { %13125 = vrcp.f32 %v1911_v26 }
0x1161   :  { %v13124_v35 = vpop.eup %13123 }
0x1162   :  { %v1940_v48 = vsub.f32 1.0, %v13124_v35  ;;  %v1952_v50 = vmul.f32 %v13124_v35, %v1809_v16 }
0x1163   :  { %v13126_v15 = vpop.eup %13125 }
0x1164   :  { %v1939_v52 = vsub.f32 1.0, %v13126_v15  ;;  %v1951_v55 = vmul.f32 %v13126_v15, %v14059_v19 }
0x11b2   :  { %v1922_v37 = vpop.permute.xlu1 %1921 }
0x11b3   :  { %v1926_v38 = vmul.f32 %v13124_v35, %v1922_v37 }
0x11b4   :  { %v1920_v39 = vpop.permute.xlu0 %1919 }
0x11b5   :  { %v1925_v40 = vmul.f32 %v13126_v15, %v1920_v39  ;;  %1931 = vrot.lane.b32.xlu1 %v1926_v38, %s13448_s0  ;;  %v14138_v39 = vld [vmem:[%s13497_s3] ss:$0 sm:$0xff]  ;;  %s16502_s3 = sld [smem:[#allocation17_spill]] }
0x11b7   :  { %1929 = vrot.lane.b32.xlu0 %v1925_v40, %s13448_s0 }
0x1227   :  { %v1932_v42 = vpop.permute.xlu1 %1931 }
0x1228   :  { %v1936_v43 = vadd.f32 %v1932_v42, %v1823_v27 }
0x1229   :  { %v1930_v44 = vpop.permute.xlu0 %1929 }
0x122a   :  { %13127 = vtanh.f32 %v1936_v43  ;;  %v1935_v45 = vadd.f32 %v1930_v44, %v1822_v31  ;;  %v2113_v44 = vld [vmem:[#allocation2 + $0x88] sm:$0xff] }
0x122c   :  { %13129 = vtanh.f32 %v1935_v45 }
0x1237   :  { %v13128_v46 = vpop.eup %13127 }
0x1238   :  { %1945 = vrot.lane.b32.xlu1 %v13128_v46, %s13449_s5  ;;  %v2112_v46 = vld [vmem:[#allocation2 + $0x80] sm:$0xff] }
0x1239   :  { %v13130_v47 = vpop.eup %13129 }
0x123a   :  { %1943 = vrot.lane.b32.xlu0 %v13130_v47, %s13449_s5 }
0x12aa   :  { %v1946_v49 = vpop.permute.xlu1 %1945 }
0x12ab   :  { %v1950_v51 = vmul.f32 %v1946_v49, %v1940_v48 }
0x12ac   :  { %v1944_v53 = vpop.permute.xlu0 %1943 }
0x12ad   :  { %v1954_v54 = vadd.f32 %v1952_v50, %v1950_v51  ;;  %v1949_v56 = vmul.f32 %v1944_v53, %v1939_v52 }
0x12af   :  { %v14087_v57 = vadd.f32 %v1951_v55, %v1949_v56  ;;  %1959 = vrot.lane.b32.xlu1 %v1954_v54, %s13449_s5 }
0x12b1   :  { %1957 = vrot.lane.b32.xlu0 %v14087_v57, %s13449_s5 }
0x1321   :  { %v1960_v58 = vpop.permute.xlu1 %1959 }
0x1322   :  { %1964 = vst.msk [vmem:[#allocation3 + $0x68] sm:$0xff] %vm227_vm0, %v1960_v58  ;;  %1966 = vst.msk [vmem:[#allocation4 + $0x98] sm:$0xff] %vm227_vm0, %v1960_v58 }
0x1323   :  { %v1958_v59 = vpop.permute.xlu0 %1957 }
0x1324   :  { %1963 = vst.msk [vmem:[#allocation3 + $0x60] sm:$0xff] %vm227_vm0, %v1958_v59  ;;  %1965 = vst.msk [vmem:[#allocation4 + $0x90] sm:$0xff] %vm227_vm0, %v1958_v59  ;;  %12127 = vmatprep.mubr.msk.f32.mxu1 %vm227_vm0, %v1958_v59 }
0x1325   :  { %12128 = vmatmul.mubr.msk.f32.vlgmr.msra.gmra.mxu1 %vm227_vm0, %v1960_v58 }
0x1326   :  { %12142 = vmatpush3.msra.mxu1 %v14002_v62 }
0x1327   :  { %12143 = vmatprep.subr.mxu1 %v14006_v63 }
0x1328   :  { %12144 = vmatpush3.msra.mxu1 %v14006_v63 }
0x1329   :  { %12145 = vmatprep.subr.mxu1 %v14011_v0 }
0x132a   :  { %12146 = vmatpush3.msra.mxu1 %v14011_v0 }
0x132b   :  { %12147 = vmatprep.subr.mxu1 %v14016_v1 }
0x132c   :  { %12148 = vmatpush3.msra.mxu1 %v14016_v1 }
0x132d   :  { %12163 = vmatprep.subr.mxu1 %v14002_v62 }
0x13e5   :  { %v12129_v60 = vpop.f32.mrf.mxu1 }
0x13e6   :  { %v2045_v61 = vadd.f32 %v12129_v60, %v13892_v28 }
0x13e7   :  { %v2039_v2 = vpop.f32.mrf.mxu1 }
0x13e8   :  { %v2040_v3 = vadd.f32 %v13892_v28, %v2039_v2  ;;  %2066 = vrot.lane.b32.xlu1 %v2045_v61, %s13448_s0  ;;  %v2049_v5 = vadd.f32 %v2045_v61, %v1968_v4 }
0x13ea   :  { %2064 = vrot.lane.b32.xlu0 %v2040_v3, %s13448_s0  ;;  %v2048_v7 = vadd.f32 %v2040_v3, %v1967_v6  ;;  %v10673_v8 = vmul.f32 -1.442695, %v2049_v5 }
0x13ec   :  { %v10672_v9 = vmul.f32 -1.442695, %v2048_v7  ;;  %13131 = vpow2.f32 %v10673_v8 }
0x13ee   :  { %13133 = vpow2.f32 %v10672_v9 }
0x13f9   :  { %v13132_v10 = vpop.eup %13131 }
0x13fa   :  { %v2057_v13 = vadd.f32 1.0, %v13132_v10 }
0x13fb   :  { %v13134_v11 = vpop.eup %13133 }
0x13fc   :  { %v2056_v14 = vadd.f32 1.0, %v13134_v11  ;;  %13135 = vrcp.f32 %v2057_v13 }
0x13fe   :  { %13137 = vrcp.f32 %v2056_v14 }
0x1409   :  { %v13136_v16 = vpop.eup %13135 }
0x140a   :  { %v2085_v29 = vsub.f32 1.0, %v13136_v16  ;;  %v2097_v30 = vmul.f32 %v13136_v16, %v1954_v54 }
0x140b   :  { %v13138_v18 = vpop.eup %13137 }
0x140c   :  { %v2084_v36 = vsub.f32 1.0, %v13138_v18  ;;  %v2096_v41 = vmul.f32 %v13138_v18, %v14087_v57 }
0x145a   :  { %v2067_v28 = vpop.permute.xlu1 %2066 }
0x145b   :  { %v2071_v17 = vmul.f32 %v13136_v16, %v2067_v28 }
0x145c   :  { %v2065_v19 = vpop.permute.xlu0 %2064 }
0x145d   :  { %v2070_v20 = vmul.f32 %v13138_v18, %v2065_v19  ;;  %2076 = vrot.lane.b32.xlu1 %v2071_v17, %s13448_s0 }
0x145f   :  { %2074 = vrot.lane.b32.xlu0 %v2070_v20, %s13448_s0 }
0x14cf   :  { %v2077_v21 = vpop.permute.xlu1 %2076 }
0x14d0   :  { %v2081_v22 = vadd.f32 %v2077_v21, %v1968_v4 }
0x14d1   :  { %v2075_v23 = vpop.permute.xlu0 %2074 }
0x14d2   :  { %13139 = vtanh.f32 %v2081_v22  ;;  %v2080_v24 = vadd.f32 %v2075_v23, %v1967_v6  ;;  %v2258_v23 = vld [vmem:[#allocation2 + $0x98] sm:$0xff] }
0x14d4   :  { %13141 = vtanh.f32 %v2080_v24 }
0x14df   :  { %v13140_v25 = vpop.eup %13139 }
0x14e0   :  { %2090 = vrot.lane.b32.xlu1 %v13140_v25, %s13449_s5  ;;  %v2257_v25 = vld [vmem:[#allocation2 + $0x90] sm:$0xff] }
0x14e1   :  { %v13142_v27 = vpop.eup %13141 }
0x14e2   :  { %2088 = vrot.lane.b32.xlu0 %v13142_v27, %s13449_s5 }
0x1552   :  { %v2091_v31 = vpop.permute.xlu1 %2090 }
0x1553   :  { %v2095_v32 = vmul.f32 %v2091_v31, %v2085_v29 }
0x1554   :  { %v2089_v33 = vpop.permute.xlu0 %2088 }
0x1555   :  { %v14114_v34 = vadd.f32 %v2097_v30, %v2095_v32  ;;  %v2094_v26 = vmul.f32 %v2089_v33, %v2084_v36 }
0x1557   :  { %v14117_v35 = vadd.f32 %v2096_v41, %v2094_v26  ;;  %2104 = vrot.lane.b32.xlu1 %v14114_v34, %s13449_s5 }
0x1559   :  { %2102 = vrot.lane.b32.xlu0 %v14117_v35, %s13449_s5 }
0x15c9   :  { %v2105_v37 = vpop.permute.xlu1 %2104 }
0x15ca   :  { %2109 = vst.msk [vmem:[#allocation3 + $0x78] sm:$0xff] %vm227_vm0, %v2105_v37  ;;  %2111 = vst.msk [vmem:[#allocation4 + $0x88] sm:$0xff] %vm227_vm0, %v2105_v37 }
0x15cb   :  { %v2103_v38 = vpop.permute.xlu0 %2102 }
0x15cc   :  { %2108 = vst.msk [vmem:[#allocation3 + $0x70] sm:$0xff] %vm227_vm0, %v2103_v38  ;;  %2110 = vst.msk [vmem:[#allocation4 + $0x80] sm:$0xff] %vm227_vm0, %v2103_v38  ;;  %12138 = vmatprep.mubr.msk.f32.mxu0 %vm227_vm0, %v2103_v38 }
0x15cd   :  { %12139 = vmatmul.mubr.msk.f32.vlgmr.msra.gmra.mxu0 %vm227_vm0, %v2105_v37 }
0x15ce   :  { %12153 = vmatpush3.msra.mxu0 %v14002_v62 }
0x15cf   :  { %12154 = vmatprep.subr.mxu0 %v14006_v63 }
0x15d0   :  { %12155 = vmatpush3.msra.mxu0 %v14006_v63 }
0x15d1   :  { %12156 = vmatprep.subr.mxu0 %v14011_v0 }
0x15d2   :  { %12157 = vmatpush3.msra.mxu0 %v14011_v0 }
0x15d3   :  { %12158 = vmatprep.subr.mxu0 %v14016_v1 }
0x15d4   :  { %12159 = vmatpush3.msra.mxu0 %v14016_v1 }
0x15d5   :  { %12174 = vmatprep.subr.mxu0 %v14002_v62 }
0x168d   :  { %v12140_v15 = vpop.f32.mrf.mxu0 }
0x168e   :  { %v2190_v40 = vadd.f32 %v14138_v39, %v12140_v15 }
0x168f   :  { %v2184_v42 = vpop.f32.mrf.mxu0 }
0x1690   :  { %v2185_v43 = vadd.f32 %v14138_v39, %v2184_v42  ;;  %2211 = vrot.lane.b32.xlu1 %v2190_v40, %s13448_s0  ;;  %v2194_v45 = vadd.f32 %v2190_v40, %v2113_v44 }
0x1692   :  { %2209 = vrot.lane.b32.xlu0 %v2185_v43, %s13448_s0  ;;  %v2193_v47 = vadd.f32 %v2185_v43, %v2112_v46  ;;  %v10677_v48 = vmul.f32 -1.442695, %v2194_v45 }
0x1694   :  { %v10676_v49 = vmul.f32 -1.442695, %v2193_v47  ;;  %13143 = vpow2.f32 %v10677_v48 }
0x1696   :  { %13145 = vpow2.f32 %v10676_v49 }
0x16a1   :  { %v13144_v50 = vpop.eup %13143 }
0x16a2   :  { %v2202_v52 = vadd.f32 1.0, %v13144_v50 }
0x16a3   :  { %v13146_v51 = vpop.eup %13145 }
0x16a4   :  { %v2201_v53 = vadd.f32 1.0, %v13146_v51  ;;  %13147 = vrcp.f32 %v2202_v52 }
0x16a6   :  { %13149 = vrcp.f32 %v2201_v53 }
0x16b1   :  { %v13148_v54 = vpop.eup %13147 }
0x16b2   :  { %v2230_v6 = vsub.f32 1.0, %v13148_v54  ;;  %v2242_v8 = vmul.f32 %v13148_v54, %v14114_v34 }
0x16b3   :  { %v13150_v57 = vpop.eup %13149 }
0x16b4   :  { %v2229_v10 = vsub.f32 1.0, %v13150_v57  ;;  %v2241_v14 = vmul.f32 %v13150_v57, %v14117_v35 }
0x1702   :  { %v2212_v55 = vpop.permute.xlu1 %2211 }
0x1703   :  { %v2216_v56 = vmul.f32 %v13148_v54, %v2212_v55 }
0x1704   :  { %v2210_v58 = vpop.permute.xlu0 %2209 }
0x1705   :  { %v2215_v59 = vmul.f32 %v13150_v57, %v2210_v58  ;;  %2221 = vrot.lane.b32.xlu1 %v2216_v56, %s13448_s0 }
0x1707   :  { %2219 = vrot.lane.b32.xlu0 %v2215_v59, %s13448_s0 }
0x1777   :  { %v2222_v60 = vpop.permute.xlu1 %2221 }
0x1778   :  { %v2226_v61 = vadd.f32 %v2222_v60, %v2113_v44 }
0x1779   :  { %v2220_v2 = vpop.permute.xlu0 %2219 }
0x177a   :  { %13151 = vtanh.f32 %v2226_v61  ;;  %v2225_v3 = vadd.f32 %v2220_v2, %v2112_v46  ;;  %v2403_v2 = vld [vmem:[#allocation2 + $0xa8] sm:$0xff] }
0x177c   :  { %13153 = vtanh.f32 %v2225_v3 }
0x1787   :  { %v13152_v4 = vpop.eup %13151 }
0x1788   :  { %2235 = vrot.lane.b32.xlu1 %v13152_v4, %s13449_s5  ;;  %v2402_v4 = vld [vmem:[#allocation2 + $0xa0] sm:$0xff] }
0x1789   :  { %v13154_v5 = vpop.eup %13153 }
0x178a   :  { %2233 = vrot.lane.b32.xlu0 %v13154_v5, %s13449_s5 }
0x17fa   :  { %v2236_v7 = vpop.permute.xlu1 %2235 }
0x17fb   :  { %v2240_v9 = vmul.f32 %v2236_v7, %v2230_v6 }
0x17fc   :  { %v2234_v11 = vpop.permute.xlu0 %2233 }
0x17fd   :  { %v2244_v13 = vadd.f32 %v2242_v8, %v2240_v9  ;;  %v2239_v16 = vmul.f32 %v2234_v11, %v2229_v10 }
0x17ff   :  { %v14150_v28 = vadd.f32 %v2241_v14, %v2239_v16  ;;  %2249 = vrot.lane.b32.xlu1 %v2244_v13, %s13449_s5 }
0x1801   :  { %2247 = vrot.lane.b32.xlu0 %v14150_v28, %s13449_s5 }
0x1871   :  { %v2250_v17 = vpop.permute.xlu1 %2249 }
0x1872   :  { %2254 = vst.msk [vmem:[#allocation3 + $0x88] sm:$0xff] %vm227_vm0, %v2250_v17  ;;  %2256 = vst.msk [vmem:[#allocation4 + $0x78] sm:$0xff] %vm227_vm0, %v2250_v17 }
0x1873   :  { %v2248_v18 = vpop.permute.xlu0 %2247 }
0x1874   :  { %2253 = vst.msk [vmem:[#allocation3 + $0x80] sm:$0xff] %vm227_vm0, %v2248_v18  ;;  %2255 = vst.msk [vmem:[#allocation4 + $0x70] sm:$0xff] %vm227_vm0, %v2248_v18  ;;  %12149 = vmatprep.mubr.msk.f32.mxu1 %vm227_vm0, %v2248_v18 }
0x1875   :  { %12150 = vmatmul.mubr.msk.f32.vlgmr.msra.gmra.mxu1 %vm227_vm0, %v2250_v17 }
0x1876   :  { %12164 = vmatpush3.msra.mxu1 %v14002_v62 }
0x1877   :  { %12165 = vmatprep.subr.mxu1 %v14006_v63 }
0x1878   :  { %12166 = vmatpush3.msra.mxu1 %v14006_v63 }
0x1879   :  { %12167 = vmatprep.subr.mxu1 %v14011_v0 }
0x187a   :  { %12168 = vmatpush3.msra.mxu1 %v14011_v0 }
0x187b   :  { %12169 = vmatprep.subr.mxu1 %v14016_v1 }
0x187c   :  { %12170 = vmatpush3.msra.mxu1 %v14016_v1 }
0x187d   :  { %12185 = vmatprep.subr.mxu1 %v14002_v62 }
0x1935   :  { %v12151_v19 = vpop.f32.mrf.mxu1 }
0x1936   :  { %v2335_v20 = vadd.f32 %v14138_v39, %v12151_v19 }
0x1937   :  { %v2329_v21 = vpop.f32.mrf.mxu1 }
0x1938   :  { %v2330_v22 = vadd.f32 %v14138_v39, %v2329_v21  ;;  %2356 = vrot.lane.b32.xlu1 %v2335_v20, %s13448_s0  ;;  %v2339_v24 = vadd.f32 %v2335_v20, %v2258_v23 }
0x193a   :  { %2354 = vrot.lane.b32.xlu0 %v2330_v22, %s13448_s0  ;;  %v2338_v27 = vadd.f32 %v2330_v22, %v2257_v25  ;;  %v10681_v29 = vmul.f32 -1.442695, %v2339_v24 }
0x193c   :  { %v10680_v31 = vmul.f32 -1.442695, %v2338_v27  ;;  %13155 = vpow2.f32 %v10681_v29 }
0x193e   :  { %13157 = vpow2.f32 %v10680_v31 }
0x1949   :  { %v13156_v30 = vpop.eup %13155 }
0x194a   :  { %v2347_v36 = vadd.f32 1.0, %v13156_v30 }
0x194b   :  { %v13158_v32 = vpop.eup %13157 }
0x194c   :  { %v2346_v33 = vadd.f32 1.0, %v13158_v32  ;;  %13159 = vrcp.f32 %v2347_v36 }
0x194e   :  { %13161 = vrcp.f32 %v2346_v33 }
0x1959   :  { %v13160_v34 = vpop.eup %13159 }
0x195a   :  { %v2375_v46 = vsub.f32 1.0, %v13160_v34  ;;  %v2387_v48 = vmul.f32 %v13160_v34, %v2244_v13 }
0x195b   :  { %v13162_v35 = vpop.eup %13161 }
0x195c   :  { %v2374_v50 = vsub.f32 1.0, %v13162_v35  ;;  %v2386_v53 = vmul.f32 %v13162_v35, %v14150_v28 }
0x19aa   :  { %v2357_v41 = vpop.permute.xlu1 %2356 }
0x19ab   :  { %v2361_v26 = vmul.f32 %v13160_v34, %v2357_v41 }
0x19ac   :  { %v2355_v37 = vpop.permute.xlu0 %2354 }
0x19ad   :  { %v2360_v38 = vmul.f32 %v13162_v35, %v2355_v37  ;;  %2366 = vrot.lane.b32.xlu1 %v2361_v26, %s13448_s0 }
0x19af   :  { %2364 = vrot.lane.b32.xlu0 %v2360_v38, %s13448_s0 }
0x1a1f   :  { %v2367_v15 = vpop.permute.xlu1 %2366 }
0x1a20   :  { %v2371_v40 = vadd.f32 %v2367_v15, %v2258_v23 }
0x1a21   :  { %v2365_v42 = vpop.permute.xlu0 %2364 }
0x1a22   :  { %13163 = vtanh.f32 %v2371_v40  ;;  %v2370_v43 = vadd.f32 %v2365_v42, %v2257_v25 }
0x1a24   :  { %13165 = vtanh.f32 %v2370_v43  ;;  %v2547_v43 = vld [vmem:[#allocation2 + $0xb0] sm:$0xff] }
0x1a2f   :  { %v13164_v44 = vpop.eup %13163 }
0x1a30   :  { %2380 = vrot.lane.b32.xlu1 %v13164_v44, %s13449_s5 }
0x1a31   :  { %v13166_v45 = vpop.eup %13165 }
0x1a32   :  { %2378 = vrot.lane.b32.xlu0 %v13166_v45, %s13449_s5 }
0x1aa2   :  { %v2381_v47 = vpop.permute.xlu1 %2380 }
0x1aa3   :  { %v2385_v49 = vmul.f32 %v2381_v47, %v2375_v46 }
0x1aa4   :  { %v2379_v51 = vpop.permute.xlu0 %2378 }
0x1aa5   :  { %v2389_v52 = vadd.f32 %v2387_v48, %v2385_v49  ;;  %v2384_v54 = vmul.f32 %v2379_v51, %v2374_v50 }
0x1aa7   :  { %v14178_v55 = vadd.f32 %v2386_v53, %v2384_v54  ;;  %2394 = vrot.lane.b32.xlu1 %v2389_v52, %s13449_s5 }
0x1aa9   :  { %2392 = vrot.lane.b32.xlu0 %v14178_v55, %s13449_s5 }
0x1b19   :  { %v2395_v56 = vpop.permute.xlu1 %2394 }
0x1b1a   :  { %2399 = vst.msk [vmem:[#allocation3 + $0x98] sm:$0xff] %vm227_vm0, %v2395_v56  ;;  %2401 = vst.msk [vmem:[#allocation4 + $0x68] sm:$0xff] %vm227_vm0, %v2395_v56 }
0x1b1b   :  { %v2393_v57 = vpop.permute.xlu0 %2392 }
0x1b1c   :  { %2398 = vst.msk [vmem:[#allocation3 + $0x90] sm:$0xff] %vm227_vm0, %v2393_v57  ;;  %2400 = vst.msk [vmem:[#allocation4 + $0x60] sm:$0xff] %vm227_vm0, %v2393_v57  ;;  %12160 = vmatprep.mubr.msk.f32.mxu0 %vm227_vm0, %v2393_v57 }
0x1b1d   :  { %12161 = vmatmul.mubr.msk.f32.vlgmr.msra.gmra.mxu0 %vm227_vm0, %v2395_v56 }
0x1b1e   :  { %12175 = vmatpush3.msra.mxu0 %v14002_v62 }
0x1b1f   :  { %12176 = vmatprep.subr.mxu0 %v14006_v63 }
0x1b20   :  { %12177 = vmatpush3.msra.mxu0 %v14006_v63 }
0x1b21   :  { %12178 = vmatprep.subr.mxu0 %v14011_v0 }
0x1b22   :  { %12179 = vmatpush3.msra.mxu0 %v14011_v0 }
0x1b23   :  { %12180 = vmatprep.subr.mxu0 %v14016_v1 }
0x1b24   :  { %12181 = vmatpush3.msra.mxu0 %v14016_v1 }
0x1b25   :  { %12196 = vmatprep.subr.mxu0 %v14002_v62 }
0x1bdd   :  { %v12162_v58 = vpop.f32.mrf.mxu0 }
0x1bde   :  { %v2480_v59 = vadd.f32 %v14138_v39, %v12162_v58 }
0x1bdf   :  { %v2474_v60 = vpop.f32.mrf.mxu0 }
0x1be0   :  { %v2475_v61 = vadd.f32 %v14138_v39, %v2474_v60  ;;  %2501 = vrot.lane.b32.xlu1 %v2480_v59, %s13448_s0  ;;  %v2484_v3 = vadd.f32 %v2480_v59, %v2403_v2 }
0x1be2   :  { %2499 = vrot.lane.b32.xlu0 %v2475_v61, %s13448_s0  ;;  %v2483_v5 = vadd.f32 %v2475_v61, %v2402_v4  ;;  %v10685_v6 = vmul.f32 -1.442695, %v2484_v3 }
0x1be4   :  { %v10684_v7 = vmul.f32 -1.442695, %v2483_v5  ;;  %13167 = vpow2.f32 %v10685_v6 }
0x1be6   :  { %13169 = vpow2.f32 %v10684_v7 }
0x1bf1   :  { %v13168_v8 = vpop.eup %13167 }
0x1bf2   :  { %v2492_v10 = vadd.f32 1.0, %v13168_v8 }
0x1bf3   :  { %v13170_v9 = vpop.eup %13169 }
0x1bf4   :  { %v2491_v11 = vadd.f32 1.0, %v13170_v9  ;;  %13171 = vrcp.f32 %v2492_v10 }
0x1bf6   :  { %13173 = vrcp.f32 %v2491_v11 }
0x1c01   :  { %v13172_v13 = vpop.eup %13171 }
0x1c02   :  { %v2520_v25 = vsub.f32 1.0, %v13172_v13  ;;  %v2532_v29 = vmul.f32 %v13172_v13, %v2389_v52 }
0x1c03   :  { %v13174_v28 = vpop.eup %13173 }
0x1c04   :  { %v2519_v30 = vsub.f32 1.0, %v13174_v28  ;;  %v2531_v33 = vmul.f32 %v13174_v28, %v14178_v55 }
0x1c52   :  { %v2502_v14 = vpop.permute.xlu1 %2501 }
0x1c53   :  { %v2506_v16 = vmul.f32 %v13172_v13, %v2502_v14  ;;  %v14249_v13 = vld [vmem:[%s13492_s29 + $0x18] sm:$0xff]  ;;  %v14253_v14 = vld [vmem:[%s13492_s29 + $0x10] sm:$0xff] }
0x1c54   :  { %v2500_v17 = vpop.permute.xlu0 %2499 }
0x1c55   :  { %v2505_v18 = vmul.f32 %v13174_v28, %v2500_v17  ;;  %2511 = vrot.lane.b32.xlu1 %v2506_v16, %s13448_s0  ;;  %v14258_v16 = vld [vmem:[%s13492_s29 + $0x8] sm:$0xff]  ;;  %v14263_v28 = vld [vmem:[%s13492_s29] sm:$0xff]  ;;  %s16501_s29 = sld [smem:[#allocation18_spill]] }
0x1c57   :  { %2509 = vrot.lane.b32.xlu0 %v2505_v18, %s13448_s0 }
0x1cc7   :  { %v2512_v19 = vpop.permute.xlu1 %2511 }
0x1cc8   :  { %v2516_v20 = vadd.f32 %v2512_v19, %v2403_v2 }
0x1cc9   :  { %v2510_v21 = vpop.permute.xlu0 %2509 }
0x1cca   :  { %13175 = vtanh.f32 %v2516_v20  ;;  %v2515_v22 = vadd.f32 %v2510_v21, %v2402_v4  ;;  %v2693_v21 = vld [vmem:[#allocation2 + $0xc8] sm:$0xff] }
0x1ccc   :  { %13177 = vtanh.f32 %v2515_v22 }
0x1cd7   :  { %v13176_v23 = vpop.eup %13175 }
0x1cd8   :  { %2525 = vrot.lane.b32.xlu1 %v13176_v23, %s13449_s5  ;;  %v2692_v23 = vld [vmem:[#allocation2 + $0xc0] sm:$0xff] }
0x1cd9   :  { %v13178_v24 = vpop.eup %13177 }
0x1cda   :  { %2523 = vrot.lane.b32.xlu0 %v13178_v24, %s13449_s5 }
0x1d4a   :  { %v2526_v27 = vpop.permute.xlu1 %2525 }
0x1d4b   :  { %v2530_v31 = vmul.f32 %v2526_v27, %v2520_v25 }
0x1d4c   :  { %v2524_v32 = vpop.permute.xlu0 %2523 }
0x1d4d   :  { %v2534_v36 = vadd.f32 %v2532_v29, %v2530_v31  ;;  %v2529_v34 = vmul.f32 %v2524_v32, %v2519_v30 }
0x1d4f   :  { %v14206_v41 = vadd.f32 %v2531_v33, %v2529_v34  ;;  %2539 = vrot.lane.b32.xlu1 %v2534_v36, %s13449_s5 }
0x1d51   :  { %2537 = vrot.lane.b32.xlu0 %v14206_v41, %s13449_s5 }
0x1dc1   :  { %v2540_v26 = vpop.permute.xlu1 %2539 }
0x1dc2   :  { %2544 = vst.msk [vmem:[#allocation3 + $0xa8] sm:$0xff] %vm227_vm0, %v2540_v26  ;;  %2546 = vst.msk [vmem:[#allocation4 + $0x58] sm:$0xff] %vm227_vm0, %v2540_v26 }
0x1dc3   :  { %v2538_v35 = vpop.permute.xlu0 %2537 }
0x1dc4   :  { %2543 = vst.msk [vmem:[#allocation3 + $0xa0] sm:$0xff] %vm227_vm0, %v2538_v35  ;;  %2545 = vst.msk [vmem:[#allocation4 + $0x50] sm:$0xff] %vm227_vm0, %v2538_v35  ;;  %12171 = vmatprep.mubr.msk.f32.mxu1 %vm227_vm0, %v2538_v35 }
0x1dc5   :  { %12172 = vmatmul.mubr.msk.f32.vlgmr.msra.gmra.mxu1 %vm227_vm0, %v2540_v26 }
0x1dc6   :  { %12186 = vmatpush3.msra.mxu1 %v14002_v62 }
0x1dc7   :  { %12187 = vmatprep.subr.mxu1 %v14006_v63 }
0x1dc8   :  { %12188 = vmatpush3.msra.mxu1 %v14006_v63  ;;  %v2548_v63 = vld [vmem:[#allocation2 + $0xb8] sm:$0xff] }
0x1dc9   :  { %12189 = vmatprep.subr.mxu1 %v14011_v0 }
0x1dca   :  { %12190 = vmatpush3.msra.mxu1 %v14011_v0 }
0x1dcb   :  { %12191 = vmatprep.subr.mxu1 %v14016_v1 }
0x1dcc   :  { %12192 = vmatpush3.msra.mxu1 %v14016_v1 }
0x1dcd   :  { %12207 = vmatprep.subr.mxu1 %v14002_v62 }
0x1e85   :  { %v12173_v37 = vpop.f32.mrf.mxu1 }
0x1e86   :  { %v2625_v38 = vadd.f32 %v14138_v39, %v12173_v37 }
0x1e87   :  { %v2619_v15 = vpop.f32.mrf.mxu1 }
0x1e88   :  { %v2620_v40 = vadd.f32 %v14138_v39, %v2619_v15  ;;  %2646 = vrot.lane.b32.xlu1 %v2625_v38, %s13448_s0  ;;  %v2629_v42 = vadd.f32 %v2625_v38, %v2548_v63 }
0x1e8a   :  { %2644 = vrot.lane.b32.xlu0 %v2620_v40, %s13448_s0  ;;  %v2628_v0 = vadd.f32 %v2620_v40, %v2547_v43  ;;  %v10689_v44 = vmul.f32 -1.442695, %v2629_v42 }
0x1e8c   :  { %v10688_v45 = vmul.f32 -1.442695, %v2628_v0  ;;  %13179 = vpow2.f32 %v10689_v44 }
0x1e8e   :  { %13181 = vpow2.f32 %v10688_v45 }
0x1e99   :  { %v13180_v1 = vpop.eup %13179 }
0x1e9a   :  { %v2637_v46 = vadd.f32 1.0, %v13180_v1 }
0x1e9b   :  { %v13182_v62 = vpop.eup %13181 }
0x1e9c   :  { %v2636_v47 = vadd.f32 1.0, %v13182_v62  ;;  %13183 = vrcp.f32 %v2637_v46 }
0x1e9e   :  { %13185 = vrcp.f32 %v2636_v47 }
0x1ea9   :  { %v13184_v48 = vpop.eup %13183 }
0x1eaa   :  { %v2665_v60 = vsub.f32 1.0, %v13184_v48  ;;  %v2677_v2 = vmul.f32 %v13184_v48, %v2534_v36 }
0x1eab   :  { %v13186_v51 = vpop.eup %13185 }
0x1eac   :  { %v2664_v4 = vsub.f32 1.0, %v13186_v51  ;;  %v2676_v7 = vmul.f32 %v13186_v51, %v14206_v41 }
0x1efa   :  { %v2647_v49 = vpop.permute.xlu1 %2646 }
0x1efb   :  { %v2651_v50 = vmul.f32 %v13184_v48, %v2647_v49 }
0x1efc   :  { %v2645_v52 = vpop.permute.xlu0 %2644 }
0x1efd   :  { %v2650_v53 = vmul.f32 %v13186_v51, %v2645_v52  ;;  %2656 = vrot.lane.b32.xlu1 %v2651_v50, %s13448_s0 }
0x1eff   :  { %2654 = vrot.lane.b32.xlu0 %v2650_v53, %s13448_s0 }
0x1f6f   :  { %v2657_v54 = vpop.permute.xlu1 %2656 }
0x1f70   :  { %v2661_v55 = vadd.f32 %v2657_v54, %v2548_v63 }
0x1f71   :  { %v2655_v56 = vpop.permute.xlu0 %2654 }
0x1f72   :  { %13187 = vtanh.f32 %v2661_v55  ;;  %v2660_v57 = vadd.f32 %v2655_v56, %v2547_v43  ;;  %v2838_v56 = vld [vmem:[#allocation2 + $0xd8] sm:$0xff] }
0x1f74   :  { %13189 = vtanh.f32 %v2660_v57 }
0x1f7f   :  { %v13188_v58 = vpop.eup %13187 }
0x1f80   :  { %2670 = vrot.lane.b32.xlu1 %v13188_v58, %s13449_s5  ;;  %v2837_v58 = vld [vmem:[#allocation2 + $0xd0] sm:$0xff] }
0x1f81   :  { %v13190_v59 = vpop.eup %13189 }
0x1f82   :  { %2668 = vrot.lane.b32.xlu0 %v13190_v59, %s13449_s5 }
0x1ff2   :  { %v2671_v61 = vpop.permute.xlu1 %2670 }
0x1ff3   :  { %v2675_v3 = vmul.f32 %v2671_v61, %v2665_v60 }
0x1ff4   :  { %v2669_v5 = vpop.permute.xlu0 %2668 }
0x1ff5   :  { %v14233_v6 = vadd.f32 %v2677_v2, %v2675_v3  ;;  %v2674_v8 = vmul.f32 %v2669_v5, %v2664_v4 }
0x1ff7   :  { %v14236_v9 = vadd.f32 %v2676_v7, %v2674_v8  ;;  %2684 = vrot.lane.b32.xlu1 %v14233_v6, %s13449_s5 }
0x1ff9   :  { %2682 = vrot.lane.b32.xlu0 %v14236_v9, %s13449_s5 }
0x2069   :  { %v2685_v10 = vpop.permute.xlu1 %2684 }
0x206a   :  { %2689 = vst.msk [vmem:[#allocation3 + $0xb8] sm:$0xff] %vm227_vm0, %v2685_v10  ;;  %2691 = vst.msk [vmem:[#allocation4 + $0x48] sm:$0xff] %vm227_vm0, %v2685_v10 }
0x206b   :  { %v2683_v11 = vpop.permute.xlu0 %2682 }
0x206c   :  { %2688 = vst.msk [vmem:[#allocation3 + $0xb0] sm:$0xff] %vm227_vm0, %v2683_v11  ;;  %2690 = vst.msk [vmem:[#allocation4 + $0x40] sm:$0xff] %vm227_vm0, %v2683_v11  ;;  %12182 = vmatprep.mubr.msk.f32.mxu0 %vm227_vm0, %v2683_v11 }
0x206d   :  { %12183 = vmatmul.mubr.msk.f32.vlgmr.msra.gmra.mxu0 %vm227_vm0, %v2685_v10 }
0x206e   :  { %12197 = vmatpush3.msra.mxu0 %v14249_v13 }
0x206f   :  { %12198 = vmatprep.subr.mxu0 %v14253_v14 }
0x2070   :  { %12199 = vmatpush3.msra.mxu0 %v14253_v14 }
0x2071   :  { %12200 = vmatprep.subr.mxu0 %v14258_v16 }
0x2072   :  { %12201 = vmatpush3.msra.mxu0 %v14258_v16 }
0x2073   :  { %12202 = vmatprep.subr.mxu0 %v14263_v28 }
0x2074   :  { %12203 = vmatpush3.msra.mxu0 %v14263_v28 }
0x212d   :  { %v12184_v17 = vpop.f32.mrf.mxu0 }
0x212e   :  { %v2770_v18 = vadd.f32 %v14138_v39, %v12184_v17 }
0x212f   :  { %v2764_v19 = vpop.f32.mrf.mxu0 }
0x2130   :  { %v2765_v20 = vadd.f32 %v14138_v39, %v2764_v19  ;;  %2791 = vrot.lane.b32.xlu1 %v2770_v18, %s13448_s0  ;;  %v2774_v22 = vadd.f32 %v2770_v18, %v2693_v21 }
0x2132   :  { %2789 = vrot.lane.b32.xlu0 %v2765_v20, %s13448_s0  ;;  %v2773_v24 = vadd.f32 %v2765_v20, %v2692_v23  ;;  %v10693_v25 = vmul.f32 -1.442695, %v2774_v22 }
0x2134   :  { %v10692_v27 = vmul.f32 -1.442695, %v2773_v24  ;;  %13191 = vpow2.f32 %v10693_v25 }
0x2136   :  { %13193 = vpow2.f32 %v10692_v27 }
0x2141   :  { %v13192_v29 = vpop.eup %13191 }
0x2142   :  { %v2782_v30 = vadd.f32 1.0, %v13192_v29 }
0x2143   :  { %v13194_v31 = vpop.eup %13193 }
0x2144   :  { %v2781_v32 = vadd.f32 1.0, %v13194_v31  ;;  %13195 = vrcp.f32 %v2782_v30 }
0x2146   :  { %13197 = vrcp.f32 %v2781_v32 }
0x2151   :  { %v13196_v36 = vpop.eup %13195 }
0x2152   :  { %v2810_v43 = vsub.f32 1.0, %v13196_v36  ;;  %v2822_v44 = vmul.f32 %v13196_v36, %v14233_v6 }
0x2153   :  { %v13198_v41 = vpop.eup %13197 }
0x2154   :  { %v2809_v1 = vsub.f32 1.0, %v13198_v41  ;;  %v2821_v47 = vmul.f32 %v13198_v41, %v14236_v9 }
0x21a2   :  { %v2792_v33 = vpop.permute.xlu1 %2791 }
0x21a3   :  { %v2796_v34 = vmul.f32 %v13196_v36, %v2792_v33 }
0x21a4   :  { %v2790_v26 = vpop.permute.xlu0 %2789 }
0x21a5   :  { %v2795_v35 = vmul.f32 %v13198_v41, %v2790_v26  ;;  %2801 = vrot.lane.b32.xlu1 %v2796_v34, %s13448_s0  ;;  %v2983_v26 = vld [vmem:[#allocation2 + $0xe8] sm:$0xff] }
0x21a7   :  { %2799 = vrot.lane.b32.xlu0 %v2795_v35, %s13448_s0 }
0x2217   :  { %v2802_v37 = vpop.permute.xlu1 %2801 }
0x2218   :  { %v2806_v38 = vadd.f32 %v2802_v37, %v2693_v21  ;;  %v2982_v37 = vld [vmem:[#allocation2 + $0xe0] sm:$0xff] }
0x2219   :  { %v2800_v15 = vpop.permute.xlu0 %2799 }
0x221a   :  { %13199 = vtanh.f32 %v2806_v38  ;;  %v2805_v40 = vadd.f32 %v2800_v15, %v2692_v23 }
0x221c   :  { %13201 = vtanh.f32 %v2805_v40 }
0x2227   :  { %v13200_v63 = vpop.eup %13199 }
0x2228   :  { %2815 = vrot.lane.b32.xlu1 %v13200_v63, %s13449_s5 }
0x2229   :  { %v13202_v42 = vpop.eup %13201 }
0x222a   :  { %2813 = vrot.lane.b32.xlu0 %v13202_v42, %s13449_s5 }
0x229a   :  { %v2816_v0 = vpop.permute.xlu1 %2815 }
0x229b   :  { %v2820_v45 = vmul.f32 %v2816_v0, %v2810_v43 }
0x229c   :  { %v2814_v62 = vpop.permute.xlu0 %2813 }
0x229d   :  { %v2824_v46 = vadd.f32 %v2822_v44, %v2820_v45  ;;  %v2819_v48 = vmul.f32 %v2814_v62, %v2809_v1 }
0x229f   :  { %v14277_v49 = vadd.f32 %v2821_v47, %v2819_v48  ;;  %2829 = vrot.lane.b32.xlu1 %v2824_v46, %s13449_s5 }
0x22a1   :  { %2827 = vrot.lane.b32.xlu0 %v14277_v49, %s13449_s5 }
0x2311   :  { %v2830_v50 = vpop.permute.xlu1 %2829 }
0x2312   :  { %2834 = vst.msk [vmem:[#allocation3 + $0xc8] sm:$0xff] %vm227_vm0, %v2830_v50  ;;  %2836 = vst.msk [vmem:[#allocation4 + $0x38] sm:$0xff] %vm227_vm0, %v2830_v50 }
0x2313   :  { %v2828_v51 = vpop.permute.xlu0 %2827 }
0x2314   :  { %2833 = vst.msk [vmem:[#allocation3 + $0xc0] sm:$0xff] %vm227_vm0, %v2828_v51  ;;  %2835 = vst.msk [vmem:[#allocation4 + $0x30] sm:$0xff] %vm227_vm0, %v2828_v51  ;;  %12193 = vmatprep.mubr.msk.f32.mxu1 %vm227_vm0, %v2828_v51 }
0x2315   :  { %12194 = vmatmul.mubr.msk.f32.vlgmr.msra.gmra.mxu1 %vm227_vm0, %v2830_v50 }
0x2316   :  { %12208 = vmatpush3.msra.mxu1 %v14249_v13 }
0x2317   :  { %12209 = vmatprep.subr.mxu1 %v14253_v14 }
0x2318   :  { %12210 = vmatpush3.msra.mxu1 %v14253_v14 }
0x2319   :  { %12211 = vmatprep.subr.mxu1 %v14258_v16 }
0x231a   :  { %12212 = vmatpush3.msra.mxu1 %v14258_v16 }
0x231b   :  { %12213 = vmatprep.subr.mxu1 %v14263_v28 }
0x231c   :  { %12214 = vmatpush3.msra.mxu1 %v14263_v28 }
0x23d5   :  { %v12195_v52 = vpop.f32.mrf.mxu1 }
0x23d6   :  { %v2915_v53 = vadd.f32 %v14138_v39, %v12195_v52 }
0x23d7   :  { %v2909_v54 = vpop.f32.mrf.mxu1 }
0x23d8   :  { %v2910_v55 = vadd.f32 %v14138_v39, %v2909_v54  ;;  %2936 = vrot.lane.b32.xlu1 %v2915_v53, %s13448_s0  ;;  %v2919_v57 = vadd.f32 %v2915_v53, %v2838_v56 }
0x23da   :  { %2934 = vrot.lane.b32.xlu0 %v2910_v55, %s13448_s0  ;;  %v2918_v59 = vadd.f32 %v2910_v55, %v2837_v58  ;;  %v10697_v60 = vmul.f32 -1.442695, %v2919_v57 }
0x23dc   :  { %v10696_v61 = vmul.f32 -1.442695, %v2918_v59  ;;  %13203 = vpow2.f32 %v10697_v60 }
0x23de   :  { %13205 = vpow2.f32 %v10696_v61 }
0x23e9   :  { %v13204_v2 = vpop.eup %13203 }
0x23ea   :  { %v2927_v4 = vadd.f32 1.0, %v13204_v2 }
0x23eb   :  { %v13206_v3 = vpop.eup %13205 }
0x23ec   :  { %v2926_v5 = vadd.f32 1.0, %v13206_v3  ;;  %13207 = vrcp.f32 %v2927_v4 }
0x23ee   :  { %13209 = vrcp.f32 %v2926_v5 }
0x23f9   :  { %v13208_v6 = vpop.eup %13207 }
0x23fa   :  { %v2955_v19 = vsub.f32 1.0, %v13208_v6  ;;  %v2967_v21 = vmul.f32 %v13208_v6, %v2824_v46 }
0x23fb   :  { %v13210_v9 = vpop.eup %13209 }
0x23fc   :  { %v2954_v23 = vsub.f32 1.0, %v13210_v9  ;;  %v2966_v27 = vmul.f32 %v13210_v9, %v14277_v49 }
0x244a   :  { %v2937_v7 = vpop.permute.xlu1 %2936 }
0x244b   :  { %v2941_v8 = vmul.f32 %v13208_v6, %v2937_v7 }
0x244c   :  { %v2935_v10 = vpop.permute.xlu0 %2934 }
0x244d   :  { %v2940_v11 = vmul.f32 %v13210_v9, %v2935_v10  ;;  %2946 = vrot.lane.b32.xlu1 %v2941_v8, %s13448_s0  ;;  %v3128_v10 = vld [vmem:[#allocation2 + $0xf8] sm:$0xff] }
0x244f   :  { %2944 = vrot.lane.b32.xlu0 %v2940_v11, %s13448_s0 }
0x24bf   :  { %v2947_v13 = vpop.permute.xlu1 %2946 }
0x24c0   :  { %v2951_v14 = vadd.f32 %v2947_v13, %v2838_v56  ;;  %v3127_v13 = vld [vmem:[#allocation2 + $0xf0] sm:$0xff] }
0x24c1   :  { %v2945_v16 = vpop.permute.xlu0 %2944 }
0x24c2   :  { %13211 = vtanh.f32 %v2951_v14  ;;  %v2950_v28 = vadd.f32 %v2945_v16, %v2837_v58 }
0x24c4   :  { %13213 = vtanh.f32 %v2950_v28 }
0x24cf   :  { %v13212_v17 = vpop.eup %13211 }
0x24d0   :  { %2960 = vrot.lane.b32.xlu1 %v13212_v17, %s13449_s5 }
0x24d1   :  { %v13214_v18 = vpop.eup %13213 }
0x24d2   :  { %2958 = vrot.lane.b32.xlu0 %v13214_v18, %s13449_s5 }
0x2542   :  { %v2961_v20 = vpop.permute.xlu1 %2960 }
0x2543   :  { %v2965_v22 = vmul.f32 %v2961_v20, %v2955_v19 }
0x2544   :  { %v2959_v24 = vpop.permute.xlu0 %2958 }
0x2545   :  { %v2969_v25 = vadd.f32 %v2967_v21, %v2965_v22  ;;  %v2964_v29 = vmul.f32 %v2959_v24, %v2954_v23 }
0x2547   :  { %v2968_v31 = vadd.f32 %v2966_v27, %v2964_v29  ;;  %2974 = vrot.lane.b32.xlu1 %v2969_v25, %s13449_s5 }
0x2549   :  { %2972 = vrot.lane.b32.xlu0 %v2968_v31, %s13449_s5 }
0x25b9   :  { %v2975_v30 = vpop.permute.xlu1 %2974 }
0x25ba   :  { %2979 = vst.msk [vmem:[#allocation3 + $0xd8] sm:$0xff] %vm227_vm0, %v2975_v30  ;;  %2981 = vst.msk [vmem:[#allocation4 + $0x28] sm:$0xff] %vm227_vm0, %v2975_v30 }
0x25bb   :  { %v2973_v32 = vpop.permute.xlu0 %2972 }
0x25bc   :  { %2978 = vst.msk [vmem:[#allocation3 + $0xd0] sm:$0xff] %vm227_vm0, %v2973_v32  ;;  %2980 = vst.msk [vmem:[#allocation4 + $0x20] sm:$0xff] %vm227_vm0, %v2973_v32  ;;  %12204 = vmatprep.mubr.msk.f32.mxu0 %vm227_vm0, %v2973_v32  ;;  %v13450_v32 = vmov 0  }
0x25bd   :  { %12205 = vmatmul.mubr.msk.f32.vlgmr.msra.gmra.mxu0 %vm227_vm0, %v2975_v30  ;;  %13046 = vset.pattern.permute.xlu1 %v13450_v32 }
0x25be   :  { %13045 = vset.pattern.permute.xlu0 %v13450_v32 }
0x267d   :  { %v12206_v36 = vpop.f32.mrf.mxu0 }
0x267e   :  { %v3060_v33 = vadd.f32 %v14138_v39, %v12206_v36 }
0x267f   :  { %v3054_v34 = vpop.f32.mrf.mxu0 }
0x2680   :  { %v3055_v41 = vadd.f32 %v14138_v39, %v3054_v34  ;;  %3081 = vrot.lane.b32.xlu1 %v3060_v33, %s13448_s0  ;;  %v3064_v35 = vadd.f32 %v3060_v33, %v2983_v26  ;;  %v3632_v34 = vld [vmem:[%s13502_s8 + $0x18] sm:$0xff] }
0x2681   :  { %12218 = vmatprep.subr.mxu0 %v3632_v34 }
0x2682   :  { %3079 = vrot.lane.b32.xlu0 %v3055_v41, %s13448_s0  ;;  %v3063_v38 = vadd.f32 %v3055_v41, %v2982_v37  ;;  %v10701_v15 = vmul.f32 -1.442695, %v3064_v35  ;;  %v3631_v41 = vld [vmem:[%s13502_s8 + $0x10] sm:$0xff]  ;;  %12219 = vmatpush3.msra.mxu0 %v3632_v34 }
0x2683   :  { %12220 = vmatprep.subr.mxu0 %v3631_v41 }
0x2684   :  { %v10700_v40 = vmul.f32 -1.442695, %v3063_v38  ;;  %13215 = vpow2.f32 %v10701_v15  ;;  %12221 = vmatpush3.msra.mxu0 %v3631_v41 }
0x2686   :  { %13217 = vpow2.f32 %v10700_v40 }
0x2691   :  { %v13216_v63 = vpop.eup %13215 }
0x2692   :  { %v3072_v43 = vadd.f32 1.0, %v13216_v63 }
0x2693   :  { %v13218_v42 = vpop.eup %13217 }
0x2694   :  { %v3071_v0 = vadd.f32 1.0, %v13218_v42  ;;  %13219 = vrcp.f32 %v3072_v43 }
0x2696   :  { %13221 = vrcp.f32 %v3071_v0 }
0x26a1   :  { %v13220_v44 = vpop.eup %13219 }
0x26a2   :  { %v3100_v54 = vsub.f32 1.0, %v13220_v44  ;;  %v3112_v56 = vmul.f32 %v13220_v44, %v2969_v25 }
0x26a3   :  { %v13222_v62 = vpop.eup %13221 }
0x26a4   :  { %v3099_v58 = vsub.f32 1.0, %v13222_v62  ;;  %v3111_v61 = vmul.f32 %v13222_v62, %v2968_v31 }
0x26f2   :  { %v3082_v45 = vpop.permute.xlu1 %3081 }
0x26f3   :  { %v3086_v1 = vmul.f32 %v13220_v44, %v3082_v45  ;;  %v3630_v44 = vld [vmem:[%s13502_s8 + $0x8] sm:$0xff] }
0x26f4   :  { %v3080_v46 = vpop.permute.xlu0 %3079  ;;  %v3374_v45 = vld [vmem:[%s13472_s13 + $0x8] sm:$0xff]  ;;  %12222 = vmatprep.subr.mxu0 %v3630_v44 }
0x26f5   :  { %v3085_v47 = vmul.f32 %v13222_v62, %v3080_v46  ;;  %3091 = vrot.lane.b32.xlu1 %v3086_v1, %s13448_s0  ;;  %12223 = vmatpush3.msra.mxu0 %v3630_v44  ;;  %v3629_v1 = vld [vmem:[%s13502_s8] sm:$0xff]  ;;  %v3375_v46 = vld [vmem:[%s13472_s13 + $0x10] sm:$0xff]  ;;  %s16504_s8 = sld [smem:[#allocation20_spill]] }
0x26f6   :  { %v3373_v62 = vld [vmem:[%s13472_s13] sm:$0xff]  ;;  %12224 = vmatprep.subr.mxu0 %v3629_v1 }
0x26f7   :  { %3089 = vrot.lane.b32.xlu0 %v3085_v47, %s13448_s0  ;;  %12225 = vmatpush3.msra.mxu0 %v3629_v1  ;;  %v3376_v47 = vld [vmem:[%s13472_s13 + $0x18] sm:$0xff]  ;;  %v3280_v1 = vld [vmem:[#allocation3 + $0x28] sm:$0xff] }
0x2767   :  { %v3092_v48 = vpop.permute.xlu1 %3091 }
0x2768   :  { %v3096_v49 = vadd.f32 %v3092_v48, %v2983_v26  ;;  %v3377_v48 = vld [vmem:[%s13472_s13 + $0x20] sm:$0xff] }
0x2769   :  { %v3090_v50 = vpop.permute.xlu0 %3089 }
0x276a   :  { %13223 = vtanh.f32 %v3096_v49  ;;  %v3095_v51 = vadd.f32 %v3090_v50, %v2982_v37  ;;  %v3378_v49 = vld [vmem:[%s13472_s13 + $0x28] sm:$0xff]  ;;  %v3379_v50 = vld [vmem:[%s13472_s13 + $0x30] sm:$0xff] }
0x276c   :  { %13225 = vtanh.f32 %v3095_v51  ;;  %v3380_v51 = vld [vmem:[%s13472_s13 + $0x38] sm:$0xff] }
0x2777   :  { %v13224_v52 = vpop.eup %13223 }
0x2778   :  { %3105 = vrot.lane.b32.xlu1 %v13224_v52, %s13449_s5  ;;  %v3381_v52 = vld [vmem:[%s13472_s13 + $0x40] sm:$0xff] }
0x2779   :  { %v13226_v53 = vpop.eup %13225 }
0x277a   :  { %3103 = vrot.lane.b32.xlu0 %v13226_v53, %s13449_s5  ;;  %v3382_v53 = vld [vmem:[%s13472_s13 + $0x48] sm:$0xff] }
0x27ea   :  { %v3106_v55 = vpop.permute.xlu1 %3105 }
0x27eb   :  { %v3110_v57 = vmul.f32 %v3106_v55, %v3100_v54  ;;  %v3383_v54 = vld [vmem:[%s13472_s13 + $0x50] sm:$0xff]  ;;  %v3384_v55 = vld [vmem:[%s13472_s13 + $0x58] sm:$0xff] }
0x27ec   :  { %v3104_v59 = vpop.permute.xlu0 %3103 }
0x27ed   :  { %v14320_v60 = vadd.f32 %v3112_v56, %v3110_v57  ;;  %v3109_v2 = vmul.f32 %v3104_v59, %v3099_v58  ;;  %v3385_v56 = vld [vmem:[%s13472_s13 + $0x60] sm:$0xff]  ;;  %v3386_v57 = vld [vmem:[%s13472_s13 + $0x68] sm:$0xff]  ;;  %v3387_v58 = vld [vmem:[%s13472_s13 + $0x70] sm:$0xff] }
0x27ee   :  { %v3388_v59 = vld [vmem:[%s13472_s13 + $0x78] sm:$0xff] }
0x27ef   :  { %v14322_v3 = vadd.f32 %v3111_v61, %v3109_v2  ;;  %3119 = vrot.lane.b32.xlu1 %v14320_v60, %s13449_s5  ;;  %v3390_v61 = vld [vmem:[%s13472_s13 + $0x88] sm:$0xff]  ;;  %v3391_v2 = vld [vmem:[%s13472_s13 + $0x90] sm:$0xff] }
0x27f1   :  { %3117 = vrot.lane.b32.xlu0 %v14322_v3, %s13449_s5 }
0x2861   :  { %v3120_v4 = vpop.permute.xlu1 %3119 }
0x2862   :  { %3124 = vst.msk [vmem:[#allocation3 + $0xe8] sm:$0xff] %vm227_vm0, %v3120_v4  ;;  %3126 = vst.msk [vmem:[#allocation4 + $0x18] sm:$0xff] %vm227_vm0, %v3120_v4 }
0x2863   :  { %v3118_v5 = vpop.permute.xlu0 %3117 }
0x2864   :  { %3123 = vst.msk [vmem:[#allocation3 + $0xe0] sm:$0xff] %vm227_vm0, %v3118_v5  ;;  %3125 = vst.msk [vmem:[#allocation4 + $0x10] sm:$0xff] %vm227_vm0, %v3118_v5  ;;  %12215 = vmatprep.mubr.msk.f32.mxu1 %vm227_vm0, %v3118_v5  ;;  %v3394_v5 = vld [vmem:[%s13472_s13 + $0xa8] sm:$0xff] }
0x2865   :  { %12216 = vmatmul.mubr.msk.f32.vlgmr.msra.gmra.mxu1 %vm227_vm0, %v3120_v4  ;;  %v3393_v4 = vld [vmem:[%s13472_s13 + $0xa0] sm:$0xff] }
0x2869   :  { %v3310_v34 = vld [vmem:[#allocation4 + $0x18] sm:$0xff] }
0x2925   :  { %v12217_v6 = vpop.f32.mrf.mxu1 }
0x2926   :  { %v3205_v7 = vadd.f32 %v14138_v39, %v12217_v6  ;;  %v3395_v6 = vld [vmem:[%s13472_s13 + $0xb0] sm:$0xff] }
0x2927   :  { %v3199_v8 = vpop.f32.mrf.mxu1 }
0x2928   :  { %v3200_v9 = vadd.f32 %v14138_v39, %v3199_v8  ;;  %3226 = vrot.lane.b32.xlu1 %v3205_v7, %s13448_s0  ;;  %v3209_v11 = vadd.f32 %v3205_v7, %v3128_v10  ;;  %v3396_v7 = vld [vmem:[%s13472_s13 + $0xb8] sm:$0xff]  ;;  %v3397_v8 = vld [vmem:[%s13472_s13 + $0xc0] sm:$0xff] }
0x292a   :  { %3224 = vrot.lane.b32.xlu0 %v3200_v9, %s13448_s0  ;;  %v3208_v14 = vadd.f32 %v3200_v9, %v3127_v13  ;;  %v10705_v16 = vmul.f32 -1.442695, %v3209_v11  ;;  %v3398_v9 = vld [vmem:[%s13472_s13 + $0xc8] sm:$0xff]  ;;  %v3400_v11 = vld [vmem:[%s13472_s13 + $0xd8] sm:$0xff] }
0x292c   :  { %v10704_v28 = vmul.f32 -1.442695, %v3208_v14  ;;  %13227 = vpow2.f32 %v10705_v16  ;;  %v3402_v14 = vld [vmem:[%s13472_s13 + $0xe8] sm:$0xff]  ;;  %v3403_v16 = vld [vmem:[%s13472_s13 + $0xf0] sm:$0xff] }
0x292e   :  { %13229 = vpow2.f32 %v10704_v28  ;;  %v3404_v28 = vld [vmem:[%s13472_s13 + $0xf8] sm:$0xff] }
0x2939   :  { %v13228_v17 = vpop.eup %13227 }
0x293a   :  { %v3217_v19 = vadd.f32 1.0, %v13228_v17  ;;  %v16348_v17 = vmov 1.0  }
0x293b   :  { %v13230_v18 = vpop.eup %13229  ;;  %12274 = vmatprep.subr.mxu1 %v16348_v17 }
0x293c   :  { %v3216_v20 = vadd.f32 1.0, %v13230_v18  ;;  %13231 = vrcp.f32 %v3217_v19  ;;  %12275 = vmatpush3.msra.mxu1 %v16348_v17 }
0x293d   :  { %12276 = vmatprep.subr.mxu1 %v16348_v17 }
0x293e   :  { %13233 = vrcp.f32 %v3216_v20  ;;  %12277 = vmatpush3.msra.mxu1 %v16348_v17  ;;  %v3272_v20 = vlaneseq }
0x293f   :  { %12278 = vmatprep.subr.mxu1 %v16348_v17 }
0x2940   :  { %12279 = vmatpush3.msra.mxu1 %v16348_v17 }
0x2941   :  { %12280 = vmatprep.subr.mxu1 %v16348_v17 }
0x2942   :  { %12281 = vmatpush3.msra.mxu1 %v16348_v17 }
0x2949   :  { %v13232_v21 = vpop.eup %13231 }
0x294a   :  { %v3245_v26 = vsub.f32 1.0, %v13232_v21  ;;  %v3257_v37 = vmul.f32 %v13232_v21, %v14320_v60  ;;  %v3389_v60 = vld [vmem:[%s13472_s13 + $0x80] sm:$0xff] }
0x294b   :  { %v13234_v23 = vpop.eup %13233 }
0x294c   :  { %v3244_v15 = vsub.f32 1.0, %v13234_v23  ;;  %v3256_v42 = vmul.f32 %v13234_v23, %v14322_v3  ;;  %v3392_v3 = vld [vmem:[%s13472_s13 + $0x98] sm:$0xff] }
0x299a   :  { %v3227_v39 = vpop.permute.xlu1 %3226 }
0x299b   :  { %v3231_v22 = vmul.f32 %v13232_v21, %v3227_v39  ;;  %v14394_v21 = vand.u32 127, %v3272_v20 }
0x299c   :  { %v3225_v24 = vpop.permute.xlu0 %3224 }
0x299d   :  { %v3230_v25 = vmul.f32 %v13234_v23, %v3225_v24  ;;  %3236 = vrot.lane.b32.xlu1 %v3231_v22, %s13448_s0  ;;  %16422 = vst [vmem:[#allocation31_spill] sm:$0xff] %v14394_v21  ;;  %vm3274_vm2 = vcmp.lt.s32.totalorder %v14394_v21, 16  ;;  %v3276_v22 = vld [vmem:[#allocation3 + $0x8] sm:$0xff] }
0x299f   :  { %3234 = vrot.lane.b32.xlu0 %v3230_v25, %s13448_s0 }
0x2a0f   :  { %v3237_v27 = vpop.permute.xlu1 %3236 }
0x2a10   :  { %v3241_v29 = vadd.f32 %v3237_v27, %v3128_v10  ;;  %v3399_v10 = vld [vmem:[%s13472_s13 + $0xd0] sm:$0xff] }
0x2a11   :  { %v3235_v31 = vpop.permute.xlu0 %3234 }
0x2a12   :  { %13235 = vtanh.f32 %v3241_v29  ;;  %v3240_v30 = vadd.f32 %v3235_v31, %v3127_v13  ;;  %v3401_v13 = vld [vmem:[%s13472_s13 + $0xe0] sm:$0xff]  ;;  %v3309_v31 = vld [vmem:[#allocation4 + $0x10] sm:$0xff]  ;;  %s16497_s13 = sld [smem:[#allocation12_spill]] }
0x2a13   :  { %v3275_v29 = vld [vmem:[#allocation3] sm:$0xff] }
0x2a14   :  { %13237 = vtanh.f32 %v3240_v30 }
0x2a1f   :  { %v13236_v36 = vpop.eup %13235 }
0x2a20   :  { %3250 = vrot.lane.b32.xlu1 %v13236_v36, %s13449_s5 }
0x2a21   :  { %v13238_v33 = vpop.eup %13237 }
0x2a22   :  { %3248 = vrot.lane.b32.xlu0 %v13238_v33, %s13449_s5  ;;  %v3277_v33 = vld [vmem:[#allocation3 + $0x10] sm:$0xff] }
0x2a92   :  { %v3251_v35 = vpop.permute.xlu1 %3250 }
0x2a93   :  { %v3255_v38 = vmul.f32 %v3251_v35, %v3245_v26  ;;  %v3343_v26 = vsel %vm3274_vm2, %v3277_v33, %v3309_v31  ;;  %v3322_v33 = vld [vmem:[#allocation4 + $0x78] sm:$0xff] }
0x2a94   :  { %v3249_v40 = vpop.permute.xlu0 %3248 }
0x2a95   :  { %v3259_v63 = vadd.f32 %v3257_v37, %v3255_v38  ;;  %v3254_v43 = vmul.f32 %v3249_v40, %v3244_v15  ;;  %v3278_v37 = vld [vmem:[#allocation3 + $0x18] sm:$0xff]  ;;  %v3311_v38 = vld [vmem:[#allocation4 + $0x20] sm:$0xff] }
0x2a96   :  { %v3344_v15 = vsel %vm3274_vm2, %v3278_v37, %v3310_v34  ;;  %v3291_v37 = vld [vmem:[#allocation3 + $0x80] sm:$0xff] }
0x2a97   :  { %v3258_v0 = vadd.f32 %v3256_v42, %v3254_v43  ;;  %3264 = vrot.lane.b32.xlu1 %v3259_v63, %s13449_s5  ;;  %v3279_v42 = vld [vmem:[#allocation3 + $0x20] sm:$0xff]  ;;  %v3312_v43 = vld [vmem:[#allocation4 + $0x28] sm:$0xff] }
0x2a98   :  { %v3345_v44 = vsel %vm3274_vm2, %v3279_v42, %v3311_v38  ;;  %v3292_v42 = vld [vmem:[#allocation3 + $0x88] sm:$0xff] }
0x2a99   :  { %3262 = vrot.lane.b32.xlu0 %v3258_v0, %s13449_s5 }
0x2a9b   :  { %3412 = vperm.xlu1 %13046, %v3374_v45  }
0x2a9d   :  { %3407 = vperm.xlu0 %13045, %v3373_v62   ;;  %v3313_v62 = vld [vmem:[#allocation4 + $0x30] sm:$0xff] }
0x2a9f   :  { %3417 = vperm.xlu1 %13046, %v3375_v46   ;;  %v3346_v46 = vsel %vm3274_vm2, %v3280_v1, %v3312_v43  ;;  %v3293_v1 = vld [vmem:[#allocation3 + $0x90] sm:$0xff] }
0x2aa1   :  { %3422 = vperm.xlu0 %13045, %v3376_v47  }
0x2aa3   :  { %3427 = vperm.xlu1 %13046, %v3377_v48  }
0x2aa5   :  { %3432 = vperm.xlu0 %13045, %v3378_v49   ;;  %v3281_v49 = vld [vmem:[#allocation3 + $0x30] sm:$0xff] }
0x2aa7   :  { %3437 = vperm.xlu1 %13046, %v3379_v50   ;;  %v3314_v50 = vld [vmem:[#allocation4 + $0x38] sm:$0xff] }
0x2aa9   :  { %3442 = vperm.xlu0 %13045, %v3380_v51  }
0x2aab   :  { %3447 = vperm.xlu1 %13046, %v3381_v52   ;;  %v3347_v52 = vsel %vm3274_vm2, %v3281_v49, %v3313_v62  ;;  %v3294_v49 = vld [vmem:[#allocation3 + $0x98] sm:$0xff] }
0x2aad   :  { %3452 = vperm.xlu0 %13045, %v3382_v53  }
0x2aaf   :  { %3457 = vperm.xlu1 %13046, %v3383_v54   ;;  %v3282_v54 = vld [vmem:[#allocation3 + $0x38] sm:$0xff] }
0x2ab1   :  { %3462 = vperm.xlu0 %13045, %v3384_v55   ;;  %v3315_v55 = vld [vmem:[#allocation4 + $0x40] sm:$0xff] }
0x2ab3   :  { %3467 = vperm.xlu1 %13046, %v3385_v56   ;;  %v3348_v56 = vsel %vm3274_vm2, %v3282_v54, %v3314_v50  ;;  %v3295_v54 = vld [vmem:[#allocation3 + $0xa0] sm:$0xff] }
0x2ab5   :  { %3472 = vperm.xlu0 %13045, %v3386_v57  }
0x2ab7   :  { %3477 = vperm.xlu1 %13046, %v3387_v58  }
0x2ab9   :  { %3482 = vperm.xlu0 %13045, %v3388_v59   ;;  %v3283_v59 = vld [vmem:[#allocation3 + $0x40] sm:$0xff] }
0x2abb   :  { %3487 = vperm.xlu1 %13046, %v3389_v60   ;;  %v3316_v60 = vld [vmem:[#allocation4 + $0x48] sm:$0xff] }
0x2abd   :  { %3492 = vperm.xlu0 %13045, %v3390_v61  }
0x2abf   :  { %3497 = vperm.xlu1 %13046, %v3391_v2   ;;  %v3349_v2 = vsel %vm3274_vm2, %v3283_v59, %v3315_v55  ;;  %v3296_v59 = vld [vmem:[#allocation3 + $0xa8] sm:$0xff] }
0x2ac1   :  { %3502 = vperm.xlu0 %13045, %v3392_v3  }
0x2ac3   :  { %3507 = vperm.xlu1 %13046, %v3393_v4   ;;  %v3284_v4 = vld [vmem:[#allocation3 + $0x48] sm:$0xff] }
0x2ac5   :  { %3512 = vperm.xlu0 %13045, %v3394_v5   ;;  %v3317_v5 = vld [vmem:[#allocation4 + $0x50] sm:$0xff] }
0x2ac7   :  { %3517 = vperm.xlu1 %13046, %v3395_v6   ;;  %v3350_v6 = vsel %vm3274_vm2, %v3284_v4, %v3316_v60  ;;  %v3297_v4 = vld [vmem:[#allocation3 + $0xb0] sm:$0xff] }
0x2ac9   :  { %3522 = vperm.xlu0 %13045, %v3396_v7  }
0x2acb   :  { %3527 = vperm.xlu1 %13046, %v3397_v8  }
0x2acd   :  { %3532 = vperm.xlu0 %13045, %v3398_v9   ;;  %v3285_v9 = vld [vmem:[#allocation3 + $0x50] sm:$0xff] }
0x2acf   :  { %3537 = vperm.xlu1 %13046, %v3399_v10   ;;  %v3318_v10 = vld [vmem:[#allocation4 + $0x58] sm:$0xff] }
0x2ad1   :  { %3542 = vperm.xlu0 %13045, %v3400_v11  }
0x2ad3   :  { %3547 = vperm.xlu1 %13046, %v3401_v13   ;;  %v3351_v13 = vsel %vm3274_vm2, %v3285_v9, %v3317_v5  ;;  %v3298_v9 = vld [vmem:[#allocation3 + $0xb8] sm:$0xff] }
0x2ad5   :  { %3552 = vperm.xlu0 %13045, %v3402_v14  }
0x2ad7   :  { %3557 = vperm.xlu1 %13046, %v3403_v16   ;;  %v3286_v16 = vld [vmem:[#allocation3 + $0x58] sm:$0xff] }
0x2ad9   :  { %3562 = vperm.xlu0 %13045, %v3404_v28   ;;  %v3319_v28 = vld [vmem:[#allocation4 + $0x60] sm:$0xff] }
0x2b09   :  { %v3265_v18 = vpop.permute.xlu1 %3264 }
0x2b0a   :  { %3269 = vst.msk [vmem:[#allocation3 + $0xf8] sm:$0xff] %vm227_vm0, %v3265_v18  ;;  %3271 = vst.msk [vmem:[#allocation4 + $0x8] sm:$0xff] %vm227_vm0, %v3265_v18  ;;  %v3352_v18 = vsel %vm3274_vm2, %v3286_v16, %v3318_v10  ;;  %v3299_v16 = vld [vmem:[#allocation3 + $0xc0] sm:$0xff] }
0x2b0b   :  { %v3263_v19 = vpop.permute.xlu0 %3262 }
0x2b0c   :  { %3268 = vst.msk [vmem:[#allocation3 + $0xf0] sm:$0xff] %vm227_vm0, %v3263_v19  ;;  %3270 = vst.msk [vmem:[#allocation4] sm:$0xff] %vm227_vm0, %v3263_v19 }
0x2b11   :  { %v3308_v39 = vld [vmem:[#allocation4 + $0x8] sm:$0xff] }
0x2b12   :  { %v3342_v25 = vsel %vm3274_vm2, %v3276_v22, %v3308_v39  ;;  %v3287_v39 = vld [vmem:[#allocation3 + $0x60] sm:$0xff]  ;;  %v3320_v22 = vld [vmem:[#allocation4 + $0x68] sm:$0xff] }
0x2b13   :  { %v3307_v23 = vld [vmem:[#allocation4] sm:$0xff] }
0x2b14   :  { %v3341_v30 = vsel %vm3274_vm2, %v3275_v29, %v3307_v23  ;;  %v3321_v29 = vld [vmem:[#allocation4 + $0x70] sm:$0xff] }
0x2b16   :  { %v3413_v24 = vpop.permute.xlu1 %3412 }
0x2b17   :  { %v3566_v27 = vmul.f32 %v3413_v24, %v3342_v25  ;;  %v3353_v24 = vsel %vm3274_vm2, %v3287_v39, %v3319_v28  ;;  %v3300_v39 = vld [vmem:[#allocation3 + $0xc8] sm:$0xff] }
0x2b18   :  { %v3408_v32 = vpop.permute.xlu0 %3407 }
0x2b19   :  { %3598 = vst.msk [vmem:[#allocation3 + $0x8] sm:$0xff] %vm227_vm0, %v3566_v27  ;;  %v3565_v36 = vmul.f32 %v3408_v32, %v3341_v30 }
0x2b1a   :  { %v3418_v41 = vpop.permute.xlu1 %3417 }
0x2b1b   :  { %3597 = vst.msk [vmem:[#allocation3] sm:$0xff] %vm227_vm0, %v3565_v36  ;;  %v3567_v35 = vmul.f32 %v3418_v41, %v3343_v26  ;;  %12226 = vmatprep.mubr.msk.f32.mxu0 %vm227_vm0, %v3565_v36  ;;  %v3289_v36 = vld [vmem:[#allocation3 + $0x70] sm:$0xff] }
0x2b1c   :  { %v3423_v40 = vpop.permute.xlu0 %3422  ;;  %12227 = vmatmul.mubr.msk.f32.vlgmr.msra.gmra.mxu0 %vm227_vm0, %v3566_v27  ;;  %v3288_v27 = vld [vmem:[#allocation3 + $0x68] sm:$0xff]  ;;  %v3355_v41 = vsel %vm3274_vm2, %v3289_v36, %v3321_v29  ;;  %v3302_v36 = vld [vmem:[#allocation3 + $0xd8] sm:$0xff] }
0x2b1d   :  { %3599 = vst.msk [vmem:[#allocation3 + $0x10] sm:$0xff] %vm227_vm0, %v3567_v35  ;;  %v3568_v63 = vmul.f32 %v3423_v40, %v3344_v15  ;;  %12229 = vmatprep.mubr.msk.f32.mxu0 %vm227_vm0, %v3567_v35  ;;  %v3354_v31 = vsel %vm3274_vm2, %v3288_v27, %v3320_v22  ;;  %v3290_v35 = vld [vmem:[#allocation3 + $0x78] sm:$0xff]  ;;  %v3301_v27 = vld [vmem:[#allocation3 + $0xd0] sm:$0xff] }
0x2b1e   :  { %v3428_v0 = vpop.permute.xlu1 %3427  ;;  %v3356_v38 = vsel %vm3274_vm2, %v3290_v35, %v3322_v33  ;;  %v3303_v35 = vld [vmem:[#allocation3 + $0xe0] sm:$0xff] }
0x2b1f   :  { %3600 = vst.msk [vmem:[#allocation3 + $0x18] sm:$0xff] %vm227_vm0, %v3568_v63  ;;  %v3569_v45 = vmul.f32 %v3428_v0, %v3345_v44 }
0x2b20   :  { %v3433_v47 = vpop.permute.xlu0 %3432  ;;  %12230 = vmatmul.mubr.msk.f32.gmra.mxu0 %vm227_vm0, %v3568_v63  ;;  %v3323_v63 = vld [vmem:[#allocation4 + $0x80] sm:$0xff] }
0x2b21   :  { %3601 = vst.msk [vmem:[#allocation3 + $0x20] sm:$0xff] %vm227_vm0, %v3569_v45  ;;  %v3570_v48 = vmul.f32 %v3433_v47, %v3346_v46  ;;  %12232 = vmatprep.mubr.msk.f32.mxu0 %vm227_vm0, %v3569_v45  ;;  %v3357_v0 = vsel %vm3274_vm2, %v3291_v37, %v3323_v63  ;;  %v3324_v45 = vld [vmem:[#allocation4 + $0x88] sm:$0xff] }
0x2b22   :  { %v3438_v51 = vpop.permute.xlu1 %3437  ;;  %v3358_v62 = vsel %vm3274_vm2, %v3292_v42, %v3324_v45  ;;  %v3304_v63 = vld [vmem:[#allocation3 + $0xe8] sm:$0xff]  ;;  %v3305_v45 = vld [vmem:[#allocation3 + $0xf0] sm:$0xff] }
0x2b23   :  { %3602 = vst.msk [vmem:[#allocation3 + $0x28] sm:$0xff] %vm227_vm0, %v3570_v48  ;;  %v3571_v53 = vmul.f32 %v3438_v51, %v3347_v52 }
0x2b24   :  { %v3443_v57 = vpop.permute.xlu0 %3442  ;;  %12233 = vmatmul.mubr.msk.f32.gmra.mxu0 %vm227_vm0, %v3570_v48  ;;  %v3325_v48 = vld [vmem:[#allocation4 + $0x90] sm:$0xff] }
0x2b25   :  { %3603 = vst.msk [vmem:[#allocation3 + $0x30] sm:$0xff] %vm227_vm0, %v3571_v53  ;;  %v3572_v58 = vmul.f32 %v3443_v57, %v3348_v56  ;;  %12235 = vmatprep.mubr.msk.f32.mxu0 %vm227_vm0, %v3571_v53  ;;  %v3359_v51 = vsel %vm3274_vm2, %v3293_v1, %v3325_v48  ;;  %v3326_v53 = vld [vmem:[#allocation4 + $0x98] sm:$0xff] }
0x2b26   :  { %v3448_v61 = vpop.permute.xlu1 %3447  ;;  %v3360_v55 = vsel %vm3274_vm2, %v3294_v49, %v3326_v53  ;;  %v3306_v48 = vld [vmem:[#allocation3 + $0xf8] sm:$0xff] }
0x2b27   :  { %3604 = vst.msk [vmem:[#allocation3 + $0x38] sm:$0xff] %vm227_vm0, %v3572_v58  ;;  %v3573_v3 = vmul.f32 %v3448_v61, %v3349_v2 }
0x2b28   :  { %v3453_v7 = vpop.permute.xlu0 %3452  ;;  %12236 = vmatmul.mubr.msk.f32.gmra.mxu0 %vm227_vm0, %v3572_v58  ;;  %v3327_v58 = vld [vmem:[#allocation4 + $0xa0] sm:$0xff] }
0x2b29   :  { %3605 = vst.msk [vmem:[#allocation3 + $0x40] sm:$0xff] %vm227_vm0, %v3573_v3  ;;  %v3574_v8 = vmul.f32 %v3453_v7, %v3350_v6  ;;  %12238 = vmatprep.mubr.msk.f32.mxu0 %vm227_vm0, %v3573_v3  ;;  %v3361_v61 = vsel %vm3274_vm2, %v3295_v54, %v3327_v58  ;;  %v3328_v3 = vld [vmem:[#allocation4 + $0xa8] sm:$0xff] }
0x2b2a   :  { %v3458_v11 = vpop.permute.xlu1 %3457  ;;  %v3362_v5 = vsel %vm3274_vm2, %v3296_v59, %v3328_v3 }
0x2b2b   :  { %3606 = vst.msk [vmem:[#allocation3 + $0x48] sm:$0xff] %vm227_vm0, %v3574_v8  ;;  %v3575_v14 = vmul.f32 %v3458_v11, %v3351_v13 }
0x2b2c   :  { %v3463_v19 = vpop.permute.xlu0 %3462  ;;  %12239 = vmatmul.mubr.msk.f32.gmra.mxu0 %vm227_vm0, %v3574_v8  ;;  %v3329_v8 = vld [vmem:[#allocation4 + $0xb0] sm:$0xff] }
0x2b2d   :  { %3607 = vst.msk [vmem:[#allocation3 + $0x50] sm:$0xff] %vm227_vm0, %v3575_v14  ;;  %v3576_v20 = vmul.f32 %v3463_v19, %v3352_v18  ;;  %12241 = vmatprep.mubr.msk.f32.mxu0 %vm227_vm0, %v3575_v14  ;;  %v3363_v11 = vsel %vm3274_vm2, %v3297_v4, %v3329_v8  ;;  %v3330_v14 = vld [vmem:[#allocation4 + $0xb8] sm:$0xff] }
0x2b2e   :  { %v3468_v23 = vpop.permute.xlu1 %3467  ;;  %v3364_v28 = vsel %vm3274_vm2, %v3298_v9, %v3330_v14 }
0x2b2f   :  { %3608 = vst.msk [vmem:[#allocation3 + $0x58] sm:$0xff] %vm227_vm0, %v3576_v20  ;;  %v3577_v25 = vmul.f32 %v3468_v23, %v3353_v24 }
0x2b30   :  { %v3473_v30 = vpop.permute.xlu0 %3472  ;;  %12242 = vmatmul.mubr.msk.f32.gmra.mxu0 %vm227_vm0, %v3576_v20  ;;  %v3331_v20 = vld [vmem:[#allocation4 + $0xc0] sm:$0xff] }
0x2b31   :  { %3609 = vst.msk [vmem:[#allocation3 + $0x60] sm:$0xff] %vm227_vm0, %v3577_v25  ;;  %v3578_v32 = vmul.f32 %v3473_v30, %v3354_v31  ;;  %12244 = vmatprep.mubr.msk.f32.mxu0 %vm227_vm0, %v3577_v25  ;;  %v3365_v23 = vsel %vm3274_vm2, %v3299_v16, %v3331_v20  ;;  %v3332_v25 = vld [vmem:[#allocation4 + $0xc8] sm:$0xff] }
0x2b32   :  { %v3478_v34 = vpop.permute.xlu1 %3477  ;;  %v3366_v29 = vsel %vm3274_vm2, %v3300_v39, %v3332_v25 }
0x2b33   :  { %3610 = vst.msk [vmem:[#allocation3 + $0x68] sm:$0xff] %vm227_vm0, %v3578_v32  ;;  %v3579_v26 = vmul.f32 %v3478_v34, %v3355_v41 }
0x2b34   :  { %v3483_v15 = vpop.permute.xlu0 %3482  ;;  %12245 = vmatmul.mubr.msk.f32.gmra.mxu0 %vm227_vm0, %v3578_v32  ;;  %v3333_v32 = vld [vmem:[#allocation4 + $0xd0] sm:$0xff] }
0x2b35   :  { %3611 = vst.msk [vmem:[#allocation3 + $0x70] sm:$0xff] %vm227_vm0, %v3579_v26  ;;  %v3580_v40 = vmul.f32 %v3483_v15, %v3356_v38  ;;  %12247 = vmatprep.mubr.msk.f32.mxu0 %vm227_vm0, %v3579_v26  ;;  %v3367_v34 = vsel %vm3274_vm2, %v3301_v27, %v3333_v32  ;;  %v3334_v26 = vld [vmem:[#allocation4 + $0xd8] sm:$0xff] }
0x2b36   :  { %v3488_v43 = vpop.permute.xlu1 %3487  ;;  %v3368_v37 = vsel %vm3274_vm2, %v3302_v36, %v3334_v26 }
0x2b37   :  { %3612 = vst.msk [vmem:[#allocation3 + $0x78] sm:$0xff] %vm227_vm0, %v3580_v40  ;;  %v3581_v44 = vmul.f32 %v3488_v43, %v3357_v0 }
0x2b38   :  { %v3493_v46 = vpop.permute.xlu0 %3492  ;;  %12248 = vmatmul.mubr.msk.f32.gmra.mxu0 %vm227_vm0, %v3580_v40  ;;  %v3335_v40 = vld [vmem:[#allocation4 + $0xe0] sm:$0xff] }
0x2b39   :  { %3613 = vst.msk [vmem:[#allocation3 + $0x80] sm:$0xff] %vm227_vm0, %v3581_v44  ;;  %v3582_v47 = vmul.f32 %v3493_v46, %v3358_v62  ;;  %12250 = vmatprep.mubr.msk.f32.mxu0 %vm227_vm0, %v3581_v44  ;;  %v3369_v43 = vsel %vm3274_vm2, %v3303_v35, %v3335_v40  ;;  %v3336_v44 = vld [vmem:[#allocation4 + $0xe8] sm:$0xff] }
0x2b3a   :  { %v3498_v50 = vpop.permute.xlu1 %3497  ;;  %v3370_v1 = vsel %vm3274_vm2, %v3304_v63, %v3336_v44 }
0x2b3b   :  { %3614 = vst.msk [vmem:[#allocation3 + $0x88] sm:$0xff] %vm227_vm0, %v3582_v47  ;;  %v3583_v52 = vmul.f32 %v3498_v50, %v3359_v51 }
0x2b3c   :  { %v3503_v56 = vpop.permute.xlu0 %3502  ;;  %12251 = vmatmul.mubr.msk.f32.gmra.mxu0 %vm227_vm0, %v3582_v47  ;;  %v3337_v47 = vld [vmem:[#allocation4 + $0xf0] sm:$0xff] }
0x2b3d   :  { %3615 = vst.msk [vmem:[#allocation3 + $0x90] sm:$0xff] %vm227_vm0, %v3583_v52  ;;  %v3584_v57 = vmul.f32 %v3503_v56, %v3360_v55  ;;  %12253 = vmatprep.mubr.msk.f32.mxu0 %vm227_vm0, %v3583_v52  ;;  %v3371_v50 = vsel %vm3274_vm2, %v3305_v45, %v3337_v47  ;;  %v3338_v52 = vld [vmem:[#allocation4 + $0xf8] sm:$0xff] }
0x2b3e   :  { %v3508_v60 = vpop.permute.xlu1 %3507  ;;  %v3372_v54 = vsel %vm3274_vm2, %v3306_v48, %v3338_v52 }
0x2b3f   :  { %3616 = vst.msk [vmem:[#allocation3 + $0x98] sm:$0xff] %vm227_vm0, %v3584_v57  ;;  %v3585_v2 = vmul.f32 %v3508_v60, %v3361_v61 }
0x2b40   :  { %v3513_v6 = vpop.permute.xlu0 %3512  ;;  %12254 = vmatmul.mubr.msk.f32.gmra.mxu0 %vm227_vm0, %v3584_v57  ;;  %v14526_v57 = vld [vmem:[%s13507_s14] ss:$0 sm:$0xff]  ;;  %s16505_s14 = sld [smem:[#allocation19_spill]] }
0x2b41   :  { %3617 = vst.msk [vmem:[#allocation3 + $0xa0] sm:$0xff] %vm227_vm0, %v3585_v2  ;;  %v3586_v7 = vmul.f32 %v3513_v6, %v3362_v5  ;;  %12256 = vmatprep.mubr.msk.f32.mxu0 %vm227_vm0, %v3585_v2 }
0x2b42   :  { %v3518_v10 = vpop.permute.xlu1 %3517 }
0x2b43   :  { %3618 = vst.msk [vmem:[#allocation3 + $0xa8] sm:$0xff] %vm227_vm0, %v3586_v7  ;;  %v3587_v13 = vmul.f32 %v3518_v10, %v3363_v11 }
0x2b44   :  { %v3523_v18 = vpop.permute.xlu0 %3522  ;;  %12257 = vmatmul.mubr.msk.f32.gmra.mxu0 %vm227_vm0, %v3586_v7 }
0x2b45   :  { %3619 = vst.msk [vmem:[#allocation3 + $0xb0] sm:$0xff] %vm227_vm0, %v3587_v13  ;;  %v3588_v19 = vmul.f32 %v3523_v18, %v3364_v28  ;;  %12259 = vmatprep.mubr.msk.f32.mxu0 %vm227_vm0, %v3587_v13 }
0x2b46   :  { %v3528_v22 = vpop.permute.xlu1 %3527 }
0x2b47   :  { %3620 = vst.msk [vmem:[#allocation3 + $0xb8] sm:$0xff] %vm227_vm0, %v3588_v19  ;;  %v3589_v24 = vmul.f32 %v3528_v22, %v3365_v23 }
0x2b48   :  { %v3533_v31 = vpop.permute.xlu0 %3532  ;;  %12260 = vmatmul.mubr.msk.f32.gmra.mxu0 %vm227_vm0, %v3588_v19 }
0x2b49   :  { %3621 = vst.msk [vmem:[#allocation3 + $0xc0] sm:$0xff] %vm227_vm0, %v3589_v24  ;;  %v3590_v30 = vmul.f32 %v3533_v31, %v3366_v29  ;;  %12262 = vmatprep.mubr.msk.f32.mxu0 %vm227_vm0, %v3589_v24 }
0x2b4a   :  { %v3538_v33 = vpop.permute.xlu1 %3537 }
0x2b4b   :  { %3622 = vst.msk [vmem:[#allocation3 + $0xc8] sm:$0xff] %vm227_vm0, %v3590_v30  ;;  %v3591_v41 = vmul.f32 %v3538_v33, %v3367_v34 }
0x2b4c   :  { %v3543_v38 = vpop.permute.xlu0 %3542  ;;  %12263 = vmatmul.mubr.msk.f32.gmra.mxu0 %vm227_vm0, %v3590_v30 }
0x2b4d   :  { %3623 = vst.msk [vmem:[#allocation3 + $0xd0] sm:$0xff] %vm227_vm0, %v3591_v41  ;;  %v3592_v15 = vmul.f32 %v3543_v38, %v3368_v37  ;;  %12265 = vmatprep.mubr.msk.f32.mxu0 %vm227_vm0, %v3591_v41 }
0x2b4e   :  { %v3548_v42 = vpop.permute.xlu1 %3547 }
0x2b4f   :  { %3624 = vst.msk [vmem:[#allocation3 + $0xd8] sm:$0xff] %vm227_vm0, %v3592_v15  ;;  %v3593_v0 = vmul.f32 %v3548_v42, %v3369_v43 }
0x2b50   :  { %v3553_v62 = vpop.permute.xlu0 %3552  ;;  %12266 = vmatmul.mubr.msk.f32.gmra.mxu0 %vm227_vm0, %v3592_v15 }
0x2b51   :  { %3625 = vst.msk [vmem:[#allocation3 + $0xe0] sm:$0xff] %vm227_vm0, %v3593_v0  ;;  %v3594_v46 = vmul.f32 %v3553_v62, %v3370_v1  ;;  %12268 = vmatprep.mubr.msk.f32.mxu0 %vm227_vm0, %v3593_v0 }
0x2b52   :  { %v3558_v49 = vpop.permute.xlu1 %3557 }
0x2b53   :  { %3626 = vst.msk [vmem:[#allocation3 + $0xe8] sm:$0xff] %vm227_vm0, %v3594_v46  ;;  %v3595_v51 = vmul.f32 %v3558_v49, %v3371_v50 }
0x2b54   :  { %v3563_v53 = vpop.permute.xlu0 %3562  ;;  %12269 = vmatmul.mubr.msk.f32.gmra.mxu0 %vm227_vm0, %v3594_v46 }
0x2b55   :  { %3627 = vst.msk [vmem:[#allocation3 + $0xf0] sm:$0xff] %vm227_vm0, %v3595_v51  ;;  %v3596_v55 = vmul.f32 %v3563_v53, %v3372_v54  ;;  %12271 = vmatprep.mubr.msk.f32.mxu0 %vm227_vm0, %v3595_v51 }
0x2b57   :  { %3628 = vst.msk [vmem:[#allocation3 + $0xf8] sm:$0xff] %vm227_vm0, %v3596_v55 }
0x2b58   :  { %12272 = vmatmul.mubr.msk.f32.gmra.mxu0 %vm227_vm0, %v3596_v55 }
0x2bdc   :  { %v12228_v56 = vpop.f32.mrf.mxu0 }
0x2bdd   :  { %v14532_v60 = vadd.f32 %v12228_v56, %v14526_v57 }
0x2bde   :  { %v3802_v58 = vpop.f32.mrf.mxu0 }
0x2bdf   :  { %v14529_v59 = vadd.f32 %v14526_v57, %v3802_v58 }
0x2be0   :  { %v12231_v61 = vpop.f32.mrf.mxu0 }
0x2be1   :  { %12282 = vmatprep.mubr.msk.f32.mxu1 %vm227_vm0, %v14529_v59  ;;  %v14542_v4 = vadd.f32 %v12231_v61, %v14526_v57 }
0x2be2   :  { %v3812_v2 = vpop.f32.mrf.mxu0  ;;  %12283 = vmatmul.mubr.msk.f32.vlgmr.msra.gmra.mxu1 %vm227_vm0, %v14532_v60 }
0x2be3   :  { %v14539_v3 = vadd.f32 %v14526_v57, %v3812_v2 }
0x2be4   :  { %v12234_v5 = vpop.f32.mrf.mxu0 }
0x2be5   :  { %12285 = vmatprep.mubr.msk.f32.mxu1 %vm227_vm0, %v14539_v3  ;;  %v14552_v8 = vadd.f32 %v12234_v5, %v14526_v57  ;;  %v14689_v5 = vld [vmem:[%s13527_s6 + $0x8] sm:$0xff] }
0x2be6   :  { %v3822_v6 = vpop.f32.mrf.mxu0  ;;  %12286 = vmatmul.mubr.msk.f32.gmra.mxu1 %vm227_vm0, %v14542_v4  ;;  %4382 = vmatprep.mubr.f32.mxu0 %v14689_v5 }
0x2be7   :  { %v14549_v7 = vadd.f32 %v14526_v57, %v3822_v6 }
0x2be8   :  { %v12237_v9 = vpop.f32.mrf.mxu0 }
0x2be9   :  { %12288 = vmatprep.mubr.msk.f32.mxu1 %vm227_vm0, %v14549_v7  ;;  %v14562_v13 = vadd.f32 %v12237_v9, %v14526_v57 }
0x2bea   :  { %v3832_v10 = vpop.f32.mrf.mxu0  ;;  %12289 = vmatmul.mubr.msk.f32.gmra.mxu1 %vm227_vm0, %v14552_v8 }
0x2beb   :  { %v14559_v11 = vadd.f32 %v14526_v57, %v3832_v10 }
0x2bec   :  { %v12240_v14 = vpop.f32.mrf.mxu0 }
0x2bed   :  { %12291 = vmatprep.mubr.msk.f32.mxu1 %vm227_vm0, %v14559_v11  ;;  %v14572_v18 = vadd.f32 %v12240_v14, %v14526_v57 }
0x2bee   :  { %v3842_v16 = vpop.f32.mrf.mxu0  ;;  %12292 = vmatmul.mubr.msk.f32.gmra.mxu1 %vm227_vm0, %v14562_v13 }
0x2bef   :  { %v14569_v28 = vadd.f32 %v14526_v57, %v3842_v16 }
0x2bf0   :  { %v12243_v19 = vpop.f32.mrf.mxu0 }
0x2bf1   :  { %12294 = vmatprep.mubr.msk.f32.mxu1 %vm227_vm0, %v14569_v28  ;;  %v14582_v22 = vadd.f32 %v12243_v19, %v14526_v57 }
0x2bf2   :  { %v3852_v20 = vpop.f32.mrf.mxu0  ;;  %12295 = vmatmul.mubr.msk.f32.gmra.mxu1 %vm227_vm0, %v14572_v18 }
0x2bf3   :  { %v14579_v39 = vadd.f32 %v14526_v57, %v3852_v20 }
0x2bf4   :  { %v12246_v23 = vpop.f32.mrf.mxu0 }
0x2bf5   :  { %12297 = vmatprep.mubr.msk.f32.mxu1 %vm227_vm0, %v14579_v39  ;;  %v14592_v27 = vadd.f32 %v12246_v23, %v14526_v57 }
0x2bf6   :  { %v3862_v24 = vpop.f32.mrf.mxu0  ;;  %12298 = vmatmul.mubr.msk.f32.gmra.mxu1 %vm227_vm0, %v14582_v22 }
0x2bf7   :  { %v14589_v25 = vadd.f32 %v14526_v57, %v3862_v24 }
0x2bf8   :  { %v12249_v29 = vpop.f32.mrf.mxu0 }
0x2bf9   :  { %12300 = vmatprep.mubr.msk.f32.mxu1 %vm227_vm0, %v14589_v25  ;;  %v14602_v32 = vadd.f32 %v12249_v29, %v14526_v57 }
0x2bfa   :  { %v3872_v31 = vpop.f32.mrf.mxu0  ;;  %12301 = vmatmul.mubr.msk.f32.gmra.mxu1 %vm227_vm0, %v14592_v27 }
0x2bfb   :  { %v14599_v30 = vadd.f32 %v14526_v57, %v3872_v31 }
0x2bfc   :  { %v12252_v36 = vpop.f32.mrf.mxu0 }
0x2bfd   :  { %12303 = vmatprep.mubr.msk.f32.mxu1 %vm227_vm0, %v14599_v30  ;;  %v14612_v41 = vadd.f32 %v12252_v36, %v14526_v57 }
0x2bfe   :  { %v3882_v33 = vpop.f32.mrf.mxu0  ;;  %12304 = vmatmul.mubr.msk.f32.gmra.mxu1 %vm227_vm0, %v14602_v32 }
0x2bff   :  { %v14609_v34 = vadd.f32 %v14526_v57, %v3882_v33 }
0x2c00   :  { %v12255_v26 = vpop.f32.mrf.mxu0 }
0x2c01   :  { %12306 = vmatprep.mubr.msk.f32.mxu1 %vm227_vm0, %v14609_v34  ;;  %v14622_v38 = vadd.f32 %v12255_v26, %v14526_v57 }
0x2c02   :  { %v3892_v35 = vpop.f32.mrf.mxu0  ;;  %12307 = vmatmul.mubr.msk.f32.gmra.mxu1 %vm227_vm0, %v14612_v41 }
0x2c03   :  { %v14619_v37 = vadd.f32 %v14526_v57, %v3892_v35 }
0x2c04   :  { %v12258_v15 = vpop.f32.mrf.mxu0 }
0x2c05   :  { %12309 = vmatprep.mubr.msk.f32.mxu1 %vm227_vm0, %v14619_v37  ;;  %v14632_v42 = vadd.f32 %v12258_v15, %v14526_v57 }
0x2c06   :  { %v3902_v40 = vpop.f32.mrf.mxu0  ;;  %12310 = vmatmul.mubr.msk.f32.gmra.mxu1 %vm227_vm0, %v14622_v38 }
0x2c07   :  { %v14629_v63 = vadd.f32 %v14526_v57, %v3902_v40 }
0x2c08   :  { %v12261_v43 = vpop.f32.mrf.mxu0 }
0x2c09   :  { %12312 = vmatprep.mubr.msk.f32.mxu1 %vm227_vm0, %v14629_v63  ;;  %v14642_v45 = vadd.f32 %v12261_v43, %v14526_v57 }
0x2c0a   :  { %v3912_v0 = vpop.f32.mrf.mxu0  ;;  %12313 = vmatmul.mubr.msk.f32.gmra.mxu1 %vm227_vm0, %v14632_v42 }
0x2c0b   :  { %v14639_v44 = vadd.f32 %v14526_v57, %v3912_v0 }
0x2c0c   :  { %v12264_v1 = vpop.f32.mrf.mxu0 }
0x2c0d   :  { %12315 = vmatprep.mubr.msk.f32.mxu1 %vm227_vm0, %v14639_v44  ;;  %v14652_v47 = vadd.f32 %v12264_v1, %v14526_v57 }
0x2c0e   :  { %v3922_v62 = vpop.f32.mrf.mxu0  ;;  %12316 = vmatmul.mubr.msk.f32.gmra.mxu1 %vm227_vm0, %v14642_v45 }
0x2c0f   :  { %v14649_v46 = vadd.f32 %v14526_v57, %v3922_v62 }
0x2c10   :  { %v12267_v48 = vpop.f32.mrf.mxu0 }
0x2c11   :  { %12318 = vmatprep.mubr.msk.f32.mxu1 %vm227_vm0, %v14649_v46  ;;  %v14662_v51 = vadd.f32 %v12267_v48, %v14526_v57 }
0x2c12   :  { %v3932_v49 = vpop.f32.mrf.mxu0  ;;  %12319 = vmatmul.mubr.msk.f32.gmra.mxu1 %vm227_vm0, %v14652_v47 }
0x2c13   :  { %v14659_v50 = vadd.f32 %v14526_v57, %v3932_v49 }
0x2c14   :  { %v12270_v52 = vpop.f32.mrf.mxu0 }
0x2c15   :  { %12321 = vmatprep.mubr.msk.f32.mxu1 %vm227_vm0, %v14659_v50  ;;  %v14672_v55 = vadd.f32 %v12270_v52, %v14526_v57 }
0x2c16   :  { %v3942_v53 = vpop.f32.mrf.mxu0  ;;  %12322 = vmatmul.mubr.msk.f32.gmra.mxu1 %vm227_vm0, %v14662_v51 }
0x2c17   :  { %v14669_v54 = vadd.f32 %v14526_v57, %v3942_v53 }
0x2c18   :  { %v12273_v56 = vpop.f32.mrf.mxu0 }
0x2c19   :  { %12324 = vmatprep.mubr.msk.f32.mxu1 %vm227_vm0, %v14669_v54  ;;  %v14682_v2 = vadd.f32 %v12273_v56, %v14526_v57 }
0x2c1a   :  { %v3952_v58 = vpop.f32.mrf.mxu0  ;;  %12325 = vmatmul.mubr.msk.f32.gmra.mxu1 %vm227_vm0, %v14672_v55 }
0x2c1b   :  { %v14679_v61 = vadd.f32 %v14526_v57, %v3952_v58 }
0x2c1d   :  { %16423 = vst [vmem:[#allocation32_spill] sm:$0xff] %v14679_v61  ;;  %12327 = vmatprep.mubr.msk.f32.mxu1 %vm227_vm0, %v14679_v61 }
0x2c1e   :  { %12328 = vmatmul.mubr.msk.f32.gmra.mxu1 %vm227_vm0, %v14682_v2 }
0x2ca2   :  { %v12284_v6 = vpop.f32.mrf.mxu1 }
0x2ca4   :  { %v14692_v9 = vpop.f32.mrf.mxu1 }
0x2ca6   :  { %v12287_v10 = vpop.f32.mrf.mxu1 }
0x2ca8   :  { %v4169_v14 = vpop.f32.mrf.mxu1 }
0x2caa   :  { %v12290_v16 = vpop.f32.mrf.mxu1 }
0x2cac   :  { %v4179_v19 = vpop.f32.mrf.mxu1 }
0x2cae   :  { %v12293_v20 = vpop.f32.mrf.mxu1 }
0x2cb0   :  { %v4189_v57 = vpop.f32.mrf.mxu1 }
0x2cb2   :  { %v12296_v23 = vpop.f32.mrf.mxu1 }
0x2cb4   :  { %v4199_v24 = vpop.f32.mrf.mxu1 }
0x2cb6   :  { %v12299_v29 = vpop.f32.mrf.mxu1 }
0x2cb8   :  { %v4209_v31 = vpop.f32.mrf.mxu1 }
0x2cba   :  { %v12302_v36 = vpop.f32.mrf.mxu1 }
0x2cbc   :  { %v4219_v33 = vpop.f32.mrf.mxu1 }
0x2cbe   :  { %v12305_v26 = vpop.f32.mrf.mxu1 }
0x2cc0   :  { %v4229_v35 = vpop.f32.mrf.mxu1 }
0x2cc2   :  { %v12308_v15 = vpop.f32.mrf.mxu1 }
0x2cc4   :  { %v4239_v40 = vpop.f32.mrf.mxu1 }
0x2cc6   :  { %v12311_v43 = vpop.f32.mrf.mxu1 }
0x2cc8   :  { %v4249_v0 = vpop.f32.mrf.mxu1 }
0x2cca   :  { %v12314_v1 = vpop.f32.mrf.mxu1 }
0x2ccc   :  { %v4259_v62 = vpop.f32.mrf.mxu1 }
0x2cce   :  { %v12317_v48 = vpop.f32.mrf.mxu1 }
0x2cd0   :  { %v4269_v49 = vpop.f32.mrf.mxu1 }
0x2cd2   :  { %v12320_v52 = vpop.f32.mrf.mxu1 }
0x2cd4   :  { %v4279_v53 = vpop.f32.mrf.mxu1 }
0x2cd6   :  { %v12323_v56 = vpop.f32.mrf.mxu1 }
0x2cd8   :  { %v4289_v58 = vpop.f32.mrf.mxu1 }
0x2cda   :  { %v12326_v12 = vpop.f32.mrf.mxu1 }
0x2cdc   :  { %v4299_v17 = vpop.f32.mrf.mxu1 }
0x2cde   :  { %v12329_v21 = vpop.f32.mrf.mxu1 }
0x2cdf   :  { %11307 = vmatprep.subr.mxu0 %v12329_v21  ;;  %v16424_v21 = vmov 1.0  }
0x2ce0   :  { %v4309_v61 = vpop.f32.mrf.mxu1  ;;  %11308 = vmatpush3.msra.mxu0 %v12305_v26  ;;  %v14754_v26 = vld [vmem:[%s13532_s12 + $0x40] sm:$0xff] }
0x2ce1   :  { %11309 = vmatprep.subr.mxu0 %v4309_v61  ;;  %v14705_v61 = vld [vmem:[%s13527_s6 + $0x10] sm:$0xff] }
0x2ce2   :  { %11310 = vmatpush3.msra.mxu0 %v4229_v35  ;;  %v14761_v35 = vld [vmem:[%s13532_s12 + $0x48] sm:$0xff] }
0x2ce3   :  { %11311 = vmatprep.subr.mxu0 %v12326_v12  ;;  %v14695_v12 = vld [vmem:[%s13527_s6] sm:$0xff] }
0x2ce4   :  { %11312 = vmatpush3.msra.mxu0 %v12302_v36  ;;  %v14744_v36 = vld [vmem:[%s13532_s12 + $0x30] sm:$0xff] }
0x2ce5   :  { %11313 = vmatprep.subr.mxu0 %v4299_v17  ;;  %v14698_v17 = vld [vmem:[%s13527_s6 + $0x18] sm:$0xff]  ;;  %s16509_s6 = sld [smem:[#allocation22_spill]] }
0x2ce6   :  { %11314 = vmatpush3.msra.mxu0 %v4219_v33  ;;  %v14751_v33 = vld [vmem:[%s13532_s12 + $0x38] sm:$0xff] }
0x2ce7   :  { %11315 = vmatprep.subr.mxu0 %v12323_v56  ;;  %v14814_v56 = vld [vmem:[%s13532_s12 + $0xa0] sm:$0xff] }
0x2ce8   :  { %11316 = vmatpush3.msra.mxu0 %v12299_v29  ;;  %v14734_v29 = vld [vmem:[%s13532_s12 + $0x20] sm:$0xff]  ;;  %16426 = vst [vmem:[#allocation34_spill] sm:$0xff] %v14814_v56 }
0x2ce9   :  { %11317 = vmatprep.subr.mxu0 %v4289_v58  ;;  %v14821_v58 = vld [vmem:[%s13532_s12 + $0xa8] sm:$0xff] }
0x2cea   :  { %11318 = vmatpush3.msra.mxu0 %v4209_v31  ;;  %v14741_v31 = vld [vmem:[%s13532_s12 + $0x28] sm:$0xff]  ;;  %16427 = vst [vmem:[#allocation35_spill] sm:$0xff] %v14821_v58 }
0x2ceb   :  { %11319 = vmatprep.subr.mxu0 %v12320_v52  ;;  %v14804_v52 = vld [vmem:[%s13532_s12 + $0x90] sm:$0xff] }
0x2cec   :  { %11320 = vmatpush3.msra.mxu0 %v12296_v23  ;;  %v14724_v23 = vld [vmem:[%s13532_s12 + $0x10] sm:$0xff] }
0x2ced   :  { %11321 = vmatprep.subr.mxu0 %v4279_v53  ;;  %v14811_v53 = vld [vmem:[%s13532_s12 + $0x98] sm:$0xff] }
0x2cee   :  { %11322 = vmatpush3.msra.mxu0 %v4199_v24  ;;  %v14731_v24 = vld [vmem:[%s13532_s12 + $0x18] sm:$0xff]  ;;  %16425 = vst [vmem:[#allocation33_spill] sm:$0xff] %v14811_v53 }
0x2cef   :  { %11323 = vmatprep.subr.mxu0 %v12317_v48  ;;  %v14794_v48 = vld [vmem:[%s13532_s12 + $0x80] sm:$0xff] }
0x2cf0   :  { %11324 = vmatpush3.msra.mxu0 %v12293_v20 }
0x2cf1   :  { %11325 = vmatprep.subr.mxu0 %v4269_v49  ;;  %v14801_v49 = vld [vmem:[%s13532_s12 + $0x88] sm:$0xff] }
0x2cf2   :  { %11326 = vmatpush3.msra.mxu0 %v4189_v57  ;;  %v14721_v57 = vld [vmem:[%s13532_s12 + $0x8] sm:$0xff] }
0x2cf3   :  { %11327 = vmatprep.subr.mxu0 %v12314_v1  ;;  %v14784_v1 = vld [vmem:[%s13532_s12 + $0x70] sm:$0xff] }
0x2cf4   :  { %11328 = vmatpush3.msra.mxu0 %v12290_v16 }
0x2cf5   :  { %11329 = vmatprep.subr.mxu0 %v4259_v62  ;;  %v14791_v62 = vld [vmem:[%s13532_s12 + $0x78] sm:$0xff] }
0x2cf6   :  { %11330 = vmatpush3.msra.mxu0 %v4179_v19 }
0x2cf7   :  { %11331 = vmatprep.subr.mxu0 %v12311_v43  ;;  %v14774_v43 = vld [vmem:[%s13532_s12 + $0x60] sm:$0xff] }
0x2cf8   :  { %11332 = vmatpush3.msra.mxu0 %v12287_v10 }
0x2cf9   :  { %11333 = vmatprep.subr.mxu0 %v4249_v0  ;;  %v14781_v0 = vld [vmem:[%s13532_s12 + $0x68] sm:$0xff] }
0x2cfa   :  { %11334 = vmatpush3.msra.mxu0 %v4169_v14 }
0x2cfb   :  { %11335 = vmatprep.subr.mxu0 %v12308_v15  ;;  %v14764_v15 = vld [vmem:[%s13532_s12 + $0x50] sm:$0xff] }
0x2cfc   :  { %11336 = vmatpush3.msra.mxu0 %v12284_v6  ;;  %v14716_v6 = vld [vmem:[%s13532_s12] sm:$0xff] }
0x2cfd   :  { %11337 = vmatprep.subr.mxu0 %v4239_v40  ;;  %12334 = vmatprep.mubr.msk.f32.mxu1 %vm4393_vm3, %v14716_v6  ;;  %v14771_v40 = vld [vmem:[%s13532_s12 + $0x58] sm:$0xff] }
0x2cfe   :  { %11338 = vmatpush3.msra.mxu0 %v14692_v9 }
0x2cff   :  { %4383 = vmatmul.mubr.f32.vlgmr.msra.gmra.mxu0 %v14695_v12  ;;  %12382 = vmatprep.subr.mxu0 %v16424_v21 }
0x2d00   :  { %4387 = vmatprep.mubr.f32.mxu0 %v14698_v17  ;;  %12383 = vmatpush3.msra.mxu0 %v16424_v21 }
0x2d01   :  { %12384 = vmatprep.subr.mxu0 %v16424_v21 }
0x2d02   :  { %12385 = vmatpush3.msra.mxu0 %v16424_v21 }
0x2d03   :  { %4388 = vmatmul.mubr.f32.gmra.mxu0 %v14705_v61  ;;  %12386 = vmatprep.subr.mxu0 %v16424_v21 }
0x2d04   :  { %12387 = vmatpush3.msra.mxu0 %v16424_v21 }
0x2d05   :  { %12388 = vmatprep.subr.mxu0 %v16424_v21 }
0x2d06   :  { %12389 = vmatpush3.msra.mxu0 %v16424_v21  ;;  %v14854_v21 = vld [vmem:[%s13532_s12 + $0xe0] sm:$0xff] }
0x2d07   :  { %16434 = vst [vmem:[#allocation42_spill] sm:$0xff] %v14854_v21 }
0x2dbf   :  { %v11339_v9 = vpop.f32.mrf.mxu0 }
0x2dc1   :  { %v11340_v10 = vpop.f32.mrf.mxu0 }
0x2dc2   :  { %v11341_v20 = vadd.f32 %v11340_v10, %v11339_v9  ;;  %v14824_v9 = vld [vmem:[%s13532_s12 + $0xb0] sm:$0xff]  ;;  %v14831_v10 = vld [vmem:[%s13532_s12 + $0xb8] sm:$0xff] }
0x2dc3   :  { %v11342_v14 = vpop.f32.mrf.mxu0  ;;  %16428 = vst [vmem:[#allocation36_spill] sm:$0xff] %v14824_v9  ;;  %16429 = vst [vmem:[#allocation37_spill] sm:$0xff] %v14831_v10 }
0x2dc5   :  { %v11343_v16 = vpop.f32.mrf.mxu0 }
0x2dc6   :  { %v11344_v19 = vadd.f32 %v11343_v16, %v11342_v14  ;;  %v14834_v14 = vld [vmem:[%s13532_s12 + $0xc0] sm:$0xff]  ;;  %v14841_v16 = vld [vmem:[%s13532_s12 + $0xc8] sm:$0xff] }
0x2dc7   :  { %16430 = vst [vmem:[#allocation38_spill] sm:$0xff] %v14834_v14  ;;  %16431 = vst [vmem:[#allocation39_spill] sm:$0xff] %v14841_v16 }
0x2dc8   :  { %12330 = vmatprep.subr.mxu1 %v11344_v19 }
0x2dc9   :  { %12331 = vmatpush3.msra.mxu1 %v11344_v19  ;;  %v14844_v19 = vld [vmem:[%s13532_s12 + $0xd0] sm:$0xff] }
0x2dca   :  { %12332 = vmatprep.subr.mxu1 %v11341_v20  ;;  %16432 = vst [vmem:[#allocation40_spill] sm:$0xff] %v14844_v19 }
0x2dcb   :  { %12333 = vmatpush3.msra.mxu1 %v11341_v20  ;;  %v14851_v20 = vld [vmem:[%s13532_s12 + $0xd8] sm:$0xff] }
0x2dcc   :  { %12335 = vmatmul.mubr.msk.f32.vlgmr.msra.gmra.mxu1 %vm4393_vm3, %v14721_v57  ;;  %16433 = vst [vmem:[#allocation41_spill] sm:$0xff] %v14851_v20 }
0x2dcd   :  { %12337 = vmatprep.mubr.msk.f32.mxu1 %vm4393_vm3, %v14724_v23 }
0x2dd0   :  { %12338 = vmatmul.mubr.msk.f32.gmra.mxu1 %vm4393_vm3, %v14731_v24 }
0x2dd1   :  { %12340 = vmatprep.mubr.msk.f32.mxu1 %vm4393_vm3, %v14734_v29 }
0x2dd4   :  { %12341 = vmatmul.mubr.msk.f32.gmra.mxu1 %vm4393_vm3, %v14741_v31 }
0x2dd5   :  { %12343 = vmatprep.mubr.msk.f32.mxu1 %vm4393_vm3, %v14744_v36 }
0x2dd8   :  { %12344 = vmatmul.mubr.msk.f32.gmra.mxu1 %vm4393_vm3, %v14751_v33 }
0x2dd9   :  { %12346 = vmatprep.mubr.msk.f32.mxu1 %vm4393_vm3, %v14754_v26 }
0x2ddc   :  { %12347 = vmatmul.mubr.msk.f32.gmra.mxu1 %vm4393_vm3, %v14761_v35 }
0x2ddd   :  { %12349 = vmatprep.mubr.msk.f32.mxu1 %vm4393_vm3, %v14764_v15 }
0x2de0   :  { %12350 = vmatmul.mubr.msk.f32.gmra.mxu1 %vm4393_vm3, %v14771_v40 }
0x2de1   :  { %12352 = vmatprep.mubr.msk.f32.mxu1 %vm4393_vm3, %v14774_v43 }
0x2de4   :  { %12353 = vmatmul.mubr.msk.f32.gmra.mxu1 %vm4393_vm3, %v14781_v0 }
0x2de5   :  { %12355 = vmatprep.mubr.msk.f32.mxu1 %vm4393_vm3, %v14784_v1 }
0x2de8   :  { %12356 = vmatmul.mubr.msk.f32.gmra.mxu1 %vm4393_vm3, %v14791_v62 }
0x2de9   :  { %12358 = vmatprep.mubr.msk.f32.mxu1 %vm4393_vm3, %v14794_v48 }
0x2dec   :  { %12359 = vmatmul.mubr.msk.f32.gmra.mxu1 %vm4393_vm3, %v14801_v49 }
0x2ded   :  { %12361 = vmatprep.mubr.msk.f32.mxu1 %vm4393_vm3, %v14804_v52 }
0x2df0   :  { %12362 = vmatmul.mubr.msk.f32.gmra.mxu1 %vm4393_vm3, %v14811_v53 }
0x2df1   :  { %12364 = vmatprep.mubr.msk.f32.mxu1 %vm4393_vm3, %v14814_v56 }
0x2df4   :  { %12365 = vmatmul.mubr.msk.f32.gmra.mxu1 %vm4393_vm3, %v14821_v58 }
0x2df5   :  { %12367 = vmatprep.mubr.msk.f32.mxu1 %vm4393_vm3, %v14824_v9 }
0x2df8   :  { %12368 = vmatmul.mubr.msk.f32.gmra.mxu1 %vm4393_vm3, %v14831_v10  ;;  %v14864_v10 = vld [vmem:[%s13532_s12 + $0xf0] sm:$0xff] }
0x2df9   :  { %12370 = vmatprep.mubr.msk.f32.mxu1 %vm4393_vm3, %v14834_v14  ;;  %v14861_v14 = vld [vmem:[%s13532_s12 + $0xe8] sm:$0xff]  ;;  %16436 = vst [vmem:[#allocation44_spill] sm:$0xff] %v14864_v10 }
0x2dfa   :  { %16435 = vst [vmem:[#allocation43_spill] sm:$0xff] %v14861_v14 }
0x2dfc   :  { %12371 = vmatmul.mubr.msk.f32.gmra.mxu1 %vm4393_vm3, %v14841_v16 }
0x2dfd   :  { %12373 = vmatprep.mubr.msk.f32.mxu1 %vm4393_vm3, %v14844_v19  ;;  %v14871_v19 = vld [vmem:[%s13532_s12 + $0xf8] sm:$0xff]  ;;  %s16511_s12 = sld [smem:[#allocation23_spill]] }
0x2dfe   :  { %16437 = vst [vmem:[#allocation45_spill] sm:$0xff] %v14871_v19 }
0x2e00   :  { %12374 = vmatmul.mubr.msk.f32.gmra.mxu1 %vm4393_vm3, %v14851_v20 }
0x2e01   :  { %12376 = vmatprep.mubr.msk.f32.mxu1 %vm4393_vm3, %v14854_v21 }
0x2e04   :  { %12377 = vmatmul.mubr.msk.f32.gmra.mxu1 %vm4393_vm3, %v14861_v14 }
0x2e05   :  { %12379 = vmatprep.mubr.msk.f32.mxu1 %vm4393_vm3, %v14864_v10 }
0x2e08   :  { %12380 = vmatmul.mubr.msk.f32.gmra.mxu1 %vm4393_vm3, %v14871_v19 }
0x2e09   :  { %5326 = vmatprep.mubr.f32.mxu1 %v14689_v5 }
0x2e8c   :  { %v12336_v20 = vpop.f32.mrf.mxu1 }
0x2e8d   :  { %4722 = vperm.xlu0 %13045, %v12336_v20  }
0x2e8e   :  { %v4556_v21 = vpop.f32.mrf.mxu1 }
0x2e8f   :  { %4717 = vperm.xlu1 %13046, %v4556_v21  }
0x2e90   :  { %v12339_v16 = vpop.f32.mrf.mxu1 }
0x2e91   :  { %4732 = vperm.xlu0 %13045, %v12339_v16  }
0x2e92   :  { %v4566_v9 = vpop.f32.mrf.mxu1 }
0x2e93   :  { %4727 = vperm.xlu1 %13046, %v4566_v9  }
0x2e94   :  { %v12342_v58 = vpop.f32.mrf.mxu1 }
0x2e95   :  { %4742 = vperm.xlu0 %13045, %v12342_v58  }
0x2e96   :  { %v4576_v14 = vpop.f32.mrf.mxu1 }
0x2e97   :  { %4737 = vperm.xlu1 %13046, %v4576_v14  }
0x2e98   :  { %v12345_v10 = vpop.f32.mrf.mxu1 }
0x2e99   :  { %4752 = vperm.xlu0 %13045, %v12345_v10  }
0x2e9a   :  { %v4586_v56 = vpop.f32.mrf.mxu1 }
0x2e9b   :  { %4747 = vperm.xlu1 %13046, %v4586_v56  }
0x2e9c   :  { %v12348_v53 = vpop.f32.mrf.mxu1 }
0x2e9d   :  { %4762 = vperm.xlu0 %13045, %v12348_v53  }
0x2e9e   :  { %v4596_v19 = vpop.f32.mrf.mxu1 }
0x2e9f   :  { %4757 = vperm.xlu1 %13046, %v4596_v19  }
0x2ea0   :  { %v12351_v5 = vpop.f32.mrf.mxu1 }
0x2ea1   :  { %4772 = vperm.xlu0 %13045, %v12351_v5  }
0x2ea2   :  { %v4606_v20 = vpop.f32.mrf.mxu1 }
0x2ea3   :  { %4767 = vperm.xlu1 %13046, %v4606_v20  }
0x2ea4   :  { %v12354_v21 = vpop.f32.mrf.mxu1 }
0x2ea5   :  { %4782 = vperm.xlu0 %13045, %v12354_v21  }
0x2ea6   :  { %v4616_v16 = vpop.f32.mrf.mxu1 }
0x2ea7   :  { %4777 = vperm.xlu1 %13046, %v4616_v16  }
0x2ea8   :  { %v12357_v9 = vpop.f32.mrf.mxu1 }
0x2ea9   :  { %4792 = vperm.xlu0 %13045, %v12357_v9  }
0x2eaa   :  { %v4626_v58 = vpop.f32.mrf.mxu1 }
0x2eab   :  { %4787 = vperm.xlu1 %13046, %v4626_v58  }
0x2eac   :  { %v12360_v14 = vpop.f32.mrf.mxu1 }
0x2ead   :  { %4802 = vperm.xlu0 %13045, %v12360_v14  }
0x2eae   :  { %v4636_v10 = vpop.f32.mrf.mxu1 }
0x2eaf   :  { %4797 = vperm.xlu1 %13046, %v4636_v10  }
0x2eb0   :  { %v12363_v56 = vpop.f32.mrf.mxu1 }
0x2eb1   :  { %4812 = vperm.xlu0 %13045, %v12363_v56  }
0x2eb2   :  { %v4646_v53 = vpop.f32.mrf.mxu1 }
0x2eb3   :  { %4807 = vperm.xlu1 %13046, %v4646_v53  }
0x2eb4   :  { %v12366_v19 = vpop.f32.mrf.mxu1 }
0x2eb5   :  { %4822 = vperm.xlu0 %13045, %v12366_v19  }
0x2eb6   :  { %v4656_v5 = vpop.f32.mrf.mxu1 }
0x2eb7   :  { %4817 = vperm.xlu1 %13046, %v4656_v5  }
0x2eb8   :  { %v12369_v20 = vpop.f32.mrf.mxu1 }
0x2eb9   :  { %4832 = vperm.xlu0 %13045, %v12369_v20  }
0x2eba   :  { %v4666_v21 = vpop.f32.mrf.mxu1 }
0x2ebb   :  { %4827 = vperm.xlu1 %13046, %v4666_v21  }
0x2ebc   :  { %v12372_v16 = vpop.f32.mrf.mxu1 }
0x2ebd   :  { %4842 = vperm.xlu0 %13045, %v12372_v16  }
0x2ebe   :  { %v4676_v9 = vpop.f32.mrf.mxu1 }
0x2ebf   :  { %4837 = vperm.xlu1 %13046, %v4676_v9  }
0x2ec0   :  { %v12375_v58 = vpop.f32.mrf.mxu1 }
0x2ec1   :  { %4852 = vperm.xlu0 %13045, %v12375_v58  }
0x2ec2   :  { %v4686_v14 = vpop.f32.mrf.mxu1 }
0x2ec3   :  { %4847 = vperm.xlu1 %13046, %v4686_v14  }
0x2ec4   :  { %v12378_v10 = vpop.f32.mrf.mxu1 }
0x2ec5   :  { %4862 = vperm.xlu0 %13045, %v12378_v10  }
0x2ec6   :  { %v4696_v56 = vpop.f32.mrf.mxu1 }
0x2ec7   :  { %4857 = vperm.xlu1 %13046, %v4696_v56  }
0x2ec8   :  { %v12381_v53 = vpop.f32.mrf.mxu1 }
0x2ec9   :  { %4872 = vperm.xlu0 %13045, %v12381_v53  }
0x2eca   :  { %v4706_v19 = vpop.f32.mrf.mxu1 }
0x2ecb   :  { %4867 = vperm.xlu1 %13046, %v4706_v19  }
0x2f08   :  { %v4723_v5 = vpop.permute.xlu0 %4722 }
0x2f09   :  { %v14877_v20 = vsub.f32 %v14532_v60, %v4723_v5 }
0x2f0a   :  { %v4718_v21 = vpop.permute.xlu1 %4717 }
0x2f0b   :  { %v14880_v16 = vsub.f32 %v14529_v59, %v4718_v21  ;;  %v4908_v14 = vmul.f32 %v14877_v20, %v14877_v20 }
0x2f0c   :  { %v4733_v9 = vpop.permute.xlu0 %4732 }
0x2f0d   :  { %v4907_v58 = vmul.f32 %v14880_v16, %v14880_v16  ;;  %v14887_v10 = vsub.f32 %v14542_v4, %v4733_v9 }
0x2f0e   :  { %v4728_v56 = vpop.permute.xlu1 %4727 }
0x2f0f   :  { %v14890_v53 = vsub.f32 %v14539_v3, %v4728_v56  ;;  %12390 = vmatprep.mubr.msk.f32.mxu0 %vm227_vm0, %v4907_v58  ;;  %v4910_v19 = vmul.f32 %v14887_v10, %v14887_v10 }
0x2f10   :  { %12391 = vmatmul.mubr.msk.f32.vlgmr.msra.gmra.mxu0 %vm227_vm0, %v4908_v14  ;;  %v4743_v59 = vpop.permute.xlu0 %4742 }
0x2f11   :  { %v4909_v60 = vmul.f32 %v14890_v53, %v14890_v53  ;;  %v14899_v5 = vsub.f32 %v14552_v8, %v4743_v59 }
0x2f12   :  { %v4738_v4 = vpop.permute.xlu1 %4737 }
0x2f13   :  { %v14902_v21 = vsub.f32 %v14549_v7, %v4738_v4  ;;  %12393 = vmatprep.mubr.msk.f32.mxu0 %vm227_vm0, %v4909_v60  ;;  %v4912_v58 = vmul.f32 %v14899_v5, %v14899_v5 }
0x2f14   :  { %12394 = vmatmul.mubr.msk.f32.gmra.mxu0 %vm227_vm0, %v4910_v19  ;;  %v4753_v3 = vpop.permute.xlu0 %4752 }
0x2f15   :  { %v4911_v9 = vmul.f32 %v14902_v21, %v14902_v21  ;;  %v14911_v14 = vsub.f32 %v14562_v13, %v4753_v3 }
0x2f16   :  { %v4748_v8 = vpop.permute.xlu1 %4747 }
0x2f17   :  { %v14914_v56 = vsub.f32 %v14559_v11, %v4748_v8  ;;  %12396 = vmatprep.mubr.msk.f32.mxu0 %vm227_vm0, %v4911_v9  ;;  %v4914_v60 = vmul.f32 %v14911_v14, %v14911_v14 }
0x2f18   :  { %12397 = vmatmul.mubr.msk.f32.gmra.mxu0 %vm227_vm0, %v4912_v58  ;;  %v4763_v7 = vpop.permute.xlu0 %4762 }
0x2f19   :  { %v4913_v59 = vmul.f32 %v14914_v56, %v14914_v56  ;;  %v14923_v19 = vsub.f32 %v14572_v18, %v4763_v7 }
0x2f1a   :  { %v4758_v13 = vpop.permute.xlu1 %4757 }
0x2f1b   :  { %v14926_v4 = vsub.f32 %v14569_v28, %v4758_v13  ;;  %12399 = vmatprep.mubr.msk.f32.mxu0 %vm227_vm0, %v4913_v59  ;;  %v4916_v9 = vmul.f32 %v14923_v19, %v14923_v19 }
0x2f1c   :  { %12400 = vmatmul.mubr.msk.f32.gmra.mxu0 %vm227_vm0, %v4914_v60  ;;  %v4773_v11 = vpop.permute.xlu0 %4772 }
0x2f1d   :  { %v4915_v3 = vmul.f32 %v14926_v4, %v14926_v4  ;;  %v14935_v58 = vsub.f32 %v14582_v22, %v4773_v11 }
0x2f1e   :  { %v4768_v18 = vpop.permute.xlu1 %4767 }
0x2f1f   :  { %16438 = vst [vmem:[#allocation46_spill] sm:$0xff] %v14935_v58  ;;  %v14938_v8 = vsub.f32 %v14579_v39, %v4768_v18  ;;  %12402 = vmatprep.mubr.msk.f32.mxu0 %vm227_vm0, %v4915_v3  ;;  %v4918_v59 = vmul.f32 %v14935_v58, %v14935_v58 }
0x2f20   :  { %12403 = vmatmul.mubr.msk.f32.gmra.mxu0 %vm227_vm0, %v4916_v9  ;;  %v4783_v28 = vpop.permute.xlu0 %4782 }
0x2f21   :  { %16439 = vst [vmem:[#allocation47_spill] sm:$0xff] %v14938_v8  ;;  %v4917_v7 = vmul.f32 %v14938_v8, %v14938_v8  ;;  %v14947_v60 = vsub.f32 %v14592_v27, %v4783_v28 }
0x2f22   :  { %v4778_v22 = vpop.permute.xlu1 %4777 }
0x2f23   :  { %16440 = vst [vmem:[#allocation48_spill] sm:$0xff] %v14947_v60  ;;  %v14950_v13 = vsub.f32 %v14589_v25, %v4778_v22  ;;  %12405 = vmatprep.mubr.msk.f32.mxu0 %vm227_vm0, %v4917_v7  ;;  %v4920_v3 = vmul.f32 %v14947_v60, %v14947_v60 }
0x2f24   :  { %12406 = vmatmul.mubr.msk.f32.gmra.mxu0 %vm227_vm0, %v4918_v59  ;;  %v4793_v39 = vpop.permute.xlu0 %4792 }
0x2f25   :  { %16441 = vst [vmem:[#allocation49_spill] sm:$0xff] %v14950_v13  ;;  %v4919_v11 = vmul.f32 %v14950_v13, %v14950_v13  ;;  %v14959_v9 = vsub.f32 %v14602_v32, %v4793_v39 }
0x2f26   :  { %v4788_v27 = vpop.permute.xlu1 %4787 }
0x2f27   :  { %16442 = vst [vmem:[#allocation50_spill] sm:$0xff] %v14959_v9  ;;  %v14962_v18 = vsub.f32 %v14599_v30, %v4788_v27  ;;  %12408 = vmatprep.mubr.msk.f32.mxu0 %vm227_vm0, %v4919_v11  ;;  %v4922_v7 = vmul.f32 %v14959_v9, %v14959_v9 }
0x2f28   :  { %12409 = vmatmul.mubr.msk.f32.gmra.mxu0 %vm227_vm0, %v4920_v3  ;;  %v4803_v25 = vpop.permute.xlu0 %4802 }
0x2f29   :  { %16443 = vst [vmem:[#allocation51_spill] sm:$0xff] %v14962_v18  ;;  %v4921_v28 = vmul.f32 %v14962_v18, %v14962_v18  ;;  %v14971_v59 = vsub.f32 %v14612_v41, %v4803_v25 }
0x2f2a   :  { %v4798_v32 = vpop.permute.xlu1 %4797 }
0x2f2b   :  { %16444 = vst [vmem:[#allocation52_spill] sm:$0xff] %v14971_v59  ;;  %v14974_v22 = vsub.f32 %v14609_v34, %v4798_v32  ;;  %12411 = vmatprep.mubr.msk.f32.mxu0 %vm227_vm0, %v4921_v28  ;;  %v4924_v11 = vmul.f32 %v14971_v59, %v14971_v59 }
0x2f2c   :  { %12412 = vmatmul.mubr.msk.f32.gmra.mxu0 %vm227_vm0, %v4922_v7  ;;  %v4813_v30 = vpop.permute.xlu0 %4812 }
0x2f2d   :  { %16445 = vst [vmem:[#allocation53_spill] sm:$0xff] %v14974_v22  ;;  %v4923_v39 = vmul.f32 %v14974_v22, %v14974_v22  ;;  %v14983_v3 = vsub.f32 %v14622_v38, %v4813_v30 }
0x2f2e   :  { %v4808_v41 = vpop.permute.xlu1 %4807 }
0x2f2f   :  { %16446 = vst [vmem:[#allocation54_spill] sm:$0xff] %v14983_v3  ;;  %v14986_v27 = vsub.f32 %v14619_v37, %v4808_v41  ;;  %12414 = vmatprep.mubr.msk.f32.mxu0 %vm227_vm0, %v4923_v39  ;;  %v4926_v28 = vmul.f32 %v14983_v3, %v14983_v3 }
0x2f30   :  { %12415 = vmatmul.mubr.msk.f32.gmra.mxu0 %vm227_vm0, %v4924_v11  ;;  %v4823_v34 = vpop.permute.xlu0 %4822 }
0x2f31   :  { %16447 = vst [vmem:[#allocation55_spill] sm:$0xff] %v14986_v27  ;;  %v4925_v25 = vmul.f32 %v14986_v27, %v14986_v27  ;;  %v14995_v7 = vsub.f32 %v14632_v42, %v4823_v34 }
0x2f32   :  { %v4818_v38 = vpop.permute.xlu1 %4817 }
0x2f33   :  { %16448 = vst [vmem:[#allocation56_spill] sm:$0xff] %v14995_v7  ;;  %v14998_v32 = vsub.f32 %v14629_v63, %v4818_v38  ;;  %12417 = vmatprep.mubr.msk.f32.mxu0 %vm227_vm0, %v4925_v25  ;;  %v4928_v39 = vmul.f32 %v14995_v7, %v14995_v7 }
0x2f34   :  { %12418 = vmatmul.mubr.msk.f32.gmra.mxu0 %vm227_vm0, %v4926_v28  ;;  %v4833_v37 = vpop.permute.xlu0 %4832 }
0x2f35   :  { %16449 = vst [vmem:[#allocation57_spill] sm:$0xff] %v14998_v32  ;;  %v4927_v30 = vmul.f32 %v14998_v32, %v14998_v32  ;;  %v15007_v11 = vsub.f32 %v14642_v45, %v4833_v37 }
0x2f36   :  { %v4828_v42 = vpop.permute.xlu1 %4827 }
0x2f37   :  { %16450 = vst [vmem:[#allocation58_spill] sm:$0xff] %v15007_v11  ;;  %v15010_v41 = vsub.f32 %v14639_v44, %v4828_v42  ;;  %12420 = vmatprep.mubr.msk.f32.mxu0 %vm227_vm0, %v4927_v30  ;;  %v4930_v25 = vmul.f32 %v15007_v11, %v15007_v11 }
0x2f38   :  { %12421 = vmatmul.mubr.msk.f32.gmra.mxu0 %vm227_vm0, %v4928_v39  ;;  %v4843_v63 = vpop.permute.xlu0 %4842 }
0x2f39   :  { %16451 = vst [vmem:[#allocation59_spill] sm:$0xff] %v15010_v41  ;;  %v4929_v34 = vmul.f32 %v15010_v41, %v15010_v41  ;;  %v15019_v28 = vsub.f32 %v14652_v47, %v4843_v63 }
0x2f3a   :  { %v4838_v45 = vpop.permute.xlu1 %4837 }
0x2f3b   :  { %16452 = vst [vmem:[#allocation60_spill] sm:$0xff] %v15019_v28  ;;  %v15022_v38 = vsub.f32 %v14649_v46, %v4838_v45  ;;  %12423 = vmatprep.mubr.msk.f32.mxu0 %vm227_vm0, %v4929_v34  ;;  %v4932_v30 = vmul.f32 %v15019_v28, %v15019_v28 }
0x2f3c   :  { %12424 = vmatmul.mubr.msk.f32.gmra.mxu0 %vm227_vm0, %v4930_v25  ;;  %v4853_v44 = vpop.permute.xlu0 %4852 }
0x2f3d   :  { %16453 = vst [vmem:[#allocation61_spill] sm:$0xff] %v15022_v38  ;;  %v4931_v37 = vmul.f32 %v15022_v38, %v15022_v38  ;;  %v15031_v39 = vsub.f32 %v14662_v51, %v4853_v44 }
0x2f3e   :  { %v4848_v47 = vpop.permute.xlu1 %4847 }
0x2f3f   :  { %16454 = vst [vmem:[#allocation62_spill] sm:$0xff] %v15031_v39  ;;  %v15034_v42 = vsub.f32 %v14659_v50, %v4848_v47  ;;  %12426 = vmatprep.mubr.msk.f32.mxu0 %vm227_vm0, %v4931_v37  ;;  %v4934_v34 = vmul.f32 %v15031_v39, %v15031_v39  ;;  %v16459_v47 = vld [vmem:[#allocation32_spill] sm:$0xff] }
0x2f40   :  { %12427 = vmatmul.mubr.msk.f32.gmra.mxu0 %vm227_vm0, %v4932_v30  ;;  %v4863_v46 = vpop.permute.xlu0 %4862 }
0x2f41   :  { %16455 = vst [vmem:[#allocation63_spill] sm:$0xff] %v15034_v42  ;;  %v4933_v63 = vmul.f32 %v15034_v42, %v15034_v42  ;;  %v15043_v25 = vsub.f32 %v14672_v55, %v4863_v46 }
0x2f42   :  { %v4858_v51 = vpop.permute.xlu1 %4857 }
0x2f43   :  { %16456 = vst [vmem:[#allocation64_spill] sm:$0xff] %v15043_v25  ;;  %v15046_v45 = vsub.f32 %v14669_v54, %v4858_v51  ;;  %12429 = vmatprep.mubr.msk.f32.mxu0 %vm227_vm0, %v4933_v63  ;;  %v4936_v37 = vmul.f32 %v15043_v25, %v15043_v25 }
0x2f44   :  { %12430 = vmatmul.mubr.msk.f32.gmra.mxu0 %vm227_vm0, %v4934_v34  ;;  %v4873_v50 = vpop.permute.xlu0 %4872 }
0x2f45   :  { %16457 = vst [vmem:[#allocation65_spill] sm:$0xff] %v15046_v45  ;;  %v4935_v44 = vmul.f32 %v15046_v45, %v15046_v45  ;;  %v15055_v30 = vsub.f32 %v14682_v2, %v4873_v50 }
0x2f46   :  { %v4868_v55 = vpop.permute.xlu1 %4867 }
0x2f47   :  { %16458 = vst [vmem:[#allocation66_spill] sm:$0xff] %v15055_v30  ;;  %v15058_v46 = vsub.f32 %v16459_v47, %v4868_v55  ;;  %12432 = vmatprep.mubr.msk.f32.mxu0 %vm227_vm0, %v4935_v44  ;;  %v4938_v63 = vmul.f32 %v15055_v30, %v15055_v30 }
0x2f48   :  { %12433 = vmatmul.mubr.msk.f32.gmra.mxu0 %vm227_vm0, %v4936_v37 }
0x2f49   :  { %16460 = vst [vmem:[#allocation32_spill] sm:$0xff] %v15058_v46  ;;  %v4937_v54 = vmul.f32 %v15058_v46, %v15058_v46 }
0x2f4b   :  { %12435 = vmatprep.mubr.msk.f32.mxu0 %vm227_vm0, %v4937_v54 }
0x2f4c   :  { %12436 = vmatmul.mubr.msk.f32.gmra.mxu0 %vm227_vm0, %v4938_v63 }
0x2f4d   :  { %12442 = vmatprep.mubr.msk.f32.mxu0 %vm4393_vm3, %v14716_v6 }
0x2fd0   :  { %v12392_v2 = vpop.f32.mrf.mxu0 }
0x2fd2   :  { %v5101_v34 = vpop.f32.mrf.mxu0 }
0x2fd4   :  { %v12395_v51 = vpop.f32.mrf.mxu0 }
0x2fd6   :  { %v5111_v50 = vpop.f32.mrf.mxu0 }
0x2fd8   :  { %v12398_v44 = vpop.f32.mrf.mxu0 }
0x2fda   :  { %v5121_v55 = vpop.f32.mrf.mxu0 }
0x2fdc   :  { %v12401_v37 = vpop.f32.mrf.mxu0 }
0x2fde   :  { %v5131_v47 = vpop.f32.mrf.mxu0 }
0x2fe0   :  { %v12404_v45 = vpop.f32.mrf.mxu0 }
0x2fe2   :  { %v5141_v46 = vpop.f32.mrf.mxu0 }
0x2fe4   :  { %v12407_v25 = vpop.f32.mrf.mxu0 }
0x2fe6   :  { %v5151_v42 = vpop.f32.mrf.mxu0 }
0x2fe8   :  { %v12410_v30 = vpop.f32.mrf.mxu0 }
0x2fea   :  { %v5161_v39 = vpop.f32.mrf.mxu0 }
0x2fec   :  { %v12413_v54 = vpop.f32.mrf.mxu0 }
0x2fee   :  { %v5171_v38 = vpop.f32.mrf.mxu0 }
0x2ff0   :  { %v12416_v63 = vpop.f32.mrf.mxu0 }
0x2ff2   :  { %v5181_v28 = vpop.f32.mrf.mxu0 }
0x2ff4   :  { %v12419_v41 = vpop.f32.mrf.mxu0 }
0x2ff6   :  { %v5191_v11 = vpop.f32.mrf.mxu0 }
0x2ff8   :  { %v12422_v32 = vpop.f32.mrf.mxu0 }
0x2ffa   :  { %v5201_v7 = vpop.f32.mrf.mxu0 }
0x2ffc   :  { %v12425_v27 = vpop.f32.mrf.mxu0 }
0x2ffe   :  { %v5211_v3 = vpop.f32.mrf.mxu0 }
0x3000   :  { %v12428_v22 = vpop.f32.mrf.mxu0 }
0x3002   :  { %v5221_v59 = vpop.f32.mrf.mxu0 }
0x3004   :  { %v12431_v18 = vpop.f32.mrf.mxu0 }
0x3006   :  { %v5231_v9 = vpop.f32.mrf.mxu0 }
0x3008   :  { %v12434_v13 = vpop.f32.mrf.mxu0 }
0x300a   :  { %v5241_v60 = vpop.f32.mrf.mxu0 }
0x300c   :  { %v12437_v8 = vpop.f32.mrf.mxu0 }
0x300d   :  { %11415 = vmatprep.subr.mxu1 %v12437_v8  ;;  %v5566_v8 = vld [vmem:[%s13517_s24] sm:$0xff] }
0x300e   :  { %v5251_v58 = vpop.f32.mrf.mxu0  ;;  %11416 = vmatpush3.msra.mxu1 %v12413_v54 }
0x300f   :  { %11417 = vmatprep.subr.mxu1 %v5251_v58  ;;  %v5567_v58 = vld [vmem:[%s13517_s24 + $0x8] sm:$0xff]  ;;  %s16508_s24 = sld [smem:[#allocation16_spill]] }
0x3010   :  { %11418 = vmatpush3.msra.mxu1 %v5171_v38 }
0x3011   :  { %11419 = vmatprep.subr.mxu1 %v12434_v13  ;;  %v16466_v13 = vld [vmem:[#allocation38_spill] sm:$0xff] }
0x3012   :  { %11420 = vmatpush3.msra.mxu1 %v12410_v30 }
0x3013   :  { %11421 = vmatprep.subr.mxu1 %v5241_v60  ;;  %v16465_v60 = vld [vmem:[#allocation37_spill] sm:$0xff] }
0x3014   :  { %11422 = vmatpush3.msra.mxu1 %v5161_v39 }
0x3015   :  { %11423 = vmatprep.subr.mxu1 %v12431_v18  ;;  %v16468_v18 = vld [vmem:[#allocation40_spill] sm:$0xff] }
0x3016   :  { %11424 = vmatpush3.msra.mxu1 %v12407_v25 }
0x3017   :  { %11425 = vmatprep.subr.mxu1 %v5231_v9  ;;  %v16467_v9 = vld [vmem:[#allocation39_spill] sm:$0xff] }
0x3018   :  { %11426 = vmatpush3.msra.mxu1 %v5151_v42 }
0x3019   :  { %11427 = vmatprep.subr.mxu1 %v12428_v22  ;;  %v16470_v22 = vld [vmem:[#allocation42_spill] sm:$0xff] }
0x301a   :  { %11428 = vmatpush3.msra.mxu1 %v12404_v45 }
0x301b   :  { %11429 = vmatprep.subr.mxu1 %v5221_v59  ;;  %v16469_v59 = vld [vmem:[#allocation41_spill] sm:$0xff] }
0x301c   :  { %11430 = vmatpush3.msra.mxu1 %v5141_v46 }
0x301d   :  { %11431 = vmatprep.subr.mxu1 %v12425_v27  ;;  %v16472_v27 = vld [vmem:[#allocation44_spill] sm:$0xff] }
0x301e   :  { %11432 = vmatpush3.msra.mxu1 %v12401_v37 }
0x301f   :  { %11433 = vmatprep.subr.mxu1 %v5211_v3  ;;  %v16471_v3 = vld [vmem:[#allocation43_spill] sm:$0xff] }
0x3020   :  { %11434 = vmatpush3.msra.mxu1 %v5131_v47 }
0x3021   :  { %11435 = vmatprep.subr.mxu1 %v12422_v32 }
0x3022   :  { %11436 = vmatpush3.msra.mxu1 %v12398_v44 }
0x3023   :  { %11437 = vmatprep.subr.mxu1 %v5201_v7  ;;  %v16473_v7 = vld [vmem:[#allocation45_spill] sm:$0xff] }
0x3024   :  { %11438 = vmatpush3.msra.mxu1 %v5121_v55  ;;  %v5261_v55 = vld [vmem:[%s13512_s19 + $0x8] sm:$0xff] }
0x3025   :  { %11439 = vmatprep.subr.mxu1 %v12419_v41 }
0x3026   :  { %11440 = vmatpush3.msra.mxu1 %v12395_v51 }
0x3027   :  { %11441 = vmatprep.subr.mxu1 %v5191_v11 }
0x3028   :  { %11442 = vmatpush3.msra.mxu1 %v5111_v50 }
0x3029   :  { %11443 = vmatprep.subr.mxu1 %v12416_v63  ;;  %v5260_v63 = vld [vmem:[%s13512_s19] sm:$0xff]  ;;  %s16506_s19 = sld [smem:[#allocation21_spill]] }
0x302a   :  { %11444 = vmatpush3.msra.mxu1 %v12392_v2 }
0x302b   :  { %11445 = vmatprep.subr.mxu1 %v5181_v28 }
0x302c   :  { %11446 = vmatpush3.msra.mxu1 %v5101_v34 }
0x302d   :  { %5327 = vmatmul.mubr.f32.vlgmr.msra.gmra.mxu1 %v14695_v12  ;;  %12490 = vmatprep.subr.mxu1 %v5567_v58  ;;  %v16461_v12 = vld [vmem:[#allocation33_spill] sm:$0xff] }
0x302e   :  { %5331 = vmatprep.mubr.f32.mxu1 %v14698_v17  ;;  %12491 = vmatpush3.msra.mxu1 %v5567_v58  ;;  %v16462_v17 = vld [vmem:[#allocation34_spill] sm:$0xff] }
0x302f   :  { %12492 = vmatprep.subr.mxu1 %v5566_v8 }
0x3030   :  { %12493 = vmatpush3.msra.mxu1 %v5566_v8 }
0x3031   :  { %5332 = vmatmul.mubr.f32.gmra.mxu1 %v14705_v61  ;;  %v16463_v61 = vld [vmem:[#allocation35_spill] sm:$0xff] }
0x3032   :  { %12494 = vmatprep.mubr.msk.f32.mxu1 %vm4393_vm3, %v14716_v6  ;;  %v16464_v6 = vld [vmem:[#allocation36_spill] sm:$0xff] }
0x3035   :  { %12495 = vmatmul.mubr.msk.f32.vlgmr.msra.gmra.mxu1 %vm4393_vm3, %v14721_v57 }
0x3036   :  { %12497 = vmatprep.mubr.msk.f32.mxu1 %vm4393_vm3, %v14724_v23 }
0x3039   :  { %12498 = vmatmul.mubr.msk.f32.gmra.mxu1 %vm4393_vm3, %v14731_v24 }
0x303a   :  { %12500 = vmatprep.mubr.msk.f32.mxu1 %vm4393_vm3, %v14734_v29 }
0x303d   :  { %12501 = vmatmul.mubr.msk.f32.gmra.mxu1 %vm4393_vm3, %v14741_v31 }
0x303e   :  { %12503 = vmatprep.mubr.msk.f32.mxu1 %vm4393_vm3, %v14744_v36 }
0x3041   :  { %12504 = vmatmul.mubr.msk.f32.gmra.mxu1 %vm4393_vm3, %v14751_v33 }
0x3042   :  { %12506 = vmatprep.mubr.msk.f32.mxu1 %vm4393_vm3, %v14754_v26 }
0x3045   :  { %12507 = vmatmul.mubr.msk.f32.gmra.mxu1 %vm4393_vm3, %v14761_v35 }
0x3046   :  { %12509 = vmatprep.mubr.msk.f32.mxu1 %vm4393_vm3, %v14764_v15 }
0x3049   :  { %12510 = vmatmul.mubr.msk.f32.gmra.mxu1 %vm4393_vm3, %v14771_v40 }
0x304a   :  { %12512 = vmatprep.mubr.msk.f32.mxu1 %vm4393_vm3, %v14774_v43 }
0x304d   :  { %12513 = vmatmul.mubr.msk.f32.gmra.mxu1 %vm4393_vm3, %v14781_v0 }
0x304e   :  { %12515 = vmatprep.mubr.msk.f32.mxu1 %vm4393_vm3, %v14784_v1 }
0x3051   :  { %12516 = vmatmul.mubr.msk.f32.gmra.mxu1 %vm4393_vm3, %v14791_v62 }
0x3052   :  { %12518 = vmatprep.mubr.msk.f32.mxu1 %vm4393_vm3, %v14794_v48 }
0x3055   :  { %12519 = vmatmul.mubr.msk.f32.gmra.mxu1 %vm4393_vm3, %v14801_v49 }
0x3056   :  { %12521 = vmatprep.mubr.msk.f32.mxu1 %vm4393_vm3, %v14804_v52 }
0x3059   :  { %12522 = vmatmul.mubr.msk.f32.gmra.mxu1 %vm4393_vm3, %v16461_v12 }
0x305a   :  { %12524 = vmatprep.mubr.msk.f32.mxu1 %vm4393_vm3, %v16462_v17 }
0x305d   :  { %12525 = vmatmul.mubr.msk.f32.gmra.mxu1 %vm4393_vm3, %v16463_v61 }
0x305e   :  { %12527 = vmatprep.mubr.msk.f32.mxu1 %vm4393_vm3, %v16464_v6 }
0x3061   :  { %12528 = vmatmul.mubr.msk.f32.gmra.mxu1 %vm4393_vm3, %v16465_v60 }
0x3062   :  { %12530 = vmatprep.mubr.msk.f32.mxu1 %vm4393_vm3, %v16466_v13 }
0x3065   :  { %12531 = vmatmul.mubr.msk.f32.gmra.mxu1 %vm4393_vm3, %v16467_v9 }
0x3066   :  { %12533 = vmatprep.mubr.msk.f32.mxu1 %vm4393_vm3, %v16468_v18 }
0x3069   :  { %12534 = vmatmul.mubr.msk.f32.gmra.mxu1 %vm4393_vm3, %v16469_v59 }
0x306a   :  { %12536 = vmatprep.mubr.msk.f32.mxu1 %vm4393_vm3, %v16470_v22 }
0x306d   :  { %12537 = vmatmul.mubr.msk.f32.gmra.mxu1 %vm4393_vm3, %v16471_v3 }
0x306e   :  { %12539 = vmatprep.mubr.msk.f32.mxu1 %vm4393_vm3, %v16472_v27 }
0x3071   :  { %12540 = vmatmul.mubr.msk.f32.gmra.mxu1 %vm4393_vm3, %v16473_v7 }
0x30ed   :  { %v11447_v32 = vpop.f32.mrf.mxu1 }
0x30ef   :  { %v11448_v11 = vpop.f32.mrf.mxu1 }
0x30f0   :  { %v11449_v41 = vadd.f32 %v11448_v11, %v11447_v32 }
0x30f1   :  { %v11450_v28 = vpop.f32.mrf.mxu1 }
0x30f2   :  { %v5329_v38 = vadd.f32 1e-05, %v11449_v41 }
0x30f3   :  { %v11451_v39 = vpop.f32.mrf.mxu1 }
0x30f4   :  { %v11452_v42 = vadd.f32 %v11451_v39, %v11450_v28  ;;  %13239 = vrsqrt.f32 %v5329_v38 }
0x30f5   :  { %v12496_v25 = vpop.f32.mrf.mxu1 }
0x30f6   :  { %v5334_v45 = vadd.f32 1e-05, %v11452_v42  ;;  %5992 = vperm.xlu0 %13045, %v12496_v25  }
0x30f7   :  { %v5634_v30 = vpop.f32.mrf.mxu1 }
0x30f8   :  { %13241 = vrsqrt.f32 %v5334_v45  ;;  %5987 = vperm.xlu1 %13046, %v5634_v30  }
0x30f9   :  { %v12499_v46 = vpop.f32.mrf.mxu1 }
0x30fa   :  { %6002 = vperm.xlu0 %13045, %v12499_v46  }
0x30fb   :  { %v5644_v2 = vpop.f32.mrf.mxu1 }
0x30fc   :  { %5997 = vperm.xlu1 %13046, %v5644_v2  }
0x30fd   :  { %v12502_v34 = vpop.f32.mrf.mxu1 }
0x30fe   :  { %6012 = vperm.xlu0 %13045, %v12502_v34  }
0x30ff   :  { %v5654_v51 = vpop.f32.mrf.mxu1 }
0x3100   :  { %6007 = vperm.xlu1 %13046, %v5654_v51  }
0x3101   :  { %v12505_v50 = vpop.f32.mrf.mxu1  ;;  %v13240_v37 = vpop.eup %13239 }
0x3102   :  { %6022 = vperm.xlu0 %13045, %v12505_v50   ;;  %v5339_v32 = vmul.f32 %v13240_v37, %v5260_v63 }
0x3103   :  { %v5664_v44 = vpop.f32.mrf.mxu1 }
0x3104   :  { %6017 = vperm.xlu1 %13046, %v5664_v44  }
0x3105   :  { %v13242_v47 = vpop.eup %13241  ;;  %v12508_v54 = vpop.f32.mrf.mxu1 }
0x3106   :  { %6032 = vperm.xlu0 %13045, %v12508_v54   ;;  %v5340_v58 = vmul.f32 %v13242_v47, %v5261_v55 }
0x3107   :  { %v5674_v8 = vpop.f32.mrf.mxu1 }
0x3108   :  { %6027 = vperm.xlu1 %13046, %v5674_v8   ;;  %12438 = vmatprep.subr.mxu0 %v5340_v58 }
0x3109   :  { %12439 = vmatpush3.msra.mxu0 %v5340_v58  ;;  %v12511_v11 = vpop.f32.mrf.mxu1 }
0x310a   :  { %6042 = vperm.xlu0 %13045, %v12511_v11   ;;  %12440 = vmatprep.subr.mxu0 %v5339_v32 }
0x310b   :  { %12441 = vmatpush3.msra.mxu0 %v5339_v32  ;;  %v5684_v41 = vpop.f32.mrf.mxu1 }
0x310c   :  { %6037 = vperm.xlu1 %13046, %v5684_v41   ;;  %12443 = vmatmul.mubr.msk.f32.vlgmr.msra.gmra.mxu0 %vm4393_vm3, %v14721_v57 }
0x310d   :  { %v12514_v28 = vpop.f32.mrf.mxu1  ;;  %12445 = vmatprep.mubr.msk.f32.mxu0 %vm4393_vm3, %v14724_v23 }
0x310e   :  { %6052 = vperm.xlu0 %13045, %v12514_v28  }
0x310f   :  { %v5694_v38 = vpop.f32.mrf.mxu1 }
0x3110   :  { %6047 = vperm.xlu1 %13046, %v5694_v38   ;;  %12446 = vmatmul.mubr.msk.f32.gmra.mxu0 %vm4393_vm3, %v14731_v24 }
0x3111   :  { %v12517_v39 = vpop.f32.mrf.mxu1  ;;  %12448 = vmatprep.mubr.msk.f32.mxu0 %vm4393_vm3, %v14734_v29 }
0x3112   :  { %6062 = vperm.xlu0 %13045, %v12517_v39  }
0x3113   :  { %v5704_v42 = vpop.f32.mrf.mxu1 }
0x3114   :  { %6057 = vperm.xlu1 %13046, %v5704_v42   ;;  %12449 = vmatmul.mubr.msk.f32.gmra.mxu0 %vm4393_vm3, %v14741_v31 }
0x3115   :  { %v12520_v57 = vpop.f32.mrf.mxu1  ;;  %12451 = vmatprep.mubr.msk.f32.mxu0 %vm4393_vm3, %v14744_v36 }
0x3116   :  { %6072 = vperm.xlu0 %13045, %v12520_v57  }
0x3117   :  { %v5714_v23 = vpop.f32.mrf.mxu1 }
0x3118   :  { %6067 = vperm.xlu1 %13046, %v5714_v23   ;;  %12452 = vmatmul.mubr.msk.f32.gmra.mxu0 %vm4393_vm3, %v14751_v33 }
0x3119   :  { %v12523_v24 = vpop.f32.mrf.mxu1  ;;  %12454 = vmatprep.mubr.msk.f32.mxu0 %vm4393_vm3, %v14754_v26 }
0x311a   :  { %6082 = vperm.xlu0 %13045, %v12523_v24  }
0x311b   :  { %v5724_v29 = vpop.f32.mrf.mxu1 }
0x311c   :  { %6077 = vperm.xlu1 %13046, %v5724_v29   ;;  %12455 = vmatmul.mubr.msk.f32.gmra.mxu0 %vm4393_vm3, %v14761_v35 }
0x311d   :  { %v12526_v31 = vpop.f32.mrf.mxu1  ;;  %12457 = vmatprep.mubr.msk.f32.mxu0 %vm4393_vm3, %v14764_v15 }
0x311e   :  { %6092 = vperm.xlu0 %13045, %v12526_v31  }
0x311f   :  { %v5734_v36 = vpop.f32.mrf.mxu1 }
0x3120   :  { %6087 = vperm.xlu1 %13046, %v5734_v36   ;;  %12458 = vmatmul.mubr.msk.f32.gmra.mxu0 %vm4393_vm3, %v14771_v40 }
0x3121   :  { %v12529_v33 = vpop.f32.mrf.mxu1  ;;  %12460 = vmatprep.mubr.msk.f32.mxu0 %vm4393_vm3, %v14774_v43 }
0x3122   :  { %6102 = vperm.xlu0 %13045, %v12529_v33  }
0x3123   :  { %v5744_v26 = vpop.f32.mrf.mxu1 }
0x3124   :  { %6097 = vperm.xlu1 %13046, %v5744_v26   ;;  %12461 = vmatmul.mubr.msk.f32.gmra.mxu0 %vm4393_vm3, %v14781_v0 }
0x3125   :  { %v12532_v35 = vpop.f32.mrf.mxu1  ;;  %12463 = vmatprep.mubr.msk.f32.mxu0 %vm4393_vm3, %v14784_v1 }
0x3126   :  { %6112 = vperm.xlu0 %13045, %v12532_v35  }
0x3127   :  { %v5754_v15 = vpop.f32.mrf.mxu1 }
0x3128   :  { %6107 = vperm.xlu1 %13046, %v5754_v15   ;;  %12464 = vmatmul.mubr.msk.f32.gmra.mxu0 %vm4393_vm3, %v14791_v62  ;;  %v6212_v62 = vld [vmem:[%s16474_s9 + $0x18] sm:$0xff] }
0x3129   :  { %v12535_v40 = vpop.f32.mrf.mxu1  ;;  %12466 = vmatprep.mubr.msk.f32.mxu0 %vm4393_vm3, %v14794_v48  ;;  %12542 = vmatprep.subr.mxu0 %v6212_v62  ;;  %v6211_v48 = vld [vmem:[%s16474_s9 + $0x10] sm:$0xff] }
0x312a   :  { %6122 = vperm.xlu0 %13045, %v12535_v40   ;;  %12543 = vmatpush3.msra.mxu0 %v6212_v62 }
0x312b   :  { %v5764_v43 = vpop.f32.mrf.mxu1  ;;  %12544 = vmatprep.subr.mxu0 %v6211_v48 }
0x312c   :  { %6117 = vperm.xlu1 %13046, %v5764_v43   ;;  %12467 = vmatmul.mubr.msk.f32.gmra.mxu0 %vm4393_vm3, %v14801_v49 }
0x312d   :  { %v12538_v0 = vpop.f32.mrf.mxu1  ;;  %12469 = vmatprep.mubr.msk.f32.mxu0 %vm4393_vm3, %v14804_v52  ;;  %12545 = vmatpush3.msra.mxu0 %v6211_v48  ;;  %v6210_v52 = vld [vmem:[%s16474_s9 + $0x8] sm:$0xff] }
0x312e   :  { %6132 = vperm.xlu0 %13045, %v12538_v0   ;;  %12546 = vmatprep.subr.mxu0 %v6210_v52 }
0x312f   :  { %v5774_v1 = vpop.f32.mrf.mxu1  ;;  %12547 = vmatpush3.msra.mxu0 %v6210_v52 }
0x3130   :  { %6127 = vperm.xlu1 %13046, %v5774_v1   ;;  %12470 = vmatmul.mubr.msk.f32.gmra.mxu0 %vm4393_vm3, %v16461_v12 }
0x3131   :  { %12472 = vmatprep.mubr.msk.f32.mxu0 %vm4393_vm3, %v16462_v17  ;;  %v6209_v17 = vld [vmem:[%s16474_s9] sm:$0xff]  ;;  %v12541_v33 = vpop.f32.mrf.mxu1 }
0x3132   :  { %12548 = vmatprep.subr.mxu0 %v6209_v17 }
0x3133   :  { %12549 = vmatpush3.msra.mxu0 %v6209_v17  ;;  %v5784_v35 = vpop.f32.mrf.mxu1 }
0x3134   :  { %12473 = vmatmul.mubr.msk.f32.gmra.mxu0 %vm4393_vm3, %v16463_v61 }
0x3135   :  { %12475 = vmatprep.mubr.msk.f32.mxu0 %vm4393_vm3, %v16464_v6 }
0x3138   :  { %12476 = vmatmul.mubr.msk.f32.gmra.mxu0 %vm4393_vm3, %v16465_v60 }
0x3139   :  { %12478 = vmatprep.mubr.msk.f32.mxu0 %vm4393_vm3, %v16466_v13 }
0x313c   :  { %12479 = vmatmul.mubr.msk.f32.gmra.mxu0 %vm4393_vm3, %v16467_v9 }
0x313d   :  { %12481 = vmatprep.mubr.msk.f32.mxu0 %vm4393_vm3, %v16468_v18 }
0x3140   :  { %12482 = vmatmul.mubr.msk.f32.gmra.mxu0 %vm4393_vm3, %v16469_v59 }
0x3141   :  { %12484 = vmatprep.mubr.msk.f32.mxu0 %vm4393_vm3, %v16470_v22 }
0x3144   :  { %12485 = vmatmul.mubr.msk.f32.gmra.mxu0 %vm4393_vm3, %v16471_v3 }
0x3145   :  { %12487 = vmatprep.mubr.msk.f32.mxu0 %vm4393_vm3, %v16472_v27 }
0x3148   :  { %12488 = vmatmul.mubr.msk.f32.gmra.mxu0 %vm4393_vm3, %v16473_v7 }
0x3171   :  { %v15207_v34 = vpop.permute.xlu0 %5992 }
0x3173   :  { %v15209_v50 = vpop.permute.xlu1 %5987 }
0x3175   :  { %v15211_v37 = vpop.permute.xlu0 %6002 }
0x3177   :  { %v15213_v54 = vpop.permute.xlu1 %5997 }
0x3179   :  { %v15215_v8 = vpop.permute.xlu0 %6012 }
0x317b   :  { %v15217_v11 = vpop.permute.xlu1 %6007 }
0x317d   :  { %v15219_v38 = vpop.permute.xlu0 %6022 }
0x317f   :  { %v15221_v42 = vpop.permute.xlu1 %6017 }
0x3181   :  { %v15223_v24 = vpop.permute.xlu0 %6032 }
0x3183   :  { %v15225_v31 = vpop.permute.xlu1 %6027 }
0x3185   :  { %v15227_v26 = vpop.permute.xlu0 %6042 }
0x3187   :  { %v15229_v15 = vpop.permute.xlu1 %6037 }
0x3189   :  { %v15231_v40 = vpop.permute.xlu0 %6052 }
0x318b   :  { %v15233_v43 = vpop.permute.xlu1 %6047 }
0x318d   :  { %v15235_v0 = vpop.permute.xlu0 %6062 }
0x318f   :  { %v15237_v1 = vpop.permute.xlu1 %6057 }
0x3191   :  { %v15239_v62 = vpop.permute.xlu0 %6072 }
0x3193   :  { %v15241_v48 = vpop.permute.xlu1 %6067 }
0x3197   :  { %v15245_v52 = vpop.permute.xlu1 %6077 }
0x319b   :  { %v15249_v17 = vpop.permute.xlu1 %6087 }
0x31cc   :  { %v12444_v49 = vpop.f32.mrf.mxu0 }
0x31cd   :  { %5800 = vperm.xlu0 %13045, %v12444_v49   ;;  %v15243_v49 = vpop.permute.xlu0 %6082 }
0x31ce   :  { %v5407_v12 = vpop.f32.mrf.mxu0 }
0x31cf   :  { %5795 = vperm.xlu1 %13046, %v5407_v12  }
0x31d0   :  { %v12447_v61 = vpop.f32.mrf.mxu0 }
0x31d1   :  { %5810 = vperm.xlu0 %13045, %v12447_v61   ;;  %v15247_v12 = vpop.permute.xlu0 %6092 }
0x31d2   :  { %v5417_v6 = vpop.f32.mrf.mxu0 }
0x31d3   :  { %5805 = vperm.xlu1 %13046, %v5417_v6   ;;  %v15253_v6 = vpop.permute.xlu1 %6097 }
0x31d4   :  { %v12450_v60 = vpop.f32.mrf.mxu0 }
0x31d5   :  { %5820 = vperm.xlu0 %13045, %v12450_v60   ;;  %v15251_v61 = vpop.permute.xlu0 %6102 }
0x31d6   :  { %v5427_v13 = vpop.f32.mrf.mxu0 }
0x31d7   :  { %5815 = vperm.xlu1 %13046, %v5427_v13   ;;  %v15257_v13 = vpop.permute.xlu1 %6107 }
0x31d8   :  { %v12453_v9 = vpop.f32.mrf.mxu0 }
0x31d9   :  { %5830 = vperm.xlu0 %13045, %v12453_v9   ;;  %v15255_v60 = vpop.permute.xlu0 %6112 }
0x31da   :  { %v5437_v18 = vpop.f32.mrf.mxu0 }
0x31db   :  { %5825 = vperm.xlu1 %13046, %v5437_v18   ;;  %v15261_v18 = vpop.permute.xlu1 %6117 }
0x31dc   :  { %v12456_v59 = vpop.f32.mrf.mxu0 }
0x31dd   :  { %5840 = vperm.xlu0 %13045, %v12456_v59   ;;  %v15259_v9 = vpop.permute.xlu0 %6122 }
0x31de   :  { %v5447_v22 = vpop.f32.mrf.mxu0 }
0x31df   :  { %5835 = vperm.xlu1 %13046, %v5447_v22   ;;  %v15265_v22 = vpop.permute.xlu1 %6127 }
0x31e0   :  { %v12459_v3 = vpop.f32.mrf.mxu0 }
0x31e1   :  { %5850 = vperm.xlu0 %13045, %v12459_v3   ;;  %v15263_v59 = vpop.permute.xlu0 %6132 }
0x31e2   :  { %v5457_v27 = vpop.f32.mrf.mxu0 }
0x31e3   :  { %5845 = vperm.xlu1 %13046, %v5457_v27  }
0x31e4   :  { %v12462_v7 = vpop.f32.mrf.mxu0 }
0x31e5   :  { %5860 = vperm.xlu0 %13045, %v12462_v7  }
0x31e6   :  { %v5467_v25 = vpop.f32.mrf.mxu0 }
0x31e7   :  { %5855 = vperm.xlu1 %13046, %v5467_v25  }
0x31e8   :  { %v12465_v45 = vpop.f32.mrf.mxu0 }
0x31e9   :  { %5870 = vperm.xlu0 %13045, %v12465_v45  }
0x31ea   :  { %v5477_v30 = vpop.f32.mrf.mxu0 }
0x31eb   :  { %5865 = vperm.xlu1 %13046, %v5477_v30  }
0x31ec   :  { %v12468_v46 = vpop.f32.mrf.mxu0 }
0x31ed   :  { %5880 = vperm.xlu0 %13045, %v12468_v46  }
0x31ee   :  { %v5487_v2 = vpop.f32.mrf.mxu0 }
0x31ef   :  { %5875 = vperm.xlu1 %13046, %v5487_v2  }
0x31f0   :  { %v12471_v51 = vpop.f32.mrf.mxu0 }
0x31f1   :  { %5890 = vperm.xlu0 %13045, %v12471_v51  }
0x31f2   :  { %v5497_v44 = vpop.f32.mrf.mxu0 }
0x31f3   :  { %5885 = vperm.xlu1 %13046, %v5497_v44  }
0x31f4   :  { %v12474_v55 = vpop.f32.mrf.mxu0 }
0x31f5   :  { %5900 = vperm.xlu0 %13045, %v12474_v55  }
0x31f6   :  { %v5507_v47 = vpop.f32.mrf.mxu0 }
0x31f7   :  { %5895 = vperm.xlu1 %13046, %v5507_v47  }
0x31f8   :  { %v12477_v63 = vpop.f32.mrf.mxu0 }
0x31f9   :  { %5910 = vperm.xlu0 %13045, %v12477_v63  }
0x31fa   :  { %v5517_v58 = vpop.f32.mrf.mxu0 }
0x31fb   :  { %5905 = vperm.xlu1 %13046, %v5517_v58  }
0x31fc   :  { %v12480_v32 = vpop.f32.mrf.mxu0 }
0x31fd   :  { %5920 = vperm.xlu0 %13045, %v12480_v32  }
0x31fe   :  { %v5527_v41 = vpop.f32.mrf.mxu0 }
0x31ff   :  { %5915 = vperm.xlu1 %13046, %v5527_v41  }
0x3200   :  { %v12483_v28 = vpop.f32.mrf.mxu0 }
0x3201   :  { %5930 = vperm.xlu0 %13045, %v12483_v28  }
0x3202   :  { %v5537_v39 = vpop.f32.mrf.mxu0 }
0x3203   :  { %5925 = vperm.xlu1 %13046, %v5537_v39  }
0x3204   :  { %v12486_v57 = vpop.f32.mrf.mxu0 }
0x3205   :  { %5940 = vperm.xlu0 %13045, %v12486_v57  }
0x3206   :  { %v5547_v23 = vpop.f32.mrf.mxu0 }
0x3207   :  { %5935 = vperm.xlu1 %13046, %v5547_v23  }
0x3208   :  { %v12489_v29 = vpop.f32.mrf.mxu0 }
0x3209   :  { %5950 = vperm.xlu0 %13045, %v12489_v29  }
0x320a   :  { %v5557_v36 = vpop.f32.mrf.mxu0 }
0x320b   :  { %5945 = vperm.xlu1 %13046, %v5557_v36  }
0x320d   :  { %6142 = vperm.xlu0 %13045, %v12541_v33  }
0x320f   :  { %6137 = vperm.xlu1 %13046, %v5784_v35  }
0x3248   :  { %v5801_v3 = vpop.permute.xlu0 %5800 }
0x3249   :  { %v5954_v27 = vmul.f32 %v5801_v3, %v14877_v20 }
0x324a   :  { %v5796_v7 = vpop.permute.xlu1 %5795 }
0x324b   :  { %v5953_v25 = vmul.f32 %v5796_v7, %v14880_v16  ;;  %v6146_v45 = vadd.f32 %v15207_v34, %v5954_v27  ;;  %v16476_v7 = vld [vmem:[#allocation47_spill] sm:$0xff] }
0x324c   :  { %v5811_v30 = vpop.permute.xlu0 %5810 }
0x324d   :  { %v6145_v46 = vadd.f32 %v15209_v50, %v5953_v25  ;;  %v5956_v2 = vmul.f32 %v5811_v30, %v14887_v10  ;;  %v6178_v47 = vmax.f32 %v6146_v45, 0.0 }
0x324e   :  { %v5806_v51 = vpop.permute.xlu1 %5805 }
0x324f   :  { %v6177_v44 = vmax.f32 %v6145_v46, 0.0  ;;  %v5955_v55 = vmul.f32 %v5806_v51, %v14890_v53  ;;  %v6148_v63 = vadd.f32 %v15211_v37, %v5956_v2 }
0x3250   :  { %v5821_v58 = vpop.permute.xlu0 %5820 }
0x3251   :  { %v6147_v20 = vadd.f32 %v15213_v54, %v5955_v55  ;;  %v5958_v32 = vmul.f32 %v5821_v58, %v14899_v5  ;;  %12550 = vmatprep.mubr.msk.f32.mxu0 %vm227_vm0, %v6177_v44  ;;  %v6180_v50 = vmax.f32 %v6148_v63, 0.0  ;;  %v16478_v44 = vld [vmem:[#allocation49_spill] sm:$0xff] }
0x3252   :  { %12551 = vmatmul.mubr.msk.f32.vlgmr.msra.gmra.mxu0 %vm227_vm0, %v6178_v47  ;;  %v5816_v16 = vpop.permute.xlu1 %5815 }
0x3253   :  { %v6179_v34 = vmax.f32 %v6147_v20, 0.0  ;;  %v5957_v10 = vmul.f32 %v5816_v16, %v14902_v21  ;;  %v6150_v41 = vadd.f32 %v15215_v8, %v5958_v32 }
0x3254   :  { %v5831_v53 = vpop.permute.xlu0 %5830 }
0x3255   :  { %v6149_v28 = vadd.f32 %v15217_v11, %v5957_v10  ;;  %v5960_v37 = vmul.f32 %v5831_v53, %v14911_v14  ;;  %12553 = vmatprep.mubr.msk.f32.mxu0 %vm227_vm0, %v6179_v34  ;;  %v6182_v57 = vmax.f32 %v6150_v41, 0.0  ;;  %v16480_v34 = vld [vmem:[#allocation51_spill] sm:$0xff] }
0x3256   :  { %12554 = vmatmul.mubr.msk.f32.gmra.mxu0 %vm227_vm0, %v6180_v50  ;;  %v5826_v5 = vpop.permute.xlu1 %5825 }
0x3257   :  { %v6181_v54 = vmax.f32 %v6149_v28, 0.0  ;;  %v5959_v39 = vmul.f32 %v5826_v5, %v14914_v56  ;;  %v6152_v23 = vadd.f32 %v15219_v38, %v5960_v37  ;;  %v16475_v38 = vld [vmem:[#allocation46_spill] sm:$0xff] }
0x3258   :  { %v5841_v21 = vpop.permute.xlu0 %5840 }
0x3259   :  { %v6151_v29 = vadd.f32 %v15221_v42, %v5959_v39  ;;  %v5962_v8 = vmul.f32 %v5841_v21, %v14923_v19  ;;  %12556 = vmatprep.mubr.msk.f32.mxu0 %vm227_vm0, %v6181_v54  ;;  %v6184_v33 = vmax.f32 %v6152_v23, 0.0  ;;  %v16482_v54 = vld [vmem:[#allocation53_spill] sm:$0xff] }
0x325a   :  { %12557 = vmatmul.mubr.msk.f32.gmra.mxu0 %vm227_vm0, %v6182_v57  ;;  %v5836_v14 = vpop.permute.xlu1 %5835 }
0x325b   :  { %v6183_v11 = vmax.f32 %v6151_v29, 0.0  ;;  %v5961_v36 = vmul.f32 %v5836_v14, %v14926_v4  ;;  %v6154_v35 = vadd.f32 %v15223_v24, %v5962_v8  ;;  %v16477_v24 = vld [vmem:[#allocation48_spill] sm:$0xff] }
0x325c   :  { %v5851_v56 = vpop.permute.xlu0 %5850 }
0x325d   :  { %v6153_v3 = vadd.f32 %v15225_v31, %v5961_v36  ;;  %v5964_v27 = vmul.f32 %v5851_v56, %v16475_v38  ;;  %12559 = vmatprep.mubr.msk.f32.mxu0 %vm227_vm0, %v6183_v11  ;;  %v6186_v45 = vmax.f32 %v6154_v35, 0.0  ;;  %v16484_v11 = vld [vmem:[#allocation55_spill] sm:$0xff] }
0x325e   :  { %12560 = vmatmul.mubr.msk.f32.gmra.mxu0 %vm227_vm0, %v6184_v33  ;;  %v5846_v19 = vpop.permute.xlu1 %5845 }
0x325f   :  { %v6185_v42 = vmax.f32 %v6153_v3, 0.0  ;;  %v5963_v25 = vmul.f32 %v5846_v19, %v16476_v7  ;;  %v6156_v30 = vadd.f32 %v15227_v26, %v5964_v27  ;;  %v16479_v26 = vld [vmem:[#allocation50_spill] sm:$0xff]  ;;  %v16486_v19 = vld [vmem:[#allocation57_spill] sm:$0xff] }
0x3260   :  { %v5861_v4 = vpop.permute.xlu0 %5860 }
0x3261   :  { %v6155_v46 = vadd.f32 %v15229_v15, %v5963_v25  ;;  %v5966_v2 = vmul.f32 %v5861_v4, %v16477_v24  ;;  %12562 = vmatprep.mubr.msk.f32.mxu0 %vm227_vm0, %v6185_v42  ;;  %v6188_v47 = vmax.f32 %v6156_v30, 0.0  ;;  %v16488_v24 = vld [vmem:[#allocation59_spill] sm:$0xff] }
0x3262   :  { %12563 = vmatmul.mubr.msk.f32.gmra.mxu0 %vm227_vm0, %v6186_v45  ;;  %v5856_v31 = vpop.permute.xlu1 %5855 }
0x3263   :  { %v6187_v51 = vmax.f32 %v6155_v46, 0.0  ;;  %v5965_v55 = vmul.f32 %v5856_v31, %v16478_v44  ;;  %v6158_v63 = vadd.f32 %v15231_v40, %v5966_v2  ;;  %v16481_v40 = vld [vmem:[#allocation52_spill] sm:$0xff] }
0x3264   :  { %v5871_v58 = vpop.permute.xlu0 %5870 }
0x3265   :  { %v6157_v20 = vadd.f32 %v15233_v43, %v5965_v55  ;;  %v5968_v32 = vmul.f32 %v5871_v58, %v16479_v26  ;;  %12565 = vmatprep.mubr.msk.f32.mxu0 %vm227_vm0, %v6187_v51  ;;  %v6190_v50 = vmax.f32 %v6158_v63, 0.0  ;;  %v16490_v58 = vld [vmem:[#allocation61_spill] sm:$0xff] }
0x3266   :  { %12566 = vmatmul.mubr.msk.f32.gmra.mxu0 %vm227_vm0, %v6188_v47  ;;  %v5866_v15 = vpop.permute.xlu1 %5865 }
0x3267   :  { %v6189_v16 = vmax.f32 %v6157_v20, 0.0  ;;  %v5967_v10 = vmul.f32 %v5866_v15, %v16480_v34  ;;  %v6160_v41 = vadd.f32 %v15235_v0, %v5968_v32  ;;  %v16483_v0 = vld [vmem:[#allocation54_spill] sm:$0xff] }
0x3268   :  { %v5881_v53 = vpop.permute.xlu0 %5880 }
0x3269   :  { %v6159_v28 = vadd.f32 %v15237_v1, %v5967_v10  ;;  %v5970_v37 = vmul.f32 %v5881_v53, %v16481_v40  ;;  %12568 = vmatprep.mubr.msk.f32.mxu0 %vm227_vm0, %v6189_v16  ;;  %v6192_v57 = vmax.f32 %v6160_v41, 0.0 }
0x326a   :  { %12569 = vmatmul.mubr.msk.f32.gmra.mxu0 %vm227_vm0, %v6190_v50  ;;  %v5876_v43 = vpop.permute.xlu1 %5875  ;;  %v16492_v50 = vld [vmem:[#allocation63_spill] sm:$0xff] }
0x326b   :  { %v6191_v5 = vmax.f32 %v6159_v28, 0.0  ;;  %v5969_v39 = vmul.f32 %v5876_v43, %v16482_v54  ;;  %v6162_v23 = vadd.f32 %v15239_v62, %v5970_v37  ;;  %v16485_v62 = vld [vmem:[#allocation56_spill] sm:$0xff]  ;;  %v16494_v54 = vld [vmem:[#allocation65_spill] sm:$0xff] }
0x326c   :  { %v5891_v21 = vpop.permute.xlu0 %5890 }
0x326d   :  { %v6161_v29 = vadd.f32 %v15241_v48, %v5969_v39  ;;  %v5972_v8 = vmul.f32 %v5891_v21, %v16483_v0  ;;  %12571 = vmatprep.mubr.msk.f32.mxu0 %vm227_vm0, %v6191_v5  ;;  %v6194_v33 = vmax.f32 %v6162_v23, 0.0 }
0x326e   :  { %12572 = vmatmul.mubr.msk.f32.gmra.mxu0 %vm227_vm0, %v6192_v57  ;;  %v5886_v1 = vpop.permute.xlu1 %5885 }
0x326f   :  { %v6193_v14 = vmax.f32 %v6161_v29, 0.0  ;;  %v5971_v36 = vmul.f32 %v5886_v1, %v16484_v11  ;;  %v6164_v35 = vadd.f32 %v15243_v49, %v5972_v8  ;;  %v16487_v49 = vld [vmem:[#allocation58_spill] sm:$0xff]  ;;  %v16496_v11 = vld [vmem:[#allocation32_spill] sm:$0xff] }
0x3270   :  { %v5901_v56 = vpop.permute.xlu0 %5900  ;;  %v16495_v8 = vld [vmem:[#allocation66_spill] sm:$0xff] }
0x3271   :  { %v6163_v3 = vadd.f32 %v15245_v52, %v5971_v36  ;;  %v5974_v38 = vmul.f32 %v5901_v56, %v16485_v62  ;;  %12574 = vmatprep.mubr.msk.f32.mxu0 %vm227_vm0, %v6193_v14  ;;  %v6196_v7 = vmax.f32 %v6164_v35, 0.0 }
0x3272   :  { %12575 = vmatmul.mubr.msk.f32.gmra.mxu0 %vm227_vm0, %v6194_v33  ;;  %v5896_v48 = vpop.permute.xlu1 %5895 }
0x3273   :  { %v6195_v27 = vmax.f32 %v6163_v3, 0.0  ;;  %v5973_v42 = vmul.f32 %v5896_v48, %v16486_v19  ;;  %v6166_v25 = vadd.f32 %v15247_v12, %v5974_v38  ;;  %v16489_v12 = vld [vmem:[#allocation60_spill] sm:$0xff] }
0x3274   :  { %v5911_v45 = vpop.permute.xlu0 %5910 }
0x3275   :  { %v6165_v30 = vadd.f32 %v15249_v17, %v5973_v42  ;;  %v5976_v4 = vmul.f32 %v5911_v45, %v16487_v49  ;;  %12577 = vmatprep.mubr.msk.f32.mxu0 %vm227_vm0, %v6195_v27  ;;  %v6198_v31 = vmax.f32 %v6166_v25, 0.0 }
0x3276   :  { %12578 = vmatmul.mubr.msk.f32.gmra.mxu0 %vm227_vm0, %v6196_v7  ;;  %v5906_v52 = vpop.permute.xlu1 %5905 }
0x3277   :  { %v6197_v46 = vmax.f32 %v6165_v30, 0.0  ;;  %v5975_v2 = vmul.f32 %v5906_v52, %v16488_v24  ;;  %v6168_v51 = vadd.f32 %v15251_v61, %v5976_v4  ;;  %v16491_v61 = vld [vmem:[#allocation62_spill] sm:$0xff] }
0x3278   :  { %v5921_v44 = vpop.permute.xlu0 %5920 }
0x3279   :  { %v6167_v55 = vadd.f32 %v15253_v6, %v5975_v2  ;;  %v5978_v47 = vmul.f32 %v5921_v44, %v16489_v12  ;;  %12580 = vmatprep.mubr.msk.f32.mxu0 %vm227_vm0, %v6197_v46  ;;  %v6200_v26 = vmax.f32 %v6168_v51, 0.0  ;;  %v6701_v12 = vld [vmem:[%s16497_s13 + $0x8] sm:$0xff] }
0x327a   :  { %12581 = vmatmul.mubr.msk.f32.gmra.mxu0 %vm227_vm0, %v6198_v31  ;;  %v5916_v17 = vpop.permute.xlu1 %5915  ;;  %6768 = vmatprep.mubr.f32.mxu1 %v6701_v12 }
0x327b   :  { %v6199_v63 = vmax.f32 %v6167_v55, 0.0  ;;  %v5977_v20 = vmul.f32 %v5916_v17, %v16490_v58  ;;  %v6170_v32 = vadd.f32 %v15255_v60, %v5978_v47  ;;  %v16493_v60 = vld [vmem:[#allocation64_spill] sm:$0xff] }
0x327c   :  { %v5931_v15 = vpop.permute.xlu0 %5930 }
0x327d   :  { %v6169_v16 = vadd.f32 %v15257_v13, %v5977_v20  ;;  %v5980_v34 = vmul.f32 %v5931_v15, %v16491_v61  ;;  %12583 = vmatprep.mubr.msk.f32.mxu0 %vm227_vm0, %v6199_v63  ;;  %v6202_v53 = vmax.f32 %v6170_v32, 0.0 }
0x327e   :  { %12584 = vmatmul.mubr.msk.f32.gmra.mxu0 %vm227_vm0, %v6200_v26  ;;  %v5926_v6 = vpop.permute.xlu1 %5925 }
0x327f   :  { %v6201_v10 = vmax.f32 %v6169_v16, 0.0  ;;  %v5979_v41 = vmul.f32 %v5926_v6, %v16492_v50  ;;  %v6172_v28 = vadd.f32 %v15259_v9, %v5980_v34 }
0x3280   :  { %v5941_v40 = vpop.permute.xlu0 %5940 }
0x3281   :  { %v6171_v37 = vadd.f32 %v15261_v18, %v5979_v41  ;;  %v5982_v43 = vmul.f32 %v5941_v40, %v16493_v60  ;;  %12586 = vmatprep.mubr.msk.f32.mxu0 %vm227_vm0, %v6201_v10  ;;  %v6204_v57 = vmax.f32 %v6172_v28, 0.0 }
0x3282   :  { %12587 = vmatmul.mubr.msk.f32.gmra.mxu0 %vm227_vm0, %v6202_v53  ;;  %v5936_v13 = vpop.permute.xlu1 %5935 }
0x3283   :  { %v6203_v5 = vmax.f32 %v6171_v37, 0.0  ;;  %v5981_v39 = vmul.f32 %v5936_v13, %v16494_v54  ;;  %v6174_v23 = vadd.f32 %v15263_v59, %v5982_v43 }
0x3284   :  { %v5951_v21 = vpop.permute.xlu0 %5950 }
0x3285   :  { %v6173_v29 = vadd.f32 %v15265_v22, %v5981_v39  ;;  %12589 = vmatprep.mubr.msk.f32.mxu0 %vm227_vm0, %v6203_v5  ;;  %v6206_v0 = vmax.f32 %v6174_v23, 0.0  ;;  %v5984_v1 = vmul.f32 %v5951_v21, %v16495_v8 }
0x3286   :  { %12590 = vmatmul.mubr.msk.f32.gmra.mxu0 %vm227_vm0, %v6204_v57  ;;  %v5946_v9 = vpop.permute.xlu1 %5945 }
0x3287   :  { %v6205_v18 = vmax.f32 %v6173_v29, 0.0  ;;  %v5983_v36 = vmul.f32 %v5946_v9, %v16496_v11 }
0x3288   :  { %v6143_v14 = vpop.permute.xlu0 %6142 }
0x3289   :  { %12592 = vmatprep.mubr.msk.f32.mxu0 %vm227_vm0, %v6205_v18  ;;  %v6176_v33 = vadd.f32 %v6143_v14, %v5984_v1 }
0x328a   :  { %12593 = vmatmul.mubr.msk.f32.gmra.mxu0 %vm227_vm0, %v6206_v0  ;;  %v6138_v59 = vpop.permute.xlu1 %6137 }
0x328b   :  { %v6175_v35 = vadd.f32 %v6138_v59, %v5983_v36  ;;  %v6208_v56 = vmax.f32 %v6176_v33, 0.0 }
0x328d   :  { %v6207_v22 = vmax.f32 %v6175_v35, 0.0 }
0x328f   :  { %12595 = vmatprep.mubr.msk.f32.mxu0 %vm227_vm0, %v6207_v22 }
0x3290   :  { %12596 = vmatmul.mubr.msk.f32.gmra.mxu0 %vm227_vm0, %v6208_v56 }
0x3312   :  { %v15361_v3 = vpop.f32.mrf.mxu0 }
0x3313   :  { %v6536_v13 = vsel %vm6534_vm4, %v15361_v3, -inf }
0x3314   :  { %v15363_v62 = vpop.f32.mrf.mxu0 }
0x3315   :  { %v6535_v50 = vsel %vm6534_vm4, %v15363_v62, -inf }
0x3316   :  { %v15365_v38 = vpop.f32.mrf.mxu0 }
0x3317   :  { %v6538_v41 = vsel %vm6534_vm4, %v15365_v38, -inf }
0x3318   :  { %v15367_v48 = vpop.f32.mrf.mxu0 }
0x3319   :  { %v6537_v61 = vsel %vm6534_vm4, %v15367_v48, -inf }
0x331a   :  { %v15369_v27 = vpop.f32.mrf.mxu0 }
0x331b   :  { %v6541_v40 = vsel %vm6534_vm4, %v15369_v27, -inf }
0x331c   :  { %v15371_v19 = vpop.f32.mrf.mxu0  ;;  %v6542_v18 = vmax.f32 %v6536_v13, %v6541_v40 }
0x331d   :  { %v6539_v34 = vsel %vm6534_vm4, %v15371_v19, -inf }
0x331e   :  { %v15373_v42 = vpop.f32.mrf.mxu0  ;;  %v6540_v5 = vmax.f32 %v6535_v50, %v6539_v34 }
0x331f   :  { %v6545_v6 = vsel %vm6534_vm4, %v15373_v42, -inf }
0x3320   :  { %v15375_v7 = vpop.f32.mrf.mxu0  ;;  %v6546_v54 = vmax.f32 %v6538_v41, %v6545_v6 }
0x3321   :  { %v6543_v16 = vsel %vm6534_vm4, %v15375_v7, -inf }
0x3322   :  { %v15377_v25 = vpop.f32.mrf.mxu0  ;;  %v6544_v53 = vmax.f32 %v6537_v61, %v6543_v16 }
0x3323   :  { %v6549_v23 = vsel %vm6534_vm4, %v15377_v25, -inf }
0x3324   :  { %v15379_v45 = vpop.f32.mrf.mxu0  ;;  %v6550_v59 = vmax.f32 %v6542_v18, %v6549_v23 }
0x3325   :  { %v6547_v37 = vsel %vm6534_vm4, %v15379_v45, -inf }
0x3326   :  { %v15381_v30 = vpop.f32.mrf.mxu0  ;;  %v6548_v0 = vmax.f32 %v6540_v5, %v6547_v37 }
0x3327   :  { %v6553_v60 = vsel %vm6534_vm4, %v15381_v30, -inf }
0x3328   :  { %v15383_v49 = vpop.f32.mrf.mxu0  ;;  %v6554_v8 = vmax.f32 %v6546_v54, %v6553_v60 }
0x3329   :  { %v6551_v10 = vsel %vm6534_vm4, %v15383_v49, -inf }
0x332a   :  { %v15385_v4 = vpop.f32.mrf.mxu0  ;;  %v6552_v39 = vmax.f32 %v6544_v53, %v6551_v10 }
0x332b   :  { %v6557_v14 = vsel %vm6534_vm4, %v15385_v4, -inf }
0x332c   :  { %v15387_v52 = vpop.f32.mrf.mxu0  ;;  %v6558_v10 = vmax.f32 %v6550_v59, %v6557_v14 }
0x332d   :  { %v6555_v21 = vsel %vm6534_vm4, %v15387_v52, -inf }
0x332e   :  { %v15389_v46 = vpop.f32.mrf.mxu0  ;;  %v6556_v35 = vmax.f32 %v6548_v0, %v6555_v21 }
0x332f   :  { %v6561_v29 = vsel %vm6534_vm4, %v15389_v46, -inf }
0x3330   :  { %v15391_v24 = vpop.f32.mrf.mxu0  ;;  %v6562_v22 = vmax.f32 %v6554_v8, %v6561_v29 }
0x3331   :  { %v6559_v43 = vsel %vm6534_vm4, %v15391_v24, -inf }
0x3332   :  { %v15393_v2 = vpop.f32.mrf.mxu0  ;;  %v6560_v1 = vmax.f32 %v6552_v39, %v6559_v43 }
0x3333   :  { %v6565_v16 = vsel %vm6534_vm4, %v15393_v2, -inf }
0x3334   :  { %v15395_v31 = vpop.f32.mrf.mxu0  ;;  %v6566_v13 = vmax.f32 %v6558_v10, %v6565_v16 }
0x3335   :  { %v6563_v11 = vsel %vm6534_vm4, %v15395_v31, -inf }
0x3336   :  { %v15397_v51 = vpop.f32.mrf.mxu0  ;;  %v6564_v50 = vmax.f32 %v6556_v35, %v6563_v11 }
0x3337   :  { %v6569_v36 = vsel %vm6534_vm4, %v15397_v51, -inf }
0x3338   :  { %v15399_v44 = vpop.f32.mrf.mxu0  ;;  %v6570_v41 = vmax.f32 %v6562_v22, %v6569_v36 }
0x3339   :  { %v6567_v9 = vsel %vm6534_vm4, %v15399_v44, -inf }
0x333a   :  { %v15401_v55 = vpop.f32.mrf.mxu0  ;;  %v6568_v56 = vmax.f32 %v6560_v1, %v6567_v9 }
0x333b   :  { %v6573_v40 = vsel %vm6534_vm4, %v15401_v55, -inf }
0x333c   :  { %v15404_v47 = vpop.f32.mrf.mxu0  ;;  %v6574_v9 = vmax.f32 %v6566_v13, %v6573_v40 }
0x333d   :  { %v6571_v61 = vsel %vm6534_vm4, %v15404_v47, -inf }
0x333e   :  { %v15406_v17 = vpop.f32.mrf.mxu0  ;;  %v6572_v5 = vmax.f32 %v6564_v50, %v6571_v61 }
0x333f   :  { %v6577_v34 = vsel %vm6534_vm4, %v15406_v17, -inf }
0x3340   :  { %v15408_v63 = vpop.f32.mrf.mxu0  ;;  %v6578_v54 = vmax.f32 %v6570_v41, %v6577_v34 }
0x3341   :  { %v6575_v33 = vsel %vm6534_vm4, %v15408_v63, -inf }
0x3342   :  { %v15410_v58 = vpop.f32.mrf.mxu0  ;;  %v6576_v53 = vmax.f32 %v6568_v56, %v6575_v33 }
0x3343   :  { %v6581_v23 = vsel %vm6534_vm4, %v15410_v58, -inf }
0x3344   :  { %v15412_v20 = vpop.f32.mrf.mxu0  ;;  %v6582_v14 = vmax.f32 %v6574_v9, %v6581_v23 }
0x3345   :  { %v6579_v37 = vsel %vm6534_vm4, %v15412_v20, -inf }
0x3346   :  { %v15414_v26 = vpop.f32.mrf.mxu0  ;;  %v6580_v18 = vmax.f32 %v6572_v5, %v6579_v37 }
0x3347   :  { %v6585_v60 = vsel %vm6534_vm4, %v15414_v26, -inf }
0x3348   :  { %v15416_v32 = vpop.f32.mrf.mxu0  ;;  %v6586_v0 = vmax.f32 %v6578_v54, %v6585_v60 }
0x3349   :  { %v6583_v6 = vsel %vm6534_vm4, %v15416_v32, -inf }
0x334a   :  { %v15418_v15 = vpop.f32.mrf.mxu0  ;;  %v6584_v39 = vmax.f32 %v6576_v53, %v6583_v6 }
0x334b   :  { %v6589_v1 = vsel %vm6534_vm4, %v15418_v15, -inf }
0x334c   :  { %v15434_v28 = vpop.f32.mrf.mxu0  ;;  %v6590_v33 = vmax.f32 %v6582_v14, %v6589_v1 }
0x334d   :  { %v6587_v21 = vsel %vm6534_vm4, %v15434_v28, -inf }
0x334e   :  { %v6588_v11 = vmax.f32 %v6580_v18, %v6587_v21 }
0x3350   :  { %v12597_v57 = vpop.f32.mrf.mxu0  ;;  %v6595_v35 = vmax.f32 %v6588_v11, %v6590_v33 }
0x3351   :  { %v6593_v29 = vsel %vm6534_vm4, %v12597_v57, -inf }
0x3352   :  { %v6525_v12 = vpop.f32.mrf.mxu0  ;;  %v6594_v36 = vmax.f32 %v6586_v0, %v6593_v29 }
0x3353   :  { %v6591_v43 = vsel %vm6534_vm4, %v6525_v12, -inf }
0x3354   :  { %v6592_v8 = vmax.f32 %v6584_v39, %v6591_v43 }
0x3356   :  { %v6596_v59 = vmax.f32 %v6592_v8, %v6594_v36 }
0x3358   :  { %v6597_v22 = vmax.f32 %v6595_v35, %v6596_v59 }
0x335a   :  { %v6598_v56 = vrot.slane %v6597_v22, 4 }
0x335c   :  { %v6599_v16 = vmax.f32 %v6597_v22, %v6598_v56 }
0x335e   :  { %v6600_v61 = vrot.slane %v6599_v16, 2 }
0x3360   :  { %v6601_v34 = vmax.f32 %v6599_v16, %v6600_v61 }
0x3362   :  { %v6602_v6 = vrot.slane %v6601_v34, 1 }
0x3364   :  { %v15484_v10 = vmax.f32 %v6601_v34, %v6602_v6 }
0x3366   :  { %v6619_v50 = vsub.f32 %v15389_v46, %v15484_v10  ;;  %v6635_v41 = vsub.f32 %v12597_v57, %v15484_v10  ;;  %v6634_v53 = vsub.f32 %v6525_v12, %v15484_v10  ;;  %v6618_v40 = vsub.f32 %v15391_v24, %v15484_v10 }
0x3367   :  { %v6633_v60 = vsub.f32 %v15418_v15, %v15484_v10  ;;  %v6617_v13 = vsub.f32 %v15385_v4, %v15484_v10  ;;  %v6632_v54 = vsub.f32 %v15434_v28, %v15484_v10  ;;  %v6616_v46 = vsub.f32 %v15387_v52, %v15484_v10 }
0x3368   :  { %v6666_v37 = vmul.f32 1.442695, %v6619_v50  ;;  %v6698_v43 = vmul.f32 1.442695, %v6635_v41  ;;  %v6696_v5 = vmul.f32 1.442695, %v6634_v53  ;;  %v6631_v24 = vsub.f32 %v15414_v26, %v15484_v10 }
0x3369   :  { %v6664_v57 = vmul.f32 1.442695, %v6618_v40  ;;  %v6694_v12 = vmul.f32 1.442695, %v6633_v60  ;;  %v6615_v15 = vsub.f32 %v15381_v30, %v15484_v10  ;;  %v6662_v39 = vmul.f32 1.442695, %v6617_v13 }
0x336a   :  { %13243 = vpow2.f32 %v6666_v37  ;;  %v6630_v4 = vsub.f32 %v15416_v32, %v15484_v10  ;;  %v6692_v23 = vmul.f32 1.442695, %v6632_v54  ;;  %v6614_v28 = vsub.f32 %v15383_v49, %v15484_v10 }
0x336b   :  { %13245 = vpow2.f32 %v6698_v43  ;;  %v6660_v52 = vmul.f32 1.442695, %v6616_v46  ;;  %v6629_v21 = vsub.f32 %v15410_v58, %v15484_v10  ;;  %v6690_v26 = vmul.f32 1.442695, %v6631_v24 }
0x336c   :  { %13247 = vpow2.f32 %v6696_v5  ;;  %v6613_v29 = vsub.f32 %v15377_v25, %v15484_v10  ;;  %v6658_v30 = vmul.f32 1.442695, %v6615_v15  ;;  %v6628_v9 = vsub.f32 %v15412_v20, %v15484_v10 }
0x336d   :  { %13249 = vpow2.f32 %v6664_v57  ;;  %v6688_v32 = vmul.f32 1.442695, %v6630_v4  ;;  %v6612_v49 = vsub.f32 %v15379_v45, %v15484_v10  ;;  %v6656_v18 = vmul.f32 1.442695, %v6614_v28 }
0x336e   :  { %13251 = vpow2.f32 %v6694_v12  ;;  %v6627_v58 = vsub.f32 %v15406_v17, %v15484_v10  ;;  %v6686_v0 = vmul.f32 1.442695, %v6629_v21  ;;  %v6611_v25 = vsub.f32 %v15373_v42, %v15484_v10 }
0x336f   :  { %13253 = vpow2.f32 %v6662_v39  ;;  %v6654_v8 = vmul.f32 1.442695, %v6613_v29  ;;  %v6626_v20 = vsub.f32 %v15408_v63, %v15484_v10  ;;  %v6684_v1 = vmul.f32 1.442695, %v6628_v9 }
0x3370   :  { %13255 = vpow2.f32 %v6692_v23  ;;  %v6610_v45 = vsub.f32 %v15375_v7, %v15484_v10  ;;  %v6652_v14 = vmul.f32 1.442695, %v6612_v49  ;;  %v6625_v17 = vsub.f32 %v15401_v55, %v15484_v10 }
0x3371   :  { %13257 = vpow2.f32 %v6660_v52  ;;  %v6682_v36 = vmul.f32 1.442695, %v6627_v58  ;;  %v6609_v33 = vsub.f32 %v15369_v27, %v15484_v10  ;;  %v6650_v63 = vmul.f32 1.442695, %v6611_v25 }
0x3372   :  { %13259 = vpow2.f32 %v6690_v26  ;;  %v6624_v59 = vsub.f32 %v15404_v47, %v15484_v10  ;;  %v6680_v7 = vmul.f32 1.442695, %v6626_v20  ;;  %v6608_v55 = vsub.f32 %v15371_v19, %v15484_v10 }
0x3373   :  { %13261 = vpow2.f32 %v6658_v30  ;;  %v6648_v22 = vmul.f32 1.442695, %v6610_v45  ;;  %v6623_v27 = vsub.f32 %v15397_v51, %v15484_v10  ;;  %v6678_v16 = vmul.f32 1.442695, %v6625_v17  ;;  %v6702_v45 = vld [vmem:[%s16497_s13 + $0x10] sm:$0xff] }
0x3374   :  { %13263 = vpow2.f32 %v6688_v32  ;;  %v6607_v61 = vsub.f32 %v15365_v38, %v15484_v10  ;;  %v6646_v34 = vmul.f32 1.442695, %v6609_v33  ;;  %v6622_v6 = vsub.f32 %v15399_v44, %v15484_v10 }
0x3375   :  { %13265 = vpow2.f32 %v6656_v18  ;;  %v6676_v50 = vmul.f32 1.442695, %v6624_v59  ;;  %v6606_v41 = vsub.f32 %v15367_v48, %v15484_v10  ;;  %v6644_v53 = vmul.f32 1.442695, %v6608_v55 }
0x3376   :  { %13267 = vpow2.f32 %v6686_v0  ;;  %v6621_v40 = vsub.f32 %v15393_v2, %v15484_v10  ;;  %v6674_v37 = vmul.f32 1.442695, %v6623_v27  ;;  %v6605_v60 = vsub.f32 %v15361_v3, %v15484_v10  ;;  %v6782_v27 = vld [vmem:[%s16498_s17 + $0x8] sm:$0xff] }
0x3377   :  { %v15524_v11 = vpop.eup %13243  ;;  %13269 = vpow2.f32 %v6654_v8  ;;  %v6642_v43 = vmul.f32 1.442695, %v6607_v61  ;;  %v6620_v13 = vsub.f32 %v15395_v31, %v15484_v10  ;;  %v6672_v5 = vmul.f32 1.442695, %v6622_v6  ;;  %v6700_v8 = vld [vmem:[%s16497_s13] sm:$0xff]  ;;  %v6784_v61 = vld [vmem:[%s16498_s17 + $0x18] sm:$0xff] }
0x3378   :  { %v15528_v42 = vpop.eup %13245  ;;  %13271 = vpow2.f32 %v6684_v1  ;;  %v6604_v54 = vsub.f32 %v15363_v62, %v15484_v10  ;;  %v6640_v46 = vmul.f32 1.442695, %v6606_v41  ;;  %v6670_v57 = vmul.f32 1.442695, %v6621_v40  ;;  %v6703_v1 = vld [vmem:[%s16497_s13 + $0x18] sm:$0xff]  ;;  %v6786_v6 = vld [vmem:[%s16498_s17 + $0x28] sm:$0xff] }
0x3379   :  { %11557 = vmatprep.subr.mxu1 %v15528_v42  ;;  %v15535_v35 = vpop.eup %13247  ;;  %13273 = vpow2.f32 %v6652_v14  ;;  %v6638_v24 = vmul.f32 1.442695, %v6605_v60  ;;  %v6668_v15 = vmul.f32 1.442695, %v6620_v13  ;;  %v6781_v14 = vld [vmem:[%s16498_s17] sm:$0xff]  ;;  %v6788_v41 = vld [vmem:[%s16498_s17 + $0x38] sm:$0xff] }
0x337a   :  { %11558 = vmatpush3.msra.mxu1 %v15524_v11  ;;  %v15540_v56 = vpop.eup %13249  ;;  %13275 = vpow2.f32 %v6682_v36  ;;  %v6636_v10 = vmul.f32 1.442695, %v6604_v54  ;;  %v6790_v40 = vld [vmem:[%s16498_s17 + $0x48] sm:$0xff]  ;;  %v6792_v60 = vld [vmem:[%s16498_s17 + $0x58] sm:$0xff] }
0x337b   :  { %11559 = vmatprep.subr.mxu1 %v15535_v35  ;;  %v15545_v47 = vpop.eup %13251  ;;  %13277 = vpow2.f32 %v6650_v63  ;;  %v6794_v13 = vld [vmem:[%s16498_s17 + $0x68] sm:$0xff]  ;;  %v6796_v54 = vld [vmem:[%s16498_s17 + $0x78] sm:$0xff] }
0x337c   :  { %11560 = vmatpush3.msra.mxu1 %v15540_v56  ;;  %v15550_v19 = vpop.eup %13253  ;;  %13279 = vpow2.f32 %v6680_v7 }
0x337d   :  { %11561 = vmatprep.subr.mxu1 %v15545_v47  ;;  %v15555_v51 = vpop.eup %13255  ;;  %13281 = vpow2.f32 %v6648_v22 }
0x337e   :  { %11562 = vmatpush3.msra.mxu1 %v15550_v19  ;;  %v15560_v38 = vpop.eup %13257  ;;  %13283 = vpow2.f32 %v6678_v16  ;;  %v6783_v16 = vld [vmem:[%s16498_s17 + $0x10] sm:$0xff] }
0x337f   :  { %11563 = vmatprep.subr.mxu1 %v15555_v51  ;;  %v15565_v44 = vpop.eup %13259  ;;  %13285 = vpow2.f32 %v6646_v34  ;;  %v6785_v34 = vld [vmem:[%s16498_s17 + $0x20] sm:$0xff] }
0x3380   :  { %11564 = vmatpush3.msra.mxu1 %v15560_v38  ;;  %v15570_v48 = vpop.eup %13261  ;;  %13287 = vpow2.f32 %v6676_v50  ;;  %v6787_v50 = vld [vmem:[%s16498_s17 + $0x30] sm:$0xff] }
0x3381   :  { %11565 = vmatprep.subr.mxu1 %v15565_v44  ;;  %v15575_v2 = vpop.eup %13263  ;;  %13289 = vpow2.f32 %v6644_v53  ;;  %v6789_v53 = vld [vmem:[%s16498_s17 + $0x40] sm:$0xff] }
0x3382   :  { %11566 = vmatpush3.msra.mxu1 %v15570_v48  ;;  %v15580_v3 = vpop.eup %13265  ;;  %13291 = vpow2.f32 %v6674_v37  ;;  %v6791_v37 = vld [vmem:[%s16498_s17 + $0x50] sm:$0xff] }
0x3383   :  { %11567 = vmatprep.subr.mxu1 %v15575_v2  ;;  %v15583_v31 = vpop.eup %13267  ;;  %13293 = vpow2.f32 %v6642_v43  ;;  %v6793_v43 = vld [vmem:[%s16498_s17 + $0x60] sm:$0xff] }
0x3384   :  { %11568 = vmatpush3.msra.mxu1 %v15580_v3  ;;  %v15586_v12 = vpop.eup %13269  ;;  %13295 = vpow2.f32 %v6672_v5  ;;  %v6795_v5 = vld [vmem:[%s16498_s17 + $0x70] sm:$0xff] }
0x3385   :  { %11569 = vmatprep.subr.mxu1 %v15583_v31  ;;  %v15589_v62 = vpop.eup %13271  ;;  %13297 = vpow2.f32 %v6640_v46  ;;  %v6797_v46 = vld [vmem:[%s16498_s17 + $0x80] sm:$0xff] }
0x3386   :  { %11570 = vmatpush3.msra.mxu1 %v15586_v12  ;;  %v15592_v39 = vpop.eup %13273  ;;  %13299 = vpow2.f32 %v6670_v57  ;;  %v6798_v57 = vld [vmem:[%s16498_s17 + $0x88] sm:$0xff] }
0x3387   :  { %11571 = vmatprep.subr.mxu1 %v15589_v62  ;;  %v15595_v4 = vpop.eup %13275  ;;  %13301 = vpow2.f32 %v6638_v24  ;;  %v6799_v24 = vld [vmem:[%s16498_s17 + $0x90] sm:$0xff] }
0x3388   :  { %11572 = vmatpush3.msra.mxu1 %v15592_v39  ;;  %v15598_v23 = vpop.eup %13277  ;;  %13303 = vpow2.f32 %v6668_v15  ;;  %v6800_v15 = vld [vmem:[%s16498_s17 + $0x98] sm:$0xff] }
0x3389   :  { %11573 = vmatprep.subr.mxu1 %v15595_v4  ;;  %v15601_v28 = vpop.eup %13279  ;;  %13305 = vpow2.f32 %v6636_v10  ;;  %v6801_v10 = vld [vmem:[%s16498_s17 + $0xa0] sm:$0xff] }
0x338a   :  { %11574 = vmatpush3.msra.mxu1 %v15598_v23  ;;  %v15604_v52 = vpop.eup %13281 }
0x338b   :  { %11575 = vmatprep.subr.mxu1 %v15601_v28  ;;  %v15607_v21 = vpop.eup %13283 }
0x338c   :  { %11576 = vmatpush3.msra.mxu1 %v15604_v52  ;;  %v15610_v26 = vpop.eup %13285 }
0x338d   :  { %11577 = vmatprep.subr.mxu1 %v15607_v21  ;;  %v15613_v29 = vpop.eup %13287 }
0x338e   :  { %11578 = vmatpush3.msra.mxu1 %v15610_v26  ;;  %v15616_v30 = vpop.eup %13289 }
0x338f   :  { %11579 = vmatprep.subr.mxu1 %v15613_v29  ;;  %v15619_v9 = vpop.eup %13291 }
0x3390   :  { %11580 = vmatpush3.msra.mxu1 %v15616_v30  ;;  %v15622_v32 = vpop.eup %13293 }
0x3391   :  { %11581 = vmatprep.subr.mxu1 %v15619_v9  ;;  %v15625_v49 = vpop.eup %13295 }
0x3392   :  { %11582 = vmatpush3.msra.mxu1 %v15622_v32  ;;  %v15628_v18 = vpop.eup %13297 }
0x3393   :  { %11583 = vmatprep.subr.mxu1 %v15625_v49  ;;  %v15631_v58 = vpop.eup %13299 }
0x3394   :  { %11584 = vmatpush3.msra.mxu1 %v15628_v18  ;;  %v15634_v0 = vpop.eup %13301 }
0x3395   :  { %11585 = vmatprep.subr.mxu1 %v15631_v58  ;;  %v15637_v25 = vpop.eup %13303 }
0x3396   :  { %11586 = vmatpush3.msra.mxu1 %v15634_v0  ;;  %v15641_v20 = vpop.eup %13305 }
0x3397   :  { %11587 = vmatprep.subr.mxu1 %v15637_v25 }
0x3398   :  { %11588 = vmatpush3.msra.mxu1 %v15641_v20 }
0x3399   :  { %6769 = vmatmul.mubr.f32.vlgmr.msra.gmra.mxu1 %v6700_v8  ;;  %v6802_v8 = vld [vmem:[%s16498_s17 + $0xa8] sm:$0xff] }
0x339a   :  { %6773 = vmatprep.mubr.f32.mxu1 %v6703_v1  ;;  %v6803_v1 = vld [vmem:[%s16498_s17 + $0xb0] sm:$0xff] }
0x339d   :  { %6774 = vmatmul.mubr.f32.gmra.mxu1 %v6702_v45  ;;  %v6804_v45 = vld [vmem:[%s16498_s17 + $0xb8] sm:$0xff] }
0x339e   :  { %12602 = vmatprep.mubr.msk.f32.mxu1 %vm4393_vm3, %v6781_v14  ;;  %v6805_v14 = vld [vmem:[%s16498_s17 + $0xc0] sm:$0xff] }
0x3459   :  { %v11589_v17 = vpop.f32.mrf.mxu1 }
0x345b   :  { %v11590_v36 = vpop.f32.mrf.mxu1 }
0x345c   :  { %v11591_v59 = vadd.f32 %v11590_v36, %v11589_v17  ;;  %v6806_v17 = vld [vmem:[%s16498_s17 + $0xc8] sm:$0xff]  ;;  %v6807_v36 = vld [vmem:[%s16498_s17 + $0xd0] sm:$0xff] }
0x345d   :  { %v11592_v33 = vpop.f32.mrf.mxu1 }
0x345f   :  { %v11593_v63 = vpop.f32.mrf.mxu1 }
0x3460   :  { %v11594_v7 = vadd.f32 %v11593_v63, %v11592_v33  ;;  %v6808_v33 = vld [vmem:[%s16498_s17 + $0xd8] sm:$0xff]  ;;  %v6809_v63 = vld [vmem:[%s16498_s17 + $0xe0] sm:$0xff] }
0x3462   :  { %13307 = vrcp.f32 %v11594_v7  ;;  %v6811_v7 = vld [vmem:[%s16498_s17 + $0xf0] sm:$0xff] }
0x3463   :  { %13309 = vrcp.f32 %v11591_v59  ;;  %v6810_v59 = vld [vmem:[%s16498_s17 + $0xe8] sm:$0xff] }
0x346f   :  { %v13308_v55 = vpop.eup %13307 }
0x3470   :  { %12598 = vmatprep.subr.mxu1 %v13308_v55  ;;  %v13310_v22 = vpop.eup %13309 }
0x3471   :  { %12599 = vmatpush3.msra.mxu1 %v13308_v55  ;;  %v6812_v55 = vld [vmem:[%s16498_s17 + $0xf8] sm:$0xff] }
0x3472   :  { %12600 = vmatprep.subr.mxu1 %v13310_v22 }
0x3473   :  { %12601 = vmatpush3.msra.mxu1 %v13310_v22 }
0x3474   :  { %12603 = vmatmul.mubr.msk.f32.vlgmr.msra.gmra.mxu1 %vm4393_vm3, %v6782_v27 }
0x3475   :  { %12605 = vmatprep.mubr.msk.f32.mxu1 %vm4393_vm3, %v6783_v16 }
0x3478   :  { %12606 = vmatmul.mubr.msk.f32.gmra.mxu1 %vm4393_vm3, %v6784_v61 }
0x3479   :  { %12608 = vmatprep.mubr.msk.f32.mxu1 %vm4393_vm3, %v6785_v34 }
0x347c   :  { %12609 = vmatmul.mubr.msk.f32.gmra.mxu1 %vm4393_vm3, %v6786_v6 }
0x347d   :  { %12611 = vmatprep.mubr.msk.f32.mxu1 %vm4393_vm3, %v6787_v50 }
0x3480   :  { %12612 = vmatmul.mubr.msk.f32.gmra.mxu1 %vm4393_vm3, %v6788_v41 }
0x3481   :  { %12614 = vmatprep.mubr.msk.f32.mxu1 %vm4393_vm3, %v6789_v53 }
0x3484   :  { %12615 = vmatmul.mubr.msk.f32.gmra.mxu1 %vm4393_vm3, %v6790_v40 }
0x3485   :  { %12617 = vmatprep.mubr.msk.f32.mxu1 %vm4393_vm3, %v6791_v37 }
0x3488   :  { %12618 = vmatmul.mubr.msk.f32.gmra.mxu1 %vm4393_vm3, %v6792_v60 }
0x3489   :  { %12620 = vmatprep.mubr.msk.f32.mxu1 %vm4393_vm3, %v6793_v43 }
0x348c   :  { %12621 = vmatmul.mubr.msk.f32.gmra.mxu1 %vm4393_vm3, %v6794_v13 }
0x348d   :  { %12623 = vmatprep.mubr.msk.f32.mxu1 %vm4393_vm3, %v6795_v5 }
0x3490   :  { %12624 = vmatmul.mubr.msk.f32.gmra.mxu1 %vm4393_vm3, %v6796_v54 }
0x3491   :  { %12626 = vmatprep.mubr.msk.f32.mxu1 %vm4393_vm3, %v6797_v46 }
0x3494   :  { %12627 = vmatmul.mubr.msk.f32.gmra.mxu1 %vm4393_vm3, %v6798_v57 }
0x3495   :  { %12629 = vmatprep.mubr.msk.f32.mxu1 %vm4393_vm3, %v6799_v24 }
0x3498   :  { %12630 = vmatmul.mubr.msk.f32.gmra.mxu1 %vm4393_vm3, %v6800_v15 }
0x3499   :  { %12632 = vmatprep.mubr.msk.f32.mxu1 %vm4393_vm3, %v6801_v10 }
0x349c   :  { %12633 = vmatmul.mubr.msk.f32.gmra.mxu1 %vm4393_vm3, %v6802_v8 }
0x349d   :  { %12635 = vmatprep.mubr.msk.f32.mxu1 %vm4393_vm3, %v6803_v1 }
0x34a0   :  { %12636 = vmatmul.mubr.msk.f32.gmra.mxu1 %vm4393_vm3, %v6804_v45 }
0x34a1   :  { %12638 = vmatprep.mubr.msk.f32.mxu1 %vm4393_vm3, %v6805_v14 }
0x34a4   :  { %12639 = vmatmul.mubr.msk.f32.gmra.mxu1 %vm4393_vm3, %v6806_v17 }
0x34a5   :  { %12641 = vmatprep.mubr.msk.f32.mxu1 %vm4393_vm3, %v6807_v36 }
0x34a8   :  { %12642 = vmatmul.mubr.msk.f32.gmra.mxu1 %vm4393_vm3, %v6808_v33 }
0x34a9   :  { %12644 = vmatprep.mubr.msk.f32.mxu1 %vm4393_vm3, %v6809_v63 }
0x34ac   :  { %12645 = vmatmul.mubr.msk.f32.gmra.mxu1 %vm4393_vm3, %v6810_v59 }
0x34ad   :  { %12647 = vmatprep.mubr.msk.f32.mxu1 %vm4393_vm3, %v6811_v7 }
0x34b0   :  { %12648 = vmatmul.mubr.msk.f32.gmra.mxu1 %vm4393_vm3, %v6812_v55 }
0x3534   :  { %v15711_v22 = vpop.f32.mrf.mxu1 }
0x3536   :  { %v15713_v27 = vpop.f32.mrf.mxu1 }
0x3538   :  { %v12607_v16 = vpop.f32.mrf.mxu1 }
0x353a   :  { %v6985_v61 = vpop.f32.mrf.mxu1 }
0x353c   :  { %v12610_v34 = vpop.f32.mrf.mxu1 }
0x353e   :  { %v6995_v6 = vpop.f32.mrf.mxu1 }
0x3540   :  { %v12613_v50 = vpop.f32.mrf.mxu1 }
0x3541   :  { %v7141_v41 = vmul.f32 %v15598_v23, %v12613_v50 }
0x3542   :  { %v7005_v53 = vpop.f32.mrf.mxu1 }
0x3543   :  { %7235 = vperm.xlu0 %13045, %v7141_v41   ;;  %v7140_v59 = vmul.f32 %v15604_v52, %v7005_v53  ;;  %v7137_v52 = vmul.f32 %v15622_v32, %v12607_v16 }
0x3544   :  { %v12616_v40 = vpop.f32.mrf.mxu1 }
0x3545   :  { %v7143_v37 = vmul.f32 %v15586_v12, %v12616_v40 }
0x3546   :  { %v7015_v60 = vpop.f32.mrf.mxu1 }
0x3547   :  { %7245 = vperm.xlu0 %13045, %v7143_v37   ;;  %v7142_v13 = vmul.f32 %v15592_v39, %v7015_v60 }
0x3548   :  { %v12619_v43 = vpop.f32.mrf.mxu1 }
0x3549   :  { %v7145_v46 = vmul.f32 %v15570_v48, %v12619_v43 }
0x354a   :  { %v7025_v5 = vpop.f32.mrf.mxu1 }
0x354b   :  { %7240 = vperm.xlu0 %13045, %v7142_v13   ;;  %v7144_v23 = vmul.f32 %v15580_v3, %v7025_v5 }
0x354c   :  { %v12622_v54 = vpop.f32.mrf.mxu1 }
0x354d   :  { %v7147_v12 = vmul.f32 %v15550_v19, %v12622_v54 }
0x354e   :  { %v7035_v57 = vpop.f32.mrf.mxu1 }
0x354f   :  { %7255 = vperm.xlu0 %13045, %v7145_v46   ;;  %v7146_v1 = vmul.f32 %v15560_v38, %v7035_v57 }
0x3550   :  { %v12625_v24 = vpop.f32.mrf.mxu1 }
0x3551   :  { %v7149_v14 = vmul.f32 %v15524_v11, %v12625_v24  ;;  %v7139_v11 = vmul.f32 %v15610_v26, %v12610_v34  ;;  %v7136_v26 = vmul.f32 %v15628_v18, %v6985_v61 }
0x3552   :  { %v7045_v15 = vpop.f32.mrf.mxu1 }
0x3553   :  { %7250 = vperm.xlu0 %13045, %v7144_v23   ;;  %v7148_v36 = vmul.f32 %v15540_v56, %v7045_v15  ;;  %v7138_v56 = vmul.f32 %v15616_v30, %v6995_v6  ;;  %v7197_v23 = vld [vmem:[#allocation3 + $0xf8] sm:$0xff] }
0x3554   :  { %v15720_v10 = vpop.f32.mrf.mxu1 }
0x3556   :  { %v15723_v8 = vpop.f32.mrf.mxu1 }
0x3557   :  { %7265 = vperm.xlu0 %13045, %v7147_v12  }
0x3558   :  { %v12631_v39 = vpop.f32.mrf.mxu1 }
0x355a   :  { %v7065_v45 = vpop.f32.mrf.mxu1 }
0x355b   :  { %7260 = vperm.xlu0 %13045, %v7146_v1   ;;  %v7196_v1 = vld [vmem:[#allocation3 + $0xf0] sm:$0xff] }
0x355c   :  { %v12634_v48 = vpop.f32.mrf.mxu1 }
0x355e   :  { %v7075_v17 = vpop.f32.mrf.mxu1 }
0x355f   :  { %7275 = vperm.xlu0 %13045, %v7149_v14  }
0x3560   :  { %v12637_v3 = vpop.f32.mrf.mxu1 }
0x3561   :  { %v7157_v33 = vmul.f32 %v15595_v4, %v12637_v3  ;;  %v7195_v3 = vld [vmem:[#allocation3 + $0xe8] sm:$0xff] }
0x3562   :  { %v7085_v63 = vpop.f32.mrf.mxu1 }
0x3563   :  { %7270 = vperm.xlu0 %13045, %v7148_v36   ;;  %7315 = vperm.xlu1 %13046, %v7157_v33   ;;  %v7156_v18 = vmul.f32 %v15601_v28, %v7085_v63  ;;  %v7150_v28 = vmul.f32 %v15637_v25, %v15723_v8  ;;  %v7179_v36 = vld [vmem:[#allocation3 + $0x68] sm:$0xff] }
0x3564   :  { %v12640_v19 = vpop.f32.mrf.mxu1 }
0x3565   :  { %v7159_v38 = vmul.f32 %v15583_v31, %v12640_v19 }
0x3566   :  { %v7095_v7 = vpop.f32.mrf.mxu1 }
0x3567   :  { %7230 = vperm.xlu0 %13045, %v7140_v59   ;;  %7325 = vperm.xlu1 %13046, %v7159_v38   ;;  %v7158_v55 = vmul.f32 %v15589_v62, %v7095_v7  ;;  %v7194_v59 = vld [vmem:[#allocation3 + $0xe0] sm:$0xff] }
0x3568   :  { %v12643_v50 = vpop.f32.mrf.mxu1  ;;  %v7178_v7 = vld [vmem:[#allocation3 + $0x60] sm:$0xff] }
0x3569   :  { %v7161_v4 = vmul.f32 %v15565_v44, %v12643_v50  ;;  %v7135_v44 = vmul.f32 %v15634_v0, %v15711_v22  ;;  %v7154_v0 = vmul.f32 %v15613_v29, %v7075_v17  ;;  %v7512_v22 = vld [vmem:[%s16499_s21 + $0x8] sm:$0xff]  ;;  %v7193_v50 = vld [vmem:[#allocation3 + $0xd8] sm:$0xff] }
0x356a   :  { %v7105_v41 = vpop.f32.mrf.mxu1  ;;  %7591 = vmatprep.mubr.f32.mxu1 %v7512_v22  ;;  %v7188_v22 = vld [vmem:[#allocation3 + $0xb0] sm:$0xff] }
0x356b   :  { %7225 = vperm.xlu0 %13045, %v7139_v11   ;;  %7320 = vperm.xlu1 %13046, %v7158_v55   ;;  %v7160_v31 = vmul.f32 %v15575_v2, %v7105_v41  ;;  %v7134_v2 = vmul.f32 %v15641_v20, %v15713_v27  ;;  %v7153_v20 = vmul.f32 %v15619_v9, %v12631_v39  ;;  %v7391_v27 = vld [vmem:[%s16500_s25 + $0x8] sm:$0xff] }
0x356c   :  { %v12646_v53 = vpop.f32.mrf.mxu1  ;;  %7470 = vmatprep.mubr.f32.mxu0 %v7391_v27 }
0x356d   :  { %v7163_v62 = vmul.f32 %v15545_v47, %v12646_v53  ;;  %v7176_v53 = vld [vmem:[#allocation3 + $0x50] sm:$0xff] }
0x356e   :  { %v7115_v34 = vpop.f32.mrf.mxu1 }
0x356f   :  { %7220 = vperm.xlu0 %13045, %v7138_v56   ;;  %7335 = vperm.xlu1 %13046, %v7161_v4   ;;  %v7162_v30 = vmul.f32 %v15555_v51, %v7115_v34  ;;  %v7155_v51 = vmul.f32 %v15607_v21, %v12634_v48  ;;  %v7180_v48 = vld [vmem:[#allocation3 + $0x70] sm:$0xff]  ;;  %v7177_v56 = vld [vmem:[#allocation3 + $0x58] sm:$0xff] }
0x3570   :  { %v12649_v6 = vpop.f32.mrf.mxu1 }
0x3571   :  { %v7165_v32 = vmul.f32 %v15528_v42, %v12649_v6  ;;  %v7152_v42 = vmul.f32 %v15625_v49, %v7065_v45 }
0x3572   :  { %v7125_v16 = vpop.f32.mrf.mxu1 }
0x3573   :  { %7215 = vperm.xlu0 %13045, %v7137_v52   ;;  %7330 = vperm.xlu1 %13046, %v7160_v31   ;;  %v7164_v47 = vmul.f32 %v15535_v35, %v7125_v16  ;;  %v7151_v35 = vmul.f32 %v15631_v58, %v15720_v10  ;;  %v7181_v10 = vld [vmem:[#allocation3 + $0x78] sm:$0xff]  ;;  %v7192_v52 = vld [vmem:[#allocation3 + $0xd0] sm:$0xff] }
0x3577   :  { %7210 = vperm.xlu0 %13045, %v7136_v26   ;;  %7345 = vperm.xlu1 %13046, %v7163_v62  }
0x357b   :  { %7205 = vperm.xlu0 %13045, %v7135_v44   ;;  %7340 = vperm.xlu1 %13046, %v7162_v30   ;;  %v7191_v44 = vld [vmem:[#allocation3 + $0xc8] sm:$0xff] }
0x357c   :  { %v7175_v30 = vld [vmem:[#allocation3 + $0x48] sm:$0xff] }
0x357f   :  { %7200 = vperm.xlu0 %13045, %v7134_v2   ;;  %7355 = vperm.xlu1 %13046, %v7165_v32   ;;  %v7190_v32 = vld [vmem:[#allocation3 + $0xc0] sm:$0xff] }
0x3583   :  { %7350 = vperm.xlu1 %13046, %v7164_v47   ;;  %v7174_v47 = vld [vmem:[#allocation3 + $0x40] sm:$0xff] }
0x3587   :  { %7310 = vperm.xlu1 %13046, %v7156_v18  }
0x358b   :  { %7305 = vperm.xlu1 %13046, %v7155_v51  }
0x358f   :  { %7300 = vperm.xlu1 %13046, %v7154_v0   ;;  %v7189_v0 = vld [vmem:[#allocation3 + $0xb8] sm:$0xff] }
0x3593   :  { %7295 = vperm.xlu1 %13046, %v7153_v20   ;;  %v7173_v20 = vld [vmem:[#allocation3 + $0x38] sm:$0xff] }
0x3597   :  { %7290 = vperm.xlu1 %13046, %v7152_v42  }
0x359b   :  { %7285 = vperm.xlu1 %13046, %v7151_v35  }
0x359f   :  { %7280 = vperm.xlu1 %13046, %v7150_v28  }
0x35be   :  { %v15757_v21 = vpop.permute.xlu0 %7235 }
0x35bf   :  { %v7365_v28 = vmul.f32 %v15757_v21, %v7173_v20  ;;  %v7186_v21 = vld [vmem:[#allocation3 + $0xa0] sm:$0xff]  ;;  %v7526_v20 = vld [vmem:[%s16499_s21 + $0x78] sm:$0xff] }
0x35c2   :  { %v15759_v29 = vpop.permute.xlu0 %7245 }
0x35c3   :  { %v7367_v2 = vmul.f32 %v15759_v29, %v7175_v30  ;;  %v7172_v29 = vld [vmem:[#allocation3 + $0x30] sm:$0xff]  ;;  %v7398_v30 = vld [vmem:[%s16500_s25 + $0x40] sm:$0xff] }
0x35c6   :  { %v15761_v9 = vpop.permute.xlu0 %7240 }
0x35c7   :  { %v7366_v51 = vmul.f32 %v15761_v9, %v7174_v47  ;;  %v7524_v47 = vld [vmem:[%s16499_s21 + $0x68] sm:$0xff] }
0x35ca   :  { %v7256_v49 = vpop.permute.xlu0 %7255 }
0x35cb   :  { %v7369_v41 = vmul.f32 %v7256_v49, %v7177_v56  ;;  %v7395_v56 = vld [vmem:[%s16500_s25 + $0x28] sm:$0xff] }
0x35ce   :  { %v7251_v61 = vpop.permute.xlu0 %7250 }
0x35cf   :  { %v7368_v34 = vmul.f32 %v7251_v61, %v7176_v53  ;;  %v7187_v61 = vld [vmem:[#allocation3 + $0xa8] sm:$0xff]  ;;  %v7517_v53 = vld [vmem:[%s16499_s21 + $0x30] sm:$0xff] }
0x35d2   :  { %v7266_v40 = vpop.permute.xlu0 %7265 }
0x35d3   :  { %v7371_v19 = vmul.f32 %v7266_v40, %v7179_v36  ;;  %v7171_v40 = vld [vmem:[#allocation3 + $0x28] sm:$0xff]  ;;  %v7166_v36 = vld [vmem:[#allocation3] sm:$0xff] }
0x35d6   :  { %v7261_v60 = vpop.permute.xlu0 %7260 }
0x35d7   :  { %v7370_v55 = vmul.f32 %v7261_v60, %v7178_v7  ;;  %v7393_v7 = vld [vmem:[%s16500_s25 + $0x18] sm:$0xff] }
0x35da   :  { %v7276_v43 = vpop.permute.xlu0 %7275 }
0x35db   :  { %v7373_v39 = vmul.f32 %v7276_v43, %v7181_v10  ;;  %v7168_v10 = vld [vmem:[#allocation3 + $0x10] sm:$0xff] }
0x35de   :  { %v15763_v37 = vpop.permute.xlu1 %7315  ;;  %v7271_v54 = vpop.permute.xlu0 %7270 }
0x35df   :  { %v7372_v17 = vmul.f32 %v7271_v54, %v7180_v48  ;;  %v7381_v42 = vmul.f32 %v15763_v37, %v7189_v0  ;;  %v7185_v54 = vld [vmem:[#allocation3 + $0x98] sm:$0xff]  ;;  %v7402_v0 = vld [vmem:[%s16500_s25 + $0x60] sm:$0xff] }
0x35e2   :  { %v15765_v58 = vpop.permute.xlu1 %7325  ;;  %v15769_v57 = vpop.permute.xlu0 %7230 }
0x35e3   :  { %v7383_v6 = vmul.f32 %v15765_v58, %v7191_v44  ;;  %v7364_v9 = vmul.f32 %v15769_v57, %v7172_v29  ;;  %v7519_v44 = vld [vmem:[%s16499_s21 + $0x40] sm:$0xff]  ;;  %v7638_v29 = vld [vmem:[%s16501_s29 + $0x10] sm:$0xff] }
0x35e6   :  { %v15767_v25 = vpop.permute.xlu1 %7320  ;;  %v15771_v12 = vpop.permute.xlu0 %7225 }
0x35e7   :  { %v7382_v18 = vmul.f32 %v15767_v25, %v7190_v32  ;;  %v7363_v58 = vmul.f32 %v15771_v12, %v7171_v40  ;;  %v7170_v25 = vld [vmem:[#allocation3 + $0x20] sm:$0xff]  ;;  %v7521_v32 = vld [vmem:[%s16499_s21 + $0x50] sm:$0xff] }
0x35e8   :  { %v7636_v40 = vld [vmem:[%s16501_s29] sm:$0xff] }
0x35ea   :  { %v7336_v13 = vpop.permute.xlu1 %7335  ;;  %v15773_v33 = vpop.permute.xlu0 %7220 }
0x35eb   :  { %v7385_v4 = vmul.f32 %v7336_v13, %v7193_v50  ;;  %v7516_v50 = vld [vmem:[%s16499_s21 + $0x28] sm:$0xff] }
0x35ee   :  { %v7331_v5 = vpop.permute.xlu1 %7330  ;;  %v15775_v26 = vpop.permute.xlu0 %7215 }
0x35ef   :  { %v7384_v62 = vmul.f32 %v7331_v5, %v7192_v52  ;;  %v7362_v5 = vmul.f32 %v15773_v33, %v7170_v25  ;;  %v7518_v52 = vld [vmem:[%s16499_s21 + $0x38] sm:$0xff] }
0x35f2   :  { %v7346_v46 = vpop.permute.xlu1 %7345  ;;  %v7211_v35 = vpop.permute.xlu0 %7210 }
0x35f3   :  { %v7387_v63 = vmul.f32 %v7346_v46, %v7195_v3  ;;  %v7169_v46 = vld [vmem:[#allocation3 + $0x18] sm:$0xff] }
0x35f6   :  { %v7341_v24 = vpop.permute.xlu1 %7340  ;;  %v7206_v43 = vpop.permute.xlu0 %7205 }
0x35f7   :  { %v7386_v11 = vmul.f32 %v7341_v24, %v7194_v59  ;;  %v7361_v24 = vmul.f32 %v15775_v26, %v7169_v46  ;;  %v7390_v59 = vld [vmem:[%s16500_s25] sm:$0xff]  ;;  %v7396_v26 = vld [vmem:[%s16500_s25 + $0x30] sm:$0xff] }
0x35fa   :  { %v7356_v15 = vpop.permute.xlu1 %7355 }
0x35fb   :  { %v7389_v8 = vmul.f32 %v7356_v15, %v7197_v23  ;;  %v7184_v23 = vld [vmem:[#allocation3 + $0x90] sm:$0xff] }
0x35fd   :  { %11629 = vmatprep.subr.mxu0 %v7389_v8  ;;  %11685 = vmatprep.subr.mxu1 %v7389_v8  ;;  %v7360_v8 = vmul.f32 %v7211_v35, %v7168_v10  ;;  %v7525_v35 = vld [vmem:[%s16499_s21 + $0x70] sm:$0xff] }
0x35fe   :  { %11630 = vmatpush3.msra.mxu0 %v7373_v39  ;;  %11686 = vmatpush3.msra.mxu1 %v7373_v39  ;;  %v7351_v45 = vpop.permute.xlu1 %7350  ;;  %v7183_v39 = vld [vmem:[#allocation3 + $0x88] sm:$0xff] }
0x35ff   :  { %v7388_v14 = vmul.f32 %v7351_v45, %v7196_v1  ;;  %v7167_v1 = vld [vmem:[#allocation3 + $0x8] sm:$0xff]  ;;  %v7201_v45 = vpop.permute.xlu0 %7200 }
0x3601   :  { %11631 = vmatprep.subr.mxu0 %v7388_v14  ;;  %11687 = vmatprep.subr.mxu1 %v7388_v14  ;;  %v7359_v14 = vmul.f32 %v7206_v43, %v7167_v1 }
0x3602   :  { %11632 = vmatpush3.msra.mxu0 %v7372_v17  ;;  %11688 = vmatpush3.msra.mxu1 %v7372_v17  ;;  %v7311_v38 = vpop.permute.xlu1 %7310  ;;  %v7182_v17 = vld [vmem:[#allocation3 + $0x80] sm:$0xff] }
0x3603   :  { %11633 = vmatprep.subr.mxu0 %v7387_v63  ;;  %11689 = vmatprep.subr.mxu1 %v7387_v63  ;;  %v7380_v49 = vmul.f32 %v7311_v38, %v7188_v22  ;;  %v7358_v63 = vmul.f32 %v7201_v45, %v7166_v36  ;;  %v7514_v38 = vld [vmem:[%s16499_s21 + $0x18] sm:$0xff] }
0x3604   :  { %11634 = vmatpush3.msra.mxu0 %v7371_v19  ;;  %11690 = vmatpush3.msra.mxu1 %v7371_v19  ;;  %v7511_v19 = vld [vmem:[%s16499_s21] sm:$0xff]  ;;  %v7639_v22 = vld [vmem:[%s16501_s29 + $0x18] sm:$0xff] }
0x3605   :  { %11635 = vmatprep.subr.mxu0 %v7386_v11  ;;  %11691 = vmatprep.subr.mxu1 %v7386_v11  ;;  %v7513_v11 = vld [vmem:[%s16499_s21 + $0x10] sm:$0xff] }
0x3606   :  { %11636 = vmatpush3.msra.mxu0 %v7370_v55  ;;  %11692 = vmatpush3.msra.mxu1 %v7370_v55  ;;  %v7306_v31 = vpop.permute.xlu1 %7305  ;;  %v7392_v55 = vld [vmem:[%s16500_s25 + $0x10] sm:$0xff] }
0x3607   :  { %11637 = vmatprep.subr.mxu0 %v7385_v4  ;;  %11693 = vmatprep.subr.mxu1 %v7385_v4  ;;  %v7379_v37 = vmul.f32 %v7306_v31, %v7187_v61  ;;  %v7515_v4 = vld [vmem:[%s16499_s21 + $0x20] sm:$0xff]  ;;  %v7397_v31 = vld [vmem:[%s16500_s25 + $0x38] sm:$0xff]  ;;  %v7633_v61 = vld [vmem:[%s16502_s3 + $0x8] sm:$0xff] }
0x3608   :  { %11638 = vmatpush3.msra.mxu0 %v7369_v41  ;;  %11694 = vmatpush3.msra.mxu1 %v7369_v41  ;;  %v7394_v41 = vld [vmem:[%s16500_s25 + $0x20] sm:$0xff] }
0x3609   :  { %11639 = vmatprep.subr.mxu0 %v7384_v62  ;;  %11695 = vmatprep.subr.mxu1 %v7384_v62  ;;  %v7520_v62 = vld [vmem:[%s16499_s21 + $0x48] sm:$0xff] }
0x360a   :  { %11640 = vmatpush3.msra.mxu0 %v7368_v34  ;;  %11696 = vmatpush3.msra.mxu1 %v7368_v34  ;;  %v7301_v16 = vpop.permute.xlu1 %7300  ;;  %v7399_v34 = vld [vmem:[%s16500_s25 + $0x48] sm:$0xff] }
0x360b   :  { %11641 = vmatprep.subr.mxu0 %v7383_v6  ;;  %11697 = vmatprep.subr.mxu1 %v7383_v6  ;;  %v7378_v13 = vmul.f32 %v7301_v16, %v7186_v21  ;;  %v7522_v6 = vld [vmem:[%s16499_s21 + $0x58] sm:$0xff]  ;;  %v7400_v16 = vld [vmem:[%s16500_s25 + $0x50] sm:$0xff] }
0x360c   :  { %11642 = vmatpush3.msra.mxu0 %v7367_v2  ;;  %11698 = vmatpush3.msra.mxu1 %v7367_v2  ;;  %v7401_v2 = vld [vmem:[%s16500_s25 + $0x58] sm:$0xff] }
0x360d   :  { %11643 = vmatprep.subr.mxu0 %v7382_v18  ;;  %11699 = vmatprep.subr.mxu1 %v7382_v18  ;;  %v7403_v18 = vld [vmem:[%s16500_s25 + $0x68] sm:$0xff] }
0x360e   :  { %11644 = vmatpush3.msra.mxu0 %v7366_v51  ;;  %11700 = vmatpush3.msra.mxu1 %v7366_v51  ;;  %v7296_v27 = vpop.permute.xlu1 %7295  ;;  %v7523_v51 = vld [vmem:[%s16499_s21 + $0x60] sm:$0xff] }
0x360f   :  { %11645 = vmatprep.subr.mxu0 %v7381_v42  ;;  %11701 = vmatprep.subr.mxu1 %v7381_v42  ;;  %v7377_v57 = vmul.f32 %v7296_v27, %v7185_v54  ;;  %v7405_v42 = vld [vmem:[%s16500_s25 + $0x78] sm:$0xff] }
0x3610   :  { %11646 = vmatpush3.msra.mxu0 %v7365_v28  ;;  %11702 = vmatpush3.msra.mxu1 %v7365_v28  ;;  %v7404_v28 = vld [vmem:[%s16500_s25 + $0x70] sm:$0xff]  ;;  %v7635_v27 = vld [vmem:[%s16502_s3 + $0x18] sm:$0xff] }
0x3611   :  { %11647 = vmatprep.subr.mxu0 %v7380_v49  ;;  %11703 = vmatprep.subr.mxu1 %v7380_v49  ;;  %v7634_v49 = vld [vmem:[%s16502_s3 + $0x10] sm:$0xff] }
0x3612   :  { %11648 = vmatpush3.msra.mxu0 %v7364_v9  ;;  %11704 = vmatpush3.msra.mxu1 %v7364_v9  ;;  %v7291_v60 = vpop.permute.xlu1 %7290  ;;  %v7637_v9 = vld [vmem:[%s16501_s29 + $0x8] sm:$0xff] }
0x3613   :  { %11649 = vmatprep.subr.mxu0 %v7379_v37  ;;  %11705 = vmatprep.subr.mxu1 %v7379_v37  ;;  %v7376_v12 = vmul.f32 %v7291_v60, %v7184_v23  ;;  %v7632_v37 = vld [vmem:[%s16502_s3] sm:$0xff] }
0x3614   :  { %11650 = vmatpush3.msra.mxu0 %v7363_v58  ;;  %11706 = vmatpush3.msra.mxu1 %v7363_v58  ;;  %v16503_v58 = vmov 0.0  }
0x3615   :  { %11651 = vmatprep.subr.mxu0 %v7378_v13  ;;  %11707 = vmatprep.subr.mxu1 %v7378_v13 }
0x3616   :  { %11652 = vmatpush3.msra.mxu0 %v7362_v5  ;;  %11708 = vmatpush3.msra.mxu1 %v7362_v5  ;;  %v7286_v15 = vpop.permute.xlu1 %7285 }
0x3617   :  { %11653 = vmatprep.subr.mxu0 %v7377_v57  ;;  %11709 = vmatprep.subr.mxu1 %v7377_v57  ;;  %v7375_v48 = vmul.f32 %v7286_v15, %v7183_v39  ;;  %v15830_v15 = vld [vmem:[%s16504_s8 + $0x18] sm:$0xff]  ;;  %v15834_v39 = vld [vmem:[%s16504_s8 + $0x10] sm:$0xff] }
0x3618   :  { %11654 = vmatpush3.msra.mxu0 %v7361_v24  ;;  %11710 = vmatpush3.msra.mxu1 %v7361_v24 }
0x3619   :  { %11655 = vmatprep.subr.mxu0 %v7376_v12  ;;  %11711 = vmatprep.subr.mxu1 %v7376_v12 }
0x361a   :  { %11656 = vmatpush3.msra.mxu0 %v7360_v8  ;;  %11712 = vmatpush3.msra.mxu1 %v7360_v8  ;;  %v7281_v3 = vpop.permute.xlu1 %7280 }
0x361b   :  { %v7374_v33 = vmul.f32 %v7281_v3, %v7182_v17  ;;  %11657 = vmatprep.subr.mxu0 %v7375_v48  ;;  %11713 = vmatprep.subr.mxu1 %v7375_v48 }
0x361c   :  { %11658 = vmatpush3.msra.mxu0 %v7359_v14  ;;  %11714 = vmatpush3.msra.mxu1 %v7359_v14  ;;  %v15841_v14 = vld [vmem:[%s16504_s8 + $0x8] sm:$0xff] }
0x361d   :  { %11659 = vmatprep.subr.mxu0 %v7374_v33  ;;  %11715 = vmatprep.subr.mxu1 %v7374_v33  ;;  %v15849_v33 = vld [vmem:[%s16504_s8] sm:$0xff] }
0x361e   :  { %11660 = vmatpush3.msra.mxu0 %v7358_v63  ;;  %11716 = vmatpush3.msra.mxu1 %v7358_v63 }
0x361f   :  { %7592 = vmatmul.mubr.f32.vlgmr.msra.gmra.mxu1 %v7511_v19  ;;  %7471 = vmatmul.mubr.f32.vlgmr.msra.gmra.mxu0 %v7390_v59 }
0x3620   :  { %7596 = vmatprep.mubr.f32.mxu1 %v7514_v38  ;;  %7475 = vmatprep.mubr.f32.mxu0 %v7393_v7 }
0x3621   :  { %12650 = vmatprep.subr.mxu0 %v7639_v22  ;;  %12670 = vmatprep.subr.mxu1 %v7635_v27 }
0x3622   :  { %12651 = vmatpush3.msra.mxu0 %v7639_v22  ;;  %12671 = vmatpush3.msra.mxu1 %v7635_v27 }
0x3623   :  { %7597 = vmatmul.mubr.f32.gmra.mxu1 %v7513_v11  ;;  %7476 = vmatmul.mubr.f32.gmra.mxu0 %v7392_v55 }
0x3624   :  { %7601 = vmatprep.mubr.f32.mxu1 %v7516_v50  ;;  %7480 = vmatprep.mubr.f32.mxu0 %v7395_v56 }
0x3625   :  { %12652 = vmatprep.subr.mxu0 %v7638_v29  ;;  %12672 = vmatprep.subr.mxu1 %v7634_v49 }
0x3626   :  { %12653 = vmatpush3.msra.mxu0 %v7638_v29  ;;  %12673 = vmatpush3.msra.mxu1 %v7634_v49 }
0x3627   :  { %7602 = vmatmul.mubr.f32.gmra.mxu1 %v7515_v4  ;;  %7481 = vmatmul.mubr.f32.gmra.mxu0 %v7394_v41 }
0x3628   :  { %7606 = vmatprep.mubr.f32.mxu1 %v7518_v52  ;;  %7485 = vmatprep.mubr.f32.mxu0 %v7397_v31 }
0x3629   :  { %12654 = vmatprep.subr.mxu0 %v7637_v9  ;;  %12674 = vmatprep.subr.mxu1 %v7633_v61 }
0x362a   :  { %12655 = vmatpush3.msra.mxu0 %v7637_v9  ;;  %12675 = vmatpush3.msra.mxu1 %v7633_v61 }
0x362b   :  { %7607 = vmatmul.mubr.f32.gmra.mxu1 %v7517_v53  ;;  %7486 = vmatmul.mubr.f32.gmra.mxu0 %v7396_v26 }
0x362c   :  { %7611 = vmatprep.mubr.f32.mxu1 %v7520_v62  ;;  %7490 = vmatprep.mubr.f32.mxu0 %v7399_v34 }
0x362d   :  { %12656 = vmatprep.subr.mxu0 %v7636_v40  ;;  %12676 = vmatprep.subr.mxu1 %v7632_v37 }
0x362e   :  { %12657 = vmatpush3.msra.mxu0 %v7636_v40  ;;  %12677 = vmatpush3.msra.mxu1 %v7632_v37 }
0x362f   :  { %7612 = vmatmul.mubr.f32.gmra.mxu1 %v7519_v44  ;;  %7491 = vmatmul.mubr.f32.gmra.mxu0 %v7398_v30 }
0x3630   :  { %7616 = vmatprep.mubr.f32.mxu1 %v7522_v6  ;;  %7495 = vmatprep.mubr.f32.mxu0 %v7401_v2 }
0x3631   :  { %12690 = vmatprep.subr.mxu0 %v16503_v58  ;;  %12712 = vmatprep.subr.mxu1 %v16503_v58 }
0x3633   :  { %7617 = vmatmul.mubr.f32.gmra.mxu1 %v7521_v32  ;;  %7496 = vmatmul.mubr.f32.gmra.mxu0 %v7400_v16 }
0x3634   :  { %7621 = vmatprep.mubr.f32.mxu1 %v7524_v47  ;;  %7500 = vmatprep.mubr.f32.mxu0 %v7403_v18 }
0x3637   :  { %7622 = vmatmul.mubr.f32.gmra.mxu1 %v7523_v51  ;;  %7501 = vmatmul.mubr.f32.gmra.mxu0 %v7402_v0 }
0x3638   :  { %7626 = vmatprep.mubr.f32.mxu1 %v7526_v20  ;;  %7505 = vmatprep.mubr.f32.mxu0 %v7405_v42 }
0x363b   :  { %7627 = vmatmul.mubr.f32.gmra.mxu1 %v7525_v35  ;;  %7506 = vmatmul.mubr.f32.gmra.mxu0 %v7404_v28  ;;  %v10979_v28 = vld [vmem:[%s16505_s14] ss:$0 sm:$0xff] }
0x36df   :  { %v11717_v21 = vpop.f32.mrf.mxu1  ;;  %v11661_v60 = vpop.f32.mrf.mxu0 }
0x36e1   :  { %v11718_v25 = vpop.f32.mrf.mxu1  ;;  %v11662_v43 = vpop.f32.mrf.mxu0 }
0x36e2   :  { %v11719_v13 = vadd.f32 %v11718_v25, %v11717_v21  ;;  %v11663_v5 = vadd.f32 %v11662_v43, %v11661_v60 }
0x36e3   :  { %v11720_v54 = vpop.f32.mrf.mxu1  ;;  %v11664_v46 = vpop.f32.mrf.mxu0 }
0x36e4   :  { %12658 = vmatprep.mubr.msk.f32.mxu0 %vm227_vm0, %v11719_v13  ;;  %12678 = vmatprep.mubr.msk.f32.mxu1 %vm227_vm0, %v11663_v5 }
0x36e5   :  { %v11721_v57 = vpop.f32.mrf.mxu1  ;;  %v11665_v24 = vpop.f32.mrf.mxu0 }
0x36e6   :  { %v11722_v23 = vadd.f32 %v11721_v57, %v11720_v54  ;;  %v11666_v10 = vadd.f32 %v11665_v24, %v11664_v46 }
0x36e7   :  { %v11723_v12 = vpop.f32.mrf.mxu1  ;;  %v11667_v8 = vpop.f32.mrf.mxu0 }
0x36e8   :  { %12659 = vmatmul.mubr.msk.f32.vlgmr.msra.gmra.mxu0 %vm227_vm0, %v11722_v23  ;;  %12679 = vmatmul.mubr.msk.f32.vlgmr.msra.gmra.mxu1 %vm227_vm0, %v11666_v10 }
0x36e9   :  { %v11724_v1 = vpop.f32.mrf.mxu1  ;;  %12691 = vmatpush3.msra.mxu0 %v15830_v15  ;;  %v11668_v45 = vpop.f32.mrf.mxu0  ;;  %12713 = vmatpush3.msra.mxu1 %v15830_v15 }
0x36ea   :  { %v11725_v48 = vadd.f32 %v11724_v1, %v11723_v12  ;;  %12692 = vmatprep.subr.mxu0 %v16503_v58  ;;  %v11669_v17 = vadd.f32 %v11668_v45, %v11667_v8  ;;  %12714 = vmatprep.subr.mxu1 %v16503_v58 }
0x36eb   :  { %v11726_v3 = vpop.f32.mrf.mxu1  ;;  %12693 = vmatpush3.msra.mxu0 %v15834_v39  ;;  %v11670_v36 = vpop.f32.mrf.mxu0  ;;  %12715 = vmatpush3.msra.mxu1 %v15834_v39 }
0x36ec   :  { %12661 = vmatprep.mubr.msk.f32.mxu0 %vm227_vm0, %v11725_v48  ;;  %12694 = vmatprep.subr.mxu0 %v16503_v58 }
0x36ed   :  { %v11727_v63 = vpop.f32.mrf.mxu1  ;;  %12695 = vmatpush3.msra.mxu0 %v15841_v14  ;;  %v11671_v19 = vpop.f32.mrf.mxu0  ;;  %12681 = vmatprep.mubr.msk.f32.mxu1 %vm227_vm0, %v11669_v17 }
0x36ee   :  { %v11728_v59 = vadd.f32 %v11727_v63, %v11726_v3  ;;  %12696 = vmatprep.subr.mxu0 %v16503_v58  ;;  %v11672_v38 = vadd.f32 %v11671_v19, %v11670_v36  ;;  %12716 = vmatprep.subr.mxu1 %v16503_v58  ;;  %v15894_v3 = vld [vmem:[%s16506_s19] ss:$0 sm:$0xff] }
0x36ef   :  { %v11729_v7 = vpop.f32.mrf.mxu1  ;;  %12697 = vmatpush3.msra.mxu0 %v15849_v33  ;;  %v11673_v11 = vpop.f32.mrf.mxu0  ;;  %12717 = vmatpush3.msra.mxu1 %v15841_v14 }
0x36f0   :  { %12662 = vmatmul.mubr.msk.f32.gmra.mxu0 %vm227_vm0, %v11728_v59  ;;  %12682 = vmatmul.mubr.msk.f32.gmra.mxu1 %vm227_vm0, %v11672_v38 }
0x36f1   :  { %v11730_v55 = vpop.f32.mrf.mxu1  ;;  %v11674_v50 = vpop.f32.mrf.mxu0  ;;  %12701 = vmatprep.subr.mxu0 %v16503_v58  ;;  %12718 = vmatprep.subr.mxu1 %v16503_v58 }
0x36f2   :  { %v11731_v56 = vadd.f32 %v11730_v55, %v11729_v7  ;;  %v11675_v4 = vadd.f32 %v11674_v50, %v11673_v11  ;;  %12719 = vmatpush3.msra.mxu1 %v15849_v33 }
0x36f3   :  { %v11732_v41 = vpop.f32.mrf.mxu1  ;;  %v11676_v52 = vpop.f32.mrf.mxu0  ;;  %12734 = vmatprep.subr.mxu1 %v16503_v58 }
0x36f4   :  { %12664 = vmatprep.mubr.msk.f32.mxu0 %vm227_vm0, %v11731_v56  ;;  %12684 = vmatprep.mubr.msk.f32.mxu1 %vm227_vm0, %v11675_v4 }
0x36f5   :  { %v11733_v31 = vpop.f32.mrf.mxu1  ;;  %v11677_v53 = vpop.f32.mrf.mxu0 }
0x36f6   :  { %v11734_v26 = vadd.f32 %v11733_v31, %v11732_v41  ;;  %v11678_v62 = vadd.f32 %v11677_v53, %v11676_v52 }
0x36f7   :  { %v11735_v34 = vpop.f32.mrf.mxu1  ;;  %v11679_v44 = vpop.f32.mrf.mxu0 }
0x36f8   :  { %12665 = vmatmul.mubr.msk.f32.gmra.mxu0 %vm227_vm0, %v11734_v26  ;;  %12685 = vmatmul.mubr.msk.f32.gmra.mxu1 %vm227_vm0, %v11678_v62 }
0x36f9   :  { %v11736_v30 = vpop.f32.mrf.mxu1  ;;  %v11680_v6 = vpop.f32.mrf.mxu0 }
0x36fa   :  { %v11737_v2 = vadd.f32 %v11736_v30, %v11735_v34  ;;  %v11681_v32 = vadd.f32 %v11680_v6, %v11679_v44 }
0x36fb   :  { %v11738_v16 = vpop.f32.mrf.mxu1  ;;  %v11682_v47 = vpop.f32.mrf.mxu0 }
0x36fc   :  { %12667 = vmatprep.mubr.msk.f32.mxu0 %vm227_vm0, %v11737_v2  ;;  %12687 = vmatprep.mubr.msk.f32.mxu1 %vm227_vm0, %v11681_v32 }
0x36fd   :  { %v11739_v18 = vpop.f32.mrf.mxu1  ;;  %v11683_v51 = vpop.f32.mrf.mxu0 }
0x36fe   :  { %v11740_v0 = vadd.f32 %v11739_v18, %v11738_v16  ;;  %v11684_v20 = vadd.f32 %v11683_v51, %v11682_v47 }
0x3700   :  { %12668 = vmatmul.mubr.msk.f32.gmra.mxu0 %vm227_vm0, %v11740_v0  ;;  %12688 = vmatmul.mubr.msk.f32.gmra.mxu1 %vm227_vm0, %v11684_v20 }
0x3701   :  { %12698 = vmatprep.mubr.msk.f32.mxu0 %vm13452_vm5, %v16503_v58  ;;  %12720 = vmatprep.mubr.msk.f32.mxu1 %vm13452_vm5, %v16503_v58 }
0x3704   :  { %12699 = vmatmul.mubr.f32.vlgmr.msra.gmra.mxu0 %v16503_v58 }
0x3705   :  { %12702 = vmatpush3.msra.mxu0 %v15830_v15  ;;  %12709 = vmatprep.mubr.msk.f32.mxu0 %vm13452_vm5, %v16503_v58 }
0x3706   :  { %12703 = vmatprep.subr.mxu0 %v16503_v58 }
0x3707   :  { %12704 = vmatpush3.msra.mxu0 %v15834_v39 }
0x3708   :  { %12705 = vmatprep.subr.mxu0 %v16503_v58 }
0x3709   :  { %12706 = vmatpush3.msra.mxu0 %v15841_v14 }
0x370a   :  { %12707 = vmatprep.subr.mxu0 %v16503_v58 }
0x370b   :  { %12708 = vmatpush3.msra.mxu0 %v15849_v33 }
0x370c   :  { %12723 = vmatprep.subr.mxu0 %v16503_v58 }
0x37a8   :  { %v12660_v42 = vpop.f32.mrf.mxu0  ;;  %v12680_v35 = vpop.f32.mrf.mxu1 }
0x37a9   :  { %v7865_v22 = vadd.f32 %v12680_v35, %v12660_v42 }
0x37aa   :  { %v7730_v27 = vpop.f32.mrf.mxu0  ;;  %v7859_v29 = vpop.f32.mrf.mxu1 }
0x37ab   :  { %v7906_v49 = vadd.f32 %v10979_v28, %v7865_v22  ;;  %v7860_v9 = vadd.f32 %v7859_v29, %v7730_v27 }
0x37ad   :  { %7914 = vst.msk [vmem:[#allocation5 + $0x8] sm:$0xff] %vm909_vm1, %v7906_v49  ;;  %v7905_v61 = vadd.f32 %v10979_v28, %v7860_v9 }
0x37af   :  { %7913 = vst.msk [vmem:[#allocation5] sm:$0xff] %vm909_vm1, %v7905_v61 }
0x37b0   :  { %v12663_v40 = vpop.f32.mrf.mxu0  ;;  %v12683_v37 = vpop.f32.mrf.mxu1 }
0x37b1   :  { %v7875_v21 = vadd.f32 %v12683_v37, %v12663_v40 }
0x37b2   :  { %v7740_v60 = vpop.f32.mrf.mxu0  ;;  %v7869_v25 = vpop.f32.mrf.mxu1 }
0x37b3   :  { %v7908_v43 = vadd.f32 %v10979_v28, %v7875_v21  ;;  %v7870_v13 = vadd.f32 %v7869_v25, %v7740_v60 }
0x37b4   :  { %v8035_v0 = vld [vmem:[#allocation5 + $0x8] sm:$0xff] }
0x37b5   :  { %7916 = vst.msk [vmem:[#allocation5 + $0x18] sm:$0xff] %vm909_vm1, %v7908_v43  ;;  %v7907_v5 = vadd.f32 %v10979_v28, %v7870_v13 }
0x37b6   :  { %v7926_v55 = vld [vmem:[#allocation5] sm:$0xff] }
0x37b7   :  { %7915 = vst.msk [vmem:[#allocation5 + $0x10] sm:$0xff] %vm909_vm1, %v7907_v5 }
0x37b8   :  { %v12666_v54 = vpop.f32.mrf.mxu0  ;;  %v12686_v46 = vpop.f32.mrf.mxu1 }
0x37b9   :  { %v7885_v57 = vadd.f32 %v12686_v46, %v12666_v54 }
0x37ba   :  { %v7750_v24 = vpop.f32.mrf.mxu0  ;;  %v7879_v23 = vpop.f32.mrf.mxu1 }
0x37bb   :  { %v7910_v10 = vadd.f32 %v10979_v28, %v7885_v57  ;;  %v7880_v12 = vadd.f32 %v7879_v23, %v7750_v24 }
0x37bd   :  { %7918 = vst.msk [vmem:[#allocation5 + $0x28] sm:$0xff] %vm909_vm1, %v7910_v10  ;;  %v7909_v8 = vadd.f32 %v10979_v28, %v7880_v12 }
0x37be   :  { %v8140_v46 = vld [vmem:[#allocation5 + $0x10] sm:$0xff] }
0x37bf   :  { %7917 = vst.msk [vmem:[#allocation5 + $0x20] sm:$0xff] %vm909_vm1, %v7909_v8 }
0x37c0   :  { %v12669_v1 = vpop.f32.mrf.mxu0  ;;  %v12689_v45 = vpop.f32.mrf.mxu1 }
0x37c1   :  { %v7895_v48 = vadd.f32 %v12689_v45, %v12669_v1 }
0x37c2   :  { %v7760_v17 = vpop.f32.mrf.mxu0  ;;  %v7889_v36 = vpop.f32.mrf.mxu1 }
0x37c3   :  { %v7912_v63 = vadd.f32 %v10979_v28, %v7895_v48  ;;  %v7890_v19 = vadd.f32 %v7889_v36, %v7760_v17 }
0x37c4   :  { %v7999_v59 = vpop.f32.mrf.mxu0 }
0x37c5   :  { %v8000_v38 = vadd.f32 %v15894_v3, %v7999_v59  ;;  %7920 = vst.msk [vmem:[#allocation5 + $0x38] sm:$0xff] %vm909_vm1, %v7912_v63  ;;  %v7911_v7 = vadd.f32 %v10979_v28, %v7890_v19 }
0x37c6   :  { %v12700_v11 = vpop.f32.mrf.mxu0 }
0x37c7   :  { %8011 = vrot.lane.b32.xlu1 %v8000_v38, %s13448_s0  ;;  %7919 = vst.msk [vmem:[#allocation5 + $0x30] sm:$0xff] %vm909_vm1, %v7911_v7  ;;  %v8003_v50 = vadd.f32 %v8000_v38, %v7926_v55 }
0x37c9   :  { %v10981_v56 = vmul.f32 -1.442695, %v8003_v50 }
0x37cb   :  { %13311 = vpow2.f32 %v10981_v56  ;;  %v8245_v56 = vld [vmem:[#allocation5 + $0x18] sm:$0xff] }
0x37d8   :  { %v13312_v4 = vpop.eup %13311 }
0x37d9   :  { %v8007_v41 = vadd.f32 1.0, %v13312_v4 }
0x37db   :  { %13313 = vrcp.f32 %v8007_v41 }
0x37e8   :  { %v13314_v52 = vpop.eup %13313 }
0x37e9   :  { %v8021_v44 = vsub.f32 1.0, %v13314_v52  ;;  %v8027_v6 = vmul.f32 0.0, %v13314_v52 }
0x3839   :  { %v8012_v31 = vpop.permute.xlu1 %8011 }
0x383a   :  { %v8014_v53 = vmul.f32 %v13314_v52, %v8012_v31 }
0x383c   :  { %8016 = vrot.lane.b32.xlu0 %v8014_v53, %s13448_s0 }
0x38ae   :  { %v8017_v26 = vpop.permute.xlu0 %8016 }
0x38af   :  { %v8019_v62 = vadd.f32 %v8017_v26, %v7926_v55 }
0x38b1   :  { %13315 = vtanh.f32 %v8019_v62 }
0x38be   :  { %v13316_v34 = vpop.eup %13315 }
0x38bf   :  { %8023 = vrot.lane.b32.xlu1 %v13316_v34, %s13449_s5 }
0x3931   :  { %v8024_v30 = vpop.permute.xlu1 %8023 }
0x3932   :  { %v8026_v2 = vmul.f32 %v8024_v30, %v8021_v44 }
0x3934   :  { %v8028_v32 = vadd.f32 %v8027_v6, %v8026_v2 }
0x3936   :  { %8030 = vrot.lane.b32.xlu0 %v8028_v32, %s13449_s5 }
0x39a8   :  { %v8031_v16 = vpop.permute.xlu0 %8030 }
0x39a9   :  { %8033 = vst.msk [vmem:[#allocation6] sm:$0xff] %vm227_vm0, %v8031_v16  ;;  %8034 = vst.msk [vmem:[#allocation7 + $0x38] sm:$0xff] %vm227_vm0, %v8031_v16  ;;  %12710 = vmatmul.mubr.msk.f32.vlgmr.msra.gmra.mxu0 %vm227_vm0, %v8031_v16 }
0x39aa   :  { %12724 = vmatpush3.msra.mxu0 %v15830_v15  ;;  %12731 = vmatprep.mubr.msk.f32.mxu0 %vm13452_vm5, %v16503_v58 }
0x39ab   :  { %12725 = vmatprep.subr.mxu0 %v16503_v58 }
0x39ac   :  { %12726 = vmatpush3.msra.mxu0 %v15834_v39 }
0x39ad   :  { %12727 = vmatprep.subr.mxu0 %v16503_v58 }
0x39ae   :  { %12728 = vmatpush3.msra.mxu0 %v15841_v14 }
0x39af   :  { %12729 = vmatprep.subr.mxu0 %v16503_v58 }
0x39b0   :  { %12730 = vmatpush3.msra.mxu0 %v15849_v33 }
0x39b1   :  { %12745 = vmatprep.subr.mxu0 %v16503_v58 }
0x3a69   :  { %v8104_v47 = vpop.f32.mrf.mxu0 }
0x3a6a   :  { %v8105_v18 = vadd.f32 %v15894_v3, %v8104_v47 }
0x3a6b   :  { %v12711_v51 = vpop.f32.mrf.mxu0 }
0x3a6c   :  { %8116 = vrot.lane.b32.xlu1 %v8105_v18, %s13448_s0  ;;  %v8108_v20 = vadd.f32 %v8105_v18, %v8035_v0 }
0x3a6e   :  { %v10983_v42 = vmul.f32 -1.442695, %v8108_v20 }
0x3a70   :  { %13317 = vpow2.f32 %v10983_v42  ;;  %v8350_v42 = vld [vmem:[#allocation5 + $0x20] sm:$0xff] }
0x3a7d   :  { %v13318_v35 = vpop.eup %13317 }
0x3a7e   :  { %v8112_v28 = vadd.f32 1.0, %v13318_v35 }
0x3a80   :  { %13319 = vrcp.f32 %v8112_v28 }
0x3a8d   :  { %v13320_v22 = vpop.eup %13319 }
0x3a8e   :  { %v8126_v40 = vsub.f32 1.0, %v13320_v22  ;;  %v8132_v21 = vmul.f32 %v13320_v22, %v8028_v32 }
0x3ade   :  { %v8117_v27 = vpop.permute.xlu1 %8116 }
0x3adf   :  { %v8119_v29 = vmul.f32 %v13320_v22, %v8117_v27 }
0x3ae1   :  { %8121 = vrot.lane.b32.xlu0 %v8119_v29, %s13448_s0 }
0x3b53   :  { %v8122_v49 = vpop.permute.xlu0 %8121 }
0x3b54   :  { %v8124_v9 = vadd.f32 %v8122_v49, %v8035_v0 }
0x3b56   :  { %13321 = vtanh.f32 %v8124_v9 }
0x3b63   :  { %v13322_v61 = vpop.eup %13321 }
0x3b64   :  { %8128 = vrot.lane.b32.xlu1 %v13322_v61, %s13449_s5 }
0x3bd6   :  { %v8129_v37 = vpop.permute.xlu1 %8128 }
0x3bd7   :  { %v8131_v60 = vmul.f32 %v8129_v37, %v8126_v40 }
0x3bd9   :  { %v8133_v25 = vadd.f32 %v8132_v21, %v8131_v60 }
0x3bdb   :  { %8135 = vrot.lane.b32.xlu0 %v8133_v25, %s13449_s5 }
0x3c4d   :  { %v8136_v43 = vpop.permute.xlu0 %8135 }
0x3c4e   :  { %8138 = vst.msk [vmem:[#allocation6 + $0x8] sm:$0xff] %vm227_vm0, %v8136_v43  ;;  %8139 = vst.msk [vmem:[#allocation7 + $0x30] sm:$0xff] %vm227_vm0, %v8136_v43  ;;  %12721 = vmatmul.mubr.msk.f32.vlgmr.msra.gmra.mxu1 %vm227_vm0, %v8136_v43 }
0x3c4f   :  { %12735 = vmatpush3.msra.mxu1 %v15830_v15  ;;  %12742 = vmatprep.mubr.msk.f32.mxu1 %vm13452_vm5, %v16503_v58 }
0x3c50   :  { %12736 = vmatprep.subr.mxu1 %v16503_v58 }
0x3c51   :  { %12737 = vmatpush3.msra.mxu1 %v15834_v39 }
0x3c52   :  { %12738 = vmatprep.subr.mxu1 %v16503_v58 }
0x3c53   :  { %12739 = vmatpush3.msra.mxu1 %v15841_v14 }
0x3c54   :  { %12740 = vmatprep.subr.mxu1 %v16503_v58 }
0x3c55   :  { %12741 = vmatpush3.msra.mxu1 %v15849_v33 }
0x3c56   :  { %12756 = vmatprep.subr.mxu1 %v16503_v58 }
0x3d0e   :  { %v8209_v13 = vpop.f32.mrf.mxu1 }
0x3d0f   :  { %v8210_v5 = vadd.f32 %v15894_v3, %v8209_v13 }
0x3d10   :  { %v12722_v54 = vpop.f32.mrf.mxu1 }
0x3d11   :  { %8221 = vrot.lane.b32.xlu1 %v8210_v5, %s13448_s0  ;;  %v8213_v57 = vadd.f32 %v8210_v5, %v8140_v46  ;;  %v16507_v54 = vmov 1.0  }
0x3d13   :  { %v10985_v24 = vmul.f32 -1.442695, %v8213_v57 }
0x3d15   :  { %13323 = vpow2.f32 %v10985_v24  ;;  %v8455_v24 = vld [vmem:[#allocation5 + $0x28] sm:$0xff] }
0x3d22   :  { %v13324_v23 = vpop.eup %13323 }
0x3d23   :  { %v8217_v10 = vadd.f32 1.0, %v13324_v23 }
0x3d25   :  { %13325 = vrcp.f32 %v8217_v10 }
0x3d32   :  { %v13326_v12 = vpop.eup %13325 }
0x3d33   :  { %v8231_v36 = vsub.f32 1.0, %v13326_v12  ;;  %v8237_v19 = vmul.f32 %v13326_v12, %v8133_v25 }
0x3d83   :  { %v8222_v8 = vpop.permute.xlu1 %8221 }
0x3d84   :  { %v8224_v1 = vmul.f32 %v13326_v12, %v8222_v8 }
0x3d86   :  { %8226 = vrot.lane.b32.xlu0 %v8224_v1, %s13448_s0 }
0x3df8   :  { %v8227_v45 = vpop.permute.xlu0 %8226 }
0x3df9   :  { %v8229_v48 = vadd.f32 %v8227_v45, %v8140_v46 }
0x3dfb   :  { %13327 = vtanh.f32 %v8229_v48 }
0x3e08   :  { %v13328_v17 = vpop.eup %13327 }
0x3e09   :  { %8233 = vrot.lane.b32.xlu1 %v13328_v17, %s13449_s5 }
0x3e7b   :  { %v8234_v63 = vpop.permute.xlu1 %8233 }
0x3e7c   :  { %v8236_v59 = vmul.f32 %v8234_v63, %v8231_v36 }
0x3e7e   :  { %v8238_v38 = vadd.f32 %v8237_v19, %v8236_v59 }
0x3e80   :  { %8240 = vrot.lane.b32.xlu0 %v8238_v38, %s13449_s5 }
0x3ef2   :  { %v8241_v7 = vpop.permute.xlu0 %8240 }
0x3ef3   :  { %8243 = vst.msk [vmem:[#allocation6 + $0x10] sm:$0xff] %vm227_vm0, %v8241_v7  ;;  %8244 = vst.msk [vmem:[#allocation7 + $0x28] sm:$0xff] %vm227_vm0, %v8241_v7  ;;  %12732 = vmatmul.mubr.msk.f32.vlgmr.msra.gmra.mxu0 %vm227_vm0, %v8241_v7 }
0x3ef4   :  { %12746 = vmatpush3.msra.mxu0 %v15830_v15  ;;  %12753 = vmatprep.mubr.msk.f32.mxu0 %vm13452_vm5, %v16503_v58 }
0x3ef5   :  { %12747 = vmatprep.subr.mxu0 %v16503_v58 }
0x3ef6   :  { %12748 = vmatpush3.msra.mxu0 %v15834_v39 }
0x3ef7   :  { %12749 = vmatprep.subr.mxu0 %v16503_v58 }
0x3ef8   :  { %12750 = vmatpush3.msra.mxu0 %v15841_v14 }
0x3ef9   :  { %12751 = vmatprep.subr.mxu0 %v16503_v58 }
0x3efa   :  { %12752 = vmatpush3.msra.mxu0 %v15849_v33 }
0x3efb   :  { %12767 = vmatprep.subr.mxu0 %v16503_v58 }
0x3fb3   :  { %v8314_v11 = vpop.f32.mrf.mxu0 }
0x3fb4   :  { %v8315_v55 = vadd.f32 %v15894_v3, %v8314_v11 }
0x3fb5   :  { %v12733_v50 = vpop.f32.mrf.mxu0 }
0x3fb6   :  { %8326 = vrot.lane.b32.xlu1 %v8315_v55, %s13448_s0  ;;  %v8318_v4 = vadd.f32 %v8315_v55, %v8245_v56  ;;  %v8560_v50 = vld [vmem:[#allocation5 + $0x30] sm:$0xff] }
0x3fb8   :  { %v10987_v41 = vmul.f32 -1.442695, %v8318_v4 }
0x3fba   :  { %13329 = vpow2.f32 %v10987_v41 }
0x3fc7   :  { %v13330_v52 = vpop.eup %13329 }
0x3fc8   :  { %v8322_v31 = vadd.f32 1.0, %v13330_v52 }
0x3fca   :  { %13331 = vrcp.f32 %v8322_v31 }
0x3fd7   :  { %v13332_v53 = vpop.eup %13331 }
0x3fd8   :  { %v8336_v6 = vsub.f32 1.0, %v13332_v53  ;;  %v8342_v32 = vmul.f32 %v13332_v53, %v8238_v38 }
0x4028   :  { %v8327_v26 = vpop.permute.xlu1 %8326 }
0x4029   :  { %v8329_v62 = vmul.f32 %v13332_v53, %v8327_v26 }
0x402b   :  { %8331 = vrot.lane.b32.xlu0 %v8329_v62, %s13448_s0 }
0x409d   :  { %v8332_v34 = vpop.permute.xlu0 %8331 }
0x409e   :  { %v8334_v44 = vadd.f32 %v8332_v34, %v8245_v56 }
0x40a0   :  { %13333 = vtanh.f32 %v8334_v44 }
0x40ad   :  { %v13334_v30 = vpop.eup %13333 }
0x40ae   :  { %8338 = vrot.lane.b32.xlu1 %v13334_v30, %s13449_s5 }
0x4120   :  { %v8339_v2 = vpop.permute.xlu1 %8338 }
0x4121   :  { %v8341_v16 = vmul.f32 %v8339_v2, %v8336_v6 }
0x4123   :  { %v8343_v47 = vadd.f32 %v8342_v32, %v8341_v16 }
0x4125   :  { %8345 = vrot.lane.b32.xlu0 %v8343_v47, %s13449_s5 }
0x4197   :  { %v8346_v18 = vpop.permute.xlu0 %8345 }
0x4198   :  { %8348 = vst.msk [vmem:[#allocation6 + $0x18] sm:$0xff] %vm227_vm0, %v8346_v18  ;;  %8349 = vst.msk [vmem:[#allocation7 + $0x20] sm:$0xff] %vm227_vm0, %v8346_v18  ;;  %12743 = vmatmul.mubr.msk.f32.vlgmr.msra.gmra.mxu1 %vm227_vm0, %v8346_v18 }
0x4199   :  { %12757 = vmatpush3.msra.mxu1 %v15830_v15  ;;  %12764 = vmatprep.mubr.msk.f32.mxu1 %vm13452_vm5, %v16503_v58 }
0x419a   :  { %12758 = vmatprep.subr.mxu1 %v16503_v58 }
0x419b   :  { %12759 = vmatpush3.msra.mxu1 %v15834_v39 }
0x419c   :  { %12760 = vmatprep.subr.mxu1 %v16503_v58 }
0x419d   :  { %12761 = vmatpush3.msra.mxu1 %v15841_v14 }
0x419e   :  { %12762 = vmatprep.subr.mxu1 %v16503_v58 }
0x419f   :  { %12763 = vmatpush3.msra.mxu1 %v15849_v33 }
0x4258   :  { %v8419_v51 = vpop.f32.mrf.mxu1 }
0x4259   :  { %v8420_v0 = vadd.f32 %v15894_v3, %v8419_v51 }
0x425a   :  { %v12744_v20 = vpop.f32.mrf.mxu1 }
0x425b   :  { %8431 = vrot.lane.b32.xlu1 %v8420_v0, %s13448_s0  ;;  %v8423_v35 = vadd.f32 %v8420_v0, %v8350_v42  ;;  %v8665_v20 = vld [vmem:[#allocation5 + $0x38] sm:$0xff] }
0x425d   :  { %v10989_v28 = vmul.f32 -1.442695, %v8423_v35 }
0x425f   :  { %13335 = vpow2.f32 %v10989_v28 }
0x426c   :  { %v13336_v22 = vpop.eup %13335 }
0x426d   :  { %v8427_v27 = vadd.f32 1.0, %v13336_v22 }
0x426f   :  { %13337 = vrcp.f32 %v8427_v27 }
0x427c   :  { %v13338_v29 = vpop.eup %13337 }
0x427d   :  { %v8441_v21 = vsub.f32 1.0, %v13338_v29  ;;  %v8447_v25 = vmul.f32 %v13338_v29, %v8343_v47 }
0x42cd   :  { %v8432_v49 = vpop.permute.xlu1 %8431 }
0x42ce   :  { %v8434_v9 = vmul.f32 %v13338_v29, %v8432_v49 }
0x42d0   :  { %8436 = vrot.lane.b32.xlu0 %v8434_v9, %s13448_s0 }
0x4342   :  { %v8437_v61 = vpop.permute.xlu0 %8436 }
0x4343   :  { %v8439_v40 = vadd.f32 %v8437_v61, %v8350_v42 }
0x4345   :  { %13339 = vtanh.f32 %v8439_v40  ;;  %v8794_v40 = vld [vmem:[%s16508_s24] sm:$0xff] }
0x4352   :  { %v13340_v37 = vpop.eup %13339 }
0x4353   :  { %8443 = vrot.lane.b32.xlu1 %v13340_v37, %s13449_s5  ;;  %v8796_v37 = vld [vmem:[%s16508_s24 + $0x10] sm:$0xff] }
0x43c5   :  { %v8444_v60 = vpop.permute.xlu1 %8443 }
0x43c6   :  { %v8446_v43 = vmul.f32 %v8444_v60, %v8441_v21  ;;  %v8798_v21 = vld [vmem:[%s16508_s24 + $0x20] sm:$0xff]  ;;  %v8800_v60 = vld [vmem:[%s16508_s24 + $0x30] sm:$0xff] }
0x43c8   :  { %v8448_v13 = vadd.f32 %v8447_v25, %v8446_v43  ;;  %v8861_v25 = vld [vmem:[%s16509_s6 + $0x18] sm:$0xff]  ;;  %v8860_v43 = vld [vmem:[%s16509_s6 + $0x10] sm:$0xff] }
0x43c9   :  { %12778 = vmatprep.subr.mxu1 %v8861_v25 }
0x43ca   :  { %8450 = vrot.lane.b32.xlu0 %v8448_v13, %s13449_s5 }
0x443c   :  { %v8451_v5 = vpop.permute.xlu0 %8450 }
0x443d   :  { %8453 = vst.msk [vmem:[#allocation6 + $0x20] sm:$0xff] %vm227_vm0, %v8451_v5  ;;  %8454 = vst.msk [vmem:[#allocation7 + $0x18] sm:$0xff] %vm227_vm0, %v8451_v5  ;;  %12754 = vmatmul.mubr.msk.f32.vlgmr.msra.gmra.mxu0 %vm227_vm0, %v8451_v5 }
0x443e   :  { %12768 = vmatpush3.msra.mxu0 %v15830_v15  ;;  %12775 = vmatprep.mubr.msk.f32.mxu0 %vm13452_vm5, %v16503_v58 }
0x443f   :  { %12769 = vmatprep.subr.mxu0 %v16503_v58 }
0x4440   :  { %12770 = vmatpush3.msra.mxu0 %v15834_v39 }
0x4441   :  { %12771 = vmatprep.subr.mxu0 %v16503_v58 }
0x4442   :  { %12772 = vmatpush3.msra.mxu0 %v15841_v14 }
0x4443   :  { %12773 = vmatprep.subr.mxu0 %v16503_v58 }
0x4444   :  { %12774 = vmatpush3.msra.mxu0 %v15849_v33 }
0x4445   :  { %12798 = vmatprep.subr.mxu0 %v16507_v54 }
0x44fd   :  { %v8524_v46 = vpop.f32.mrf.mxu0 }
0x44fe   :  { %v8525_v15 = vadd.f32 %v15894_v3, %v8524_v46 }
0x44ff   :  { %v12755_v57 = vpop.f32.mrf.mxu0 }
0x4500   :  { %8536 = vrot.lane.b32.xlu1 %v8525_v15, %s13448_s0  ;;  %v8528_v23 = vadd.f32 %v8525_v15, %v8455_v24 }
0x4502   :  { %v10991_v10 = vmul.f32 -1.442695, %v8528_v23  ;;  %v8858_v23 = vld [vmem:[%s16509_s6] sm:$0xff] }
0x4504   :  { %13341 = vpow2.f32 %v10991_v10  ;;  %v8795_v10 = vld [vmem:[%s16508_s24 + $0x8] sm:$0xff] }
0x4511   :  { %v13342_v39 = vpop.eup %13341 }
0x4512   :  { %v8532_v12 = vadd.f32 1.0, %v13342_v39  ;;  %v8797_v39 = vld [vmem:[%s16508_s24 + $0x18] sm:$0xff] }
0x4514   :  { %13343 = vrcp.f32 %v8532_v12 }
0x4521   :  { %v13344_v14 = vpop.eup %13343 }
0x4522   :  { %v8546_v17 = vsub.f32 1.0, %v13344_v14  ;;  %v8552_v63 = vmul.f32 %v13344_v14, %v8448_v13  ;;  %v8859_v13 = vld [vmem:[%s16509_s6 + $0x8] sm:$0xff] }
0x4572   :  { %v8537_v8 = vpop.permute.xlu1 %8536 }
0x4573   :  { %v8539_v1 = vmul.f32 %v13344_v14, %v8537_v8  ;;  %v8799_v14 = vld [vmem:[%s16508_s24 + $0x28] sm:$0xff] }
0x4575   :  { %8541 = vrot.lane.b32.xlu0 %v8539_v1, %s13448_s0  ;;  %v8772_v1 = vld [vmem:[#allocation6 + $0x10] sm:$0xff] }
0x45e7   :  { %v8542_v33 = vpop.permute.xlu0 %8541 }
0x45e8   :  { %v8544_v45 = vadd.f32 %v8542_v33, %v8455_v24 }
0x45ea   :  { %13345 = vtanh.f32 %v8544_v45 }
0x45f7   :  { %v13346_v48 = vpop.eup %13345 }
0x45f8   :  { %8548 = vrot.lane.b32.xlu1 %v13346_v48, %s13449_s5 }
0x466a   :  { %v8549_v36 = vpop.permute.xlu1 %8548 }
0x466b   :  { %v8551_v19 = vmul.f32 %v8549_v36, %v8546_v17  ;;  %v8801_v36 = vld [vmem:[%s16508_s24 + $0x38] sm:$0xff] }
0x466d   :  { %v8553_v59 = vadd.f32 %v8552_v63, %v8551_v19  ;;  %v8774_v63 = vld [vmem:[#allocation6 + $0x20] sm:$0xff] }
0x466e   :  { %v8782_v19 = vld [vmem:[#allocation7 + $0x20] sm:$0xff] }
0x466f   :  { %8555 = vrot.lane.b32.xlu0 %v8553_v59, %s13449_s5 }
0x46e1   :  { %v8556_v38 = vpop.permute.xlu0 %8555 }
0x46e2   :  { %8558 = vst.msk [vmem:[#allocation6 + $0x28] sm:$0xff] %vm227_vm0, %v8556_v38  ;;  %8559 = vst.msk [vmem:[#allocation7 + $0x10] sm:$0xff] %vm227_vm0, %v8556_v38  ;;  %12765 = vmatmul.mubr.msk.f32.vlgmr.msra.gmra.mxu1 %vm227_vm0, %v8556_v38 }
0x46e3   :  { %12779 = vmatpush3.msra.mxu1 %v8861_v25 }
0x46e4   :  { %12780 = vmatprep.subr.mxu1 %v8860_v43 }
0x46e5   :  { %12781 = vmatpush3.msra.mxu1 %v8860_v43 }
0x46e6   :  { %12782 = vmatprep.subr.mxu1 %v8859_v13 }
0x46e7   :  { %12783 = vmatpush3.msra.mxu1 %v8859_v13 }
0x46e8   :  { %12784 = vmatprep.subr.mxu1 %v8858_v23 }
0x46e9   :  { %12785 = vmatpush3.msra.mxu1 %v8858_v23  ;;  %v8780_v8 = vld [vmem:[#allocation7 + $0x10] sm:$0xff] }
0x46ea   :  { %12818 = vmatprep.subr.mxu1 %v16503_v58  ;;  %v8788_v45 = vsel %vm3274_vm2, %v8772_v1, %v8780_v8 }
0x47a2   :  { %v8629_v7 = vpop.f32.mrf.mxu1 }
0x47a3   :  { %v8630_v11 = vadd.f32 %v15894_v3, %v8629_v7 }
0x47a4   :  { %v12766_v55 = vpop.f32.mrf.mxu1 }
0x47a5   :  { %8641 = vrot.lane.b32.xlu1 %v8630_v11, %s13448_s0  ;;  %v8633_v56 = vadd.f32 %v8630_v11, %v8560_v50  ;;  %v8784_v55 = vld [vmem:[#allocation7 + $0x30] sm:$0xff] }
0x47a7   :  { %v10993_v4 = vmul.f32 -1.442695, %v8633_v56 }
0x47a9   :  { %13347 = vpow2.f32 %v10993_v4 }
0x47b6   :  { %v13348_v41 = vpop.eup %13347 }
0x47b7   :  { %v8637_v52 = vadd.f32 1.0, %v13348_v41 }
0x47b9   :  { %13349 = vrcp.f32 %v8637_v52  ;;  %v8770_v52 = vld [vmem:[#allocation6] sm:$0xff] }
0x47c6   :  { %v13350_v31 = vpop.eup %13349 }
0x47c7   :  { %v8651_v30 = vsub.f32 1.0, %v13350_v31  ;;  %v8657_v2 = vmul.f32 %v13350_v31, %v8553_v59  ;;  %v8790_v59 = vsel %vm3274_vm2, %v8774_v63, %v8782_v19  ;;  %v16123_v63 = vld [vmem:[%s16513_s10 + $0x8] sm:$0xff]  ;;  %v16126_v19 = vld [vmem:[%s16513_s10 + $0x10] sm:$0xff] }
0x4817   :  { %v8642_v53 = vpop.permute.xlu1 %8641 }
0x4818   :  { %v8644_v26 = vmul.f32 %v13350_v31, %v8642_v53 }
0x481a   :  { %8646 = vrot.lane.b32.xlu0 %v8644_v26, %s13448_s0 }
0x488c   :  { %v8647_v62 = vpop.permute.xlu0 %8646 }
0x488d   :  { %v8649_v34 = vadd.f32 %v8647_v62, %v8560_v50 }
0x488f   :  { %13351 = vtanh.f32 %v8649_v34  ;;  %v8771_v34 = vld [vmem:[#allocation6 + $0x8] sm:$0xff] }
0x489c   :  { %v13352_v44 = vpop.eup %13351 }
0x489d   :  { %8653 = vrot.lane.b32.xlu1 %v13352_v44, %s13449_s5 }
0x490f   :  { %v8654_v6 = vpop.permute.xlu1 %8653 }
0x4910   :  { %v8656_v32 = vmul.f32 %v8654_v6, %v8651_v30 }
0x4912   :  { %v8658_v16 = vadd.f32 %v8657_v2, %v8656_v32  ;;  %v8781_v2 = vld [vmem:[#allocation7 + $0x18] sm:$0xff] }
0x4913   :  { %v8773_v32 = vld [vmem:[#allocation6 + $0x18] sm:$0xff] }
0x4914   :  { %8660 = vrot.lane.b32.xlu0 %v8658_v16, %s13449_s5 }
0x4986   :  { %v8661_v47 = vpop.permute.xlu0 %8660 }
0x4987   :  { %8663 = vst.msk [vmem:[#allocation6 + $0x30] sm:$0xff] %vm227_vm0, %v8661_v47  ;;  %8664 = vst.msk [vmem:[#allocation7 + $0x8] sm:$0xff] %vm227_vm0, %v8661_v47  ;;  %12776 = vmatmul.mubr.msk.f32.vlgmr.msra.gmra.mxu0 %vm227_vm0, %v8661_v47 }
0x4988   :  { %12799 = vmatpush3.msra.mxu0 %v16507_v54 }
0x4989   :  { %12800 = vmatprep.subr.mxu0 %v16507_v54 }
0x498a   :  { %12801 = vmatpush3.msra.mxu0 %v16507_v54 }
0x498b   :  { %12802 = vmatprep.subr.mxu0 %v16507_v54 }
0x498c   :  { %12803 = vmatpush3.msra.mxu0 %v16507_v54 }
0x498d   :  { %12804 = vmatprep.subr.mxu0 %v16507_v54 }
0x498e   :  { %12805 = vmatpush3.msra.mxu0 %v16507_v54  ;;  %v8776_v11 = vld [vmem:[#allocation6 + $0x30] sm:$0xff]  ;;  %v8779_v62 = vld [vmem:[#allocation7 + $0x8] sm:$0xff] }
0x498f   :  { %12851 = vmatprep.subr.mxu0 %v16507_v54  ;;  %v8792_v50 = vsel %vm3274_vm2, %v8776_v11, %v8784_v55  ;;  %v8787_v44 = vsel %vm3274_vm2, %v8771_v34, %v8779_v62  ;;  %v16144_v11 = vld [vmem:[%s16513_s10 + $0x28] sm:$0xff]  ;;  %v16147_v55 = vld [vmem:[%s16513_s10 + $0x30] sm:$0xff] }
0x4a47   :  { %v8734_v18 = vpop.f32.mrf.mxu0 }
0x4a48   :  { %v8735_v51 = vadd.f32 %v15894_v3, %v8734_v18 }
0x4a49   :  { %v12777_v0 = vpop.f32.mrf.mxu0 }
0x4a4a   :  { %8746 = vrot.lane.b32.xlu1 %v8735_v51, %s13448_s0  ;;  %v8738_v42 = vadd.f32 %v8735_v51, %v8665_v20  ;;  %v8775_v51 = vld [vmem:[#allocation6 + $0x28] sm:$0xff] }
0x4a4b   :  { %v8783_v0 = vld [vmem:[#allocation7 + $0x28] sm:$0xff] }
0x4a4c   :  { %v10995_v35 = vmul.f32 -1.442695, %v8738_v42 }
0x4a4e   :  { %13353 = vpow2.f32 %v10995_v35 }
0x4a5b   :  { %v13354_v28 = vpop.eup %13353 }
0x4a5c   :  { %v8742_v22 = vadd.f32 1.0, %v13354_v28 }
0x4a5e   :  { %13355 = vrcp.f32 %v8742_v22  ;;  %v8785_v22 = vld [vmem:[#allocation7 + $0x38] sm:$0xff] }
0x4a6b   :  { %v13356_v27 = vpop.eup %13355 }
0x4a6c   :  { %v8756_v5 = vsub.f32 1.0, %v13356_v27  ;;  %v8762_v15 = vmul.f32 %v13356_v27, %v8658_v16  ;;  %v8789_v16 = vsel %vm3274_vm2, %v8773_v32, %v8781_v2 }
0x4abc   :  { %v8747_v29 = vpop.permute.xlu1 %8746 }
0x4abd   :  { %v8749_v49 = vmul.f32 %v13356_v27, %v8747_v29 }
0x4abf   :  { %8751 = vrot.lane.b32.xlu0 %v8749_v49, %s13448_s0 }
0x4b31   :  { %v8752_v3 = vpop.permute.xlu0 %8751 }
0x4b32   :  { %v8754_v9 = vadd.f32 %v8752_v3, %v8665_v20  ;;  %v8791_v20 = vsel %vm3274_vm2, %v8775_v51, %v8783_v0 }
0x4b34   :  { %13357 = vtanh.f32 %v8754_v9  ;;  %v10996_v9 = vld [vmem:[%s16511_s12] ss:$0 sm:$0xff] }
0x4b41   :  { %v13358_v61 = vpop.eup %13357 }
0x4b42   :  { %8758 = vrot.lane.b32.xlu1 %v13358_v61, %s13449_s5 }
0x4b46   :  { %8804 = vperm.xlu1 %13046, %v8794_v40  }
0x4b4a   :  { %8814 = vperm.xlu1 %13046, %v8796_v37  }
0x4b4e   :  { %8824 = vperm.xlu1 %13046, %v8798_v21  }
0x4b52   :  { %8834 = vperm.xlu1 %13046, %v8800_v60  }
0x4bb4   :  { %v8759_v46 = vpop.permute.xlu1 %8758 }
0x4bb5   :  { %v8761_v57 = vmul.f32 %v8759_v46, %v8756_v5 }
0x4bb7   :  { %v8763_v24 = vadd.f32 %v8762_v15, %v8761_v57 }
0x4bb9   :  { %8765 = vrot.lane.b32.xlu0 %v8763_v24, %s13449_s5 }
0x4bbd   :  { %8809 = vperm.xlu0 %13045, %v8795_v10  }
0x4bc1   :  { %8819 = vperm.xlu0 %13045, %v8797_v39   ;;  %v8805_v12 = vpop.permute.xlu1 %8804 }
0x4bc5   :  { %8829 = vperm.xlu0 %13045, %v8799_v14   ;;  %v8815_v48 = vpop.permute.xlu1 %8814 }
0x4bc6   :  { %v8844_v17 = vmul.f32 %v8815_v48, %v8788_v45  ;;  %v16112_v48 = vld [vmem:[%s16512_s7] sm:$0xff] }
0x4bc8   :  { %8852 = vst.msk [vmem:[#allocation6 + $0x10] sm:$0xff] %vm227_vm0, %v8844_v17 }
0x4bc9   :  { %8839 = vperm.xlu0 %13045, %v8801_v36   ;;  %v8825_v38 = vpop.permute.xlu1 %8824 }
0x4bca   :  { %v8846_v7 = vmul.f32 %v8825_v38, %v8790_v59  ;;  %v16134_v38 = vld [vmem:[%s16513_s10 + $0x18] sm:$0xff] }
0x4bcc   :  { %8854 = vst.msk [vmem:[#allocation6 + $0x20] sm:$0xff] %vm227_vm0, %v8846_v7 }
0x4bcd   :  { %v8835_v56 = vpop.permute.xlu1 %8834 }
0x4bce   :  { %v8848_v4 = vmul.f32 %v8835_v56, %v8792_v50  ;;  %v16154_v50 = vld [vmem:[%s16513_s10 + $0x38] sm:$0xff] }
0x4bd0   :  { %8856 = vst.msk [vmem:[#allocation6 + $0x30] sm:$0xff] %vm227_vm0, %v8848_v4 }
0x4c2b   :  { %v8766_v41 = vpop.permute.xlu0 %8765 }
0x4c2c   :  { %8768 = vst.msk [vmem:[#allocation6 + $0x38] sm:$0xff] %vm227_vm0, %v8766_v41  ;;  %8769 = vst.msk [vmem:[#allocation7] sm:$0xff] %vm227_vm0, %v8766_v41 }
0x4c33   :  { %v8778_v31 = vld [vmem:[#allocation7] sm:$0xff]  ;;  %v8777_v28 = vld [vmem:[#allocation6 + $0x38] sm:$0xff] }
0x4c34   :  { %v8786_v53 = vsel %vm3274_vm2, %v8770_v52, %v8778_v31  ;;  %v8793_v29 = vsel %vm3274_vm2, %v8777_v28, %v8785_v22 }
0x4c35   :  { %v8842_v26 = vmul.f32 %v8805_v12, %v8786_v53 }
0x4c37   :  { %8850 = vst.msk [vmem:[#allocation6] sm:$0xff] %vm227_vm0, %v8842_v26  ;;  %12786 = vmatprep.mubr.msk.f32.mxu1 %vm227_vm0, %v8842_v26 }
0x4c38   :  { %v8810_v30 = vpop.permute.xlu0 %8809 }
0x4c39   :  { %v8843_v6 = vmul.f32 %v8810_v30, %v8787_v44 }
0x4c3b   :  { %8851 = vst.msk [vmem:[#allocation6 + $0x8] sm:$0xff] %vm227_vm0, %v8843_v6  ;;  %12787 = vmatmul.mubr.msk.f32.vlgmr.msra.gmra.mxu1 %vm227_vm0, %v8843_v6 }
0x4c3c   :  { %v8820_v47 = vpop.permute.xlu0 %8819  ;;  %12789 = vmatprep.mubr.msk.f32.mxu1 %vm227_vm0, %v8844_v17  ;;  %v16118_v17 = vld [vmem:[%s16513_s10] sm:$0xff] }
0x4c3d   :  { %v8845_v18 = vmul.f32 %v8820_v47, %v8789_v16 }
0x4c3f   :  { %8853 = vst.msk [vmem:[#allocation6 + $0x18] sm:$0xff] %vm227_vm0, %v8845_v18  ;;  %12790 = vmatmul.mubr.msk.f32.gmra.mxu1 %vm227_vm0, %v8845_v18 }
0x4c40   :  { %v8830_v42 = vpop.permute.xlu0 %8829  ;;  %12792 = vmatprep.mubr.msk.f32.mxu1 %vm227_vm0, %v8846_v7  ;;  %v16137_v7 = vld [vmem:[%s16513_s10 + $0x20] sm:$0xff] }
0x4c41   :  { %v8847_v35 = vmul.f32 %v8830_v42, %v8791_v20 }
0x4c43   :  { %8855 = vst.msk [vmem:[#allocation6 + $0x28] sm:$0xff] %vm227_vm0, %v8847_v35  ;;  %12793 = vmatmul.mubr.msk.f32.gmra.mxu1 %vm227_vm0, %v8847_v35 }
0x4c44   :  { %v8840_v27 = vpop.permute.xlu0 %8839  ;;  %12795 = vmatprep.mubr.msk.f32.mxu1 %vm227_vm0, %v8848_v4 }
0x4c45   :  { %v8849_v49 = vmul.f32 %v8840_v27, %v8793_v29 }
0x4c47   :  { %8857 = vst.msk [vmem:[#allocation6 + $0x38] sm:$0xff] %vm227_vm0, %v8849_v49  ;;  %12796 = vmatmul.mubr.msk.f32.gmra.mxu1 %vm227_vm0, %v8849_v49 }
0x4c48   :  { %12834 = vmatprep.mubr.msk.f32.mxu1 %vm13452_vm5, %v16503_v58 }
0x4cfb   :  { %v12788_v3 = vpop.f32.mrf.mxu1 }
0x4cfc   :  { %v16068_v37 = vadd.f32 %v12788_v3, %v10996_v9 }
0x4cfd   :  { %v8959_v61 = vpop.f32.mrf.mxu1 }
0x4cfe   :  { %v16066_v40 = vadd.f32 %v10996_v9, %v8959_v61 }
0x4cff   :  { %v12791_v21 = vpop.f32.mrf.mxu1 }
0x4d00   :  { %12806 = vmatprep.mubr.msk.f32.mxu0 %vm227_vm0, %v16066_v40  ;;  %v16077_v43 = vadd.f32 %v12791_v21, %v10996_v9 }
0x4d01   :  { %v8969_v60 = vpop.f32.mrf.mxu1  ;;  %12807 = vmatmul.mubr.msk.f32.vlgmr.msra.gmra.mxu0 %vm227_vm0, %v16068_v37 }
0x4d02   :  { %v16074_v25 = vadd.f32 %v10996_v9, %v8969_v60  ;;  %12852 = vmatpush3.msra.mxu0 %v16507_v54 }
0x4d03   :  { %v12794_v13 = vpop.f32.mrf.mxu1  ;;  %12853 = vmatprep.subr.mxu0 %v16507_v54 }
0x4d04   :  { %12809 = vmatprep.mubr.msk.f32.mxu0 %vm227_vm0, %v16074_v25  ;;  %12854 = vmatpush3.msra.mxu0 %v16507_v54  ;;  %v16089_v15 = vadd.f32 %v12794_v13, %v10996_v9 }
0x4d05   :  { %v8979_v5 = vpop.f32.mrf.mxu1  ;;  %12810 = vmatmul.mubr.msk.f32.gmra.mxu0 %vm227_vm0, %v16077_v43  ;;  %12855 = vmatprep.subr.mxu0 %v16507_v54 }
0x4d06   :  { %v16086_v46 = vadd.f32 %v10996_v9, %v8979_v5  ;;  %12856 = vmatpush3.msra.mxu0 %v16507_v54 }
0x4d07   :  { %v12797_v57 = vpop.f32.mrf.mxu1  ;;  %12857 = vmatprep.subr.mxu0 %v16507_v54 }
0x4d08   :  { %12812 = vmatprep.mubr.msk.f32.mxu0 %vm227_vm0, %v16086_v46  ;;  %12858 = vmatpush3.msra.mxu0 %v16507_v54  ;;  %v16099_v10 = vadd.f32 %v12797_v57, %v10996_v9  ;;  %v9703_v57 = vld [vmem:[%s16514_s11] sm:$0xff] }
0x4d09   :  { %v8989_v24 = vpop.f32.mrf.mxu1  ;;  %12813 = vmatmul.mubr.msk.f32.gmra.mxu0 %vm227_vm0, %v16089_v15 }
0x4d0a   :  { %v16097_v23 = vadd.f32 %v10996_v9, %v8989_v24 }
0x4d0c   :  { %12815 = vmatprep.mubr.msk.f32.mxu0 %vm227_vm0, %v16097_v23 }
0x4d0d   :  { %12816 = vmatmul.mubr.msk.f32.gmra.mxu0 %vm227_vm0, %v16099_v10 }
0x4dc1   :  { %v12808_v39 = vpop.f32.mrf.mxu0 }
0x4dc3   :  { %v9097_v12 = vpop.f32.mrf.mxu0 }
0x4dc5   :  { %v12811_v14 = vpop.f32.mrf.mxu0 }
0x4dc7   :  { %v9107_v8 = vpop.f32.mrf.mxu0 }
0x4dc9   :  { %v12814_v1 = vpop.f32.mrf.mxu0 }
0x4dcb   :  { %v9117_v54 = vpop.f32.mrf.mxu0 }
0x4dcd   :  { %v12817_v33 = vpop.f32.mrf.mxu0 }
0x4dce   :  { %12819 = vmatpush3.msra.mxu1 %v12817_v33  ;;  %v9525_v33 = vld [vmem:[%s16515_s15] sm:$0xff] }
0x4dcf   :  { %v9127_v45 = vpop.f32.mrf.mxu0  ;;  %12820 = vmatprep.subr.mxu1 %v16503_v58 }
0x4dd0   :  { %12821 = vmatpush3.msra.mxu1 %v9127_v45 }
0x4dd1   :  { %12822 = vmatprep.subr.mxu1 %v16503_v58 }
0x4dd2   :  { %12823 = vmatpush3.msra.mxu1 %v12814_v1 }
0x4dd3   :  { %12824 = vmatprep.subr.mxu1 %v16503_v58 }
0x4dd4   :  { %12825 = vmatpush3.msra.mxu1 %v9117_v54 }
0x4dd5   :  { %12826 = vmatprep.subr.mxu1 %v16503_v58 }
0x4dd6   :  { %12827 = vmatpush3.msra.mxu1 %v12811_v14 }
0x4dd7   :  { %12828 = vmatprep.subr.mxu1 %v16503_v58 }
0x4dd8   :  { %12829 = vmatpush3.msra.mxu1 %v9107_v8 }
0x4dd9   :  { %12830 = vmatprep.subr.mxu1 %v16503_v58 }
0x4dda   :  { %12831 = vmatpush3.msra.mxu1 %v12808_v39 }
0x4ddb   :  { %12832 = vmatprep.subr.mxu1 %v16503_v58 }
0x4ddc   :  { %12833 = vmatpush3.msra.mxu1 %v9097_v12 }
0x4ddd   :  { %12835 = vmatmul.mubr.msk.f32.vlgmr.msra.gmra.mxu1 %vm9136_vm6, %v16112_v48 }
0x4dde   :  { %12839 = vmatprep.mubr.msk.f32.mxu1 %vm9210_vm7, %v16118_v17 }
0x4e9d   :  { %v9206_v36 = vpop.f32.mrf.mxu1 }
0x4e9e   :  { %12837 = vmatprep.subr.mxu1 %v9206_v36 }
0x4e9f   :  { %12838 = vmatpush3.msra.mxu1 %v9206_v36  ;;  %v12836_v59 = vpop.f32.mrf.mxu1  ;;  %v9915_v36 = vld [vmem:[%s16516_s16 + $0x10] sm:$0xff] }
0x4ea0   :  { %12840 = vmatmul.mubr.msk.f32.vlgmr.msra.gmra.mxu1 %vm9210_vm7, %v16123_v63  ;;  %12871 = vmatprep.subr.mxu1 %v16503_v58 }
0x4ea1   :  { %12842 = vmatprep.mubr.msk.f32.mxu1 %vm9210_vm7, %v16126_v19 }
0x4ea4   :  { %12843 = vmatmul.mubr.msk.f32.gmra.mxu1 %vm9210_vm7, %v16134_v38 }
0x4ea5   :  { %12845 = vmatprep.mubr.msk.f32.mxu1 %vm9210_vm7, %v16137_v7 }
0x4ea8   :  { %12846 = vmatmul.mubr.msk.f32.gmra.mxu1 %vm9210_vm7, %v16144_v11 }
0x4ea9   :  { %12848 = vmatprep.mubr.msk.f32.mxu1 %vm9210_vm7, %v16147_v55 }
0x4eac   :  { %12849 = vmatmul.mubr.msk.f32.gmra.mxu1 %vm9210_vm7, %v16154_v50 }
0x4ead   :  { %12887 = vmatprep.mubr.msk.f32.mxu1 %vm13452_vm5, %v16503_v58 }
0x4f60   :  { %v12841_v56 = vpop.f32.mrf.mxu1 }
0x4f61   :  { %9347 = vperm.xlu0 %13045, %v12841_v56  }
0x4f62   :  { %v9301_v4 = vpop.f32.mrf.mxu1 }
0x4f63   :  { %9342 = vperm.xlu1 %13046, %v9301_v4  }
0x4f64   :  { %v12844_v41 = vpop.f32.mrf.mxu1 }
0x4f65   :  { %9357 = vperm.xlu0 %13045, %v12844_v41  }
0x4f66   :  { %v9311_v52 = vpop.f32.mrf.mxu1 }
0x4f67   :  { %9352 = vperm.xlu1 %13046, %v9311_v52  }
0x4f68   :  { %v12847_v31 = vpop.f32.mrf.mxu1 }
0x4f69   :  { %9367 = vperm.xlu0 %13045, %v12847_v31  }
0x4f6a   :  { %v9321_v53 = vpop.f32.mrf.mxu1 }
0x4f6b   :  { %9362 = vperm.xlu1 %13046, %v9321_v53  }
0x4f6c   :  { %v12850_v26 = vpop.f32.mrf.mxu1 }
0x4f6d   :  { %9377 = vperm.xlu0 %13045, %v12850_v26  }
0x4f6e   :  { %v9331_v62 = vpop.f32.mrf.mxu1 }
0x4f6f   :  { %9372 = vperm.xlu1 %13046, %v9331_v62  }
0x4fdc   :  { %v9348_v34 = vpop.permute.xlu0 %9347 }
0x4fdd   :  { %v16161_v44 = vsub.f32 %v16068_v37, %v9348_v34 }
0x4fde   :  { %v9343_v30 = vpop.permute.xlu1 %9342 }
0x4fdf   :  { %v16164_v6 = vsub.f32 %v16066_v40, %v9343_v30  ;;  %v9389_v16 = vmul.f32 %v16161_v44, %v16161_v44 }
0x4fe0   :  { %v9358_v2 = vpop.permute.xlu0 %9357 }
0x4fe1   :  { %v9388_v32 = vmul.f32 %v16164_v6, %v16164_v6  ;;  %v16171_v47 = vsub.f32 %v16077_v43, %v9358_v2 }
0x4fe2   :  { %v9353_v18 = vpop.permute.xlu1 %9352 }
0x4fe3   :  { %v16174_v51 = vsub.f32 %v16074_v25, %v9353_v18  ;;  %12859 = vmatprep.mubr.msk.f32.mxu0 %vm227_vm0, %v9388_v32  ;;  %v9391_v42 = vmul.f32 %v16171_v47, %v16171_v47 }
0x4fe4   :  { %12860 = vmatmul.mubr.msk.f32.vlgmr.msra.gmra.mxu0 %vm227_vm0, %v9389_v16  ;;  %v9368_v0 = vpop.permute.xlu0 %9367 }
0x4fe5   :  { %v9390_v20 = vmul.f32 %v16174_v51, %v16174_v51  ;;  %v16183_v35 = vsub.f32 %v16089_v15, %v9368_v0 }
0x4fe6   :  { %v9363_v28 = vpop.permute.xlu1 %9362 }
0x4fe7   :  { %v16186_v22 = vsub.f32 %v16086_v46, %v9363_v28  ;;  %12862 = vmatprep.mubr.msk.f32.mxu0 %vm227_vm0, %v9390_v20  ;;  %v9393_v49 = vmul.f32 %v16183_v35, %v16183_v35 }
0x4fe8   :  { %12863 = vmatmul.mubr.msk.f32.gmra.mxu0 %vm227_vm0, %v9391_v42  ;;  %v9378_v27 = vpop.permute.xlu0 %9377 }
0x4fe9   :  { %v9392_v29 = vmul.f32 %v16186_v22, %v16186_v22  ;;  %v16195_v3 = vsub.f32 %v16099_v10, %v9378_v27 }
0x4fea   :  { %v9373_v9 = vpop.permute.xlu1 %9372 }
0x4feb   :  { %v16198_v61 = vsub.f32 %v16097_v23, %v9373_v9  ;;  %12865 = vmatprep.mubr.msk.f32.mxu0 %vm227_vm0, %v9392_v29  ;;  %v9395_v37 = vmul.f32 %v16195_v3, %v16195_v3 }
0x4fec   :  { %12866 = vmatmul.mubr.msk.f32.gmra.mxu0 %vm227_vm0, %v9393_v49 }
0x4fed   :  { %v9394_v40 = vmul.f32 %v16198_v61, %v16198_v61 }
0x4fef   :  { %12868 = vmatprep.mubr.msk.f32.mxu0 %vm227_vm0, %v9394_v40 }
0x4ff0   :  { %12869 = vmatmul.mubr.msk.f32.gmra.mxu0 %vm227_vm0, %v9395_v37 }
0x4ff1   :  { %12892 = vmatprep.mubr.msk.f32.mxu0 %vm9210_vm7, %v16118_v17 }
0x50a4   :  { %v12861_v21 = vpop.f32.mrf.mxu0 }
0x50a6   :  { %v9486_v60 = vpop.f32.mrf.mxu0 }
0x50a8   :  { %v12864_v25 = vpop.f32.mrf.mxu0 }
0x50aa   :  { %v9496_v43 = vpop.f32.mrf.mxu0 }
0x50ac   :  { %v12867_v13 = vpop.f32.mrf.mxu0 }
0x50ae   :  { %v9506_v5 = vpop.f32.mrf.mxu0 }
0x50b0   :  { %v12870_v46 = vpop.f32.mrf.mxu0 }
0x50b1   :  { %12872 = vmatpush3.msra.mxu1 %v12870_v46 }
0x50b2   :  { %v9516_v15 = vpop.f32.mrf.mxu0  ;;  %12873 = vmatprep.subr.mxu1 %v16503_v58 }
0x50b3   :  { %12874 = vmatpush3.msra.mxu1 %v9516_v15 }
0x50b4   :  { %12875 = vmatprep.subr.mxu1 %v16503_v58 }
0x50b5   :  { %12876 = vmatpush3.msra.mxu1 %v12867_v13 }
0x50b6   :  { %12877 = vmatprep.subr.mxu1 %v16503_v58 }
0x50b7   :  { %12878 = vmatpush3.msra.mxu1 %v9506_v5 }
0x50b8   :  { %12879 = vmatprep.subr.mxu1 %v16503_v58 }
0x50b9   :  { %12880 = vmatpush3.msra.mxu1 %v12864_v25 }
0x50ba   :  { %12881 = vmatprep.subr.mxu1 %v16503_v58 }
0x50bb   :  { %12882 = vmatpush3.msra.mxu1 %v9496_v43 }
0x50bc   :  { %12883 = vmatprep.subr.mxu1 %v16503_v58 }
0x50bd   :  { %12884 = vmatpush3.msra.mxu1 %v12861_v21 }
0x50be   :  { %12885 = vmatprep.subr.mxu1 %v16503_v58 }
0x50bf   :  { %12886 = vmatpush3.msra.mxu1 %v9486_v60 }
0x50c0   :  { %12888 = vmatmul.mubr.msk.f32.vlgmr.msra.gmra.mxu1 %vm9136_vm6, %v16112_v48  ;;  %12904 = vmatprep.subr.mxu1 %v9703_v57 }
0x50c1   :  { %12905 = vmatpush3.msra.mxu1 %v9703_v57  ;;  %12906 = vmatprep.mubr.msk.f32.mxu1 %vm9210_vm7, %v16118_v17  ;;  %v9916_v17 = vld [vmem:[%s16516_s16 + $0x18] sm:$0xff] }
0x50c2   :  { %12938 = vmatprep.subr.mxu1 %v16503_v58 }
0x50c4   :  { %12907 = vmatmul.mubr.msk.f32.vlgmr.msra.gmra.mxu1 %vm9210_vm7, %v16123_v63 }
0x50c5   :  { %12909 = vmatprep.mubr.msk.f32.mxu1 %vm9210_vm7, %v16126_v19 }
0x50c8   :  { %12910 = vmatmul.mubr.msk.f32.gmra.mxu1 %vm9210_vm7, %v16134_v38 }
0x50c9   :  { %12912 = vmatprep.mubr.msk.f32.mxu1 %vm9210_vm7, %v16137_v7 }
0x50cc   :  { %12913 = vmatmul.mubr.msk.f32.gmra.mxu1 %vm9210_vm7, %v16144_v11 }
0x50cd   :  { %12915 = vmatprep.mubr.msk.f32.mxu1 %vm9210_vm7, %v16147_v55 }
0x50d0   :  { %12916 = vmatmul.mubr.msk.f32.gmra.mxu1 %vm9210_vm7, %v16154_v50 }
0x50d1   :  { %12954 = vmatprep.mubr.msk.f32.mxu1 %vm13452_vm5, %v16503_v58 }
0x5180   :  { %v9592_v24 = vpop.f32.mrf.mxu1 }
0x5181   :  { %v9593_v23 = vadd.f32 1e-05, %v9592_v24 }
0x5182   :  { %v12889_v10 = vpop.f32.mrf.mxu1 }
0x5183   :  { %13359 = vrsqrt.f32 %v9593_v23 }
0x5184   :  { %v12908_v39 = vpop.f32.mrf.mxu1 }
0x5185   :  { %9864 = vperm.xlu0 %13045, %v12908_v39  }
0x5186   :  { %v9770_v12 = vpop.f32.mrf.mxu1 }
0x5187   :  { %9859 = vperm.xlu1 %13046, %v9770_v12  }
0x5188   :  { %v12911_v14 = vpop.f32.mrf.mxu1 }
0x5189   :  { %9874 = vperm.xlu0 %13045, %v12911_v14  }
0x518a   :  { %v9780_v8 = vpop.f32.mrf.mxu1 }
0x518b   :  { %9869 = vperm.xlu1 %13046, %v9780_v8  }
0x518c   :  { %v12914_v1 = vpop.f32.mrf.mxu1 }
0x518d   :  { %9884 = vperm.xlu0 %13045, %v12914_v1  }
0x518e   :  { %v9790_v54 = vpop.f32.mrf.mxu1 }
0x518f   :  { %9879 = vperm.xlu1 %13046, %v9790_v54  }
0x5190   :  { %v13360_v45 = vpop.eup %13359  ;;  %v12917_v41 = vpop.f32.mrf.mxu1 }
0x5191   :  { %v9597_v48 = vmul.f32 %v13360_v45, %v9525_v33 }
0x5192   :  { %v9800_v52 = vpop.f32.mrf.mxu1 }
0x5193   :  { %12890 = vmatprep.subr.mxu0 %v9597_v48 }
0x5194   :  { %12891 = vmatpush3.msra.mxu0 %v9597_v48 }
0x5195   :  { %12893 = vmatmul.mubr.msk.f32.vlgmr.msra.gmra.mxu0 %vm9210_vm7, %v16123_v63  ;;  %12918 = vmatprep.subr.mxu0 %v9916_v17 }
0x5196   :  { %12895 = vmatprep.mubr.msk.f32.mxu0 %vm9210_vm7, %v16126_v19  ;;  %12919 = vmatpush3.msra.mxu0 %v9916_v17  ;;  %v9914_v19 = vld [vmem:[%s16516_s16 + $0x8] sm:$0xff] }
0x5197   :  { %12920 = vmatprep.subr.mxu0 %v9915_v36 }
0x5198   :  { %12921 = vmatpush3.msra.mxu0 %v9915_v36 }
0x5199   :  { %12896 = vmatmul.mubr.msk.f32.gmra.mxu0 %vm9210_vm7, %v16134_v38  ;;  %12922 = vmatprep.subr.mxu0 %v9914_v19  ;;  %v9913_v38 = vld [vmem:[%s16516_s16] sm:$0xff] }
0x519a   :  { %12898 = vmatprep.mubr.msk.f32.mxu0 %vm9210_vm7, %v16137_v7  ;;  %12923 = vmatpush3.msra.mxu0 %v9914_v19 }
0x519b   :  { %12924 = vmatprep.subr.mxu0 %v9913_v38 }
0x519c   :  { %12925 = vmatpush3.msra.mxu0 %v9913_v38 }
0x519d   :  { %12899 = vmatmul.mubr.msk.f32.gmra.mxu0 %vm9210_vm7, %v16144_v11  ;;  %12971 = vmatprep.subr.mxu0 %v16503_v58 }
0x519e   :  { %12901 = vmatprep.mubr.msk.f32.mxu0 %vm9210_vm7, %v16147_v55 }
0x51a1   :  { %12902 = vmatmul.mubr.msk.f32.gmra.mxu0 %vm9210_vm7, %v16154_v50 }
0x5200   :  { %v9865_v31 = vpop.permute.xlu0 %9864 }
0x5202   :  { %v9860_v53 = vpop.permute.xlu1 %9859 }
0x5204   :  { %v9875_v26 = vpop.permute.xlu0 %9874 }
0x5206   :  { %v9870_v62 = vpop.permute.xlu1 %9869 }
0x5208   :  { %v9885_v34 = vpop.permute.xlu0 %9884 }
0x520a   :  { %v9880_v30 = vpop.permute.xlu1 %9879 }
0x5255   :  { %v12894_v63 = vpop.f32.mrf.mxu0 }
0x5256   :  { %9816 = vperm.xlu0 %13045, %v12894_v63  }
0x5257   :  { %v9664_v59 = vpop.f32.mrf.mxu0 }
0x5258   :  { %9811 = vperm.xlu1 %13046, %v9664_v59  }
0x5259   :  { %v12897_v7 = vpop.f32.mrf.mxu0 }
0x525a   :  { %9826 = vperm.xlu0 %13045, %v12897_v7  }
0x525b   :  { %v9674_v11 = vpop.f32.mrf.mxu0 }
0x525c   :  { %9821 = vperm.xlu1 %13046, %v9674_v11  }
0x525d   :  { %v12900_v55 = vpop.f32.mrf.mxu0 }
0x525e   :  { %9836 = vperm.xlu0 %13045, %v12900_v55  }
0x525f   :  { %v9684_v50 = vpop.f32.mrf.mxu0 }
0x5260   :  { %9831 = vperm.xlu1 %13046, %v9684_v50  }
0x5261   :  { %v12903_v56 = vpop.f32.mrf.mxu0 }
0x5262   :  { %9846 = vperm.xlu0 %13045, %v12903_v56  }
0x5263   :  { %v9694_v4 = vpop.f32.mrf.mxu0 }
0x5264   :  { %9841 = vperm.xlu1 %13046, %v9694_v4  }
0x5266   :  { %9894 = vperm.xlu0 %13045, %v12917_v41  }
0x5268   :  { %9889 = vperm.xlu1 %13046, %v9800_v52  }
0x52d1   :  { %v9817_v2 = vpop.permute.xlu0 %9816 }
0x52d2   :  { %v9850_v32 = vmul.f32 %v9817_v2, %v16161_v44 }
0x52d3   :  { %v9812_v16 = vpop.permute.xlu1 %9811 }
0x52d4   :  { %v9849_v18 = vmul.f32 %v9812_v16, %v16164_v6  ;;  %v9898_v0 = vadd.f32 %v9865_v31, %v9850_v32 }
0x52d5   :  { %v9827_v20 = vpop.permute.xlu0 %9826 }
0x52d6   :  { %v9897_v42 = vadd.f32 %v9860_v53, %v9849_v18  ;;  %v9852_v28 = vmul.f32 %v9827_v20, %v16171_v47  ;;  %v9906_v9 = vmax.f32 %v9898_v0, 0.0 }
0x52d7   :  { %v9822_v27 = vpop.permute.xlu1 %9821 }
0x52d8   :  { %v9905_v29 = vmax.f32 %v9897_v42, 0.0  ;;  %v9851_v49 = vmul.f32 %v9822_v27, %v16174_v51  ;;  %v9900_v40 = vadd.f32 %v9875_v26, %v9852_v28 }
0x52d9   :  { %v9837_v37 = vpop.permute.xlu0 %9836 }
0x52da   :  { %v9899_v21 = vadd.f32 %v9870_v62, %v9851_v49  ;;  %v9854_v60 = vmul.f32 %v9837_v37, %v16183_v35  ;;  %12926 = vmatprep.mubr.msk.f32.mxu0 %vm227_vm0, %v9905_v29  ;;  %v9908_v43 = vmax.f32 %v9900_v40, 0.0 }
0x52db   :  { %12927 = vmatmul.mubr.msk.f32.vlgmr.msra.gmra.mxu0 %vm227_vm0, %v9906_v9  ;;  %v9832_v44 = vpop.permute.xlu1 %9831 }
0x52dc   :  { %v9907_v6 = vmax.f32 %v9899_v21, 0.0  ;;  %v9853_v25 = vmul.f32 %v9832_v44, %v16186_v22  ;;  %v9902_v47 = vadd.f32 %v9885_v34, %v9854_v60 }
0x52dd   :  { %v9847_v13 = vpop.permute.xlu0 %9846 }
0x52de   :  { %v9901_v5 = vadd.f32 %v9880_v30, %v9853_v25  ;;  %12929 = vmatprep.mubr.msk.f32.mxu0 %vm227_vm0, %v9907_v6  ;;  %v9910_v15 = vmax.f32 %v9902_v47, 0.0  ;;  %v9856_v35 = vmul.f32 %v9847_v13, %v16195_v3 }
0x52df   :  { %12930 = vmatmul.mubr.msk.f32.gmra.mxu0 %vm227_vm0, %v9908_v43  ;;  %v9842_v51 = vpop.permute.xlu1 %9841 }
0x52e0   :  { %v9909_v46 = vmax.f32 %v9901_v5, 0.0  ;;  %v9855_v24 = vmul.f32 %v9842_v51, %v16198_v61  ;;  %v10091_v51 = vld [vmem:[%s16517_s18] sm:$0xff] }
0x52e1   :  { %v9895_v57 = vpop.permute.xlu0 %9894 }
0x52e2   :  { %12932 = vmatprep.mubr.msk.f32.mxu0 %vm227_vm0, %v9909_v46  ;;  %v9904_v23 = vadd.f32 %v9895_v57, %v9856_v35 }
0x52e3   :  { %12933 = vmatmul.mubr.msk.f32.gmra.mxu0 %vm227_vm0, %v9910_v15  ;;  %v9890_v22 = vpop.permute.xlu1 %9889  ;;  %v10166_v15 = vld [vmem:[%s16518_s22] sm:$0xff] }
0x52e4   :  { %v9903_v10 = vadd.f32 %v9890_v22, %v9855_v24  ;;  %v9912_v12 = vmax.f32 %v9904_v23, 0.0  ;;  %v10167_v23 = vld [vmem:[%s16518_s22 + $0x8] sm:$0xff]  ;;  %v10168_v22 = vld [vmem:[%s16518_s22 + $0x10] sm:$0xff] }
0x52e6   :  { %v9911_v39 = vmax.f32 %v9903_v10, 0.0  ;;  %v10169_v10 = vld [vmem:[%s16518_s22 + $0x18] sm:$0xff] }
0x52e8   :  { %12935 = vmatprep.mubr.msk.f32.mxu0 %vm227_vm0, %v9911_v39  ;;  %v10170_v39 = vld [vmem:[%s16518_s22 + $0x20] sm:$0xff] }
0x52e9   :  { %12936 = vmatmul.mubr.msk.f32.gmra.mxu0 %vm227_vm0, %v9912_v12  ;;  %v10171_v12 = vld [vmem:[%s16518_s22 + $0x28] sm:$0xff] }
0x52ea   :  { %12987 = vmatprep.mubr.msk.f32.mxu0 %vm13452_vm5, %v16503_v58 }
0x539b   :  { %v12928_v3 = vpop.f32.mrf.mxu0 }
0x539c   :  { %v10047_v59 = vsel %vm6534_vm4, %v12928_v3, -inf }
0x539d   :  { %v10007_v14 = vpop.f32.mrf.mxu0 }
0x539e   :  { %v10046_v48 = vsel %vm6534_vm4, %v10007_v14, -inf }
0x539f   :  { %v12931_v8 = vpop.f32.mrf.mxu0 }
0x53a0   :  { %v10049_v38 = vsel %vm6534_vm4, %v12931_v8, -inf }
0x53a1   :  { %v10017_v61 = vpop.f32.mrf.mxu0 }
0x53a2   :  { %v10048_v7 = vsel %vm6534_vm4, %v10017_v61, -inf }
0x53a3   :  { %v12934_v1 = vpop.f32.mrf.mxu0 }
0x53a4   :  { %v10052_v17 = vsel %vm6534_vm4, %v12934_v1, -inf }
0x53a5   :  { %v10027_v54 = vpop.f32.mrf.mxu0  ;;  %v10053_v55 = vmax.f32 %v10047_v59, %v10052_v17 }
0x53a6   :  { %v10050_v33 = vsel %vm6534_vm4, %v10027_v54, -inf }
0x53a7   :  { %v10051_v63 = vmax.f32 %v10046_v48, %v10050_v33 }
0x53a9   :  { %v12937_v45 = vpop.f32.mrf.mxu0  ;;  %v10058_v4 = vmax.f32 %v10051_v63, %v10053_v55 }
0x53aa   :  { %v10056_v36 = vsel %vm6534_vm4, %v12937_v45, -inf }
0x53ab   :  { %v10037_v19 = vpop.f32.mrf.mxu0  ;;  %v10057_v50 = vmax.f32 %v10049_v38, %v10056_v36 }
0x53ac   :  { %v10054_v11 = vsel %vm6534_vm4, %v10037_v19, -inf }
0x53ad   :  { %v10055_v56 = vmax.f32 %v10048_v7, %v10054_v11 }
0x53af   :  { %v10059_v41 = vmax.f32 %v10055_v56, %v10057_v50  ;;  %v10444_v50 = vld [vmem:[%s13637_s20 + $0x18] sm:$0xff]  ;;  %v10443_v56 = vld [vmem:[%s13637_s20 + $0x10] sm:$0xff] }
0x53b1   :  { %v10060_v52 = vmax.f32 %v10058_v4, %v10059_v41  ;;  %v10442_v4 = vld [vmem:[%s13637_s20 + $0x8] sm:$0xff]  ;;  %v10441_v41 = vld [vmem:[%s13637_s20] sm:$0xff]  ;;  %s13453_s20 = smov [#allocation8]  }
0x53b2   :  { %s10533_s23 = sshll.u32 %s13453_s20, 4  ;;  %s10534_s23 = int_to_ptr.vmem [resolvable:$true] %s10533_s23 }
0x53b3   :  { %v10061_v31 = vrot.slane %v10060_v52, 4  ;;  %s13388_s26 = scalar_lea.vmem %s10534_s23, 32  ;;  %p13393_p1 = scmp.lt.s32.totalorder %s10534_s23, %s10534_s23 }
0x53b4   :  { %p13389_p0 = scmp.ne.s32.totalorder %s10534_s23, %s13388_s26  ;;  %p13394_p2 = scmp.lt.s32.totalorder %s13388_s26, %s13388_s26 }
0x53b5   :  { %v10062_v53 = vmax.f32 %v10060_v52, %v10061_v31  ;;  %v10318_v52 = vld [vmem:[#allocation6 + $0x38] sm:$0xff] }
0x53b6   :  { %p13395_p3 = por %p13394_p2, %p13393_p1 }
0x53b7   :  { %v10063_v26 = vrot.slane %v10062_v53, 2 }
0x53b8   :  { %p13396_p4 = pnand %p13395_p3, %p13389_p0 }
0x53b9   :  { %v10064_v62 = vmax.f32 %v10062_v53, %v10063_v26  ;;  %v10317_v26 = vld [vmem:[#allocation6 + $0x30] sm:$0xff] }
0x53bb   :  { %v10065_v34 = vrot.slane %v10064_v62, 1 }
0x53bd   :  { %v10066_v30 = vmax.f32 %v10064_v62, %v10065_v34 }
0x53bf   :  { %v10074_v2 = vsub.f32 %v12937_v45, %v10066_v30  ;;  %v10073_v32 = vsub.f32 %v10037_v19, %v10066_v30  ;;  %v10072_v16 = vsub.f32 %v12934_v1, %v10066_v30  ;;  %v10071_v0 = vsub.f32 %v10027_v54, %v10066_v30 }
0x53c0   :  { %v10070_v42 = vsub.f32 %v12931_v8, %v10066_v30  ;;  %v10069_v27 = vsub.f32 %v10017_v61, %v10066_v30  ;;  %v10068_v49 = vsub.f32 %v12928_v3, %v10066_v30  ;;  %v10067_v40 = vsub.f32 %v10007_v14, %v10066_v30  ;;  %v10172_v3 = vld [vmem:[%s16518_s22 + $0x30] sm:$0xff]  ;;  %v10173_v14 = vld [vmem:[%s16518_s22 + $0x38] sm:$0xff]  ;;  %v10316_v30 = vld [vmem:[#allocation6 + $0x28] sm:$0xff] }
0x53c1   :  { %v10089_v18 = vmul.f32 1.442695, %v10074_v2  ;;  %v10087_v20 = vmul.f32 1.442695, %v10073_v32  ;;  %v10085_v28 = vmul.f32 1.442695, %v10072_v16 }
0x53c2   :  { %v10083_v29 = vmul.f32 1.442695, %v10071_v0  ;;  %v10081_v9 = vmul.f32 1.442695, %v10070_v42  ;;  %v10079_v37 = vmul.f32 1.442695, %v10069_v27 }
0x53c3   :  { %13361 = vpow2.f32 %v10089_v18  ;;  %v10077_v21 = vmul.f32 1.442695, %v10068_v49  ;;  %v10075_v60 = vmul.f32 1.442695, %v10067_v40  ;;  %v10315_v16 = vld [vmem:[#allocation6 + $0x20] sm:$0xff]  ;;  %v10313_v27 = vld [vmem:[#allocation6 + $0x10] sm:$0xff] }
0x53c4   :  { %13363 = vpow2.f32 %v10087_v20  ;;  %v10314_v20 = vld [vmem:[#allocation6 + $0x18] sm:$0xff] }
0x53c5   :  { %13365 = vpow2.f32 %v10085_v28 }
0x53c6   :  { %13367 = vpow2.f32 %v10083_v29 }
0x53c7   :  { %13369 = vpow2.f32 %v10081_v9  ;;  %v10312_v9 = vld [vmem:[#allocation6 + $0x8] sm:$0xff] }
0x53c8   :  { %13371 = vpow2.f32 %v10079_v37 }
0x53c9   :  { %13373 = vpow2.f32 %v10077_v21 }
0x53ca   :  { %13375 = vpow2.f32 %v10075_v60  ;;  %v10311_v60 = vld [vmem:[#allocation6] sm:$0xff] }
0x53d0   :  { %v13362_v44 = vpop.eup %13361 }
0x53d1   :  { %12939 = vmatpush3.msra.mxu1 %v13362_v44  ;;  %v13364_v6 = vpop.eup %13363 }
0x53d2   :  { %12940 = vmatprep.subr.mxu1 %v16503_v58  ;;  %v13366_v25 = vpop.eup %13365 }
0x53d3   :  { %12941 = vmatpush3.msra.mxu1 %v13364_v6  ;;  %v13368_v43 = vpop.eup %13367 }
0x53d4   :  { %12942 = vmatprep.subr.mxu1 %v16503_v58  ;;  %v13370_v47 = vpop.eup %13369 }
0x53d5   :  { %12943 = vmatpush3.msra.mxu1 %v13366_v25  ;;  %v13372_v13 = vpop.eup %13371 }
0x53d6   :  { %12944 = vmatprep.subr.mxu1 %v16503_v58  ;;  %v13374_v5 = vpop.eup %13373 }
0x53d7   :  { %12945 = vmatpush3.msra.mxu1 %v13368_v43  ;;  %v13376_v46 = vpop.eup %13375 }
0x53d8   :  { %12946 = vmatprep.subr.mxu1 %v16503_v58 }
0x53d9   :  { %12947 = vmatpush3.msra.mxu1 %v13370_v47 }
0x53da   :  { %12948 = vmatprep.subr.mxu1 %v16503_v58 }
0x53db   :  { %12949 = vmatpush3.msra.mxu1 %v13372_v13 }
0x53dc   :  { %12950 = vmatprep.subr.mxu1 %v16503_v58 }
0x53dd   :  { %12951 = vmatpush3.msra.mxu1 %v13374_v5 }
0x53de   :  { %12952 = vmatprep.subr.mxu1 %v16503_v58 }
0x53df   :  { %12953 = vmatpush3.msra.mxu1 %v13376_v46 }
0x53e0   :  { %12955 = vmatmul.mubr.msk.f32.vlgmr.msra.gmra.mxu1 %vm9136_vm6, %v10091_v51 }
0x53e1   :  { %12959 = vmatprep.mubr.msk.f32.mxu1 %vm9210_vm7, %v10166_v15 }
0x54a0   :  { %v10161_v35 = vpop.f32.mrf.mxu1 }
0x54a1   :  { %13377 = vrcp.f32 %v10161_v35 }
0x54a2   :  { %v12956_v57 = vpop.f32.mrf.mxu1 }
0x54ae   :  { %v13378_v24 = vpop.eup %13377 }
0x54af   :  { %12957 = vmatprep.subr.mxu1 %v13378_v24 }
0x54b0   :  { %12958 = vmatpush3.msra.mxu1 %v13378_v24 }
0x54b1   :  { %12960 = vmatmul.mubr.msk.f32.vlgmr.msra.gmra.mxu1 %vm9210_vm7, %v10167_v23  ;;  %12990 = vmatprep.subr.mxu1 %v16503_v58 }
0x54b2   :  { %12962 = vmatprep.mubr.msk.f32.mxu1 %vm9210_vm7, %v10168_v22  ;;  %12991 = vmatpush3.msra.mxu1 %v10444_v50 }
0x54b3   :  { %12992 = vmatprep.subr.mxu1 %v16503_v58 }
0x54b4   :  { %12993 = vmatpush3.msra.mxu1 %v10443_v56 }
0x54b5   :  { %12963 = vmatmul.mubr.msk.f32.gmra.mxu1 %vm9210_vm7, %v10169_v10  ;;  %12994 = vmatprep.subr.mxu1 %v16503_v58 }
0x54b6   :  { %12965 = vmatprep.mubr.msk.f32.mxu1 %vm9210_vm7, %v10170_v39  ;;  %12995 = vmatpush3.msra.mxu1 %v10442_v4 }
0x54b7   :  { %12996 = vmatprep.subr.mxu1 %v16503_v58 }
0x54b8   :  { %12997 = vmatpush3.msra.mxu1 %v10441_v41 }
0x54b9   :  { %12966 = vmatmul.mubr.msk.f32.gmra.mxu1 %vm9210_vm7, %v10171_v12 }
0x54ba   :  { %12968 = vmatprep.mubr.msk.f32.mxu1 %vm9210_vm7, %v10172_v3 }
0x54bd   :  { %12969 = vmatmul.mubr.msk.f32.gmra.mxu1 %vm9210_vm7, %v10173_v14 }
0x54be   :  { %12998 = vmatprep.mubr.msk.f32.mxu1 %vm13452_vm5, %v16503_v58 }
0x5571   :  { %v12961_v8 = vpop.f32.mrf.mxu1 }
0x5572   :  { %v10304_v11 = vmul.f32 %v13374_v5, %v12961_v8 }
0x5573   :  { %v10264_v61 = vpop.f32.mrf.mxu1 }
0x5574   :  { %v10303_v55 = vmul.f32 %v13376_v46, %v10264_v61 }
0x5575   :  { %v12964_v1 = vpop.f32.mrf.mxu1 }
0x5576   :  { %v10306_v38 = vmul.f32 %v13370_v47, %v12964_v1  ;;  %v11065_v47 = vld [vmem:[%s13642_s27] ss:$0 sm:$0xff] }
0x5577   :  { %v10274_v54 = vpop.f32.mrf.mxu1 }
0x5578   :  { %v10305_v7 = vmul.f32 %v13372_v13, %v10274_v54 }
0x5579   :  { %v12967_v33 = vpop.f32.mrf.mxu1 }
0x557a   :  { %v10308_v19 = vmul.f32 %v13366_v25, %v12967_v33 }
0x557b   :  { %v10284_v45 = vpop.f32.mrf.mxu1 }
0x557c   :  { %v10307_v59 = vmul.f32 %v13368_v43, %v10284_v45 }
0x557d   :  { %v12970_v48 = vpop.f32.mrf.mxu1 }
0x557e   :  { %v10310_v17 = vmul.f32 %v13362_v44, %v12970_v48 }
0x557f   :  { %v10294_v36 = vpop.f32.mrf.mxu1 }
0x5580   :  { %v10309_v63 = vmul.f32 %v13364_v6, %v10294_v36  ;;  %10356 = vperm.xlu1 %13046, %v10310_v17   ;;  %v10367_v6 = vld [vmem:[%s13632_s30] sm:$0x3] }
0x5582   :  { %10351 = vperm.xlu0 %13045, %v10309_v63  }
0x5584   :  { %10346 = vperm.xlu1 %13046, %v10308_v19  }
0x5586   :  { %10341 = vperm.xlu0 %13045, %v10307_v59  }
0x5588   :  { %10336 = vperm.xlu1 %13046, %v10306_v38  }
0x558a   :  { %10331 = vperm.xlu0 %13045, %v10305_v7  }
0x558c   :  { %10326 = vperm.xlu1 %13046, %v10304_v11  }
0x558e   :  { %10321 = vperm.xlu0 %13045, %v10303_v55  }
0x55fb   :  { %v10357_v31 = vpop.permute.xlu1 %10356 }
0x55fc   :  { %v10366_v53 = vmul.f32 %v10357_v31, %v10318_v52 }
0x55fd   :  { %v10352_v62 = vpop.permute.xlu0 %10351 }
0x55fe   :  { %v10365_v34 = vmul.f32 %v10352_v62, %v10317_v26  ;;  %12972 = vmatpush3.msra.mxu0 %v10366_v53 }
0x55ff   :  { %12973 = vmatprep.subr.mxu0 %v16503_v58  ;;  %v10347_v2 = vpop.permute.xlu1 %10346 }
0x5600   :  { %v10364_v32 = vmul.f32 %v10347_v2, %v10316_v30  ;;  %12974 = vmatpush3.msra.mxu0 %v10365_v34 }
0x5601   :  { %12975 = vmatprep.subr.mxu0 %v16503_v58  ;;  %v10342_v18 = vpop.permute.xlu0 %10341 }
0x5602   :  { %v10363_v0 = vmul.f32 %v10342_v18, %v10315_v16  ;;  %12976 = vmatpush3.msra.mxu0 %v10364_v32 }
0x5603   :  { %v10337_v42 = vpop.permute.xlu1 %10336  ;;  %12977 = vmatprep.subr.mxu0 %v16503_v58 }
0x5604   :  { %v10362_v28 = vmul.f32 %v10337_v42, %v10314_v20  ;;  %12978 = vmatpush3.msra.mxu0 %v10363_v0 }
0x5605   :  { %12979 = vmatprep.subr.mxu0 %v16503_v58  ;;  %v10332_v29 = vpop.permute.xlu0 %10331 }
0x5606   :  { %v10361_v49 = vmul.f32 %v10332_v29, %v10313_v27  ;;  %12980 = vmatpush3.msra.mxu0 %v10362_v28 }
0x5607   :  { %v10327_v40 = vpop.permute.xlu1 %10326  ;;  %12981 = vmatprep.subr.mxu0 %v16503_v58 }
0x5608   :  { %v10360_v37 = vmul.f32 %v10327_v40, %v10312_v9  ;;  %12982 = vmatpush3.msra.mxu0 %v10361_v49 }
0x5609   :  { %12983 = vmatprep.subr.mxu0 %v16503_v58  ;;  %v10322_v21 = vpop.permute.xlu0 %10321 }
0x560a   :  { %v10359_v44 = vmul.f32 %v10322_v21, %v10311_v60  ;;  %12984 = vmatpush3.msra.mxu0 %v10360_v37 }
0x560b   :  { %12985 = vmatprep.subr.mxu0 %v16503_v58 }
0x560c   :  { %12986 = vmatpush3.msra.mxu0 %v10359_v44 }
0x560d   :  { %12988 = vmatmul.mubr.msk.f32.vlgmr.msra.gmra.mxu0 %vm9136_vm6, %v10367_v6 }
0x56cd   :  { %v10437_v25 = vpop.f32.mrf.mxu0 }
0x56ce   :  { %12999 = vmatmul.mubr.msk.f32.vlgmr.msra.gmra.mxu1 %vm227_vm0, %v10437_v25 }
0x56cf   :  { %v12989_v43 = vpop.f32.mrf.mxu0 }
0x578e   :  { %v10521_v13 = vpop.f32.mrf.mxu1 }
0x578f   :  { %v10522_v5 = vadd.f32 %v11065_v47, %v10521_v13 }
0x5790   :  { %v13000_v51 = vpop.f32.mrf.mxu1 }
0x5791   :  { %10526 = vst.msk [vmem:[#allocation8] sm:$0x3] %vm10525_vm8, %v10522_v5 }
0x5792   :  { %13399 = shalt.err (!%p13396_p4)
}
0x5793   :  { %10536 = dma.vmem_to_hbm [thread:$0]  %s10534_s23, 32, %s13647_s4, [#allocation9]  }
0x5794   :  { %13408 = dma.done.wait [#allocation9], 32  }
0x5795   :  { %13409 = vsyncadd [#allocation9], 4294967264 }
0x5796   :  { %10540 = vsyncpa [#allocation9], 1 }

</bundles_post_ra>
